<compile_context>
chip_gen: v6e
topology: v6e:2x2x1
jax: 0.10.0
libtpu: 0.0.40
codegen_flags: <defaults>
</compile_context>

<pallas_src>
import jax
import jax.numpy as jnp
import numpy as np
from jax import lax
from jax.experimental import pallas as pl
from jax.experimental.pallas import tpu as pltpu

INPUT_DIM = 1
HIDDEN_DIM = 64          # H (logical, matches torch)
HP = 128                 # lane-padded hidden width (one full vreg per gate slab)
OUTPUT_DIM = 1
N_LAYERS = 2
SEQ_LEN = 8
H = HIDDEN_DIM


# ---------------------------------------------------------------------------
# Kernel
# ---------------------------------------------------------------------------
def gru_kernel(x_ref,                                     # SMEM (seq,) f32
               wih0_ref, bgi0_ref, whh0_ref, bgh0_ref,    # layer 0 (padded)
               w1_ref, b1_ref,                            # layer 1 (fused, padded)
               wlin_ref, blin_ref,                        # linear head (padded)
               out_ref):
    seq = x_ref.shape[0]

    # Hoist all weight loads out of the recurrence.
    wih0 = wih0_ref[...]       # (1, 3*HP)
    bgi0 = bgi0_ref[...]       # (1, 3*HP)   (only n-slab nonzero)
    whh0 = whh0_ref[...]       # (HP, 3*HP)
    bgh0 = bgh0_ref[...]       # (1, 3*HP)   (r/z slabs hold b_ih+b_hh)
    w1 = w1_ref[...]           # (2*HP, 4*HP)
    b1 = b1_ref[...]           # (1, 4*HP)

    def step(t, carry):
        h0, h1 = carry                         # (1, HP) each; lanes >= H are 0
        x_t = x_ref[t]                         # scalar (sreg) — INPUT_DIM == 1

        # ---- layer 0: gi via VPU broadcast-mul, gh via one MXU matmul (K=128).
        gi0 = x_t * wih0 + bgi0                                          # (1,3HP)
        gh0 = jnp.dot(h0, whh0, preferred_element_type=jnp.float32) + bgh0
        r0 = jax.nn.sigmoid(gi0[:, 0:HP] + gh0[:, 0:HP])
        z0 = jax.nn.sigmoid(gi0[:, HP:2 * HP] + gh0[:, HP:2 * HP])
        n0 = jnp.tanh(gi0[:, 2 * HP:3 * HP] + r0 * gh0[:, 2 * HP:3 * HP])
        h0n = n0 + z0 * (h0 - n0)              # == (1-z)*n + z*h

        # TODO(synk): nn.GRU inter-layer dropout (p=0.1) only applies in torch
        # training mode with torch RNG; eval-mode (identity) semantics here.

        # ---- layer 1: one fused (1,2*HP)@(2*HP,4*HP) matmul (K=256).
        # column slabs: [r: gi+gh | z: gi+gh | gi_n | gh_n]
        xh = jnp.concatenate([h0n, h1], axis=1)                          # (1,2HP)
        g1 = jnp.dot(xh, w1, preferred_element_type=jnp.float32) + b1    # (1,4HP)
        r1 = jax.nn.sigmoid(g1[:, 0:HP])
        z1 = jax.nn.sigmoid(g1[:, HP:2 * HP])
        n1 = jnp.tanh(g1[:, 2 * HP:3 * HP] + r1 * g1[:, 3 * HP:4 * HP])
        h1n = n1 + z1 * (h1 - n1)
        return (h0n, h1n)

    h0 = jnp.zeros((1, HP), jnp.float32)       # torch init_hidden(): zeros
    h1 = jnp.zeros((1, HP), jnp.float32)
    h0, h1 = lax.fori_loop(0, seq, step, (h0, h1), unroll=True)

    # Linear head once, on the final last-layer hidden (== linear(gru_out[-1])).
    out_ref[...] = (jnp.dot(h1, wlin_ref[...], preferred_element_type=jnp.float32)
                    + blin_ref[...])


# ---------------------------------------------------------------------------
# Parameter packing (raw "torch-transposed" params -> padded/fused kernel params)
# ---------------------------------------------------------------------------
def pack_params(params):
    (w_ih0, w_hh0, b_ih0, b_hh0,
     w_ih1, w_hh1, b_ih1, b_hh1, w_lin, b_lin) = params

    def slab_cols(w):
        """(K, 3H) -> (K, 3*HP): each gate in its own 128-lane slab, zero-padded."""
        out = jnp.zeros((w.shape[0], 3 * HP), jnp.float32)
        for g in range(3):
            out = out.at[:, g * HP:g * HP + H].set(w[:, g * H:(g + 1) * H])
        return out

    # layer 0: gi comes from a scalar broadcast (x * row), gh from h0 @ whh0.
    wih0_p = slab_cols(w_ih0)                                           # (1, 3*HP)
    bgi0_p = (jnp.zeros((1, 3 * HP), jnp.float32)
              .at[:, 2 * HP:2 * HP + H].set(b_ih0[:, 2 * H:3 * H]))     # only n
    whh0_p = jnp.zeros((HP, 3 * HP), jnp.float32).at[:H, :].set(slab_cols(w_hh0))
    bgh0_p = (jnp.zeros((1, 3 * HP), jnp.float32)
              .at[:, 0:H].set(b_ih0[:, 0:H] + b_hh0[:, 0:H])            # r folded
              .at[:, HP:HP + H].set(b_ih0[:, H:2 * H] + b_hh0[:, H:2 * H])  # z folded
              .at[:, 2 * HP:2 * HP + H].set(b_hh0[:, 2 * H:3 * H]))     # gh_n

    # layer 1: fused weight for concat([h0, h1]); 4 column slabs: r, z, gi_n, gh_n.
    w1_p = (jnp.zeros((2 * HP, 4 * HP), jnp.float32)
            .at[0:H, 0:H].set(w_ih1[:, 0:H])
            .at[0:H, HP:HP + H].set(w_ih1[:, H:2 * H])
            .at[0:H, 2 * HP:2 * HP + H].set(w_ih1[:, 2 * H:3 * H])
            .at[HP:HP + H, 0:H].set(w_hh1[:, 0:H])
            .at[HP:HP + H, HP:HP + H].set(w_hh1[:, H:2 * H])
            .at[HP:HP + H, 3 * HP:3 * HP + H].set(w_hh1[:, 2 * H:3 * H]))
    b1_p = (jnp.zeros((1, 4 * HP), jnp.float32)
            .at[:, 0:H].set(b_ih1[:, 0:H] + b_hh1[:, 0:H])
            .at[:, HP:HP + H].set(b_ih1[:, H:2 * H] + b_hh1[:, H:2 * H])
            .at[:, 2 * HP:2 * HP + H].set(b_ih1[:, 2 * H:3 * H])
            .at[:, 3 * HP:3 * HP + H].set(b_hh1[:, 2 * H:3 * H]))

    # linear head
    wlin_p = jnp.zeros((HP, OUTPUT_DIM), jnp.float32).at[:H, :].set(w_lin)

    return (wih0_p, bgi0_p, whh0_p, bgh0_p, w1_p, b1_p, wlin_p, b_lin)


# ---------------------------------------------------------------------------
# Wrapper
# ---------------------------------------------------------------------------
def gru_forward(x_seq, params):
    """x_seq: (seq, input_dim=1) float32. Returns (output_dim,) == torch `out[-1]`."""
    seq = x_seq.shape[0]
    assert x_seq.shape[1] == INPUT_DIM == 1
    x_flat = x_seq.reshape(seq).astype(jnp.float32)
    packed = pack_params(params)

    vmem = pl.BlockSpec(memory_space=pltpu.MemorySpace.VMEM)
    smem = pl.BlockSpec(memory_space=pltpu.MemorySpace.SMEM)

    out = pl.pallas_call(
        gru_kernel,
        out_shape=jax.ShapeDtypeStruct((1, OUTPUT_DIM), jnp.float32),
        in_specs=[smem] + [vmem] * 8,
        out_specs=vmem,
    )(x_flat, *packed)
    return out[0]                       # shape (OUTPUT_DIM,)


# ---------------------------------------------------------------------------
# Init + pure-JAX reference
# ---------------------------------------------------------------------------
def init_params(key):
    """Deterministic init mirroring PyTorch's uniform(-1/sqrt(H), 1/sqrt(H)).
    Weights are stored transposed vs. torch: (in_features, 3H) / (H, out)."""
    k = 1.0 / np.sqrt(H)
    ks = jax.random.split(key, 10)
    u = lambda kk, shape: jax.random.uniform(kk, shape, jnp.float32, -k, k)
    w_ih0 = u(ks[0], (INPUT_DIM, 3 * H))
    w_hh0 = u(ks[1], (H, 3 * H))
    b_ih0 = u(ks[2], (1, 3 * H))
    b_hh0 = u(ks[3], (1, 3 * H))
    w_ih1 = u(ks[4], (H, 3 * H))
    w_hh1 = u(ks[5], (H, 3 * H))
    b_ih1 = u(ks[6], (1, 3 * H))
    b_hh1 = u(ks[7], (1, 3 * H))
    w_lin = u(ks[8], (H, OUTPUT_DIM))
    b_lin = u(ks[9], (1, OUTPUT_DIM))
    return (w_ih0, w_hh0, b_ih0, b_hh0,
            w_ih1, w_hh1, b_ih1, b_hh1, w_lin, b_lin)


def _gru_cell_ref(x, h, w_ih, w_hh, b_ih, b_hh):
    gi = jnp.dot(x, w_ih) + b_ih
    gh = jnp.dot(h, w_hh) + b_hh
    r = jax.nn.sigmoid(gi[:, 0:H] + gh[:, 0:H])
    z = jax.nn.sigmoid(gi[:, H:2 * H] + gh[:, H:2 * H])
    n = jnp.tanh(gi[:, 2 * H:3 * H] + r * gh[:, 2 * H:3 * H])
    return (1.0 - z) * n + z * h


def gru_ref(x_seq, params):
    (w_ih0, w_hh0, b_ih0, b_hh0,
     w_ih1, w_hh1, b_ih1, b_hh1, w_lin, b_lin) = params
    h0 = jnp.zeros((1, H), jnp.float32)
    h1 = jnp.zeros((1, H), jnp.float32)
    for t in range(x_seq.shape[0]):
        x = x_seq[t].reshape(1, INPUT_DIM).astype(jnp.float32)
        h0 = _gru_cell_ref(x, h0, w_ih0, w_hh0, b_ih0, b_hh0)
        h1 = _gru_cell_ref(h0, h1, w_ih1, w_hh1, b_ih1, b_hh1)
    return (h1 @ w_lin + b_lin)[0]


if __name__ == "__main__":
    key = jax.random.PRNGKey(0)
    pkey, xkey = jax.random.split(key)
    params = init_params(pkey)
    x = jax.random.normal(xkey, (SEQ_LEN, INPUT_DIM), jnp.float32)

    out = jax.block_until_ready(gru_forward(x, params))
    ref = jax.block_until_ready(gru_ref(x, params))
    np.testing.assert_allclose(np.asarray(out), np.asarray(ref),
                               rtol=1e-4, atol=1e-5)
    print("KERNEL_OK")
</pallas_src>

<mosaic_0001>
module attributes {stable_mosaic.version = 11 : i64} {
  func.func @gru_kernel(%arg0: memref<8xf32, #tpu.memory_space<smem>>, %arg1: memref<1x384xf32, #tpu.memory_space<vmem>>, %arg2: memref<1x384xf32, #tpu.memory_space<vmem>>, %arg3: memref<128x384xf32, #tpu.memory_space<vmem>>, %arg4: memref<1x384xf32, #tpu.memory_space<vmem>>, %arg5: memref<256x512xf32, #tpu.memory_space<vmem>>, %arg6: memref<1x512xf32, #tpu.memory_space<vmem>>, %arg7: memref<128x1xf32, #tpu.memory_space<vmem>>, %arg8: memref<1x1xf32, #tpu.memory_space<vmem>>, %arg9: memref<1x1xf32, #tpu.memory_space<vmem>>) attributes {dimension_semantics = [], scalar_prefetch = 0 : i64, scratch_operands = 0 : i64, tpu.core_type = #tpu.core_type<tc>} {
    %c0 = arith.constant 0 : index
    %c0_0 = arith.constant 0 : index
    %0 = vector.load %arg1[%c0, %c0_0] : memref<1x384xf32, #tpu.memory_space<vmem>>, vector<1x384xf32>
    %c0_1 = arith.constant 0 : index
    %c0_2 = arith.constant 0 : index
    %1 = vector.load %arg2[%c0_1, %c0_2] : memref<1x384xf32, #tpu.memory_space<vmem>>, vector<1x384xf32>
    %c0_3 = arith.constant 0 : index
    %c0_4 = arith.constant 0 : index
    %2 = vector.load %arg3[%c0_3, %c0_4] : memref<128x384xf32, #tpu.memory_space<vmem>>, vector<128x384xf32>
    %c0_5 = arith.constant 0 : index
    %c0_6 = arith.constant 0 : index
    %3 = vector.load %arg4[%c0_5, %c0_6] : memref<1x384xf32, #tpu.memory_space<vmem>>, vector<1x384xf32>
    %c0_7 = arith.constant 0 : index
    %c0_8 = arith.constant 0 : index
    %4 = vector.load %arg5[%c0_7, %c0_8] : memref<256x512xf32, #tpu.memory_space<vmem>>, vector<256x512xf32>
    %c0_9 = arith.constant 0 : index
    %c0_10 = arith.constant 0 : index
    %5 = vector.load %arg6[%c0_9, %c0_10] : memref<1x512xf32, #tpu.memory_space<vmem>>, vector<1x512xf32>
    %cst = arith.constant 0.000000e+00 : f32
    %6 = vector.broadcast %cst : f32 to vector<1x128xf32>
    %cst_11 = arith.constant 0.000000e+00 : f32
    %7 = vector.broadcast %cst_11 : f32 to vector<1x128xf32>
    %c0_i32 = arith.constant 0 : i32
    %8 = arith.index_cast %c0_i32 : i32 to index
    %9 = memref.load %arg0[%8] : memref<8xf32, #tpu.memory_space<smem>>
    %10 = vector.broadcast %9 : f32 to vector<1x384xf32>
    %11 = arith.mulf %10, %0 : vector<1x384xf32>
    %12 = arith.addf %11, %1 : vector<1x384xf32>
    %cst_12 = arith.constant dense<0.000000e+00> : vector<1x384xf32>
    %13 = tpu.matmul %6, %2, %cst_12 {dimension_numbers = #tpu.dot_dimension_numbers<[1], [0], [0], [1], [0, 0, 1, 1], [], []>} : vector<1x128xf32>, vector<128x384xf32>, vector<1x384xf32> -> vector<1x384xf32>
    %14 = arith.addf %13, %3 : vector<1x384xf32>
    %15 = vector.extract_strided_slice %12 {offsets = [0, 0], sizes = [1, 128], strides = [1, 1]} : vector<1x384xf32> to vector<1x128xf32>
    %16 = vector.extract_strided_slice %14 {offsets = [0, 0], sizes = [1, 128], strides = [1, 1]} : vector<1x384xf32> to vector<1x128xf32>
    %17 = arith.addf %15, %16 : vector<1x128xf32>
    %18 = arith.negf %17 : vector<1x128xf32>
    %19 = math.exp %18 : vector<1x128xf32>
    %cst_13 = arith.constant 1.000000e+00 : f32
    %20 = vector.broadcast %cst_13 : f32 to vector<1x128xf32>
    %21 = arith.addf %20, %19 : vector<1x128xf32>
    %22 = arith.divf %20, %21 : vector<1x128xf32>
    %23 = vector.extract_strided_slice %12 {offsets = [0, 128], sizes = [1, 128], strides = [1, 1]} : vector<1x384xf32> to vector<1x128xf32>
    %24 = vector.extract_strided_slice %14 {offsets = [0, 128], sizes = [1, 128], strides = [1, 1]} : vector<1x384xf32> to vector<1x128xf32>
    %25 = arith.addf %23, %24 : vector<1x128xf32>
    %26 = arith.negf %25 : vector<1x128xf32>
    %27 = math.exp %26 : vector<1x128xf32>
    %cst_14 = arith.constant 1.000000e+00 : f32
    %28 = vector.broadcast %cst_14 : f32 to vector<1x128xf32>
    %29 = arith.addf %28, %27 : vector<1x128xf32>
    %30 = arith.divf %28, %29 : vector<1x128xf32>
    %31 = vector.extract_strided_slice %12 {offsets = [0, 256], sizes = [1, 128], strides = [1, 1]} : vector<1x384xf32> to vector<1x128xf32>
    %32 = vector.extract_strided_slice %14 {offsets = [0, 256], sizes = [1, 128], strides = [1, 1]} : vector<1x384xf32> to vector<1x128xf32>
    %33 = arith.mulf %22, %32 : vector<1x128xf32>
    %34 = arith.addf %31, %33 : vector<1x128xf32>
    %35 = math.tanh %34 : vector<1x128xf32>
    %36 = arith.subf %6, %35 : vector<1x128xf32>
    %37 = arith.mulf %30, %36 : vector<1x128xf32>
    %38 = arith.addf %35, %37 : vector<1x128xf32>
    %39 = tpu.concatenate %38, %7 in 1 : vector<1x128xf32>, vector<1x128xf32> -> vector<1x256xf32>
    %cst_15 = arith.constant dense<0.000000e+00> : vector<1x512xf32>
    %40 = tpu.matmul %39, %4, %cst_15 {dimension_numbers = #tpu.dot_dimension_numbers<[1], [0], [0], [1], [0, 0, 1, 1], [], []>} : vector<1x256xf32>, vector<256x512xf32>, vector<1x512xf32> -> vector<1x512xf32>
    %41 = arith.addf %40, %5 : vector<1x512xf32>
    %42 = vector.extract_strided_slice %41 {offsets = [0, 0], sizes = [1, 128], strides = [1, 1]} : vector<1x512xf32> to vector<1x128xf32>
    %43 = arith.negf %42 : vector<1x128xf32>
    %44 = math.exp %43 : vector<1x128xf32>
    %cst_16 = arith.constant 1.000000e+00 : f32
    %45 = vector.broadcast %cst_16 : f32 to vector<1x128xf32>
    %46 = arith.addf %45, %44 : vector<1x128xf32>
    %47 = arith.divf %45, %46 : vector<1x128xf32>
    %48 = vector.extract_strided_slice %41 {offsets = [0, 128], sizes = [1, 128], strides = [1, 1]} : vector<1x512xf32> to vector<1x128xf32>
    %49 = arith.negf %48 : vector<1x128xf32>
    %50 = math.exp %49 : vector<1x128xf32>
    %cst_17 = arith.constant 1.000000e+00 : f32
    %51 = vector.broadcast %cst_17 : f32 to vector<1x128xf32>
    %52 = arith.addf %51, %50 : vector<1x128xf32>
    %53 = arith.divf %51, %52 : vector<1x128xf32>
    %54 = vector.extract_strided_slice %41 {offsets = [0, 256], sizes = [1, 128], strides = [1, 1]} : vector<1x512xf32> to vector<1x128xf32>
    %55 = vector.extract_strided_slice %41 {offsets = [0, 384], sizes = [1, 128], strides = [1, 1]} : vector<1x512xf32> to vector<1x128xf32>
    %56 = arith.mulf %47, %55 : vector<1x128xf32>
    %57 = arith.addf %54, %56 : vector<1x128xf32>
    %58 = math.tanh %57 : vector<1x128xf32>
    %59 = arith.subf %7, %58 : vector<1x128xf32>
    %60 = arith.mulf %53, %59 : vector<1x128xf32>
    %61 = arith.addf %58, %60 : vector<1x128xf32>
    %c1_i32 = arith.constant 1 : i32
    %62 = arith.index_cast %c1_i32 : i32 to index
    %63 = memref.load %arg0[%62] : memref<8xf32, #tpu.memory_space<smem>>
    %64 = vector.broadcast %63 : f32 to vector<1x384xf32>
    %65 = arith.mulf %64, %0 : vector<1x384xf32>
    %66 = arith.addf %65, %1 : vector<1x384xf32>
    %cst_18 = arith.constant dense<0.000000e+00> : vector<1x384xf32>
    %67 = tpu.matmul %38, %2, %cst_18 {dimension_numbers = #tpu.dot_dimension_numbers<[1], [0], [0], [1], [0, 0, 1, 1], [], []>} : vector<1x128xf32>, vector<128x384xf32>, vector<1x384xf32> -> vector<1x384xf32>
    %68 = arith.addf %67, %3 : vector<1x384xf32>
    %69 = vector.extract_strided_slice %66 {offsets = [0, 0], sizes = [1, 128], strides = [1, 1]} : vector<1x384xf32> to vector<1x128xf32>
    %70 = vector.extract_strided_slice %68 {offsets = [0, 0], sizes = [1, 128], strides = [1, 1]} : vector<1x384xf32> to vector<1x128xf32>
    %71 = arith.addf %69, %70 : vector<1x128xf32>
    %72 = arith.negf %71 : vector<1x128xf32>
    %73 = math.exp %72 : vector<1x128xf32>
    %cst_19 = arith.constant 1.000000e+00 : f32
    %74 = vector.broadcast %cst_19 : f32 to vector<1x128xf32>
    %75 = arith.addf %74, %73 : vector<1x128xf32>
    %76 = arith.divf %74, %75 : vector<1x128xf32>
    %77 = vector.extract_strided_slice %66 {offsets = [0, 128], sizes = [1, 128], strides = [1, 1]} : vector<1x384xf32> to vector<1x128xf32>
    %78 = vector.extract_strided_slice %68 {offsets = [0, 128], sizes = [1, 128], strides = [1, 1]} : vector<1x384xf32> to vector<1x128xf32>
    %79 = arith.addf %77, %78 : vector<1x128xf32>
    %80 = arith.negf %79 : vector<1x128xf32>
    %81 = math.exp %80 : vector<1x128xf32>
    %cst_20 = arith.constant 1.000000e+00 : f32
    %82 = vector.broadcast %cst_20 : f32 to vector<1x128xf32>
    %83 = arith.addf %82, %81 : vector<1x128xf32>
    %84 = arith.divf %82, %83 : vector<1x128xf32>
    %85 = vector.extract_strided_slice %66 {offsets = [0, 256], sizes = [1, 128], strides = [1, 1]} : vector<1x384xf32> to vector<1x128xf32>
    %86 = vector.extract_strided_slice %68 {offsets = [0, 256], sizes = [1, 128], strides = [1, 1]} : vector<1x384xf32> to vector<1x128xf32>
    %87 = arith.mulf %76, %86 : vector<1x128xf32>
    %88 = arith.addf %85, %87 : vector<1x128xf32>
    %89 = math.tanh %88 : vector<1x128xf32>
    %90 = arith.subf %38, %89 : vector<1x128xf32>
    %91 = arith.mulf %84, %90 : vector<1x128xf32>
    %92 = arith.addf %89, %91 : vector<1x128xf32>
    %93 = tpu.concatenate %92, %61 in 1 : vector<1x128xf32>, vector<1x128xf32> -> vector<1x256xf32>
    %cst_21 = arith.constant dense<0.000000e+00> : vector<1x512xf32>
    %94 = tpu.matmul %93, %4, %cst_21 {dimension_numbers = #tpu.dot_dimension_numbers<[1], [0], [0], [1], [0, 0, 1, 1], [], []>} : vector<1x256xf32>, vector<256x512xf32>, vector<1x512xf32> -> vector<1x512xf32>
    %95 = arith.addf %94, %5 : vector<1x512xf32>
    %96 = vector.extract_strided_slice %95 {offsets = [0, 0], sizes = [1, 128], strides = [1, 1]} : vector<1x512xf32> to vector<1x128xf32>
    %97 = arith.negf %96 : vector<1x128xf32>
    %98 = math.exp %97 : vector<1x128xf32>
    %cst_22 = arith.constant 1.000000e+00 : f32
    %99 = vector.broadcast %cst_22 : f32 to vector<1x128xf32>
    %100 = arith.addf %99, %98 : vector<1x128xf32>
    %101 = arith.divf %99, %100 : vector<1x128xf32>
    %102 = vector.extract_strided_slice %95 {offsets = [0, 128], sizes = [1, 128], strides = [1, 1]} : vector<1x512xf32> to vector<1x128xf32>
    %103 = arith.negf %102 : vector<1x128xf32>
    %104 = math.exp %103 : vector<1x128xf32>
    %cst_23 = arith.constant 1.000000e+00 : f32
    %105 = vector.broadcast %cst_23 : f32 to vector<1x128xf32>
    %106 = arith.addf %105, %104 : vector<1x128xf32>
    %107 = arith.divf %105, %106 : vector<1x128xf32>
    %108 = vector.extract_strided_slice %95 {offsets = [0, 256], sizes = [1, 128], strides = [1, 1]} : vector<1x512xf32> to vector<1x128xf32>
    %109 = vector.extract_strided_slice %95 {offsets = [0, 384], sizes = [1, 128], strides = [1, 1]} : vector<1x512xf32> to vector<1x128xf32>
    %110 = arith.mulf %101, %109 : vector<1x128xf32>
    %111 = arith.addf %108, %110 : vector<1x128xf32>
    %112 = math.tanh %111 : vector<1x128xf32>
    %113 = arith.subf %61, %112 : vector<1x128xf32>
    %114 = arith.mulf %107, %113 : vector<1x128xf32>
    %115 = arith.addf %112, %114 : vector<1x128xf32>
    %c2_i32 = arith.constant 2 : i32
    %116 = arith.index_cast %c2_i32 : i32 to index
    %117 = memref.load %arg0[%116] : memref<8xf32, #tpu.memory_space<smem>>
    %118 = vector.broadcast %117 : f32 to vector<1x384xf32>
    %119 = arith.mulf %118, %0 : vector<1x384xf32>
    %120 = arith.addf %119, %1 : vector<1x384xf32>
    %cst_24 = arith.constant dense<0.000000e+00> : vector<1x384xf32>
    %121 = tpu.matmul %92, %2, %cst_24 {dimension_numbers = #tpu.dot_dimension_numbers<[1], [0], [0], [1], [0, 0, 1, 1], [], []>} : vector<1x128xf32>, vector<128x384xf32>, vector<1x384xf32> -> vector<1x384xf32>
    %122 = arith.addf %121, %3 : vector<1x384xf32>
    %123 = vector.extract_strided_slice %120 {offsets = [0, 0], sizes = [1, 128], strides = [1, 1]} : vector<1x384xf32> to vector<1x128xf32>
    %124 = vector.extract_strided_slice %122 {offsets = [0, 0], sizes = [1, 128], strides = [1, 1]} : vector<1x384xf32> to vector<1x128xf32>
    %125 = arith.addf %123, %124 : vector<1x128xf32>
    %126 = arith.negf %125 : vector<1x128xf32>
    %127 = math.exp %126 : vector<1x128xf32>
    %cst_25 = arith.constant 1.000000e+00 : f32
    %128 = vector.broadcast %cst_25 : f32 to vector<1x128xf32>
    %129 = arith.addf %128, %127 : vector<1x128xf32>
    %130 = arith.divf %128, %129 : vector<1x128xf32>
    %131 = vector.extract_strided_slice %120 {offsets = [0, 128], sizes = [1, 128], strides = [1, 1]} : vector<1x384xf32> to vector<1x128xf32>
    %132 = vector.extract_strided_slice %122 {offsets = [0, 128], sizes = [1, 128], strides = [1, 1]} : vector<1x384xf32> to vector<1x128xf32>
    %133 = arith.addf %131, %132 : vector<1x128xf32>
    %134 = arith.negf %133 : vector<1x128xf32>
    %135 = math.exp %134 : vector<1x128xf32>
    %cst_26 = arith.constant 1.000000e+00 : f32
    %136 = vector.broadcast %cst_26 : f32 to vector<1x128xf32>
    %137 = arith.addf %136, %135 : vector<1x128xf32>
    %138 = arith.divf %136, %137 : vector<1x128xf32>
    %139 = vector.extract_strided_slice %120 {offsets = [0, 256], sizes = [1, 128], strides = [1, 1]} : vector<1x384xf32> to vector<1x128xf32>
    %140 = vector.extract_strided_slice %122 {offsets = [0, 256], sizes = [1, 128], strides = [1, 1]} : vector<1x384xf32> to vector<1x128xf32>
    %141 = arith.mulf %130, %140 : vector<1x128xf32>
    %142 = arith.addf %139, %141 : vector<1x128xf32>
    %143 = math.tanh %142 : vector<1x128xf32>
    %144 = arith.subf %92, %143 : vector<1x128xf32>
    %145 = arith.mulf %138, %144 : vector<1x128xf32>
    %146 = arith.addf %143, %145 : vector<1x128xf32>
    %147 = tpu.concatenate %146, %115 in 1 : vector<1x128xf32>, vector<1x128xf32> -> vector<1x256xf32>
    %cst_27 = arith.constant dense<0.000000e+00> : vector<1x512xf32>
    %148 = tpu.matmul %147, %4, %cst_27 {dimension_numbers = #tpu.dot_dimension_numbers<[1], [0], [0], [1], [0, 0, 1, 1], [], []>} : vector<1x256xf32>, vector<256x512xf32>, vector<1x512xf32> -> vector<1x512xf32>
    %149 = arith.addf %148, %5 : vector<1x512xf32>
    %150 = vector.extract_strided_slice %149 {offsets = [0, 0], sizes = [1, 128], strides = [1, 1]} : vector<1x512xf32> to vector<1x128xf32>
    %151 = arith.negf %150 : vector<1x128xf32>
    %152 = math.exp %151 : vector<1x128xf32>
    %cst_28 = arith.constant 1.000000e+00 : f32
    %153 = vector.broadcast %cst_28 : f32 to vector<1x128xf32>
    %154 = arith.addf %153, %152 : vector<1x128xf32>
    %155 = arith.divf %153, %154 : vector<1x128xf32>
    %156 = vector.extract_strided_slice %149 {offsets = [0, 128], sizes = [1, 128], strides = [1, 1]} : vector<1x512xf32> to vector<1x128xf32>
    %157 = arith.negf %156 : vector<1x128xf32>
    %158 = math.exp %157 : vector<1x128xf32>
    %cst_29 = arith.constant 1.000000e+00 : f32
    %159 = vector.broadcast %cst_29 : f32 to vector<1x128xf32>
    %160 = arith.addf %159, %158 : vector<1x128xf32>
    %161 = arith.divf %159, %160 : vector<1x128xf32>
    %162 = vector.extract_strided_slice %149 {offsets = [0, 256], sizes = [1, 128], strides = [1, 1]} : vector<1x512xf32> to vector<1x128xf32>
    %163 = vector.extract_strided_slice %149 {offsets = [0, 384], sizes = [1, 128], strides = [1, 1]} : vector<1x512xf32> to vector<1x128xf32>
    %164 = arith.mulf %155, %163 : vector<1x128xf32>
    %165 = arith.addf %162, %164 : vector<1x128xf32>
    %166 = math.tanh %165 : vector<1x128xf32>
    %167 = arith.subf %115, %166 : vector<1x128xf32>
    %168 = arith.mulf %161, %167 : vector<1x128xf32>
    %169 = arith.addf %166, %168 : vector<1x128xf32>
    %c3_i32 = arith.constant 3 : i32
    %170 = arith.index_cast %c3_i32 : i32 to index
    %171 = memref.load %arg0[%170] : memref<8xf32, #tpu.memory_space<smem>>
    %172 = vector.broadcast %171 : f32 to vector<1x384xf32>
    %173 = arith.mulf %172, %0 : vector<1x384xf32>
    %174 = arith.addf %173, %1 : vector<1x384xf32>
    %cst_30 = arith.constant dense<0.000000e+00> : vector<1x384xf32>
    %175 = tpu.matmul %146, %2, %cst_30 {dimension_numbers = #tpu.dot_dimension_numbers<[1], [0], [0], [1], [0, 0, 1, 1], [], []>} : vector<1x128xf32>, vector<128x384xf32>, vector<1x384xf32> -> vector<1x384xf32>
    %176 = arith.addf %175, %3 : vector<1x384xf32>
    %177 = vector.extract_strided_slice %174 {offsets = [0, 0], sizes = [1, 128], strides = [1, 1]} : vector<1x384xf32> to vector<1x128xf32>
    %178 = vector.extract_strided_slice %176 {offsets = [0, 0], sizes = [1, 128], strides = [1, 1]} : vector<1x384xf32> to vector<1x128xf32>
    %179 = arith.addf %177, %178 : vector<1x128xf32>
    %180 = arith.negf %179 : vector<1x128xf32>
    %181 = math.exp %180 : vector<1x128xf32>
    %cst_31 = arith.constant 1.000000e+00 : f32
    %182 = vector.broadcast %cst_31 : f32 to vector<1x128xf32>
    %183 = arith.addf %182, %181 : vector<1x128xf32>
    %184 = arith.divf %182, %183 : vector<1x128xf32>
    %185 = vector.extract_strided_slice %174 {offsets = [0, 128], sizes = [1, 128], strides = [1, 1]} : vector<1x384xf32> to vector<1x128xf32>
    %186 = vector.extract_strided_slice %176 {offsets = [0, 128], sizes = [1, 128], strides = [1, 1]} : vector<1x384xf32> to vector<1x128xf32>
    %187 = arith.addf %185, %186 : vector<1x128xf32>
    %188 = arith.negf %187 : vector<1x128xf32>
    %189 = math.exp %188 : vector<1x128xf32>
    %cst_32 = arith.constant 1.000000e+00 : f32
    %190 = vector.broadcast %cst_32 : f32 to vector<1x128xf32>
    %191 = arith.addf %190, %189 : vector<1x128xf32>
    %192 = arith.divf %190, %191 : vector<1x128xf32>
    %193 = vector.extract_strided_slice %174 {offsets = [0, 256], sizes = [1, 128], strides = [1, 1]} : vector<1x384xf32> to vector<1x128xf32>
    %194 = vector.extract_strided_slice %176 {offsets = [0, 256], sizes = [1, 128], strides = [1, 1]} : vector<1x384xf32> to vector<1x128xf32>
    %195 = arith.mulf %184, %194 : vector<1x128xf32>
    %196 = arith.addf %193, %195 : vector<1x128xf32>
    %197 = math.tanh %196 : vector<1x128xf32>
    %198 = arith.subf %146, %197 : vector<1x128xf32>
    %199 = arith.mulf %192, %198 : vector<1x128xf32>
    %200 = arith.addf %197, %199 : vector<1x128xf32>
    %201 = tpu.concatenate %200, %169 in 1 : vector<1x128xf32>, vector<1x128xf32> -> vector<1x256xf32>
    %cst_33 = arith.constant dense<0.000000e+00> : vector<1x512xf32>
    %202 = tpu.matmul %201, %4, %cst_33 {dimension_numbers = #tpu.dot_dimension_numbers<[1], [0], [0], [1], [0, 0, 1, 1], [], []>} : vector<1x256xf32>, vector<256x512xf32>, vector<1x512xf32> -> vector<1x512xf32>
    %203 = arith.addf %202, %5 : vector<1x512xf32>
    %204 = vector.extract_strided_slice %203 {offsets = [0, 0], sizes = [1, 128], strides = [1, 1]} : vector<1x512xf32> to vector<1x128xf32>
    %205 = arith.negf %204 : vector<1x128xf32>
    %206 = math.exp %205 : vector<1x128xf32>
    %cst_34 = arith.constant 1.000000e+00 : f32
    %207 = vector.broadcast %cst_34 : f32 to vector<1x128xf32>
    %208 = arith.addf %207, %206 : vector<1x128xf32>
    %209 = arith.divf %207, %208 : vector<1x128xf32>
    %210 = vector.extract_strided_slice %203 {offsets = [0, 128], sizes = [1, 128], strides = [1, 1]} : vector<1x512xf32> to vector<1x128xf32>
    %211 = arith.negf %210 : vector<1x128xf32>
    %212 = math.exp %211 : vector<1x128xf32>
    %cst_35 = arith.constant 1.000000e+00 : f32
    %213 = vector.broadcast %cst_35 : f32 to vector<1x128xf32>
    %214 = arith.addf %213, %212 : vector<1x128xf32>
    %215 = arith.divf %213, %214 : vector<1x128xf32>
    %216 = vector.extract_strided_slice %203 {offsets = [0, 256], sizes = [1, 128], strides = [1, 1]} : vector<1x512xf32> to vector<1x128xf32>
    %217 = vector.extract_strided_slice %203 {offsets = [0, 384], sizes = [1, 128], strides = [1, 1]} : vector<1x512xf32> to vector<1x128xf32>
    %218 = arith.mulf %209, %217 : vector<1x128xf32>
    %219 = arith.addf %216, %218 : vector<1x128xf32>
    %220 = math.tanh %219 : vector<1x128xf32>
    %221 = arith.subf %169, %220 : vector<1x128xf32>
    %222 = arith.mulf %215, %221 : vector<1x128xf32>
    %223 = arith.addf %220, %222 : vector<1x128xf32>
    %c4_i32 = arith.constant 4 : i32
    %224 = arith.index_cast %c4_i32 : i32 to index
    %225 = memref.load %arg0[%224] : memref<8xf32, #tpu.memory_space<smem>>
    %226 = vector.broadcast %225 : f32 to vector<1x384xf32>
    %227 = arith.mulf %226, %0 : vector<1x384xf32>
    %228 = arith.addf %227, %1 : vector<1x384xf32>
    %cst_36 = arith.constant dense<0.000000e+00> : vector<1x384xf32>
    %229 = tpu.matmul %200, %2, %cst_36 {dimension_numbers = #tpu.dot_dimension_numbers<[1], [0], [0], [1], [0, 0, 1, 1], [], []>} : vector<1x128xf32>, vector<128x384xf32>, vector<1x384xf32> -> vector<1x384xf32>
    %230 = arith.addf %229, %3 : vector<1x384xf32>
    %231 = vector.extract_strided_slice %228 {offsets = [0, 0], sizes = [1, 128], strides = [1, 1]} : vector<1x384xf32> to vector<1x128xf32>
    %232 = vector.extract_strided_slice %230 {offsets = [0, 0], sizes = [1, 128], strides = [1, 1]} : vector<1x384xf32> to vector<1x128xf32>
    %233 = arith.addf %231, %232 : vector<1x128xf32>
    %234 = arith.negf %233 : vector<1x128xf32>
    %235 = math.exp %234 : vector<1x128xf32>
    %cst_37 = arith.constant 1.000000e+00 : f32
    %236 = vector.broadcast %cst_37 : f32 to vector<1x128xf32>
    %237 = arith.addf %236, %235 : vector<1x128xf32>
    %238 = arith.divf %236, %237 : vector<1x128xf32>
    %239 = vector.extract_strided_slice %228 {offsets = [0, 128], sizes = [1, 128], strides = [1, 1]} : vector<1x384xf32> to vector<1x128xf32>
    %240 = vector.extract_strided_slice %230 {offsets = [0, 128], sizes = [1, 128], strides = [1, 1]} : vector<1x384xf32> to vector<1x128xf32>
    %241 = arith.addf %239, %240 : vector<1x128xf32>
    %242 = arith.negf %241 : vector<1x128xf32>
    %243 = math.exp %242 : vector<1x128xf32>
    %cst_38 = arith.constant 1.000000e+00 : f32
    %244 = vector.broadcast %cst_38 : f32 to vector<1x128xf32>
    %245 = arith.addf %244, %243 : vector<1x128xf32>
    %246 = arith.divf %244, %245 : vector<1x128xf32>
    %247 = vector.extract_strided_slice %228 {offsets = [0, 256], sizes = [1, 128], strides = [1, 1]} : vector<1x384xf32> to vector<1x128xf32>
    %248 = vector.extract_strided_slice %230 {offsets = [0, 256], sizes = [1, 128], strides = [1, 1]} : vector<1x384xf32> to vector<1x128xf32>
    %249 = arith.mulf %238, %248 : vector<1x128xf32>
    %250 = arith.addf %247, %249 : vector<1x128xf32>
    %251 = math.tanh %250 : vector<1x128xf32>
    %252 = arith.subf %200, %251 : vector<1x128xf32>
    %253 = arith.mulf %246, %252 : vector<1x128xf32>
    %254 = arith.addf %251, %253 : vector<1x128xf32>
    %255 = tpu.concatenate %254, %223 in 1 : vector<1x128xf32>, vector<1x128xf32> -> vector<1x256xf32>
    %cst_39 = arith.constant dense<0.000000e+00> : vector<1x512xf32>
    %256 = tpu.matmul %255, %4, %cst_39 {dimension_numbers = #tpu.dot_dimension_numbers<[1], [0], [0], [1], [0, 0, 1, 1], [], []>} : vector<1x256xf32>, vector<256x512xf32>, vector<1x512xf32> -> vector<1x512xf32>
    %257 = arith.addf %256, %5 : vector<1x512xf32>
    %258 = vector.extract_strided_slice %257 {offsets = [0, 0], sizes = [1, 128], strides = [1, 1]} : vector<1x512xf32> to vector<1x128xf32>
    %259 = arith.negf %258 : vector<1x128xf32>
    %260 = math.exp %259 : vector<1x128xf32>
    %cst_40 = arith.constant 1.000000e+00 : f32
    %261 = vector.broadcast %cst_40 : f32 to vector<1x128xf32>
    %262 = arith.addf %261, %260 : vector<1x128xf32>
    %263 = arith.divf %261, %262 : vector<1x128xf32>
    %264 = vector.extract_strided_slice %257 {offsets = [0, 128], sizes = [1, 128], strides = [1, 1]} : vector<1x512xf32> to vector<1x128xf32>
    %265 = arith.negf %264 : vector<1x128xf32>
    %266 = math.exp %265 : vector<1x128xf32>
    %cst_41 = arith.constant 1.000000e+00 : f32
    %267 = vector.broadcast %cst_41 : f32 to vector<1x128xf32>
    %268 = arith.addf %267, %266 : vector<1x128xf32>
    %269 = arith.divf %267, %268 : vector<1x128xf32>
    %270 = vector.extract_strided_slice %257 {offsets = [0, 256], sizes = [1, 128], strides = [1, 1]} : vector<1x512xf32> to vector<1x128xf32>
    %271 = vector.extract_strided_slice %257 {offsets = [0, 384], sizes = [1, 128], strides = [1, 1]} : vector<1x512xf32> to vector<1x128xf32>
    %272 = arith.mulf %263, %271 : vector<1x128xf32>
    %273 = arith.addf %270, %272 : vector<1x128xf32>
    %274 = math.tanh %273 : vector<1x128xf32>
    %275 = arith.subf %223, %274 : vector<1x128xf32>
    %276 = arith.mulf %269, %275 : vector<1x128xf32>
    %277 = arith.addf %274, %276 : vector<1x128xf32>
    %c5_i32 = arith.constant 5 : i32
    %278 = arith.index_cast %c5_i32 : i32 to index
    %279 = memref.load %arg0[%278] : memref<8xf32, #tpu.memory_space<smem>>
    %280 = vector.broadcast %279 : f32 to vector<1x384xf32>
    %281 = arith.mulf %280, %0 : vector<1x384xf32>
    %282 = arith.addf %281, %1 : vector<1x384xf32>
    %cst_42 = arith.constant dense<0.000000e+00> : vector<1x384xf32>
    %283 = tpu.matmul %254, %2, %cst_42 {dimension_numbers = #tpu.dot_dimension_numbers<[1], [0], [0], [1], [0, 0, 1, 1], [], []>} : vector<1x128xf32>, vector<128x384xf32>, vector<1x384xf32> -> vector<1x384xf32>
    %284 = arith.addf %283, %3 : vector<1x384xf32>
    %285 = vector.extract_strided_slice %282 {offsets = [0, 0], sizes = [1, 128], strides = [1, 1]} : vector<1x384xf32> to vector<1x128xf32>
    %286 = vector.extract_strided_slice %284 {offsets = [0, 0], sizes = [1, 128], strides = [1, 1]} : vector<1x384xf32> to vector<1x128xf32>
    %287 = arith.addf %285, %286 : vector<1x128xf32>
    %288 = arith.negf %287 : vector<1x128xf32>
    %289 = math.exp %288 : vector<1x128xf32>
    %cst_43 = arith.constant 1.000000e+00 : f32
    %290 = vector.broadcast %cst_43 : f32 to vector<1x128xf32>
    %291 = arith.addf %290, %289 : vector<1x128xf32>
    %292 = arith.divf %290, %291 : vector<1x128xf32>
    %293 = vector.extract_strided_slice %282 {offsets = [0, 128], sizes = [1, 128], strides = [1, 1]} : vector<1x384xf32> to vector<1x128xf32>
    %294 = vector.extract_strided_slice %284 {offsets = [0, 128], sizes = [1, 128], strides = [1, 1]} : vector<1x384xf32> to vector<1x128xf32>
    %295 = arith.addf %293, %294 : vector<1x128xf32>
    %296 = arith.negf %295 : vector<1x128xf32>
    %297 = math.exp %296 : vector<1x128xf32>
    %cst_44 = arith.constant 1.000000e+00 : f32
    %298 = vector.broadcast %cst_44 : f32 to vector<1x128xf32>
    %299 = arith.addf %298, %297 : vector<1x128xf32>
    %300 = arith.divf %298, %299 : vector<1x128xf32>
    %301 = vector.extract_strided_slice %282 {offsets = [0, 256], sizes = [1, 128], strides = [1, 1]} : vector<1x384xf32> to vector<1x128xf32>
    %302 = vector.extract_strided_slice %284 {offsets = [0, 256], sizes = [1, 128], strides = [1, 1]} : vector<1x384xf32> to vector<1x128xf32>
    %303 = arith.mulf %292, %302 : vector<1x128xf32>
    %304 = arith.addf %301, %303 : vector<1x128xf32>
    %305 = math.tanh %304 : vector<1x128xf32>
    %306 = arith.subf %254, %305 : vector<1x128xf32>
    %307 = arith.mulf %300, %306 : vector<1x128xf32>
    %308 = arith.addf %305, %307 : vector<1x128xf32>
    %309 = tpu.concatenate %308, %277 in 1 : vector<1x128xf32>, vector<1x128xf32> -> vector<1x256xf32>
    %cst_45 = arith.constant dense<0.000000e+00> : vector<1x512xf32>
    %310 = tpu.matmul %309, %4, %cst_45 {dimension_numbers = #tpu.dot_dimension_numbers<[1], [0], [0], [1], [0, 0, 1, 1], [], []>} : vector<1x256xf32>, vector<256x512xf32>, vector<1x512xf32> -> vector<1x512xf32>
    %311 = arith.addf %310, %5 : vector<1x512xf32>
    %312 = vector.extract_strided_slice %311 {offsets = [0, 0], sizes = [1, 128], strides = [1, 1]} : vector<1x512xf32> to vector<1x128xf32>
    %313 = arith.negf %312 : vector<1x128xf32>
    %314 = math.exp %313 : vector<1x128xf32>
    %cst_46 = arith.constant 1.000000e+00 : f32
    %315 = vector.broadcast %cst_46 : f32 to vector<1x128xf32>
    %316 = arith.addf %315, %314 : vector<1x128xf32>
    %317 = arith.divf %315, %316 : vector<1x128xf32>
    %318 = vector.extract_strided_slice %311 {offsets = [0, 128], sizes = [1, 128], strides = [1, 1]} : vector<1x512xf32> to vector<1x128xf32>
    %319 = arith.negf %318 : vector<1x128xf32>
    %320 = math.exp %319 : vector<1x128xf32>
    %cst_47 = arith.constant 1.000000e+00 : f32
    %321 = vector.broadcast %cst_47 : f32 to vector<1x128xf32>
    %322 = arith.addf %321, %320 : vector<1x128xf32>
    %323 = arith.divf %321, %322 : vector<1x128xf32>
    %324 = vector.extract_strided_slice %311 {offsets = [0, 256], sizes = [1, 128], strides = [1, 1]} : vector<1x512xf32> to vector<1x128xf32>
    %325 = vector.extract_strided_slice %311 {offsets = [0, 384], sizes = [1, 128], strides = [1, 1]} : vector<1x512xf32> to vector<1x128xf32>
    %326 = arith.mulf %317, %325 : vector<1x128xf32>
    %327 = arith.addf %324, %326 : vector<1x128xf32>
    %328 = math.tanh %327 : vector<1x128xf32>
    %329 = arith.subf %277, %328 : vector<1x128xf32>
    %330 = arith.mulf %323, %329 : vector<1x128xf32>
    %331 = arith.addf %328, %330 : vector<1x128xf32>
    %c6_i32 = arith.constant 6 : i32
    %332 = arith.index_cast %c6_i32 : i32 to index
    %333 = memref.load %arg0[%332] : memref<8xf32, #tpu.memory_space<smem>>
    %334 = vector.broadcast %333 : f32 to vector<1x384xf32>
    %335 = arith.mulf %334, %0 : vector<1x384xf32>
    %336 = arith.addf %335, %1 : vector<1x384xf32>
    %cst_48 = arith.constant dense<0.000000e+00> : vector<1x384xf32>
    %337 = tpu.matmul %308, %2, %cst_48 {dimension_numbers = #tpu.dot_dimension_numbers<[1], [0], [0], [1], [0, 0, 1, 1], [], []>} : vector<1x128xf32>, vector<128x384xf32>, vector<1x384xf32> -> vector<1x384xf32>
    %338 = arith.addf %337, %3 : vector<1x384xf32>
    %339 = vector.extract_strided_slice %336 {offsets = [0, 0], sizes = [1, 128], strides = [1, 1]} : vector<1x384xf32> to vector<1x128xf32>
    %340 = vector.extract_strided_slice %338 {offsets = [0, 0], sizes = [1, 128], strides = [1, 1]} : vector<1x384xf32> to vector<1x128xf32>
    %341 = arith.addf %339, %340 : vector<1x128xf32>
    %342 = arith.negf %341 : vector<1x128xf32>
    %343 = math.exp %342 : vector<1x128xf32>
    %cst_49 = arith.constant 1.000000e+00 : f32
    %344 = vector.broadcast %cst_49 : f32 to vector<1x128xf32>
    %345 = arith.addf %344, %343 : vector<1x128xf32>
    %346 = arith.divf %344, %345 : vector<1x128xf32>
    %347 = vector.extract_strided_slice %336 {offsets = [0, 128], sizes = [1, 128], strides = [1, 1]} : vector<1x384xf32> to vector<1x128xf32>
    %348 = vector.extract_strided_slice %338 {offsets = [0, 128], sizes = [1, 128], strides = [1, 1]} : vector<1x384xf32> to vector<1x128xf32>
    %349 = arith.addf %347, %348 : vector<1x128xf32>
    %350 = arith.negf %349 : vector<1x128xf32>
    %351 = math.exp %350 : vector<1x128xf32>
    %cst_50 = arith.constant 1.000000e+00 : f32
    %352 = vector.broadcast %cst_50 : f32 to vector<1x128xf32>
    %353 = arith.addf %352, %351 : vector<1x128xf32>
    %354 = arith.divf %352, %353 : vector<1x128xf32>
    %355 = vector.extract_strided_slice %336 {offsets = [0, 256], sizes = [1, 128], strides = [1, 1]} : vector<1x384xf32> to vector<1x128xf32>
    %356 = vector.extract_strided_slice %338 {offsets = [0, 256], sizes = [1, 128], strides = [1, 1]} : vector<1x384xf32> to vector<1x128xf32>
    %357 = arith.mulf %346, %356 : vector<1x128xf32>
    %358 = arith.addf %355, %357 : vector<1x128xf32>
    %359 = math.tanh %358 : vector<1x128xf32>
    %360 = arith.subf %308, %359 : vector<1x128xf32>
    %361 = arith.mulf %354, %360 : vector<1x128xf32>
    %362 = arith.addf %359, %361 : vector<1x128xf32>
    %363 = tpu.concatenate %362, %331 in 1 : vector<1x128xf32>, vector<1x128xf32> -> vector<1x256xf32>
    %cst_51 = arith.constant dense<0.000000e+00> : vector<1x512xf32>
    %364 = tpu.matmul %363, %4, %cst_51 {dimension_numbers = #tpu.dot_dimension_numbers<[1], [0], [0], [1], [0, 0, 1, 1], [], []>} : vector<1x256xf32>, vector<256x512xf32>, vector<1x512xf32> -> vector<1x512xf32>
    %365 = arith.addf %364, %5 : vector<1x512xf32>
    %366 = vector.extract_strided_slice %365 {offsets = [0, 0], sizes = [1, 128], strides = [1, 1]} : vector<1x512xf32> to vector<1x128xf32>
    %367 = arith.negf %366 : vector<1x128xf32>
    %368 = math.exp %367 : vector<1x128xf32>
    %cst_52 = arith.constant 1.000000e+00 : f32
    %369 = vector.broadcast %cst_52 : f32 to vector<1x128xf32>
    %370 = arith.addf %369, %368 : vector<1x128xf32>
    %371 = arith.divf %369, %370 : vector<1x128xf32>
    %372 = vector.extract_strided_slice %365 {offsets = [0, 128], sizes = [1, 128], strides = [1, 1]} : vector<1x512xf32> to vector<1x128xf32>
    %373 = arith.negf %372 : vector<1x128xf32>
    %374 = math.exp %373 : vector<1x128xf32>
    %cst_53 = arith.constant 1.000000e+00 : f32
    %375 = vector.broadcast %cst_53 : f32 to vector<1x128xf32>
    %376 = arith.addf %375, %374 : vector<1x128xf32>
    %377 = arith.divf %375, %376 : vector<1x128xf32>
    %378 = vector.extract_strided_slice %365 {offsets = [0, 256], sizes = [1, 128], strides = [1, 1]} : vector<1x512xf32> to vector<1x128xf32>
    %379 = vector.extract_strided_slice %365 {offsets = [0, 384], sizes = [1, 128], strides = [1, 1]} : vector<1x512xf32> to vector<1x128xf32>
    %380 = arith.mulf %371, %379 : vector<1x128xf32>
    %381 = arith.addf %378, %380 : vector<1x128xf32>
    %382 = math.tanh %381 : vector<1x128xf32>
    %383 = arith.subf %331, %382 : vector<1x128xf32>
    %384 = arith.mulf %377, %383 : vector<1x128xf32>
    %385 = arith.addf %382, %384 : vector<1x128xf32>
    %c7_i32 = arith.constant 7 : i32
    %386 = arith.index_cast %c7_i32 : i32 to index
    %387 = memref.load %arg0[%386] : memref<8xf32, #tpu.memory_space<smem>>
    %388 = vector.broadcast %387 : f32 to vector<1x384xf32>
    %389 = arith.mulf %388, %0 : vector<1x384xf32>
    %390 = arith.addf %389, %1 : vector<1x384xf32>
    %cst_54 = arith.constant dense<0.000000e+00> : vector<1x384xf32>
    %391 = tpu.matmul %362, %2, %cst_54 {dimension_numbers = #tpu.dot_dimension_numbers<[1], [0], [0], [1], [0, 0, 1, 1], [], []>} : vector<1x128xf32>, vector<128x384xf32>, vector<1x384xf32> -> vector<1x384xf32>
    %392 = arith.addf %391, %3 : vector<1x384xf32>
    %393 = vector.extract_strided_slice %390 {offsets = [0, 0], sizes = [1, 128], strides = [1, 1]} : vector<1x384xf32> to vector<1x128xf32>
    %394 = vector.extract_strided_slice %392 {offsets = [0, 0], sizes = [1, 128], strides = [1, 1]} : vector<1x384xf32> to vector<1x128xf32>
    %395 = arith.addf %393, %394 : vector<1x128xf32>
    %396 = arith.negf %395 : vector<1x128xf32>
    %397 = math.exp %396 : vector<1x128xf32>
    %cst_55 = arith.constant 1.000000e+00 : f32
    %398 = vector.broadcast %cst_55 : f32 to vector<1x128xf32>
    %399 = arith.addf %398, %397 : vector<1x128xf32>
    %400 = arith.divf %398, %399 : vector<1x128xf32>
    %401 = vector.extract_strided_slice %390 {offsets = [0, 128], sizes = [1, 128], strides = [1, 1]} : vector<1x384xf32> to vector<1x128xf32>
    %402 = vector.extract_strided_slice %392 {offsets = [0, 128], sizes = [1, 128], strides = [1, 1]} : vector<1x384xf32> to vector<1x128xf32>
    %403 = arith.addf %401, %402 : vector<1x128xf32>
    %404 = arith.negf %403 : vector<1x128xf32>
    %405 = math.exp %404 : vector<1x128xf32>
    %cst_56 = arith.constant 1.000000e+00 : f32
    %406 = vector.broadcast %cst_56 : f32 to vector<1x128xf32>
    %407 = arith.addf %406, %405 : vector<1x128xf32>
    %408 = arith.divf %406, %407 : vector<1x128xf32>
    %409 = vector.extract_strided_slice %390 {offsets = [0, 256], sizes = [1, 128], strides = [1, 1]} : vector<1x384xf32> to vector<1x128xf32>
    %410 = vector.extract_strided_slice %392 {offsets = [0, 256], sizes = [1, 128], strides = [1, 1]} : vector<1x384xf32> to vector<1x128xf32>
    %411 = arith.mulf %400, %410 : vector<1x128xf32>
    %412 = arith.addf %409, %411 : vector<1x128xf32>
    %413 = math.tanh %412 : vector<1x128xf32>
    %414 = arith.subf %362, %413 : vector<1x128xf32>
    %415 = arith.mulf %408, %414 : vector<1x128xf32>
    %416 = arith.addf %413, %415 : vector<1x128xf32>
    %417 = tpu.concatenate %416, %385 in 1 : vector<1x128xf32>, vector<1x128xf32> -> vector<1x256xf32>
    %cst_57 = arith.constant dense<0.000000e+00> : vector<1x512xf32>
    %418 = tpu.matmul %417, %4, %cst_57 {dimension_numbers = #tpu.dot_dimension_numbers<[1], [0], [0], [1], [0, 0, 1, 1], [], []>} : vector<1x256xf32>, vector<256x512xf32>, vector<1x512xf32> -> vector<1x512xf32>
    %419 = arith.addf %418, %5 : vector<1x512xf32>
    %420 = vector.extract_strided_slice %419 {offsets = [0, 0], sizes = [1, 128], strides = [1, 1]} : vector<1x512xf32> to vector<1x128xf32>
    %421 = arith.negf %420 : vector<1x128xf32>
    %422 = math.exp %421 : vector<1x128xf32>
    %cst_58 = arith.constant 1.000000e+00 : f32
    %423 = vector.broadcast %cst_58 : f32 to vector<1x128xf32>
    %424 = arith.addf %423, %422 : vector<1x128xf32>
    %425 = arith.divf %423, %424 : vector<1x128xf32>
    %426 = vector.extract_strided_slice %419 {offsets = [0, 128], sizes = [1, 128], strides = [1, 1]} : vector<1x512xf32> to vector<1x128xf32>
    %427 = arith.negf %426 : vector<1x128xf32>
    %428 = math.exp %427 : vector<1x128xf32>
    %cst_59 = arith.constant 1.000000e+00 : f32
    %429 = vector.broadcast %cst_59 : f32 to vector<1x128xf32>
    %430 = arith.addf %429, %428 : vector<1x128xf32>
    %431 = arith.divf %429, %430 : vector<1x128xf32>
    %432 = vector.extract_strided_slice %419 {offsets = [0, 256], sizes = [1, 128], strides = [1, 1]} : vector<1x512xf32> to vector<1x128xf32>
    %433 = vector.extract_strided_slice %419 {offsets = [0, 384], sizes = [1, 128], strides = [1, 1]} : vector<1x512xf32> to vector<1x128xf32>
    %434 = arith.mulf %425, %433 : vector<1x128xf32>
    %435 = arith.addf %432, %434 : vector<1x128xf32>
    %436 = math.tanh %435 : vector<1x128xf32>
    %437 = arith.subf %385, %436 : vector<1x128xf32>
    %438 = arith.mulf %431, %437 : vector<1x128xf32>
    %439 = arith.addf %436, %438 : vector<1x128xf32>
    %c8_i32 = arith.constant 8 : i32
    %c0_60 = arith.constant 0 : index
    %c0_61 = arith.constant 0 : index
    %440 = vector.load %arg7[%c0_60, %c0_61] : memref<128x1xf32, #tpu.memory_space<vmem>>, vector<128x1xf32>
    %cst_62 = arith.constant dense<0.000000e+00> : vector<1x1xf32>
    %441 = tpu.matmul %439, %440, %cst_62 {dimension_numbers = #tpu.dot_dimension_numbers<[1], [0], [0], [1], [0, 0, 1, 1], [], []>} : vector<1x128xf32>, vector<128x1xf32>, vector<1x1xf32> -> vector<1x1xf32>
    %c0_63 = arith.constant 0 : index
    %c0_64 = arith.constant 0 : index
    %442 = vector.load %arg8[%c0_63, %c0_64] : memref<1x1xf32, #tpu.memory_space<vmem>>, vector<1x1xf32>
    %443 = arith.addf %441, %442 : vector<1x1xf32>
    %c0_65 = arith.constant 0 : index
    %c0_66 = arith.constant 0 : index
    %444 = vector.load %arg9[%c0_65, %c0_66] : memref<1x1xf32, #tpu.memory_space<vmem>>, vector<1x1xf32>
    tpu.vector_store %arg9[%c0_65, %c0_66], %443 {strides = array<i32>} : memref<1x1xf32, #tpu.memory_space<vmem>>, vector<1x1xf32>,
    return
  }
}

</mosaic_0001>

<bundles_post_ra>
// kernel: tpu_custom_call.1
= control target key start
LH: loop header
LB: loop body
LE: loop exit
PB: predicated region body
PF: predicated region fallthrough
CT: control target
= control target key end

     0   :  { %s7677_s0 = inlined_call_operand.vmem [shape: f32[8], index: 0, kind: input, shape index: {}]   ;;  %s7678_s1 = inlined_call_operand.vmem [shape: f32[1,384], index: 1, kind: input, shape index: {}]   ;;  %s7679_s2 = inlined_call_operand.vmem [shape: f32[1,384], index: 2, kind: input, shape index: {}]   ;;  %s7680_s3 = inlined_call_operand.hbm [shape: f32[128,384], index: 3, kind: input, shape index: {}]   ;;  %s7681_s4 = inlined_call_operand.vmem [shape: f32[1,384], index: 4, kind: input, shape index: {}]   ;;  %s7682_s5 = inlined_call_operand.hbm [shape: f32[256,512], index: 5, kind: input, shape index: {}]   ;;  %s7683_s6 = inlined_call_operand.vmem [shape: f32[1,512], index: 6, kind: input, shape index: {}]   ;;  %s7684_s7 = inlined_call_operand.vmem [shape: f32[128,1], index: 7, kind: input, shape index: {}]   ;;  %s7685_s8 = inlined_call_operand.<no memory space> [shape: f32[1,1], index: 8, kind: input, shape index: {}]   ;;  %s7686_s9 = inlined_call_operand.hbm [shape: f32[1,1], index: 9, kind: output, shape index: {}]  }
   0x1   :  { %v14_v0 = vstv %s7685_s8 }
   0x2   :  { %15 = vst [vmem:[#allocation2] sm:$0x1] %v14_v0 }
   0x3   :  { %16 = vsyncpa [#allocation6], 0 }
   0x4   :  { %17 = vsyncpa [#allocation4], 0 }
   0x5   :  { %18 = vsyncpa [#allocation9], 0 }
   0x6   :  { %19 = vsyncpa [#allocation5], 0  ;;  %s26_s13 = sshll.u32 %s7677_s0, 4  ;;  %s27_s13 = int_to_ptr.vmem [resolvable:$true] %s26_s13 }
   0x7   :  { %s4250_s14 = scalar_lea.vmem %s27_s13, 16  ;;  %p4255_p1 = scmp.lt.s32.totalorder %s27_s13, %s27_s13 }
   0x8   :  { %p4251_p0 = scmp.ne.s32.totalorder %s27_s13, %s4250_s14  ;;  %p4256_p2 = scmp.lt.s32.totalorder %s4250_s14, %s4250_s14 }
   0xa   :  { %p4257_p3 = por %p4256_p2, %p4255_p1 }
   0xc   :  { %p4258_p4 = pnand %p4257_p3, %p4251_p0 }
   0xe   :  { %4261 = shalt.err (!%p4258_p4)
}
   0xf   :  { %s4330_s15 = smov [#allocation3]   ;;  %s4331_s8 = smov [#allocation7]  }
  0x10   :  { %29 = dma.vmem_to_smem %s27_s13, 16, %s4330_s15, [#allocation6]  }
  0x11   :  { %s39_s16 = sshll.u32 %s4331_s8, 4  ;;  %s40_s16 = int_to_ptr.vmem [resolvable:$true] %s39_s16 }
  0x12   :  { %s4270_s17 = scalar_lea.vmem %s40_s16, 6144  ;;  %p4275_p6 = scmp.lt.s32.totalorder %s40_s16, %s40_s16 }
  0x13   :  { %p4271_p5 = scmp.ne.s32.totalorder %s40_s16, %s4270_s17  ;;  %p4276_p7 = scmp.lt.s32.totalorder %s4270_s17, %s4270_s17 }
  0x15   :  { %p4277_p8 = por %p4276_p7, %p4275_p6 }
  0x17   :  { %p4278_p9 = pnand %p4277_p8, %p4271_p5 }
  0x19   :  { %4281 = shalt.err (!%p4278_p9)
}
  0x1a   :  { %s4332_s0 = smov 384   ;;  %s4333_s18 = smov 24  }
  0x1b   :  { %45 = dma.hbm_to_vmem [thread:$0]  %s7680_s3, 6144, %s40_s16, [#allocation4], %s4332_s0, %s4332_s0, %s4333_s18  }
  0x1c   :  { %s4334_s21 = smov [#allocation8]  }
  0x1d   :  { %s53_s22 = sshll.u32 %s4334_s21, 4  ;;  %s54_s22 = int_to_ptr.vmem [resolvable:$true] %s53_s22 }
  0x1e   :  { %s4290_s23 = scalar_lea.vmem %s54_s22, 16384  ;;  %p4295_p11 = scmp.lt.s32.totalorder %s54_s22, %s54_s22 }
  0x1f   :  { %p4291_p10 = scmp.ne.s32.totalorder %s54_s22, %s4290_s23  ;;  %p4296_p12 = scmp.lt.s32.totalorder %s4290_s23, %s4290_s23 }
  0x21   :  { %p4297_p13 = por %p4296_p12, %p4295_p11 }
  0x23   :  { %p4298_p0 = pnand %p4297_p13, %p4291_p10 }
  0x25   :  { %4301 = shalt.err (!%p4298_p0)
}
  0x26   :  { %s4335_s24 = smov 512   ;;  %s4336_s25 = smov 32  }
  0x27   :  { %59 = dma.hbm_to_vmem [thread:$0]  %s7682_s5, 16384, %s54_s22, [#allocation9], %s4335_s24, %s4335_s24, %s4336_s25  }
  0x28   :  { %4322 = dma.done.wait [#allocation6], 16  }
  0x29   :  { %4323 = vsyncadd [#allocation6], 4294967280 }
  0x2a   :  { %4324 = dma.done.wait [#allocation4], 6144  }
  0x2b   :  { %4325 = vsyncadd [#allocation4], 4294961152 }
  0x2c   :  { %4326 = dma.done.wait [#allocation9], 16384  }
  0x2d   :  { %4327 = vsyncadd [#allocation9], 4294950912 }
  0x2e   :  { %75 = sfence }
  0x2f   :  { %v4402_v1 = vld [vmem:[#allocation7 + $0x170] sm:$0xff]  ;;  %v4404_v2 = vld [vmem:[#allocation7 + $0x168] sm:$0xff]  ;;  %v4406_v3 = vld [vmem:[#allocation7 + $0x158] sm:$0xff]  ;;  %v7687_v5 = vmov 0.0   ;;  %vm4338_vm0 = vmmov 0   ;;  %s256_s3 = sld [smem:[#allocation3]] }
  0x30   :  { %276 = vmatprep.subr.mxu0 %v4402_v1  ;;  %v4409_v4 = vld [vmem:[#allocation7 + $0x150] sm:$0xff]  ;;  %340 = vmatprep.mubr.f32.mxu0 %v7687_v5  ;;  %v4413_v6 = vld [vmem:[#allocation7 + $0x140] sm:$0xff]  ;;  %v4417_v7 = vld [vmem:[#allocation7 + $0x138] sm:$0xff]  ;;  %s3043_s13 = sld [smem:[#allocation3 + $0x1]]  ;;  %vm3020_vm1 = vcmask 0  }
  0x31   :  { %277 = vmatpush1.msra.mxu0 %v4404_v2  ;;  %3231 = vmatprep.subr.mxu1 %v7687_v5  ;;  %v4422_v8 = vld [vmem:[#allocation7 + $0x128] sm:$0xff]  ;;  %v4425_v9 = vld [vmem:[#allocation7 + $0x120] sm:$0xff]  ;;  %v4428_v10 = vld [vmem:[#allocation7 + $0x110] sm:$0xff]  ;;  %s3053_s17 = sld [smem:[#allocation3 + $0x3]] }
  0x32   :  { %278 = vmatprep.subr.mxu0 %v4406_v3  ;;  %3263 = vmatprep.mubr.msk.f32.mxu1 %vm4338_vm0, %v7687_v5  ;;  %v4431_v11 = vld [vmem:[#allocation7 + $0x108] sm:$0xff]  ;;  %v4434_v12 = vld [vmem:[#allocation7 + $0xf8] sm:$0xff]  ;;  %v4437_v13 = vld [vmem:[#allocation7 + $0xf0] sm:$0xff]  ;;  %s3058_s0 = sld [smem:[#allocation3 + $0x4]] }
  0x33   :  { %279 = vmatpush1.msra.mxu0 %v4409_v4  ;;  %v4440_v14 = vld [vmem:[#allocation7 + $0xe0] sm:$0xff]  ;;  %v4442_v15 = vld [vmem:[#allocation7 + $0x178] sm:$0xff]  ;;  %v4451_v18 = vld [vmem:[#allocation7 + $0xc8] sm:$0xff]  ;;  %s3063_s22 = sld [smem:[#allocation3 + $0x5]] }
  0x34   :  { %280 = vmatprep.subr.mxu0 %v4413_v6  ;;  %v4445_v16 = vld [vmem:[#allocation7 + $0xd8] sm:$0xff]  ;;  %3232 = vmatpush3.msra.mxu1 %v4442_v15  ;;  %v4448_v17 = vld [vmem:[#allocation7 + $0x160] sm:$0xff]  ;;  %v4454_v19 = vld [vmem:[#allocation7 + $0x148] sm:$0xff]  ;;  %s3068_s23 = sld [smem:[#allocation3 + $0x6]] }
  0x35   :  { %281 = vmatpush1.msra.mxu0 %v4417_v7  ;;  %3233 = vmatprep.subr.mxu1 %v7687_v5  ;;  %v4457_v20 = vld [vmem:[#allocation7 + $0xc0] sm:$0xff]  ;;  %v4461_v21 = vld [vmem:[#allocation7 + $0xb0] sm:$0xff]  ;;  %v4467_v23 = vld [vmem:[#allocation7 + $0xa8] sm:$0xff] }
  0x36   :  { %282 = vmatprep.subr.mxu0 %v4422_v8  ;;  %3234 = vmatpush3.msra.mxu1 %v4448_v17  ;;  %v4464_v22 = vld [vmem:[#allocation7 + $0x130] sm:$0xff]  ;;  %v4471_v24 = vld [vmem:[#allocation7 + $0x98] sm:$0xff]  ;;  %v4481_v27 = vld [vmem:[#allocation7 + $0x80] sm:$0xff] }
  0x37   :  { %283 = vmatpush1.msra.mxu0 %v4425_v9  ;;  %3235 = vmatprep.subr.mxu1 %v7687_v5  ;;  %v4474_v25 = vld [vmem:[#allocation7 + $0x118] sm:$0xff]  ;;  %v4477_v26 = vld [vmem:[#allocation7 + $0x90] sm:$0xff]  ;;  %v4484_v28 = vld [vmem:[#allocation7 + $0x100] sm:$0xff] }
  0x38   :  { %284 = vmatprep.subr.mxu0 %v4428_v10  ;;  %3236 = vmatpush3.msra.mxu1 %v4454_v19  ;;  %v4487_v29 = vld [vmem:[#allocation7 + $0x78] sm:$0xff]  ;;  %v4491_v30 = vld [vmem:[#allocation7 + $0x68] sm:$0xff]  ;;  %v4497_v32 = vld [vmem:[#allocation7 + $0x60] sm:$0xff] }
  0x39   :  { %285 = vmatpush1.msra.mxu0 %v4431_v11  ;;  %3237 = vmatprep.subr.mxu1 %v7687_v5  ;;  %v4494_v31 = vld [vmem:[#allocation7 + $0xe8] sm:$0xff]  ;;  %v4501_v33 = vld [vmem:[#allocation7 + $0x50] sm:$0xff]  ;;  %v4511_v36 = vld [vmem:[#allocation7 + $0x38] sm:$0xff] }
  0x3a   :  { %286 = vmatprep.subr.mxu0 %v4434_v12  ;;  %3238 = vmatpush3.msra.mxu1 %v4464_v22  ;;  %v4504_v34 = vld [vmem:[#allocation7 + $0xd0] sm:$0xff]  ;;  %v4507_v35 = vld [vmem:[#allocation7 + $0x48] sm:$0xff]  ;;  %v4514_v37 = vld [vmem:[#allocation7 + $0xb8] sm:$0xff] }
  0x3b   :  { %287 = vmatpush1.msra.mxu0 %v4437_v13  ;;  %3239 = vmatprep.subr.mxu1 %v7687_v5  ;;  %v4517_v38 = vld [vmem:[#allocation7 + $0x30] sm:$0xff]  ;;  %v4521_v39 = vld [vmem:[#allocation7 + $0x20] sm:$0xff]  ;;  %v4527_v41 = vld [vmem:[#allocation7 + $0x18] sm:$0xff] }
  0x3c   :  { %288 = vmatprep.subr.mxu0 %v4440_v14  ;;  %3240 = vmatpush3.msra.mxu1 %v4474_v25  ;;  %v4524_v40 = vld [vmem:[#allocation7 + $0xa0] sm:$0xff]  ;;  %v4531_v42 = vld [vmem:[#allocation7 + $0x8] sm:$0xff]  ;;  %v4542_v45 = vld [vmem:[#allocation7 + $0x70] sm:$0xff] }
  0x3d   :  { %289 = vmatpush1.msra.mxu0 %v4445_v16  ;;  %3241 = vmatprep.subr.mxu1 %v7687_v5  ;;  %8266 = vst [vmem:[#allocation15_spill] sm:$0xff] %v4531_v42  ;;  %v4534_v43 = vld [vmem:[#allocation7 + $0x88] sm:$0xff]  ;;  %v4537_v44 = vld [vmem:[#allocation7] sm:$0xff]  ;;  %v4550_v47 = vld [vmem:[#allocation7 + $0x58] sm:$0xff] }
  0x3e   :  { %290 = vmatprep.subr.mxu0 %v4451_v18  ;;  %3242 = vmatpush3.msra.mxu1 %v4484_v28  ;;  %8267 = vst [vmem:[#allocation16_spill] sm:$0xff] %v4537_v44  ;;  %v4546_v46 = vld [vmem:[#allocation8 + $0x1e8] sm:$0xff]  ;;  %v4552_v48 = vld [vmem:[#allocation8 + $0x1e0] sm:$0xff]  ;;  %v4573_v53 = vld [vmem:[#allocation7 + $0x10] sm:$0xff] }
  0x3f   :  { %291 = vmatpush1.msra.mxu0 %v4457_v20  ;;  %3243 = vmatprep.subr.mxu1 %v7687_v5  ;;  %8268 = vst [vmem:[#allocation17_spill] sm:$0xff] %v4546_v46  ;;  %8269 = vst [vmem:[#allocation18_spill] sm:$0xff] %v4552_v48  ;;  %v4556_v49 = vld [vmem:[#allocation8 + $0x1c8] sm:$0xff]  ;;  %v4559_v50 = vld [vmem:[#allocation7 + $0x40] sm:$0xff] }
  0x40   :  { %292 = vmatprep.subr.mxu0 %v4461_v21  ;;  %3244 = vmatpush3.msra.mxu1 %v4494_v31  ;;  %8270 = vst [vmem:[#allocation19_spill] sm:$0xff] %v4556_v49  ;;  %v4562_v51 = vld [vmem:[#allocation8 + $0x1c0] sm:$0xff]  ;;  %v4567_v52 = vld [vmem:[#allocation7 + $0x28] sm:$0xff]  ;;  %8272 = vst [vmem:[#allocation21_spill] sm:$0xff] %v4573_v53 }
  0x41   :  { %293 = vmatpush1.msra.mxu0 %v4467_v23  ;;  %3245 = vmatprep.subr.mxu1 %v7687_v5  ;;  %8271 = vst [vmem:[#allocation20_spill] sm:$0xff] %v4562_v51  ;;  %v4577_v54 = vld [vmem:[#allocation8 + $0x1f8] sm:$0xff]  ;;  %v4580_v55 = vld [vmem:[#allocation8 + $0x1f0] sm:$0xff]  ;;  %v4593_v58 = vld [vmem:[#allocation8 + $0x1a8] sm:$0xff] }
  0x42   :  { %294 = vmatprep.subr.mxu0 %v4471_v24  ;;  %3246 = vmatpush3.msra.mxu1 %v4504_v34  ;;  %8273 = vst [vmem:[#allocation22_spill] sm:$0xff] %v4577_v54  ;;  %8274 = vst [vmem:[#allocation23_spill] sm:$0xff] %v4580_v55  ;;  %v4583_v56 = vld [vmem:[#allocation8 + $0x1d8] sm:$0xff]  ;;  %v4587_v57 = vld [vmem:[#allocation8 + $0x1d0] sm:$0xff] }
  0x43   :  { %295 = vmatpush1.msra.mxu0 %v4477_v26  ;;  %3247 = vmatprep.subr.mxu1 %v7687_v5  ;;  %8275 = vst [vmem:[#allocation24_spill] sm:$0xff] %v4583_v56  ;;  %8276 = vst [vmem:[#allocation25_spill] sm:$0xff] %v4587_v57  ;;  %v4595_v59 = vld [vmem:[#allocation8 + $0x1b8] sm:$0xff]  ;;  %v4599_v60 = vld [vmem:[#allocation8 + $0x1a0] sm:$0xff] }
  0x44   :  { %296 = vmatprep.subr.mxu0 %v4481_v27  ;;  %3248 = vmatpush3.msra.mxu1 %v4514_v37  ;;  %8277 = vst [vmem:[#allocation26_spill] sm:$0xff] %v4593_v58  ;;  %8278 = vst [vmem:[#allocation27_spill] sm:$0xff] %v4595_v59  ;;  %v4601_v61 = vld [vmem:[#allocation8 + $0x1b0] sm:$0xff]  ;;  %v4605_v62 = vld [vmem:[#allocation8 + $0x188] sm:$0xff] }
  0x45   :  { %297 = vmatpush1.msra.mxu0 %v4487_v29  ;;  %3249 = vmatprep.subr.mxu1 %v7687_v5  ;;  %8279 = vst [vmem:[#allocation28_spill] sm:$0xff] %v4599_v60  ;;  %8280 = vst [vmem:[#allocation29_spill] sm:$0xff] %v4601_v61  ;;  %v4607_v63 = vld [vmem:[#allocation8 + $0x198] sm:$0xff]  ;;  %v4611_v0 = vld [vmem:[#allocation8 + $0x180] sm:$0xff] }
  0x46   :  { %298 = vmatprep.subr.mxu0 %v4491_v30  ;;  %3250 = vmatpush3.msra.mxu1 %v4524_v40  ;;  %8281 = vst [vmem:[#allocation30_spill] sm:$0xff] %v4605_v62  ;;  %8282 = vst [vmem:[#allocation31_spill] sm:$0xff] %v4607_v63 }
  0x47   :  { %299 = vmatpush1.msra.mxu0 %v4497_v32  ;;  %3251 = vmatprep.subr.mxu1 %v7687_v5  ;;  %8283 = vst [vmem:[#allocation32_spill] sm:$0xff] %v4611_v0 }
  0x48   :  { %300 = vmatprep.subr.mxu0 %v4501_v33  ;;  %3252 = vmatpush3.msra.mxu1 %v4534_v43 }
  0x49   :  { %301 = vmatpush1.msra.mxu0 %v4507_v35  ;;  %3253 = vmatprep.subr.mxu1 %v7687_v5 }
  0x4a   :  { %302 = vmatprep.subr.mxu0 %v4511_v36  ;;  %3254 = vmatpush3.msra.mxu1 %v4542_v45 }
  0x4b   :  { %303 = vmatpush1.msra.mxu0 %v4517_v38  ;;  %3255 = vmatprep.subr.mxu1 %v7687_v5 }
  0x4c   :  { %304 = vmatprep.subr.mxu0 %v4521_v39  ;;  %3256 = vmatpush3.msra.mxu1 %v4550_v47 }
  0x4d   :  { %305 = vmatpush1.msra.mxu0 %v4527_v41  ;;  %3257 = vmatprep.subr.mxu1 %v7687_v5 }
  0x4e   :  { %306 = vmatprep.subr.mxu0 %v4531_v42  ;;  %3258 = vmatpush3.msra.mxu1 %v4559_v50 }
  0x4f   :  { %307 = vmatpush1.msra.mxu0 %v4537_v44  ;;  %3259 = vmatprep.subr.mxu1 %v7687_v5 }
  0x50   :  { %341 = vmatmul.mubr.f32.vlgmr.msra.gmra.mxu0 %v7687_v5  ;;  %463 = vmatprep.subr.mxu0 %v4546_v46 }
  0x51   :  { %464 = vmatpush1.msra.mxu0 %v4552_v48  ;;  %527 = vmatprep.mubr.f32.mxu0 %v7687_v5 }
  0x52   :  { %465 = vmatprep.subr.mxu0 %v4556_v49  ;;  %3260 = vmatpush3.msra.mxu1 %v4567_v52 }
  0x53   :  { %466 = vmatpush1.msra.mxu0 %v4562_v51  ;;  %3261 = vmatprep.subr.mxu1 %v7687_v5  ;;  %v4777_v51 = vld [vmem:[#allocation8 + $0x3d0] sm:$0xff] }
  0x54   :  { %3262 = vmatpush3.msra.mxu1 %v4573_v53  ;;  %467 = vmatprep.subr.mxu0 %v4593_v58  ;;  %v4761_v58 = vld [vmem:[#allocation8 + $0x3f8] sm:$0xff]  ;;  %8340 = vst [vmem:[#allocation89_spill] sm:$0xff] %v4777_v51 }
  0x55   :  { %3264 = vmatmul.mubr.f32.vlgmr.msra.gmra.mxu1 %v7687_v5  ;;  %534 = vmatprep.subr.mxu1 %v4577_v54  ;;  %8334 = vst [vmem:[#allocation83_spill] sm:$0xff] %v4761_v58 }
  0x56   :  { %535 = vmatpush1.msra.mxu1 %v4580_v55  ;;  %598 = vmatprep.mubr.f32.mxu1 %v7687_v5  ;;  %v4613_v5 = vld [vmem:[#allocation8 + $0x190] sm:$0xff] }
  0x57   :  { %536 = vmatprep.subr.mxu1 %v4583_v56  ;;  %468 = vmatpush1.msra.mxu0 %v4599_v60  ;;  %8284 = vst [vmem:[#allocation33_spill] sm:$0xff] %v4613_v5  ;;  %v4619_v60 = vld [vmem:[#allocation8 + $0x178] sm:$0xff]  ;;  %v4889_v56 = vld [vmem:[#allocation8 + $0x288] sm:$0xff] }
  0x58   :  { %537 = vmatpush1.msra.mxu1 %v4587_v57  ;;  %469 = vmatprep.subr.mxu0 %v4605_v62  ;;  %8286 = vst [vmem:[#allocation35_spill] sm:$0xff] %v4619_v60  ;;  %v4625_v62 = vld [vmem:[#allocation8 + $0x170] sm:$0xff]  ;;  %v4769_v57 = vld [vmem:[#allocation8 + $0x3c8] sm:$0xff]  ;;  %8377 = vst [vmem:[#allocation126_spill] sm:$0xff] %v4889_v56 }
  0x59   :  { %538 = vmatprep.subr.mxu1 %v4595_v59  ;;  %470 = vmatpush1.msra.mxu0 %v4611_v0  ;;  %v4617_v59 = vld [vmem:[#allocation8 + $0x168] sm:$0xff]  ;;  %8288 = vst [vmem:[#allocation37_spill] sm:$0xff] %v4625_v62  ;;  %v4631_v0 = vld [vmem:[#allocation8 + $0x158] sm:$0xff]  ;;  %8337 = vst [vmem:[#allocation86_spill] sm:$0xff] %v4769_v57 }
  0x5a   :  { %539 = vmatpush1.msra.mxu1 %v4601_v61  ;;  %8285 = vst [vmem:[#allocation34_spill] sm:$0xff] %v4617_v59  ;;  %471 = vmatprep.subr.mxu0 %v4617_v59  ;;  %v4623_v61 = vld [vmem:[#allocation8 + $0x160] sm:$0xff]  ;;  %8290 = vst [vmem:[#allocation39_spill] sm:$0xff] %v4631_v0  ;;  %v4637_v59 = vld [vmem:[#allocation8 + $0x150] sm:$0xff] }
  0x5b   :  { %540 = vmatprep.subr.mxu1 %v4607_v63  ;;  %8287 = vst [vmem:[#allocation36_spill] sm:$0xff] %v4623_v61  ;;  %472 = vmatpush1.msra.mxu0 %v4623_v61  ;;  %v4629_v63 = vld [vmem:[#allocation8 + $0x148] sm:$0xff]  ;;  %8292 = vst [vmem:[#allocation41_spill] sm:$0xff] %v4637_v59  ;;  %v4643_v61 = vld [vmem:[#allocation8 + $0x138] sm:$0xff] }
  0x5c   :  { %541 = vmatpush1.msra.mxu1 %v4613_v5  ;;  %8289 = vst [vmem:[#allocation38_spill] sm:$0xff] %v4629_v63  ;;  %473 = vmatprep.subr.mxu0 %v4629_v63  ;;  %v4635_v5 = vld [vmem:[#allocation8 + $0x140] sm:$0xff]  ;;  %8294 = vst [vmem:[#allocation43_spill] sm:$0xff] %v4643_v61  ;;  %v4649_v63 = vld [vmem:[#allocation8 + $0x130] sm:$0xff] }
  0x5d   :  { %542 = vmatprep.subr.mxu1 %v4619_v60  ;;  %8291 = vst [vmem:[#allocation40_spill] sm:$0xff] %v4635_v5  ;;  %474 = vmatpush1.msra.mxu0 %v4635_v5  ;;  %v4641_v60 = vld [vmem:[#allocation8 + $0x128] sm:$0xff]  ;;  %8296 = vst [vmem:[#allocation45_spill] sm:$0xff] %v4649_v63  ;;  %v4655_v5 = vld [vmem:[#allocation8 + $0x118] sm:$0xff] }
  0x5e   :  { %543 = vmatpush1.msra.mxu1 %v4625_v62  ;;  %8293 = vst [vmem:[#allocation42_spill] sm:$0xff] %v4641_v60  ;;  %475 = vmatprep.subr.mxu0 %v4641_v60  ;;  %v4647_v62 = vld [vmem:[#allocation8 + $0x120] sm:$0xff]  ;;  %8298 = vst [vmem:[#allocation47_spill] sm:$0xff] %v4655_v5  ;;  %v4661_v60 = vld [vmem:[#allocation8 + $0x110] sm:$0xff] }
  0x5f   :  { %544 = vmatprep.subr.mxu1 %v4631_v0  ;;  %8295 = vst [vmem:[#allocation44_spill] sm:$0xff] %v4647_v62  ;;  %476 = vmatpush1.msra.mxu0 %v4647_v62  ;;  %v4653_v0 = vld [vmem:[#allocation8 + $0x108] sm:$0xff]  ;;  %8300 = vst [vmem:[#allocation49_spill] sm:$0xff] %v4661_v60  ;;  %v4667_v62 = vld [vmem:[#allocation8 + $0xf8] sm:$0xff] }
  0x60   :  { %545 = vmatpush1.msra.mxu1 %v4637_v59  ;;  %8297 = vst [vmem:[#allocation46_spill] sm:$0xff] %v4653_v0  ;;  %477 = vmatprep.subr.mxu0 %v4653_v0  ;;  %v4659_v59 = vld [vmem:[#allocation8 + $0x100] sm:$0xff]  ;;  %8302 = vst [vmem:[#allocation51_spill] sm:$0xff] %v4667_v62  ;;  %v4673_v0 = vld [vmem:[#allocation8 + $0xf0] sm:$0xff] }
  0x61   :  { %546 = vmatprep.subr.mxu1 %v4643_v61  ;;  %8299 = vst [vmem:[#allocation48_spill] sm:$0xff] %v4659_v59  ;;  %478 = vmatpush1.msra.mxu0 %v4659_v59  ;;  %v4665_v61 = vld [vmem:[#allocation8 + $0xe8] sm:$0xff]  ;;  %8304 = vst [vmem:[#allocation53_spill] sm:$0xff] %v4673_v0  ;;  %v4679_v59 = vld [vmem:[#allocation8 + $0xd8] sm:$0xff] }
  0x62   :  { %547 = vmatpush1.msra.mxu1 %v4649_v63  ;;  %8301 = vst [vmem:[#allocation50_spill] sm:$0xff] %v4665_v61  ;;  %479 = vmatprep.subr.mxu0 %v4665_v61  ;;  %v4671_v63 = vld [vmem:[#allocation8 + $0xe0] sm:$0xff]  ;;  %8306 = vst [vmem:[#allocation55_spill] sm:$0xff] %v4679_v59  ;;  %v4685_v61 = vld [vmem:[#allocation8 + $0xd0] sm:$0xff] }
  0x63   :  { %548 = vmatprep.subr.mxu1 %v4655_v5  ;;  %8303 = vst [vmem:[#allocation52_spill] sm:$0xff] %v4671_v63  ;;  %480 = vmatpush1.msra.mxu0 %v4671_v63  ;;  %v4677_v5 = vld [vmem:[#allocation8 + $0xc8] sm:$0xff]  ;;  %8308 = vst [vmem:[#allocation57_spill] sm:$0xff] %v4685_v61  ;;  %v4691_v63 = vld [vmem:[#allocation8 + $0xb8] sm:$0xff] }
  0x64   :  { %549 = vmatpush1.msra.mxu1 %v4661_v60  ;;  %8305 = vst [vmem:[#allocation54_spill] sm:$0xff] %v4677_v5  ;;  %481 = vmatprep.subr.mxu0 %v4677_v5  ;;  %v4683_v60 = vld [vmem:[#allocation8 + $0xc0] sm:$0xff]  ;;  %8310 = vst [vmem:[#allocation59_spill] sm:$0xff] %v4691_v63  ;;  %v4697_v5 = vld [vmem:[#allocation8 + $0xb0] sm:$0xff] }
  0x65   :  { %550 = vmatprep.subr.mxu1 %v4667_v62  ;;  %8307 = vst [vmem:[#allocation56_spill] sm:$0xff] %v4683_v60  ;;  %482 = vmatpush1.msra.mxu0 %v4683_v60  ;;  %v4689_v62 = vld [vmem:[#allocation8 + $0xa8] sm:$0xff]  ;;  %8312 = vst [vmem:[#allocation61_spill] sm:$0xff] %v4697_v5  ;;  %v4703_v60 = vld [vmem:[#allocation8 + $0x98] sm:$0xff] }
  0x66   :  { %551 = vmatpush1.msra.mxu1 %v4673_v0  ;;  %8309 = vst [vmem:[#allocation58_spill] sm:$0xff] %v4689_v62  ;;  %483 = vmatprep.subr.mxu0 %v4689_v62  ;;  %v4695_v0 = vld [vmem:[#allocation8 + $0xa0] sm:$0xff]  ;;  %8314 = vst [vmem:[#allocation63_spill] sm:$0xff] %v4703_v60  ;;  %v4709_v62 = vld [vmem:[#allocation8 + $0x90] sm:$0xff] }
  0x67   :  { %552 = vmatprep.subr.mxu1 %v4679_v59  ;;  %8311 = vst [vmem:[#allocation60_spill] sm:$0xff] %v4695_v0  ;;  %484 = vmatpush1.msra.mxu0 %v4695_v0  ;;  %v4701_v59 = vld [vmem:[#allocation8 + $0x88] sm:$0xff]  ;;  %8316 = vst [vmem:[#allocation65_spill] sm:$0xff] %v4709_v62  ;;  %v4715_v0 = vld [vmem:[#allocation8 + $0x78] sm:$0xff] }
  0x68   :  { %553 = vmatpush1.msra.mxu1 %v4685_v61  ;;  %8313 = vst [vmem:[#allocation62_spill] sm:$0xff] %v4701_v59  ;;  %485 = vmatprep.subr.mxu0 %v4701_v59  ;;  %v4707_v61 = vld [vmem:[#allocation8 + $0x80] sm:$0xff]  ;;  %8318 = vst [vmem:[#allocation67_spill] sm:$0xff] %v4715_v0  ;;  %v4721_v59 = vld [vmem:[#allocation8 + $0x70] sm:$0xff] }
  0x69   :  { %554 = vmatprep.subr.mxu1 %v4691_v63  ;;  %8315 = vst [vmem:[#allocation64_spill] sm:$0xff] %v4707_v61  ;;  %486 = vmatpush1.msra.mxu0 %v4707_v61  ;;  %v4713_v63 = vld [vmem:[#allocation8 + $0x68] sm:$0xff]  ;;  %8320 = vst [vmem:[#allocation69_spill] sm:$0xff] %v4721_v59  ;;  %v4727_v61 = vld [vmem:[#allocation8 + $0x58] sm:$0xff] }
  0x6a   :  { %555 = vmatpush1.msra.mxu1 %v4697_v5  ;;  %8317 = vst [vmem:[#allocation66_spill] sm:$0xff] %v4713_v63  ;;  %487 = vmatprep.subr.mxu0 %v4713_v63  ;;  %v4719_v5 = vld [vmem:[#allocation8 + $0x60] sm:$0xff]  ;;  %8322 = vst [vmem:[#allocation71_spill] sm:$0xff] %v4727_v61  ;;  %v4733_v63 = vld [vmem:[#allocation8 + $0x50] sm:$0xff] }
  0x6b   :  { %556 = vmatprep.subr.mxu1 %v4703_v60  ;;  %8319 = vst [vmem:[#allocation68_spill] sm:$0xff] %v4719_v5  ;;  %488 = vmatpush1.msra.mxu0 %v4719_v5  ;;  %v4725_v60 = vld [vmem:[#allocation8 + $0x48] sm:$0xff]  ;;  %8324 = vst [vmem:[#allocation73_spill] sm:$0xff] %v4733_v63  ;;  %v4739_v5 = vld [vmem:[#allocation8 + $0x38] sm:$0xff] }
  0x6c   :  { %557 = vmatpush1.msra.mxu1 %v4709_v62  ;;  %8321 = vst [vmem:[#allocation70_spill] sm:$0xff] %v4725_v60  ;;  %489 = vmatprep.subr.mxu0 %v4725_v60  ;;  %v4731_v62 = vld [vmem:[#allocation8 + $0x40] sm:$0xff]  ;;  %8326 = vst [vmem:[#allocation75_spill] sm:$0xff] %v4739_v5  ;;  %v4745_v60 = vld [vmem:[#allocation8 + $0x30] sm:$0xff] }
  0x6d   :  { %558 = vmatprep.subr.mxu1 %v4715_v0  ;;  %8323 = vst [vmem:[#allocation72_spill] sm:$0xff] %v4731_v62  ;;  %490 = vmatpush1.msra.mxu0 %v4731_v62  ;;  %v4737_v0 = vld [vmem:[#allocation8 + $0x28] sm:$0xff]  ;;  %8328 = vst [vmem:[#allocation77_spill] sm:$0xff] %v4745_v60  ;;  %v4751_v62 = vld [vmem:[#allocation8 + $0x18] sm:$0xff] }
  0x6e   :  { %559 = vmatpush1.msra.mxu1 %v4721_v59  ;;  %8325 = vst [vmem:[#allocation74_spill] sm:$0xff] %v4737_v0  ;;  %491 = vmatprep.subr.mxu0 %v4737_v0  ;;  %v4743_v59 = vld [vmem:[#allocation8 + $0x20] sm:$0xff]  ;;  %8330 = vst [vmem:[#allocation79_spill] sm:$0xff] %v4751_v62  ;;  %v4757_v0 = vld [vmem:[#allocation8 + $0x10] sm:$0xff] }
  0x6f   :  { %560 = vmatprep.subr.mxu1 %v4727_v61  ;;  %8327 = vst [vmem:[#allocation76_spill] sm:$0xff] %v4743_v59  ;;  %492 = vmatpush1.msra.mxu0 %v4743_v59  ;;  %v4749_v61 = vld [vmem:[#allocation8 + $0x8] sm:$0xff]  ;;  %8332 = vst [vmem:[#allocation81_spill] sm:$0xff] %v4757_v0  ;;  %v4767_v59 = vld [vmem:[#allocation8 + $0x3f0] sm:$0xff] }
  0x70   :  { %561 = vmatpush1.msra.mxu1 %v4733_v63  ;;  %8329 = vst [vmem:[#allocation78_spill] sm:$0xff] %v4749_v61  ;;  %v4753_v63 = vld [vmem:[#allocation8] sm:$0xff]  ;;  %493 = vmatprep.subr.mxu0 %v4749_v61  ;;  %8336 = vst [vmem:[#allocation85_spill] sm:$0xff] %v4767_v59 }
  0x71   :  { %562 = vmatprep.subr.mxu1 %v4739_v5  ;;  %8331 = vst [vmem:[#allocation80_spill] sm:$0xff] %v4753_v63  ;;  %v4759_v5 = vld [vmem:[#allocation8 + $0x3e8] sm:$0xff]  ;;  %494 = vmatpush1.msra.mxu0 %v4753_v63  ;;  %v4775_v61 = vld [vmem:[#allocation8 + $0x3c0] sm:$0xff]  ;;  %v4873_v63 = vld [vmem:[#allocation8 + $0x2d0] sm:$0xff] }
  0x72   :  { %563 = vmatpush1.msra.mxu1 %v4745_v60  ;;  %8333 = vst [vmem:[#allocation82_spill] sm:$0xff] %v4759_v5  ;;  %v4765_v60 = vld [vmem:[#allocation8 + $0x3e0] sm:$0xff]  ;;  %495 = vmatprep.subr.mxu0 %v4759_v5  ;;  %8339 = vst [vmem:[#allocation88_spill] sm:$0xff] %v4775_v61  ;;  %v4785_v5 = vld [vmem:[#allocation8 + $0x3a8] sm:$0xff] }
  0x73   :  { %564 = vmatprep.subr.mxu1 %v4751_v62  ;;  %8335 = vst [vmem:[#allocation84_spill] sm:$0xff] %v4765_v60  ;;  %v4773_v62 = vld [vmem:[#allocation8 + $0x3d8] sm:$0xff]  ;;  %496 = vmatpush2.msra.mxu0 %v4765_v60  ;;  %8341 = vst [vmem:[#allocation90_spill] sm:$0xff] %v4785_v5  ;;  %v4793_v60 = vld [vmem:[#allocation8 + $0x3b0] sm:$0xff] }
  0x74   :  { %565 = vmatpush1.msra.mxu1 %v4757_v0  ;;  %8338 = vst [vmem:[#allocation87_spill] sm:$0xff] %v4773_v62  ;;  %497 = vmatprep.subr.mxu0 %v4769_v57  ;;  %v4791_v0 = vld [vmem:[#allocation8 + $0x3a0] sm:$0xff]  ;;  %8344 = vst [vmem:[#allocation93_spill] sm:$0xff] %v4793_v60  ;;  %v4857_v57 = vld [vmem:[#allocation8 + $0x2f8] sm:$0xff] }
  0x75   :  { %566 = vmatprep.subr.mxu1 %v4761_v58  ;;  %498 = vmatpush2.msra.mxu0 %v4775_v61  ;;  %v4787_v58 = vld [vmem:[#allocation8 + $0x3b8] sm:$0xff]  ;;  %8343 = vst [vmem:[#allocation92_spill] sm:$0xff] %v4791_v0  ;;  %8366 = vst [vmem:[#allocation115_spill] sm:$0xff] %v4857_v57 }
  0x76   :  { %567 = vmatpush2.msra.mxu1 %v4767_v59  ;;  %8342 = vst [vmem:[#allocation91_spill] sm:$0xff] %v4787_v58  ;;  %499 = vmatprep.subr.mxu0 %v4785_v5  ;;  %v4799_v61 = vld [vmem:[#allocation8 + $0x398] sm:$0xff]  ;;  %v4805_v5 = vld [vmem:[#allocation8 + $0x390] sm:$0xff]  ;;  %v4865_v59 = vld [vmem:[#allocation8 + $0x2c8] sm:$0xff] }
  0x77   :  { %568 = vmatprep.subr.mxu1 %v4773_v62  ;;  %500 = vmatpush2.msra.mxu0 %v4791_v0  ;;  %v4797_v62 = vld [vmem:[#allocation8 + $0x388] sm:$0xff]  ;;  %8346 = vst [vmem:[#allocation95_spill] sm:$0xff] %v4799_v61  ;;  %8348 = vst [vmem:[#allocation97_spill] sm:$0xff] %v4805_v5  ;;  %v4811_v0 = vld [vmem:[#allocation8 + $0x378] sm:$0xff] }
  0x78   :  { %569 = vmatpush2.msra.mxu1 %v4777_v51  ;;  %8345 = vst [vmem:[#allocation94_spill] sm:$0xff] %v4797_v62  ;;  %501 = vmatprep.subr.mxu0 %v4797_v62  ;;  %v4803_v51 = vld [vmem:[#allocation8 + $0x380] sm:$0xff]  ;;  %8350 = vst [vmem:[#allocation99_spill] sm:$0xff] %v4811_v0  ;;  %v4817_v62 = vld [vmem:[#allocation8 + $0x370] sm:$0xff] }
  0x79   :  { %570 = vmatprep.subr.mxu1 %v4787_v58  ;;  %8347 = vst [vmem:[#allocation96_spill] sm:$0xff] %v4803_v51  ;;  %502 = vmatpush2.msra.mxu0 %v4803_v51  ;;  %v4809_v58 = vld [vmem:[#allocation8 + $0x368] sm:$0xff]  ;;  %8352 = vst [vmem:[#allocation101_spill] sm:$0xff] %v4817_v62  ;;  %v4823_v51 = vld [vmem:[#allocation8 + $0x358] sm:$0xff] }
  0x7a   :  { %571 = vmatpush2.msra.mxu1 %v4793_v60  ;;  %8349 = vst [vmem:[#allocation98_spill] sm:$0xff] %v4809_v58  ;;  %503 = vmatprep.subr.mxu0 %v4809_v58  ;;  %v4815_v60 = vld [vmem:[#allocation8 + $0x360] sm:$0xff]  ;;  %8354 = vst [vmem:[#allocation103_spill] sm:$0xff] %v4823_v51  ;;  %v4829_v58 = vld [vmem:[#allocation8 + $0x350] sm:$0xff] }
  0x7b   :  { %572 = vmatprep.subr.mxu1 %v4799_v61  ;;  %8351 = vst [vmem:[#allocation100_spill] sm:$0xff] %v4815_v60  ;;  %504 = vmatpush2.msra.mxu0 %v4815_v60  ;;  %v4821_v61 = vld [vmem:[#allocation8 + $0x348] sm:$0xff]  ;;  %8356 = vst [vmem:[#allocation105_spill] sm:$0xff] %v4829_v58  ;;  %v4835_v60 = vld [vmem:[#allocation8 + $0x338] sm:$0xff] }
  0x7c   :  { %573 = vmatpush2.msra.mxu1 %v4805_v5  ;;  %8353 = vst [vmem:[#allocation102_spill] sm:$0xff] %v4821_v61  ;;  %505 = vmatprep.subr.mxu0 %v4821_v61  ;;  %v4827_v5 = vld [vmem:[#allocation8 + $0x340] sm:$0xff]  ;;  %8358 = vst [vmem:[#allocation107_spill] sm:$0xff] %v4835_v60  ;;  %v4841_v61 = vld [vmem:[#allocation8 + $0x330] sm:$0xff] }
  0x7d   :  { %574 = vmatprep.subr.mxu1 %v4811_v0  ;;  %8355 = vst [vmem:[#allocation104_spill] sm:$0xff] %v4827_v5  ;;  %506 = vmatpush2.msra.mxu0 %v4827_v5  ;;  %v4833_v0 = vld [vmem:[#allocation8 + $0x328] sm:$0xff]  ;;  %8360 = vst [vmem:[#allocation109_spill] sm:$0xff] %v4841_v61  ;;  %v4847_v5 = vld [vmem:[#allocation8 + $0x318] sm:$0xff] }
  0x7e   :  { %575 = vmatpush2.msra.mxu1 %v4817_v62  ;;  %8357 = vst [vmem:[#allocation106_spill] sm:$0xff] %v4833_v0  ;;  %507 = vmatprep.subr.mxu0 %v4833_v0  ;;  %v4839_v62 = vld [vmem:[#allocation8 + $0x320] sm:$0xff]  ;;  %8362 = vst [vmem:[#allocation111_spill] sm:$0xff] %v4847_v5  ;;  %v4853_v0 = vld [vmem:[#allocation8 + $0x310] sm:$0xff] }
  0x7f   :  { %576 = vmatprep.subr.mxu1 %v4823_v51  ;;  %8359 = vst [vmem:[#allocation108_spill] sm:$0xff] %v4839_v62  ;;  %508 = vmatpush2.msra.mxu0 %v4839_v62  ;;  %v4845_v51 = vld [vmem:[#allocation8 + $0x308] sm:$0xff]  ;;  %8364 = vst [vmem:[#allocation113_spill] sm:$0xff] %v4853_v0  ;;  %v4863_v62 = vld [vmem:[#allocation8 + $0x2f0] sm:$0xff] }
  0x80   :  { %577 = vmatpush2.msra.mxu1 %v4829_v58  ;;  %8361 = vst [vmem:[#allocation110_spill] sm:$0xff] %v4845_v51  ;;  %v4849_v58 = vld [vmem:[#allocation8 + $0x300] sm:$0xff]  ;;  %509 = vmatprep.subr.mxu0 %v4845_v51  ;;  %8368 = vst [vmem:[#allocation117_spill] sm:$0xff] %v4863_v62 }
  0x81   :  { %578 = vmatprep.subr.mxu1 %v4835_v60  ;;  %8363 = vst [vmem:[#allocation112_spill] sm:$0xff] %v4849_v58  ;;  %v4855_v60 = vld [vmem:[#allocation8 + $0x2e8] sm:$0xff]  ;;  %510 = vmatpush2.msra.mxu0 %v4849_v58  ;;  %8369 = vst [vmem:[#allocation118_spill] sm:$0xff] %v4865_v59  ;;  %v4871_v51 = vld [vmem:[#allocation8 + $0x2c0] sm:$0xff] }
  0x82   :  { %579 = vmatpush2.msra.mxu1 %v4841_v61  ;;  %8365 = vst [vmem:[#allocation114_spill] sm:$0xff] %v4855_v60  ;;  %v4861_v61 = vld [vmem:[#allocation8 + $0x2e0] sm:$0xff]  ;;  %511 = vmatprep.subr.mxu0 %v4855_v60  ;;  %8371 = vst [vmem:[#allocation120_spill] sm:$0xff] %v4871_v51  ;;  %v4879_v58 = vld [vmem:[#allocation8 + $0x2b8] sm:$0xff] }
  0x83   :  { %580 = vmatprep.subr.mxu1 %v4847_v5  ;;  %8367 = vst [vmem:[#allocation116_spill] sm:$0xff] %v4861_v61  ;;  %v4869_v5 = vld [vmem:[#allocation8 + $0x2d8] sm:$0xff]  ;;  %8372 = vst [vmem:[#allocation121_spill] sm:$0xff] %v4873_v63  ;;  %512 = vmatpush2.msra.mxu0 %v4861_v61  ;;  %v4883_v60 = vld [vmem:[#allocation8 + $0x2a0] sm:$0xff] }
  0x84   :  { %581 = vmatpush2.msra.mxu1 %v4853_v0  ;;  %8370 = vst [vmem:[#allocation119_spill] sm:$0xff] %v4869_v5  ;;  %v4877_v0 = vld [vmem:[#allocation8 + $0x2a8] sm:$0xff]  ;;  %8374 = vst [vmem:[#allocation123_spill] sm:$0xff] %v4879_v58  ;;  %513 = vmatprep.subr.mxu0 %v4865_v59  ;;  %v4891_v61 = vld [vmem:[#allocation8 + $0x298] sm:$0xff] }
  0x85   :  { %582 = vmatprep.subr.mxu1 %v4857_v57  ;;  %8373 = vst [vmem:[#allocation122_spill] sm:$0xff] %v4877_v0  ;;  %8375 = vst [vmem:[#allocation124_spill] sm:$0xff] %v4883_v60  ;;  %v4885_v57 = vld [vmem:[#allocation8 + $0x2b0] sm:$0xff]  ;;  %514 = vmatpush2.msra.mxu0 %v4871_v51  ;;  %v4903_v51 = vld [vmem:[#allocation8 + $0x278] sm:$0xff] }
  0x86   :  { %583 = vmatpush2.msra.mxu1 %v4863_v62  ;;  %8376 = vst [vmem:[#allocation125_spill] sm:$0xff] %v4885_v57  ;;  %8378 = vst [vmem:[#allocation127_spill] sm:$0xff] %v4891_v61  ;;  %515 = vmatprep.subr.mxu0 %v4877_v0  ;;  %v4895_v62 = vld [vmem:[#allocation8 + $0x280] sm:$0xff]  ;;  %v4897_v59 = vld [vmem:[#allocation8 + $0x290] sm:$0xff] }
  0x87   :  { %584 = vmatprep.subr.mxu1 %v4869_v5  ;;  %8379 = vst [vmem:[#allocation128_spill] sm:$0xff] %v4895_v62  ;;  %8380 = vst [vmem:[#allocation129_spill] sm:$0xff] %v4897_v59  ;;  %516 = vmatpush2.msra.mxu0 %v4883_v60  ;;  %v4901_v5 = vld [vmem:[#allocation8 + $0x268] sm:$0xff]  ;;  %v4909_v0 = vld [vmem:[#allocation8 + $0x270] sm:$0xff] }
  0x88   :  { %585 = vmatpush2.msra.mxu1 %v4873_v63  ;;  %8381 = vst [vmem:[#allocation130_spill] sm:$0xff] %v4901_v5  ;;  %8382 = vst [vmem:[#allocation131_spill] sm:$0xff] %v4903_v51  ;;  %517 = vmatprep.subr.mxu0 %v4889_v56  ;;  %v4907_v63 = vld [vmem:[#allocation8 + $0x260] sm:$0xff]  ;;  %v4915_v60 = vld [vmem:[#allocation8 + $0x258] sm:$0xff] }
  0x89   :  { %586 = vmatprep.subr.mxu1 %v4879_v58  ;;  %8383 = vst [vmem:[#allocation132_spill] sm:$0xff] %v4907_v63  ;;  %8384 = vst [vmem:[#allocation133_spill] sm:$0xff] %v4909_v0  ;;  %518 = vmatpush2.msra.mxu0 %v4895_v62  ;;  %v4913_v58 = vld [vmem:[#allocation8 + $0x248] sm:$0xff]  ;;  %v4921_v56 = vld [vmem:[#allocation8 + $0x250] sm:$0xff] }
  0x8a   :  { %587 = vmatpush2.msra.mxu1 %v4885_v57  ;;  %8385 = vst [vmem:[#allocation134_spill] sm:$0xff] %v4913_v58  ;;  %8386 = vst [vmem:[#allocation135_spill] sm:$0xff] %v4915_v60  ;;  %519 = vmatprep.subr.mxu0 %v4901_v5  ;;  %v4919_v57 = vld [vmem:[#allocation8 + $0x240] sm:$0xff]  ;;  %v4927_v62 = vld [vmem:[#allocation8 + $0x238] sm:$0xff] }
  0x8b   :  { %588 = vmatprep.subr.mxu1 %v4891_v61  ;;  %8387 = vst [vmem:[#allocation136_spill] sm:$0xff] %v4919_v57  ;;  %8388 = vst [vmem:[#allocation137_spill] sm:$0xff] %v4921_v56  ;;  %520 = vmatpush2.msra.mxu0 %v4907_v63  ;;  %v4925_v61 = vld [vmem:[#allocation8 + $0x228] sm:$0xff]  ;;  %v4933_v5 = vld [vmem:[#allocation8 + $0x230] sm:$0xff] }
  0x8c   :  { %589 = vmatpush2.msra.mxu1 %v4897_v59  ;;  %8389 = vst [vmem:[#allocation138_spill] sm:$0xff] %v4925_v61  ;;  %8390 = vst [vmem:[#allocation139_spill] sm:$0xff] %v4927_v62  ;;  %521 = vmatprep.subr.mxu0 %v4913_v58  ;;  %v4931_v59 = vld [vmem:[#allocation8 + $0x220] sm:$0xff]  ;;  %v4939_v63 = vld [vmem:[#allocation8 + $0x218] sm:$0xff] }
  0x8d   :  { %590 = vmatprep.subr.mxu1 %v4903_v51  ;;  %8391 = vst [vmem:[#allocation140_spill] sm:$0xff] %v4931_v59  ;;  %8392 = vst [vmem:[#allocation141_spill] sm:$0xff] %v4933_v5  ;;  %522 = vmatpush2.msra.mxu0 %v4919_v57  ;;  %v4937_v51 = vld [vmem:[#allocation8 + $0x208] sm:$0xff]  ;;  %v4945_v58 = vld [vmem:[#allocation8 + $0x210] sm:$0xff] }
  0x8e   :  { %591 = vmatpush2.msra.mxu1 %v4909_v0  ;;  %8393 = vst [vmem:[#allocation142_spill] sm:$0xff] %v4937_v51  ;;  %8394 = vst [vmem:[#allocation143_spill] sm:$0xff] %v4939_v63  ;;  %523 = vmatprep.subr.mxu0 %v4925_v61  ;;  %v4943_v0 = vld [vmem:[#allocation8 + $0x200] sm:$0xff]  ;;  %v8397_v61 = vmov 0.0  }
  0x8f   :  { %592 = vmatprep.subr.mxu1 %v4915_v60  ;;  %8395 = vst [vmem:[#allocation144_spill] sm:$0xff] %v4943_v0  ;;  %8396 = vst [vmem:[#allocation145_spill] sm:$0xff] %v4945_v58  ;;  %524 = vmatpush2.msra.mxu0 %v4931_v59 }
  0x90   :  { %593 = vmatpush2.msra.mxu1 %v4921_v56  ;;  %525 = vmatprep.subr.mxu0 %v4937_v51  ;;  %v257_v51 = vstv %s256_s3 }
  0x91   :  { %594 = vmatprep.subr.mxu1 %v4927_v62  ;;  %526 = vmatpush2.msra.mxu0 %v4943_v0  ;;  %v261_v62 = vlaneseq  ;;  %v4970_v0 = vld [vmem:[%s7679_s2] sm:$0x7] }
  0x92   :  { %595 = vmatpush2.msra.mxu1 %v4933_v5  ;;  %627 = vmatprep.subr.mxu0 %v4402_v1  ;;  %v4960_v5 = vld [vmem:[%s7678_s1] sm:$0x7]  ;;  %8399 = vst [vmem:[#allocation147_spill] sm:$0xff] %v4970_v0 }
  0x93   :  { %596 = vmatprep.subr.mxu1 %v4939_v63  ;;  %v4955_v56 = vshrl.u32 %v261_v62, 7  ;;  %8398 = vst [vmem:[#allocation146_spill] sm:$0xff] %v4960_v5  ;;  %v258_v1 = vmul.f32 %v257_v51, %v4960_v5 }
  0x94   :  { %597 = vmatpush2.msra.mxu1 %v4945_v58  ;;  %v126_v58 = vld [vmem:[%s7681_s4] sm:$0x7] }
  0x95   :  { %3266 = vmatprep.subr.mxu1 %v8397_v61  ;;  %v7818_v63 = vsub.s32 0, %v4955_v56  ;;  %v259_v59 = vadd.f32 %v258_v1, %v4970_v0  ;;  %v7823_v49 = vsub.s32 1, %v4955_v56 }
  0x97   :  { %v4974_v62 = vrot.slane %v126_v58, %v7818_v63  ;;  %v4981_v51 = vrot.slane %v126_v58, %v7823_v49  ;;  %v425_v63 = vrot.slane %v259_v59, 1  ;;  %v435_v49 = vrot.slane %v259_v59, 2 }
  0x99   :  { %8400 = vst [vmem:[#allocation148_spill] sm:$0xff] %v4974_v62  ;;  %8401 = vst [vmem:[#allocation149_spill] sm:$0xff] %v4981_v51 }
 0x110   :  { %v342_v57 = vpop.f32.mrf.mxu0 }
 0x111   :  { %v343_v60 = vadd.f32 %v342_v57, %v4974_v62  ;;  %v271_v57 = vsub.s32 2, %v4955_v56 }
 0x112   :  { %v344_v5 = vpop.f32.mrf.mxu0 }
 0x113   :  { %v417_v55 = vadd.f32 %v343_v60, %v259_v59  ;;  %v345_v46 = vadd.f32 %v344_v5, %v4981_v51  ;;  %v8449_v59 = vld [vmem:[#allocation62_spill] sm:$0xff] }
 0x115   :  { %v3039_v48 = vmul.f32 -1.442695, %v417_v55  ;;  %v413_v54 = vpop.f32.mrf.mxu1  ;;  %v427_v44 = vadd.f32 %v425_v63, %v345_v46  ;;  %v4987_v55 = vrot.slane %v126_v58, %v271_v57  ;;  %v8448_v58 = vld [vmem:[#allocation61_spill] sm:$0xff] }
 0x117   :  { %3556 = vpow2.f32 %v3039_v48  ;;  %v3265_v53 = vpop.f32.mrf.mxu1  ;;  %v3040_v1 = vmul.f32 -1.442695, %v427_v44  ;;  %v414_v48 = vadd.f32 %v413_v54, %v4987_v55  ;;  %v8447_v54 = vld [vmem:[#allocation60_spill] sm:$0xff] }
 0x119   :  { %3558 = vpow2.f32 %v3040_v1  ;;  %v8452_v1 = vld [vmem:[#allocation65_spill] sm:$0xff] }
 0x124   :  { %v3557_v0 = vpop.eup %3556 }
 0x125   :  { %v421_v42 = vadd.f32 1.0, %v3557_v0 }
 0x126   :  { %v3559_v60 = vpop.eup %3558 }
 0x127   :  { %3560 = vrcp.f32 %v421_v42  ;;  %v431_v51 = vadd.f32 1.0, %v3559_v60  ;;  %v8454_v60 = vld [vmem:[#allocation67_spill] sm:$0xff] }
 0x134   :  { %v3561_v62 = vpop.eup %3560 }
 0x135   :  { %v434_v5 = vmul.f32 %v3561_v62, %v414_v48  ;;  %v8450_v62 = vld [vmem:[#allocation63_spill] sm:$0xff]  ;;  %v8453_v48 = vld [vmem:[#allocation66_spill] sm:$0xff] }
 0x137   :  { %v437_v53 = vadd.f32 %v435_v49, %v434_v5  ;;  %v8444_v49 = vld [vmem:[#allocation57_spill] sm:$0xff]  ;;  %v8455_v5 = vld [vmem:[#allocation68_spill] sm:$0xff] }
 0x139   :  { %3562 = vtanh.f32 %v437_v53  ;;  %v8456_v53 = vld [vmem:[#allocation69_spill] sm:$0xff] }
 0x13a   :  { %3564 = vrcp.f32 %v431_v51  ;;  %v8451_v51 = vld [vmem:[#allocation64_spill] sm:$0xff] }
 0x146   :  { %v3563_v44 = vpop.eup %3562 }
 0x147   :  { %v439_v46 = vsub.f32 0.0, %v3563_v44  ;;  %v3565_v63 = vpop.eup %3564 }
 0x149   :  { %v440_v42 = vmul.f32 %v3565_v63, %v439_v46  ;;  %v8458_v46 = vld [vmem:[#allocation71_spill] sm:$0xff]  ;;  %v8459_v63 = vld [vmem:[#allocation72_spill] sm:$0xff] }
 0x14b   :  { %v4990_v0 = vadd.f32 %v3563_v44, %v440_v42  ;;  %v8457_v44 = vld [vmem:[#allocation70_spill] sm:$0xff]  ;;  %v8460_v42 = vld [vmem:[#allocation73_spill] sm:$0xff] }
 0x14d   :  { %528 = vmatmul.mubr.f32.vlgmr.msra.gmra.mxu0 %v4990_v0  ;;  %599 = vmatmul.mubr.f32.vlgmr.msra.gmra.mxu1 %v4990_v0 }
 0x14e   :  { %628 = vmatpush1.msra.mxu0 %v4404_v2  ;;  %3267 = vmatpush3.msra.mxu1 %v4442_v15  ;;  %v8402_v2 = vld [vmem:[#allocation15_spill] sm:$0xff] }
 0x14f   :  { %629 = vmatprep.subr.mxu0 %v4406_v3  ;;  %3268 = vmatprep.subr.mxu1 %v8397_v61  ;;  %v8403_v3 = vld [vmem:[#allocation16_spill] sm:$0xff]  ;;  %v8414_v15 = vld [vmem:[#allocation27_spill] sm:$0xff] }
 0x150   :  { %630 = vmatpush1.msra.mxu0 %v4409_v4  ;;  %3269 = vmatpush3.msra.mxu1 %v4448_v17  ;;  %v8404_v4 = vld [vmem:[#allocation21_spill] sm:$0xff] }
 0x151   :  { %631 = vmatprep.subr.mxu0 %v4413_v6  ;;  %3270 = vmatprep.subr.mxu1 %v8397_v61  ;;  %v8405_v6 = vld [vmem:[#allocation17_spill] sm:$0xff] }
 0x152   :  { %632 = vmatpush1.msra.mxu0 %v4417_v7  ;;  %3271 = vmatpush3.msra.mxu1 %v4454_v19  ;;  %v8406_v7 = vld [vmem:[#allocation22_spill] sm:$0xff]  ;;  %v8416_v17 = vld [vmem:[#allocation29_spill] sm:$0xff]  ;;  %v8418_v19 = vld [vmem:[#allocation31_spill] sm:$0xff] }
 0x153   :  { %633 = vmatprep.subr.mxu0 %v4422_v8  ;;  %3272 = vmatprep.subr.mxu1 %v8397_v61  ;;  %v8407_v8 = vld [vmem:[#allocation18_spill] sm:$0xff] }
 0x154   :  { %634 = vmatpush1.msra.mxu0 %v4425_v9  ;;  %3273 = vmatpush3.msra.mxu1 %v4464_v22  ;;  %v8408_v9 = vld [vmem:[#allocation23_spill] sm:$0xff]  ;;  %v8421_v22 = vld [vmem:[#allocation34_spill] sm:$0xff] }
 0x155   :  { %635 = vmatprep.subr.mxu0 %v4428_v10  ;;  %3274 = vmatprep.subr.mxu1 %v8397_v61  ;;  %v8409_v10 = vld [vmem:[#allocation19_spill] sm:$0xff] }
 0x156   :  { %636 = vmatpush1.msra.mxu0 %v4431_v11  ;;  %3275 = vmatpush3.msra.mxu1 %v4474_v25  ;;  %v8410_v11 = vld [vmem:[#allocation24_spill] sm:$0xff]  ;;  %v8424_v25 = vld [vmem:[#allocation37_spill] sm:$0xff] }
 0x157   :  { %637 = vmatprep.subr.mxu0 %v4434_v12  ;;  %3276 = vmatprep.subr.mxu1 %v8397_v61  ;;  %v8411_v12 = vld [vmem:[#allocation20_spill] sm:$0xff] }
 0x158   :  { %638 = vmatpush1.msra.mxu0 %v4437_v13  ;;  %3277 = vmatpush3.msra.mxu1 %v4484_v28  ;;  %v8412_v13 = vld [vmem:[#allocation25_spill] sm:$0xff]  ;;  %v8427_v28 = vld [vmem:[#allocation40_spill] sm:$0xff] }
 0x159   :  { %639 = vmatprep.subr.mxu0 %v4440_v14  ;;  %3278 = vmatprep.subr.mxu1 %v8397_v61  ;;  %v8413_v14 = vld [vmem:[#allocation26_spill] sm:$0xff] }
 0x15a   :  { %640 = vmatpush1.msra.mxu0 %v4445_v16  ;;  %3279 = vmatpush3.msra.mxu1 %v4494_v31  ;;  %v8415_v16 = vld [vmem:[#allocation28_spill] sm:$0xff]  ;;  %v8430_v31 = vld [vmem:[#allocation43_spill] sm:$0xff] }
 0x15b   :  { %641 = vmatprep.subr.mxu0 %v4451_v18  ;;  %3280 = vmatprep.subr.mxu1 %v8397_v61  ;;  %v8417_v18 = vld [vmem:[#allocation30_spill] sm:$0xff] }
 0x15c   :  { %642 = vmatpush1.msra.mxu0 %v4457_v20  ;;  %3281 = vmatpush3.msra.mxu1 %v4504_v34  ;;  %v8419_v20 = vld [vmem:[#allocation32_spill] sm:$0xff]  ;;  %v8433_v34 = vld [vmem:[#allocation46_spill] sm:$0xff] }
 0x15d   :  { %643 = vmatprep.subr.mxu0 %v4461_v21  ;;  %3282 = vmatprep.subr.mxu1 %v8397_v61  ;;  %v8420_v21 = vld [vmem:[#allocation33_spill] sm:$0xff] }
 0x15e   :  { %644 = vmatpush1.msra.mxu0 %v4467_v23  ;;  %3283 = vmatpush3.msra.mxu1 %v4514_v37  ;;  %v8422_v23 = vld [vmem:[#allocation35_spill] sm:$0xff]  ;;  %v8436_v37 = vld [vmem:[#allocation49_spill] sm:$0xff] }
 0x15f   :  { %645 = vmatprep.subr.mxu0 %v4471_v24  ;;  %3284 = vmatprep.subr.mxu1 %v8397_v61  ;;  %v8423_v24 = vld [vmem:[#allocation36_spill] sm:$0xff] }
 0x160   :  { %646 = vmatpush1.msra.mxu0 %v4477_v26  ;;  %3285 = vmatpush3.msra.mxu1 %v4524_v40  ;;  %v8425_v26 = vld [vmem:[#allocation38_spill] sm:$0xff]  ;;  %v8439_v40 = vld [vmem:[#allocation52_spill] sm:$0xff] }
 0x161   :  { %647 = vmatprep.subr.mxu0 %v4481_v27  ;;  %3286 = vmatprep.subr.mxu1 %v8397_v61  ;;  %v8426_v27 = vld [vmem:[#allocation39_spill] sm:$0xff] }
 0x162   :  { %648 = vmatpush1.msra.mxu0 %v4487_v29  ;;  %3287 = vmatpush3.msra.mxu1 %v4534_v43  ;;  %v8428_v29 = vld [vmem:[#allocation41_spill] sm:$0xff]  ;;  %v8441_v43 = vld [vmem:[#allocation54_spill] sm:$0xff] }
 0x163   :  { %649 = vmatprep.subr.mxu0 %v4491_v30  ;;  %3288 = vmatprep.subr.mxu1 %v8397_v61  ;;  %v8429_v30 = vld [vmem:[#allocation42_spill] sm:$0xff] }
 0x164   :  { %650 = vmatpush1.msra.mxu0 %v4497_v32  ;;  %3289 = vmatpush3.msra.mxu1 %v4542_v45  ;;  %v8431_v32 = vld [vmem:[#allocation44_spill] sm:$0xff]  ;;  %v8442_v45 = vld [vmem:[#allocation55_spill] sm:$0xff] }
 0x165   :  { %651 = vmatprep.subr.mxu0 %v4501_v33  ;;  %3290 = vmatprep.subr.mxu1 %v8397_v61  ;;  %v8432_v33 = vld [vmem:[#allocation45_spill] sm:$0xff] }
 0x166   :  { %652 = vmatpush1.msra.mxu0 %v4507_v35  ;;  %3291 = vmatpush3.msra.mxu1 %v4550_v47  ;;  %v8434_v35 = vld [vmem:[#allocation47_spill] sm:$0xff]  ;;  %v8443_v47 = vld [vmem:[#allocation56_spill] sm:$0xff] }
 0x167   :  { %653 = vmatprep.subr.mxu0 %v4511_v36  ;;  %3292 = vmatprep.subr.mxu1 %v8397_v61  ;;  %v8435_v36 = vld [vmem:[#allocation48_spill] sm:$0xff] }
 0x168   :  { %654 = vmatpush1.msra.mxu0 %v4517_v38  ;;  %3293 = vmatpush3.msra.mxu1 %v4559_v50  ;;  %v8437_v38 = vld [vmem:[#allocation50_spill] sm:$0xff] }
 0x169   :  { %655 = vmatprep.subr.mxu0 %v4521_v39  ;;  %3294 = vmatprep.subr.mxu1 %v8397_v61  ;;  %v8438_v39 = vld [vmem:[#allocation51_spill] sm:$0xff]  ;;  %v8445_v50 = vld [vmem:[#allocation58_spill] sm:$0xff] }
 0x16a   :  { %656 = vmatpush1.msra.mxu0 %v4527_v41  ;;  %3295 = vmatpush3.msra.mxu1 %v4567_v52  ;;  %v8440_v41 = vld [vmem:[#allocation53_spill] sm:$0xff]  ;;  %v8446_v52 = vld [vmem:[#allocation59_spill] sm:$0xff] }
 0x16b   :  { %657 = vmatprep.subr.mxu0 %v8402_v2  ;;  %3296 = vmatprep.subr.mxu1 %v8397_v61  ;;  %v8461_v2 = vld [vmem:[#allocation74_spill] sm:$0xff] }
 0x16c   :  { %658 = vmatpush1.msra.mxu0 %v8403_v3  ;;  %691 = vmatprep.mubr.f32.mxu0 %v8397_v61  ;;  %v8462_v3 = vld [vmem:[#allocation75_spill] sm:$0xff] }
 0x16d   :  { %3297 = vmatpush3.msra.mxu1 %v8404_v4  ;;  %3298 = vmatprep.mubr.msk.f32.mxu1 %vm4338_vm0, %v8397_v61  ;;  %v8463_v4 = vld [vmem:[#allocation76_spill] sm:$0xff] }
 0x16e   :  { %692 = vmatmul.mubr.f32.vlgmr.msra.gmra.mxu0 %v4990_v0  ;;  %3299 = vmatmul.mubr.f32.vlgmr.msra.gmra.mxu1 %v4990_v0 }
 0x16f   :  { %793 = vmatprep.subr.mxu0 %v8405_v6  ;;  %864 = vmatprep.subr.mxu1 %v8406_v7  ;;  %v8464_v6 = vld [vmem:[#allocation77_spill] sm:$0xff]  ;;  %v8465_v7 = vld [vmem:[#allocation78_spill] sm:$0xff] }
 0x170   :  { %794 = vmatpush1.msra.mxu0 %v8407_v8  ;;  %865 = vmatpush1.msra.mxu1 %v8408_v9  ;;  %v8466_v8 = vld [vmem:[#allocation79_spill] sm:$0xff]  ;;  %v8467_v9 = vld [vmem:[#allocation80_spill] sm:$0xff] }
 0x171   :  { %795 = vmatprep.subr.mxu0 %v8409_v10  ;;  %866 = vmatprep.subr.mxu1 %v8410_v11  ;;  %v8468_v10 = vld [vmem:[#allocation81_spill] sm:$0xff]  ;;  %v8469_v11 = vld [vmem:[#allocation82_spill] sm:$0xff] }
 0x172   :  { %796 = vmatpush1.msra.mxu0 %v8411_v12  ;;  %867 = vmatpush1.msra.mxu1 %v8412_v13  ;;  %v8470_v12 = vld [vmem:[#allocation83_spill] sm:$0xff]  ;;  %v8471_v13 = vld [vmem:[#allocation84_spill] sm:$0xff] }
 0x173   :  { %797 = vmatprep.subr.mxu0 %v8413_v14  ;;  %868 = vmatprep.subr.mxu1 %v8414_v15  ;;  %v8472_v14 = vld [vmem:[#allocation85_spill] sm:$0xff]  ;;  %v8473_v15 = vld [vmem:[#allocation86_spill] sm:$0xff] }
 0x174   :  { %798 = vmatpush1.msra.mxu0 %v8415_v16  ;;  %869 = vmatpush1.msra.mxu1 %v8416_v17  ;;  %v8474_v16 = vld [vmem:[#allocation87_spill] sm:$0xff]  ;;  %v8475_v17 = vld [vmem:[#allocation88_spill] sm:$0xff] }
 0x175   :  { %799 = vmatprep.subr.mxu0 %v8417_v18  ;;  %870 = vmatprep.subr.mxu1 %v8418_v19  ;;  %v8476_v18 = vld [vmem:[#allocation89_spill] sm:$0xff]  ;;  %v8477_v19 = vld [vmem:[#allocation90_spill] sm:$0xff] }
 0x176   :  { %800 = vmatpush1.msra.mxu0 %v8419_v20  ;;  %871 = vmatpush1.msra.mxu1 %v8420_v21  ;;  %v8478_v20 = vld [vmem:[#allocation91_spill] sm:$0xff]  ;;  %v8479_v21 = vld [vmem:[#allocation92_spill] sm:$0xff] }
 0x177   :  { %801 = vmatprep.subr.mxu0 %v8421_v22  ;;  %872 = vmatprep.subr.mxu1 %v8422_v23  ;;  %v8480_v22 = vld [vmem:[#allocation93_spill] sm:$0xff]  ;;  %v8481_v23 = vld [vmem:[#allocation94_spill] sm:$0xff] }
 0x178   :  { %802 = vmatpush1.msra.mxu0 %v8423_v24  ;;  %873 = vmatpush1.msra.mxu1 %v8424_v25  ;;  %v8482_v24 = vld [vmem:[#allocation95_spill] sm:$0xff]  ;;  %v8483_v25 = vld [vmem:[#allocation96_spill] sm:$0xff] }
 0x179   :  { %803 = vmatprep.subr.mxu0 %v8425_v26  ;;  %874 = vmatprep.subr.mxu1 %v8426_v27  ;;  %v8484_v26 = vld [vmem:[#allocation97_spill] sm:$0xff]  ;;  %v8485_v27 = vld [vmem:[#allocation98_spill] sm:$0xff] }
 0x17a   :  { %804 = vmatpush1.msra.mxu0 %v8427_v28  ;;  %875 = vmatpush1.msra.mxu1 %v8428_v29  ;;  %v8486_v28 = vld [vmem:[#allocation99_spill] sm:$0xff]  ;;  %v8487_v29 = vld [vmem:[#allocation100_spill] sm:$0xff] }
 0x17b   :  { %805 = vmatprep.subr.mxu0 %v8429_v30  ;;  %876 = vmatprep.subr.mxu1 %v8430_v31  ;;  %v8488_v30 = vld [vmem:[#allocation101_spill] sm:$0xff]  ;;  %v8489_v31 = vld [vmem:[#allocation102_spill] sm:$0xff] }
 0x17c   :  { %806 = vmatpush1.msra.mxu0 %v8431_v32  ;;  %877 = vmatpush1.msra.mxu1 %v8432_v33  ;;  %v8490_v32 = vld [vmem:[#allocation103_spill] sm:$0xff]  ;;  %v8491_v33 = vld [vmem:[#allocation104_spill] sm:$0xff] }
 0x17d   :  { %807 = vmatprep.subr.mxu0 %v8433_v34  ;;  %878 = vmatprep.subr.mxu1 %v8434_v35  ;;  %v8492_v34 = vld [vmem:[#allocation105_spill] sm:$0xff]  ;;  %v8493_v35 = vld [vmem:[#allocation106_spill] sm:$0xff] }
 0x17e   :  { %808 = vmatpush1.msra.mxu0 %v8435_v36  ;;  %879 = vmatpush1.msra.mxu1 %v8436_v37  ;;  %v8494_v36 = vld [vmem:[#allocation107_spill] sm:$0xff]  ;;  %v8495_v37 = vld [vmem:[#allocation108_spill] sm:$0xff] }
 0x17f   :  { %809 = vmatprep.subr.mxu0 %v8437_v38  ;;  %880 = vmatprep.subr.mxu1 %v8438_v39  ;;  %v8496_v38 = vld [vmem:[#allocation109_spill] sm:$0xff]  ;;  %v8497_v39 = vld [vmem:[#allocation110_spill] sm:$0xff] }
 0x180   :  { %810 = vmatpush1.msra.mxu0 %v8439_v40  ;;  %881 = vmatpush1.msra.mxu1 %v8440_v41  ;;  %v8498_v40 = vld [vmem:[#allocation111_spill] sm:$0xff]  ;;  %v8499_v41 = vld [vmem:[#allocation112_spill] sm:$0xff] }
 0x181   :  { %811 = vmatprep.subr.mxu0 %v8441_v43  ;;  %882 = vmatprep.subr.mxu1 %v8442_v45  ;;  %v8500_v43 = vld [vmem:[#allocation113_spill] sm:$0xff]  ;;  %v8501_v45 = vld [vmem:[#allocation114_spill] sm:$0xff] }
 0x182   :  { %812 = vmatpush1.msra.mxu0 %v8443_v47  ;;  %883 = vmatpush1.msra.mxu1 %v8444_v49  ;;  %v8502_v47 = vld [vmem:[#allocation115_spill] sm:$0xff]  ;;  %v8503_v49 = vld [vmem:[#allocation116_spill] sm:$0xff] }
 0x183   :  { %813 = vmatprep.subr.mxu0 %v8445_v50  ;;  %884 = vmatprep.subr.mxu1 %v8446_v52  ;;  %v8504_v50 = vld [vmem:[#allocation117_spill] sm:$0xff]  ;;  %v8505_v52 = vld [vmem:[#allocation118_spill] sm:$0xff] }
 0x184   :  { %814 = vmatpush1.msra.mxu0 %v8447_v54  ;;  %885 = vmatpush1.msra.mxu1 %v8448_v58  ;;  %v8506_v54 = vld [vmem:[#allocation119_spill] sm:$0xff]  ;;  %v8507_v58 = vld [vmem:[#allocation120_spill] sm:$0xff] }
 0x185   :  { %815 = vmatprep.subr.mxu0 %v8449_v59  ;;  %886 = vmatprep.subr.mxu1 %v8450_v62  ;;  %v8508_v59 = vld [vmem:[#allocation121_spill] sm:$0xff]  ;;  %v8509_v62 = vld [vmem:[#allocation122_spill] sm:$0xff] }
 0x186   :  { %816 = vmatpush1.msra.mxu0 %v8451_v51  ;;  %887 = vmatpush1.msra.mxu1 %v8452_v1  ;;  %v8510_v51 = vld [vmem:[#allocation123_spill] sm:$0xff]  ;;  %v8511_v1 = vld [vmem:[#allocation124_spill] sm:$0xff] }
 0x187   :  { %817 = vmatprep.subr.mxu0 %v8453_v48  ;;  %888 = vmatprep.subr.mxu1 %v8454_v60  ;;  %v8512_v48 = vld [vmem:[#allocation125_spill] sm:$0xff]  ;;  %v8513_v60 = vld [vmem:[#allocation126_spill] sm:$0xff] }
 0x188   :  { %818 = vmatpush1.msra.mxu0 %v8455_v5  ;;  %889 = vmatpush1.msra.mxu1 %v8456_v53  ;;  %v8514_v5 = vld [vmem:[#allocation127_spill] sm:$0xff]  ;;  %v8515_v53 = vld [vmem:[#allocation128_spill] sm:$0xff] }
 0x189   :  { %819 = vmatprep.subr.mxu0 %v8457_v44  ;;  %890 = vmatprep.subr.mxu1 %v8458_v46  ;;  %v8516_v44 = vld [vmem:[#allocation129_spill] sm:$0xff]  ;;  %v8517_v46 = vld [vmem:[#allocation130_spill] sm:$0xff] }
 0x18a   :  { %820 = vmatpush1.msra.mxu0 %v8459_v63  ;;  %891 = vmatpush1.msra.mxu1 %v8460_v42  ;;  %v8518_v63 = vld [vmem:[#allocation131_spill] sm:$0xff]  ;;  %v8519_v42 = vld [vmem:[#allocation132_spill] sm:$0xff] }
 0x18b   :  { %821 = vmatprep.subr.mxu0 %v8461_v2  ;;  %892 = vmatprep.subr.mxu1 %v8462_v3  ;;  %v8520_v2 = vld [vmem:[#allocation133_spill] sm:$0xff]  ;;  %v8521_v3 = vld [vmem:[#allocation134_spill] sm:$0xff] }
 0x18c   :  { %822 = vmatpush1.msra.mxu0 %v8463_v4  ;;  %893 = vmatpush1.msra.mxu1 %v8464_v6  ;;  %v8522_v4 = vld [vmem:[#allocation135_spill] sm:$0xff]  ;;  %v8523_v6 = vld [vmem:[#allocation136_spill] sm:$0xff] }
 0x18d   :  { %823 = vmatprep.subr.mxu0 %v8465_v7  ;;  %894 = vmatprep.subr.mxu1 %v8466_v8  ;;  %v8524_v7 = vld [vmem:[#allocation137_spill] sm:$0xff]  ;;  %v8525_v8 = vld [vmem:[#allocation138_spill] sm:$0xff] }
 0x18e   :  { %824 = vmatpush1.msra.mxu0 %v8467_v9  ;;  %895 = vmatpush1.msra.mxu1 %v8468_v10  ;;  %v8526_v9 = vld [vmem:[#allocation139_spill] sm:$0xff]  ;;  %v8527_v10 = vld [vmem:[#allocation140_spill] sm:$0xff] }
 0x18f   :  { %825 = vmatprep.subr.mxu0 %v8469_v11  ;;  %896 = vmatprep.subr.mxu1 %v8470_v12  ;;  %v8528_v11 = vld [vmem:[#allocation141_spill] sm:$0xff]  ;;  %v8529_v12 = vld [vmem:[#allocation142_spill] sm:$0xff] }
 0x190   :  { %826 = vmatpush2.msra.mxu0 %v8471_v13  ;;  %897 = vmatpush2.msra.mxu1 %v8472_v14  ;;  %v8530_v13 = vld [vmem:[#allocation143_spill] sm:$0xff]  ;;  %v8531_v14 = vld [vmem:[#allocation144_spill] sm:$0xff] }
 0x191   :  { %827 = vmatprep.subr.mxu0 %v8473_v15  ;;  %898 = vmatprep.subr.mxu1 %v8474_v16  ;;  %v8532_v15 = vld [vmem:[#allocation145_spill] sm:$0xff] }
 0x192   :  { %828 = vmatpush2.msra.mxu0 %v8475_v17  ;;  %899 = vmatpush2.msra.mxu1 %v8476_v18  ;;  %v5189_v16 = vld [vmem:[#allocation7 + $0x170] sm:$0xff]  ;;  %v255_v17 = vld [vmem:[%s7683_s6] sm:$0xf]  ;;  %v8533_v18 = vsub.s32 0, %v4955_v56  ;;  %s3048_s6 = sld [smem:[#allocation3 + $0x2]] }
 0x193   :  { %829 = vmatprep.subr.mxu0 %v8477_v19  ;;  %900 = vmatprep.subr.mxu1 %v8478_v20 }
 0x194   :  { %830 = vmatpush2.msra.mxu0 %v8479_v21  ;;  %901 = vmatpush2.msra.mxu1 %v8480_v22  ;;  %v5198_v19 = vrot.slane %v255_v17, %v8533_v18 }
 0x195   :  { %831 = vmatprep.subr.mxu0 %v8481_v23  ;;  %902 = vmatprep.subr.mxu1 %v8482_v24  ;;  %v8535_v23 = vsub.s32 1, %v4955_v56 }
 0x196   :  { %832 = vmatpush2.msra.mxu0 %v8483_v25  ;;  %903 = vmatpush2.msra.mxu1 %v8484_v26  ;;  %8534 = vst [vmem:[#allocation15_spill] sm:$0xff] %v5198_v19 }
 0x197   :  { %833 = vmatprep.subr.mxu0 %v8485_v27  ;;  %904 = vmatprep.subr.mxu1 %v8486_v28  ;;  %v5203_v24 = vrot.slane %v255_v17, %v8535_v23  ;;  %v5242_v23 = vld [vmem:[#allocation7 + $0x160] sm:$0xff] }
 0x198   :  { %834 = vmatpush2.msra.mxu0 %v8487_v29  ;;  %905 = vmatpush2.msra.mxu1 %v8488_v30  ;;  %v457_v30 = vsub.s32 3, %v4955_v56 }
 0x199   :  { %835 = vmatprep.subr.mxu0 %v8489_v31  ;;  %906 = vmatprep.subr.mxu1 %v8490_v32  ;;  %8536 = vst [vmem:[#allocation16_spill] sm:$0xff] %v5203_v24  ;;  %v624_v31 = vstv %s3043_s13 }
 0x19a   :  { %836 = vmatpush2.msra.mxu0 %v8491_v33  ;;  %907 = vmatpush2.msra.mxu1 %v8492_v34  ;;  %v8537_v33 = vld [vmem:[#allocation146_spill] sm:$0xff] }
 0x19b   :  { %837 = vmatprep.subr.mxu0 %v8493_v35  ;;  %908 = vmatprep.subr.mxu1 %v8494_v36  ;;  %v625_v34 = vmul.f32 %v624_v31, %v8537_v33  ;;  %v5208_v35 = vrot.slane %v255_v17, %v457_v30  ;;  %v5262_v30 = vld [vmem:[#allocation7 + $0x130] sm:$0xff]  ;;  %v5272_v33 = vld [vmem:[#allocation7 + $0x118] sm:$0xff] }
 0x19c   :  { %838 = vmatpush2.msra.mxu0 %v8495_v37  ;;  %909 = vmatpush2.msra.mxu1 %v8496_v38  ;;  %v5212_v37 = vrot.slane %v255_v17, %v271_v57  ;;  %v8539_v38 = vld [vmem:[#allocation147_spill] sm:$0xff]  ;;  %v5265_v31 = vld [vmem:[#allocation7 + $0x110] sm:$0xff] }
 0x19d   :  { %839 = vmatprep.subr.mxu0 %v8497_v39  ;;  %910 = vmatprep.subr.mxu1 %v8498_v40  ;;  %8538 = vst [vmem:[#allocation21_spill] sm:$0xff] %v5208_v35  ;;  %v626_v39 = vadd.f32 %v625_v34, %v8539_v38  ;;  %v5275_v34 = vld [vmem:[#allocation7 + $0xf8] sm:$0xff]  ;;  %v5282_v38 = vld [vmem:[#allocation7 + $0x100] sm:$0xff] }
 0x19e   :  { %840 = vmatpush2.msra.mxu0 %v8499_v41  ;;  %911 = vmatpush2.msra.mxu1 %v8500_v43 }
 0x19f   :  { %841 = vmatprep.subr.mxu0 %v8501_v45  ;;  %912 = vmatprep.subr.mxu1 %v8502_v47 }
 0x1a0   :  { %842 = vmatpush2.msra.mxu0 %v8503_v49  ;;  %913 = vmatpush2.msra.mxu1 %v8504_v50  ;;  %v8540_v49 = vld [vmem:[#allocation148_spill] sm:$0xff] }
 0x1a1   :  { %843 = vmatprep.subr.mxu0 %v8505_v52  ;;  %914 = vmatprep.subr.mxu1 %v8506_v54 }
 0x1a2   :  { %844 = vmatpush2.msra.mxu0 %v8507_v58  ;;  %915 = vmatpush2.msra.mxu1 %v8508_v59 }
 0x1a3   :  { %845 = vmatprep.subr.mxu0 %v8509_v62  ;;  %916 = vmatprep.subr.mxu1 %v8510_v51 }
 0x1a4   :  { %846 = vmatpush2.msra.mxu0 %v8511_v1  ;;  %917 = vmatpush2.msra.mxu1 %v8512_v48  ;;  %v8541_v1 = vld [vmem:[#allocation149_spill] sm:$0xff] }
 0x1a5   :  { %847 = vmatprep.subr.mxu0 %v8513_v60  ;;  %918 = vmatprep.subr.mxu1 %v8514_v5  ;;  %v776_v60 = vrot.slane %v626_v39, 1 }
 0x1a6   :  { %848 = vmatpush2.msra.mxu0 %v8515_v53  ;;  %919 = vmatpush2.msra.mxu1 %v8516_v44 }
 0x1a7   :  { %849 = vmatprep.subr.mxu0 %v8517_v46  ;;  %920 = vmatprep.subr.mxu1 %v8518_v63 }
 0x1a8   :  { %850 = vmatpush2.msra.mxu0 %v8519_v42  ;;  %921 = vmatpush2.msra.mxu1 %v8520_v2 }
 0x1a9   :  { %851 = vmatprep.subr.mxu0 %v8521_v3  ;;  %922 = vmatprep.subr.mxu1 %v8522_v4 }
 0x1aa   :  { %852 = vmatpush2.msra.mxu0 %v8523_v6  ;;  %923 = vmatpush2.msra.mxu1 %v8524_v7 }
 0x1ab   :  { %853 = vmatprep.subr.mxu0 %v8525_v8  ;;  %924 = vmatprep.subr.mxu1 %v8526_v9  ;;  %v786_v8 = vrot.slane %v626_v39, 2 }
 0x1ac   :  { %854 = vmatpush2.msra.mxu0 %v8527_v10  ;;  %925 = vmatpush2.msra.mxu1 %v8528_v11 }
 0x1ad   :  { %855 = vmatprep.subr.mxu0 %v8529_v12  ;;  %926 = vmatprep.subr.mxu1 %v8530_v13 }
 0x1ae   :  { %856 = vmatpush2.msra.mxu0 %v8531_v14  ;;  %927 = vmatpush2.msra.mxu1 %v8532_v15 }
 0x1af   :  { %957 = vmatprep.subr.mxu0 %v5189_v16  ;;  %3301 = vmatprep.subr.mxu1 %v8397_v61 }
 0x20d   :  { %v529_v20 = vpop.f32.mrf.mxu0  ;;  %v600_v32 = vpop.f32.mrf.mxu1 }
 0x20e   :  { %v530_v21 = vadd.f32 %v529_v20, %v5198_v19  ;;  %v601_v52 = vadd.f32 %v600_v32, %v5212_v37  ;;  %v5229_v20 = vld [vmem:[#allocation7 + $0x168] sm:$0xff] }
 0x20f   :  { %v531_v25 = vpop.f32.mrf.mxu0  ;;  %v602_v36 = vpop.f32.mrf.mxu1  ;;  %v5269_v32 = vld [vmem:[#allocation7 + $0x108] sm:$0xff] }
 0x210   :  { %v3041_v22 = vmul.f32 -1.442695, %v530_v21  ;;  %v532_v26 = vadd.f32 %v531_v25, %v5203_v24  ;;  %v603_v41 = vadd.f32 %v602_v36, %v5208_v35  ;;  %v5232_v21 = vld [vmem:[#allocation7 + $0x178] sm:$0xff]  ;;  %v5245_v25 = vld [vmem:[#allocation7 + $0x140] sm:$0xff]  ;;  %v5279_v36 = vld [vmem:[#allocation7 + $0xf0] sm:$0xff] }
 0x212   :  { %3566 = vpow2.f32 %v3041_v22  ;;  %v3042_v27 = vmul.f32 -1.442695, %v532_v26  ;;  %v5235_v22 = vld [vmem:[#allocation7 + $0x158] sm:$0xff] }
 0x213   :  { %v5249_v26 = vld [vmem:[#allocation7 + $0x138] sm:$0xff] }
 0x214   :  { %3568 = vpow2.f32 %v3042_v27  ;;  %v5252_v27 = vld [vmem:[#allocation7 + $0x148] sm:$0xff] }
 0x21f   :  { %v3567_v28 = vpop.eup %3566 }
 0x220   :  { %v608_v29 = vadd.f32 1.0, %v3567_v28  ;;  %v5255_v28 = vld [vmem:[#allocation7 + $0x128] sm:$0xff] }
 0x221   :  { %v3569_v40 = vpop.eup %3568 }
 0x222   :  { %3570 = vrcp.f32 %v608_v29  ;;  %v614_v62 = vadd.f32 1.0, %v3569_v40  ;;  %v5259_v29 = vld [vmem:[#allocation7 + $0x120] sm:$0xff]  ;;  %v5289_v40 = vld [vmem:[#allocation7 + $0xd8] sm:$0xff] }
 0x22e   :  { %v693_v43 = vpop.f32.mrf.mxu0  ;;  %v764_v45 = vpop.f32.mrf.mxu1 }
 0x22f   :  { %v3571_v47 = vpop.eup %3570  ;;  %v694_v50 = vadd.f32 %v693_v43, %v8540_v49  ;;  %v765_v7 = vadd.f32 %v764_v45, %v4987_v55  ;;  %v5295_v43 = vld [vmem:[#allocation7 + $0xc8] sm:$0xff]  ;;  %v5299_v45 = vld [vmem:[#allocation7 + $0xc0] sm:$0xff] }
 0x230   :  { %v617_v54 = vmul.f32 %v3571_v47, %v603_v41  ;;  %v3300_v58 = vpop.f32.mrf.mxu1  ;;  %v695_v57 = vpop.f32.mrf.mxu0  ;;  %v5292_v41 = vld [vmem:[#allocation7 + $0xe8] sm:$0xff]  ;;  %v5302_v47 = vld [vmem:[#allocation7 + $0xd0] sm:$0xff] }
 0x231   :  { %v768_v59 = vadd.f32 %v694_v50, %v626_v39  ;;  %v696_v48 = vadd.f32 %v695_v57, %v8541_v1  ;;  %v5285_v39 = vld [vmem:[#allocation7 + $0xe0] sm:$0xff]  ;;  %v5305_v50 = vld [vmem:[#allocation7 + $0xb0] sm:$0xff]  ;;  %v5315_v58 = vld [vmem:[#allocation7 + $0x98] sm:$0xff] }
 0x232   :  { %v618_v51 = vadd.f32 %v617_v54, %v601_v52  ;;  %v5309_v52 = vld [vmem:[#allocation7 + $0xa8] sm:$0xff]  ;;  %v5312_v54 = vld [vmem:[#allocation7 + $0xb8] sm:$0xff] }
 0x233   :  { %v3044_v56 = vmul.f32 -1.442695, %v768_v59  ;;  %v778_v5 = vadd.f32 %v776_v60, %v696_v48  ;;  %v5319_v59 = vld [vmem:[#allocation7 + $0x90] sm:$0xff]  ;;  %v5332_v57 = vld [vmem:[#allocation7 + $0x88] sm:$0xff]  ;;  %v5339_v60 = vld [vmem:[#allocation7 + $0x60] sm:$0xff] }
 0x234   :  { %3572 = vtanh.f32 %v618_v51  ;;  %v5325_v51 = vld [vmem:[#allocation7 + $0x80] sm:$0xff]  ;;  %v5335_v48 = vld [vmem:[#allocation7 + $0x68] sm:$0xff] }
 0x235   :  { %3574 = vpow2.f32 %v3044_v56  ;;  %v3045_v53 = vmul.f32 -1.442695, %v778_v5  ;;  %v5329_v56 = vld [vmem:[#allocation7 + $0x78] sm:$0xff]  ;;  %v5342_v5 = vld [vmem:[#allocation7 + $0x70] sm:$0xff] }
 0x236   :  { %3576 = vrcp.f32 %v614_v62  ;;  %v5322_v62 = vld [vmem:[#allocation7 + $0xa0] sm:$0xff] }
 0x237   :  { %3578 = vpow2.f32 %v3045_v53  ;;  %v5345_v53 = vld [vmem:[#allocation7 + $0x50] sm:$0xff] }
 0x238   :  { %8542 = vst [vmem:[#allocation17_spill] sm:$0xff] %v5345_v53 }
 0x241   :  { %v3573_v44 = vpop.eup %3572 }
 0x242   :  { %v3575_v46 = vpop.eup %3574  ;;  %v620_v63 = vsub.f32 0.0, %v3573_v44 }
 0x243   :  { %v3577_v42 = vpop.eup %3576  ;;  %v772_v2 = vadd.f32 1.0, %v3575_v46  ;;  %v5352_v46 = vld [vmem:[#allocation7 + $0x58] sm:$0xff] }
 0x244   :  { %v621_v3 = vmul.f32 %v3577_v42, %v620_v63  ;;  %v3579_v6 = vpop.eup %3578  ;;  %8544 = vst [vmem:[#allocation18_spill] sm:$0xff] %v5352_v46  ;;  %v5355_v63 = vld [vmem:[#allocation7 + $0x38] sm:$0xff]  ;;  %v5359_v42 = vld [vmem:[#allocation7 + $0x30] sm:$0xff] }
 0x245   :  { %3580 = vrcp.f32 %v772_v2  ;;  %v782_v12 = vadd.f32 1.0, %v3579_v6  ;;  %8545 = vst [vmem:[#allocation23_spill] sm:$0xff] %v5355_v63  ;;  %8546 = vst [vmem:[#allocation19_spill] sm:$0xff] %v5359_v42  ;;  %v5362_v2 = vld [vmem:[#allocation7 + $0x40] sm:$0xff]  ;;  %v5369_v6 = vld [vmem:[#allocation7 + $0x18] sm:$0xff] }
 0x246   :  { %v5219_v4 = vadd.f32 %v3573_v44, %v621_v3  ;;  %v5349_v44 = vld [vmem:[#allocation7 + $0x48] sm:$0xff]  ;;  %8547 = vst [vmem:[#allocation24_spill] sm:$0xff] %v5362_v2  ;;  %v5365_v3 = vld [vmem:[#allocation7 + $0x20] sm:$0xff]  ;;  %8549 = vst [vmem:[#allocation25_spill] sm:$0xff] %v5369_v6 }
 0x247   :  { %8543 = vst [vmem:[#allocation22_spill] sm:$0xff] %v5349_v44  ;;  %8548 = vst [vmem:[#allocation20_spill] sm:$0xff] %v5365_v3 }
 0x248   :  { %857 = vmatprep.mubr.f32.mxu0 %v5219_v4  ;;  %928 = vmatprep.mubr.f32.mxu1 %v5219_v4 }
 0x252   :  { %v3581_v9 = vpop.eup %3580 }
 0x253   :  { %v785_v10 = vmul.f32 %v3581_v9, %v765_v7  ;;  %v5372_v7 = vld [vmem:[#allocation7 + $0x28] sm:$0xff]  ;;  %v5379_v9 = vld [vmem:[#allocation7] sm:$0xff] }
 0x254   :  { %8550 = vst [vmem:[#allocation26_spill] sm:$0xff] %v5372_v7  ;;  %8552 = vst [vmem:[#allocation28_spill] sm:$0xff] %v5379_v9 }
 0x255   :  { %v788_v11 = vadd.f32 %v786_v8, %v785_v10  ;;  %v5375_v8 = vld [vmem:[#allocation7 + $0x8] sm:$0xff]  ;;  %v5383_v10 = vld [vmem:[#allocation7 + $0x10] sm:$0xff] }
 0x256   :  { %8551 = vst [vmem:[#allocation27_spill] sm:$0xff] %v5375_v8  ;;  %8553 = vst [vmem:[#allocation29_spill] sm:$0xff] %v5383_v10 }
 0x257   :  { %3582 = vtanh.f32 %v788_v11  ;;  %v5390_v11 = vld [vmem:[#allocation8 + $0x1e8] sm:$0xff] }
 0x258   :  { %3584 = vrcp.f32 %v782_v12  ;;  %8554 = vst [vmem:[#allocation30_spill] sm:$0xff] %v5390_v11  ;;  %v5393_v12 = vld [vmem:[#allocation8 + $0x1f8] sm:$0xff] }
 0x259   :  { %8555 = vst [vmem:[#allocation31_spill] sm:$0xff] %v5393_v12 }
 0x264   :  { %v3583_v13 = vpop.eup %3582 }
 0x265   :  { %v790_v14 = vsub.f32 %v4990_v0, %v3583_v13  ;;  %v3585_v15 = vpop.eup %3584  ;;  %v5239_v0 = vld [vmem:[#allocation7 + $0x150] sm:$0xff] }
 0x267   :  { %v791_v17 = vmul.f32 %v3585_v15, %v790_v14  ;;  %v5399_v14 = vld [vmem:[#allocation8 + $0x1f0] sm:$0xff]  ;;  %v5402_v15 = vld [vmem:[#allocation8 + $0x1c8] sm:$0xff] }
 0x268   :  { %8557 = vst [vmem:[#allocation33_spill] sm:$0xff] %v5399_v14  ;;  %8558 = vst [vmem:[#allocation34_spill] sm:$0xff] %v5402_v15 }
 0x269   :  { %v5225_v18 = vadd.f32 %v3583_v13, %v791_v17  ;;  %v5396_v13 = vld [vmem:[#allocation8 + $0x1e0] sm:$0xff]  ;;  %v5405_v17 = vld [vmem:[#allocation8 + $0x1d8] sm:$0xff] }
 0x26a   :  { %8556 = vst [vmem:[#allocation32_spill] sm:$0xff] %v5396_v13  ;;  %8559 = vst [vmem:[#allocation35_spill] sm:$0xff] %v5405_v17 }
 0x26b   :  { %858 = vmatmul.mubr.f32.vlgmr.msra.gmra.mxu0 %v5225_v18  ;;  %929 = vmatmul.mubr.f32.vlgmr.msra.gmra.mxu1 %v5225_v18 }
 0x26c   :  { %958 = vmatpush1.msra.mxu0 %v5229_v20  ;;  %3302 = vmatpush3.msra.mxu1 %v5232_v21 }
 0x26d   :  { %959 = vmatprep.subr.mxu0 %v5235_v22  ;;  %3303 = vmatprep.subr.mxu1 %v8397_v61 }
 0x26e   :  { %960 = vmatpush1.msra.mxu0 %v5239_v0  ;;  %3304 = vmatpush3.msra.mxu1 %v5242_v23 }
 0x26f   :  { %961 = vmatprep.subr.mxu0 %v5245_v25  ;;  %3305 = vmatprep.subr.mxu1 %v8397_v61 }
 0x270   :  { %962 = vmatpush1.msra.mxu0 %v5249_v26  ;;  %3306 = vmatpush3.msra.mxu1 %v5252_v27 }
 0x271   :  { %963 = vmatprep.subr.mxu0 %v5255_v28  ;;  %3307 = vmatprep.subr.mxu1 %v8397_v61 }
 0x272   :  { %964 = vmatpush1.msra.mxu0 %v5259_v29  ;;  %3308 = vmatpush3.msra.mxu1 %v5262_v30 }
 0x273   :  { %965 = vmatprep.subr.mxu0 %v5265_v31  ;;  %3309 = vmatprep.subr.mxu1 %v8397_v61 }
 0x274   :  { %966 = vmatpush1.msra.mxu0 %v5269_v32  ;;  %3310 = vmatpush3.msra.mxu1 %v5272_v33 }
 0x275   :  { %967 = vmatprep.subr.mxu0 %v5275_v34  ;;  %3311 = vmatprep.subr.mxu1 %v8397_v61 }
 0x276   :  { %968 = vmatpush1.msra.mxu0 %v5279_v36  ;;  %3312 = vmatpush3.msra.mxu1 %v5282_v38 }
 0x277   :  { %969 = vmatprep.subr.mxu0 %v5285_v39  ;;  %3313 = vmatprep.subr.mxu1 %v8397_v61 }
 0x278   :  { %970 = vmatpush1.msra.mxu0 %v5289_v40  ;;  %3314 = vmatpush3.msra.mxu1 %v5292_v41 }
 0x279   :  { %971 = vmatprep.subr.mxu0 %v5295_v43  ;;  %3315 = vmatprep.subr.mxu1 %v8397_v61 }
 0x27a   :  { %972 = vmatpush1.msra.mxu0 %v5299_v45  ;;  %3316 = vmatpush3.msra.mxu1 %v5302_v47 }
 0x27b   :  { %973 = vmatprep.subr.mxu0 %v5305_v50  ;;  %3317 = vmatprep.subr.mxu1 %v8397_v61 }
 0x27c   :  { %974 = vmatpush1.msra.mxu0 %v5309_v52  ;;  %3318 = vmatpush3.msra.mxu1 %v5312_v54 }
 0x27d   :  { %975 = vmatprep.subr.mxu0 %v5315_v58  ;;  %3319 = vmatprep.subr.mxu1 %v8397_v61 }
 0x27e   :  { %976 = vmatpush1.msra.mxu0 %v5319_v59  ;;  %3320 = vmatpush3.msra.mxu1 %v5322_v62 }
 0x27f   :  { %977 = vmatprep.subr.mxu0 %v5325_v51  ;;  %3321 = vmatprep.subr.mxu1 %v8397_v61 }
 0x280   :  { %978 = vmatpush1.msra.mxu0 %v5329_v56  ;;  %3322 = vmatpush3.msra.mxu1 %v5332_v57 }
 0x281   :  { %979 = vmatprep.subr.mxu0 %v5335_v48  ;;  %3323 = vmatprep.subr.mxu1 %v8397_v61 }
 0x282   :  { %980 = vmatpush1.msra.mxu0 %v5339_v60  ;;  %3324 = vmatpush3.msra.mxu1 %v5342_v5 }
 0x283   :  { %981 = vmatprep.subr.mxu0 %v5345_v53  ;;  %3325 = vmatprep.subr.mxu1 %v8397_v61 }
 0x284   :  { %982 = vmatpush1.msra.mxu0 %v5349_v44  ;;  %3326 = vmatpush3.msra.mxu1 %v5352_v46 }
 0x285   :  { %983 = vmatprep.subr.mxu0 %v5355_v63  ;;  %3327 = vmatprep.subr.mxu1 %v8397_v61 }
 0x286   :  { %984 = vmatpush1.msra.mxu0 %v5359_v42  ;;  %3328 = vmatpush3.msra.mxu1 %v5362_v2 }
 0x287   :  { %985 = vmatprep.subr.mxu0 %v5365_v3  ;;  %3329 = vmatprep.subr.mxu1 %v8397_v61 }
 0x288   :  { %986 = vmatpush1.msra.mxu0 %v5369_v6  ;;  %3330 = vmatpush3.msra.mxu1 %v5372_v7  ;;  %v954_v7 = vstv %s3048_s6 }
 0x289   :  { %987 = vmatprep.subr.mxu0 %v5375_v8  ;;  %3331 = vmatprep.subr.mxu1 %v8397_v61 }
 0x28a   :  { %988 = vmatpush1.msra.mxu0 %v5379_v9  ;;  %1021 = vmatprep.mubr.f32.mxu0 %v8397_v61 }
 0x28b   :  { %3332 = vmatpush3.msra.mxu1 %v5383_v10  ;;  %3333 = vmatprep.mubr.msk.f32.mxu1 %vm4338_vm0, %v8397_v61 }
 0x28c   :  { %1022 = vmatmul.mubr.f32.vlgmr.msra.gmra.mxu0 %v5225_v18  ;;  %3334 = vmatmul.mubr.f32.vlgmr.msra.gmra.mxu1 %v5225_v18 }
 0x28d   :  { %1123 = vmatprep.subr.mxu0 %v5390_v11  ;;  %1194 = vmatprep.subr.mxu1 %v5393_v12  ;;  %v5408_v11 = vld [vmem:[#allocation8 + $0x1c0] sm:$0xff]  ;;  %v5411_v12 = vld [vmem:[#allocation8 + $0x1d0] sm:$0xff] }
 0x28e   :  { %1124 = vmatpush1.msra.mxu0 %v5396_v13  ;;  %1195 = vmatpush1.msra.mxu1 %v5399_v14  ;;  %8560 = vst [vmem:[#allocation36_spill] sm:$0xff] %v5408_v11  ;;  %8561 = vst [vmem:[#allocation37_spill] sm:$0xff] %v5411_v12  ;;  %v5414_v13 = vld [vmem:[#allocation8 + $0x1a8] sm:$0xff]  ;;  %v5417_v14 = vld [vmem:[#allocation8 + $0x1b8] sm:$0xff] }
 0x28f   :  { %1125 = vmatprep.subr.mxu0 %v5402_v15  ;;  %1196 = vmatprep.subr.mxu1 %v5405_v17  ;;  %8562 = vst [vmem:[#allocation38_spill] sm:$0xff] %v5414_v13  ;;  %8563 = vst [vmem:[#allocation39_spill] sm:$0xff] %v5417_v14  ;;  %v5420_v15 = vld [vmem:[#allocation8 + $0x1a0] sm:$0xff]  ;;  %v5423_v17 = vld [vmem:[#allocation8 + $0x1b0] sm:$0xff] }
 0x290   :  { %1126 = vmatpush1.msra.mxu0 %v5408_v11  ;;  %1197 = vmatpush1.msra.mxu1 %v5411_v12  ;;  %8564 = vst [vmem:[#allocation40_spill] sm:$0xff] %v5420_v15  ;;  %8565 = vst [vmem:[#allocation41_spill] sm:$0xff] %v5423_v17  ;;  %v5426_v11 = vld [vmem:[#allocation8 + $0x188] sm:$0xff]  ;;  %v5429_v12 = vld [vmem:[#allocation8 + $0x198] sm:$0xff] }
 0x291   :  { %1127 = vmatprep.subr.mxu0 %v5414_v13  ;;  %1198 = vmatprep.subr.mxu1 %v5417_v14  ;;  %8566 = vst [vmem:[#allocation42_spill] sm:$0xff] %v5426_v11  ;;  %8567 = vst [vmem:[#allocation43_spill] sm:$0xff] %v5429_v12  ;;  %v5432_v13 = vld [vmem:[#allocation8 + $0x180] sm:$0xff]  ;;  %v5435_v14 = vld [vmem:[#allocation8 + $0x190] sm:$0xff] }
 0x292   :  { %1128 = vmatpush1.msra.mxu0 %v5420_v15  ;;  %1199 = vmatpush1.msra.mxu1 %v5423_v17  ;;  %8568 = vst [vmem:[#allocation44_spill] sm:$0xff] %v5432_v13  ;;  %8569 = vst [vmem:[#allocation45_spill] sm:$0xff] %v5435_v14  ;;  %v5438_v15 = vld [vmem:[#allocation8 + $0x168] sm:$0xff]  ;;  %v5441_v17 = vld [vmem:[#allocation8 + $0x178] sm:$0xff] }
 0x293   :  { %1129 = vmatprep.subr.mxu0 %v5426_v11  ;;  %1200 = vmatprep.subr.mxu1 %v5429_v12  ;;  %8570 = vst [vmem:[#allocation46_spill] sm:$0xff] %v5438_v15  ;;  %8571 = vst [vmem:[#allocation47_spill] sm:$0xff] %v5441_v17  ;;  %v5444_v11 = vld [vmem:[#allocation8 + $0x160] sm:$0xff]  ;;  %v5447_v12 = vld [vmem:[#allocation8 + $0x170] sm:$0xff] }
 0x294   :  { %1130 = vmatpush1.msra.mxu0 %v5432_v13  ;;  %1201 = vmatpush1.msra.mxu1 %v5435_v14  ;;  %8572 = vst [vmem:[#allocation48_spill] sm:$0xff] %v5444_v11  ;;  %8573 = vst [vmem:[#allocation49_spill] sm:$0xff] %v5447_v12  ;;  %v5450_v13 = vld [vmem:[#allocation8 + $0x148] sm:$0xff]  ;;  %v5453_v14 = vld [vmem:[#allocation8 + $0x158] sm:$0xff] }
 0x295   :  { %1131 = vmatprep.subr.mxu0 %v5438_v15  ;;  %1202 = vmatprep.subr.mxu1 %v5441_v17  ;;  %8574 = vst [vmem:[#allocation50_spill] sm:$0xff] %v5450_v13  ;;  %8575 = vst [vmem:[#allocation51_spill] sm:$0xff] %v5453_v14  ;;  %v5456_v15 = vld [vmem:[#allocation8 + $0x140] sm:$0xff]  ;;  %v5459_v17 = vld [vmem:[#allocation8 + $0x150] sm:$0xff] }
 0x296   :  { %1132 = vmatpush1.msra.mxu0 %v5444_v11  ;;  %1203 = vmatpush1.msra.mxu1 %v5447_v12  ;;  %8576 = vst [vmem:[#allocation52_spill] sm:$0xff] %v5456_v15  ;;  %8577 = vst [vmem:[#allocation53_spill] sm:$0xff] %v5459_v17  ;;  %v5462_v11 = vld [vmem:[#allocation8 + $0x128] sm:$0xff]  ;;  %v5465_v12 = vld [vmem:[#allocation8 + $0x138] sm:$0xff] }
 0x297   :  { %1133 = vmatprep.subr.mxu0 %v5450_v13  ;;  %1204 = vmatprep.subr.mxu1 %v5453_v14  ;;  %8578 = vst [vmem:[#allocation54_spill] sm:$0xff] %v5462_v11  ;;  %8579 = vst [vmem:[#allocation55_spill] sm:$0xff] %v5465_v12  ;;  %v5468_v13 = vld [vmem:[#allocation8 + $0x120] sm:$0xff]  ;;  %v5471_v14 = vld [vmem:[#allocation8 + $0x130] sm:$0xff] }
 0x298   :  { %1134 = vmatpush1.msra.mxu0 %v5456_v15  ;;  %1205 = vmatpush1.msra.mxu1 %v5459_v17  ;;  %8580 = vst [vmem:[#allocation56_spill] sm:$0xff] %v5468_v13  ;;  %8581 = vst [vmem:[#allocation57_spill] sm:$0xff] %v5471_v14  ;;  %v5474_v15 = vld [vmem:[#allocation8 + $0x108] sm:$0xff]  ;;  %v5477_v17 = vld [vmem:[#allocation8 + $0x118] sm:$0xff] }
 0x299   :  { %1135 = vmatprep.subr.mxu0 %v5462_v11  ;;  %1206 = vmatprep.subr.mxu1 %v5465_v12  ;;  %8582 = vst [vmem:[#allocation58_spill] sm:$0xff] %v5474_v15  ;;  %8583 = vst [vmem:[#allocation59_spill] sm:$0xff] %v5477_v17  ;;  %v5480_v11 = vld [vmem:[#allocation8 + $0x100] sm:$0xff]  ;;  %v5483_v12 = vld [vmem:[#allocation8 + $0x110] sm:$0xff] }
 0x29a   :  { %1136 = vmatpush1.msra.mxu0 %v5468_v13  ;;  %1207 = vmatpush1.msra.mxu1 %v5471_v14  ;;  %8584 = vst [vmem:[#allocation60_spill] sm:$0xff] %v5480_v11  ;;  %8585 = vst [vmem:[#allocation61_spill] sm:$0xff] %v5483_v12  ;;  %v5486_v13 = vld [vmem:[#allocation8 + $0xe8] sm:$0xff]  ;;  %v5489_v14 = vld [vmem:[#allocation8 + $0xf8] sm:$0xff] }
 0x29b   :  { %1137 = vmatprep.subr.mxu0 %v5474_v15  ;;  %1208 = vmatprep.subr.mxu1 %v5477_v17  ;;  %8586 = vst [vmem:[#allocation62_spill] sm:$0xff] %v5486_v13  ;;  %8587 = vst [vmem:[#allocation63_spill] sm:$0xff] %v5489_v14  ;;  %v5492_v15 = vld [vmem:[#allocation8 + $0xe0] sm:$0xff]  ;;  %v5495_v17 = vld [vmem:[#allocation8 + $0xf0] sm:$0xff] }
 0x29c   :  { %1138 = vmatpush1.msra.mxu0 %v5480_v11  ;;  %1209 = vmatpush1.msra.mxu1 %v5483_v12  ;;  %8588 = vst [vmem:[#allocation64_spill] sm:$0xff] %v5492_v15  ;;  %8589 = vst [vmem:[#allocation65_spill] sm:$0xff] %v5495_v17  ;;  %v5498_v11 = vld [vmem:[#allocation8 + $0xc8] sm:$0xff]  ;;  %v5501_v12 = vld [vmem:[#allocation8 + $0xd8] sm:$0xff] }
 0x29d   :  { %1139 = vmatprep.subr.mxu0 %v5486_v13  ;;  %1210 = vmatprep.subr.mxu1 %v5489_v14  ;;  %8590 = vst [vmem:[#allocation66_spill] sm:$0xff] %v5498_v11  ;;  %8591 = vst [vmem:[#allocation67_spill] sm:$0xff] %v5501_v12  ;;  %v5504_v13 = vld [vmem:[#allocation8 + $0xc0] sm:$0xff]  ;;  %v5507_v14 = vld [vmem:[#allocation8 + $0xd0] sm:$0xff] }
 0x29e   :  { %1140 = vmatpush1.msra.mxu0 %v5492_v15  ;;  %1211 = vmatpush1.msra.mxu1 %v5495_v17  ;;  %8592 = vst [vmem:[#allocation68_spill] sm:$0xff] %v5504_v13  ;;  %8593 = vst [vmem:[#allocation69_spill] sm:$0xff] %v5507_v14  ;;  %v5510_v15 = vld [vmem:[#allocation8 + $0xa8] sm:$0xff]  ;;  %v5513_v17 = vld [vmem:[#allocation8 + $0xb8] sm:$0xff] }
 0x29f   :  { %1141 = vmatprep.subr.mxu0 %v5498_v11  ;;  %1212 = vmatprep.subr.mxu1 %v5501_v12  ;;  %8594 = vst [vmem:[#allocation70_spill] sm:$0xff] %v5510_v15  ;;  %8595 = vst [vmem:[#allocation71_spill] sm:$0xff] %v5513_v17  ;;  %v5516_v11 = vld [vmem:[#allocation8 + $0xa0] sm:$0xff]  ;;  %v5519_v12 = vld [vmem:[#allocation8 + $0xb0] sm:$0xff] }
 0x2a0   :  { %1142 = vmatpush1.msra.mxu0 %v5504_v13  ;;  %1213 = vmatpush1.msra.mxu1 %v5507_v14  ;;  %8596 = vst [vmem:[#allocation72_spill] sm:$0xff] %v5516_v11  ;;  %8597 = vst [vmem:[#allocation73_spill] sm:$0xff] %v5519_v12  ;;  %v5522_v13 = vld [vmem:[#allocation8 + $0x88] sm:$0xff]  ;;  %v5525_v14 = vld [vmem:[#allocation8 + $0x98] sm:$0xff] }
 0x2a1   :  { %1143 = vmatprep.subr.mxu0 %v5510_v15  ;;  %1214 = vmatprep.subr.mxu1 %v5513_v17  ;;  %8598 = vst [vmem:[#allocation74_spill] sm:$0xff] %v5522_v13  ;;  %8599 = vst [vmem:[#allocation75_spill] sm:$0xff] %v5525_v14  ;;  %v5528_v15 = vld [vmem:[#allocation8 + $0x80] sm:$0xff]  ;;  %v5531_v17 = vld [vmem:[#allocation8 + $0x90] sm:$0xff] }
 0x2a2   :  { %1144 = vmatpush1.msra.mxu0 %v5516_v11  ;;  %1215 = vmatpush1.msra.mxu1 %v5519_v12  ;;  %8600 = vst [vmem:[#allocation76_spill] sm:$0xff] %v5528_v15  ;;  %8601 = vst [vmem:[#allocation77_spill] sm:$0xff] %v5531_v17  ;;  %v5534_v11 = vld [vmem:[#allocation8 + $0x68] sm:$0xff]  ;;  %v5537_v12 = vld [vmem:[#allocation8 + $0x78] sm:$0xff] }
 0x2a3   :  { %1145 = vmatprep.subr.mxu0 %v5522_v13  ;;  %1216 = vmatprep.subr.mxu1 %v5525_v14  ;;  %8602 = vst [vmem:[#allocation78_spill] sm:$0xff] %v5534_v11  ;;  %8603 = vst [vmem:[#allocation79_spill] sm:$0xff] %v5537_v12  ;;  %v5540_v13 = vld [vmem:[#allocation8 + $0x60] sm:$0xff]  ;;  %v5543_v14 = vld [vmem:[#allocation8 + $0x70] sm:$0xff] }
 0x2a4   :  { %1146 = vmatpush1.msra.mxu0 %v5528_v15  ;;  %1217 = vmatpush1.msra.mxu1 %v5531_v17  ;;  %8604 = vst [vmem:[#allocation80_spill] sm:$0xff] %v5540_v13  ;;  %8605 = vst [vmem:[#allocation81_spill] sm:$0xff] %v5543_v14  ;;  %v5546_v15 = vld [vmem:[#allocation8 + $0x48] sm:$0xff]  ;;  %v5549_v17 = vld [vmem:[#allocation8 + $0x58] sm:$0xff] }
 0x2a5   :  { %1147 = vmatprep.subr.mxu0 %v5534_v11  ;;  %1218 = vmatprep.subr.mxu1 %v5537_v12  ;;  %8606 = vst [vmem:[#allocation82_spill] sm:$0xff] %v5546_v15  ;;  %8607 = vst [vmem:[#allocation83_spill] sm:$0xff] %v5549_v17  ;;  %v5552_v11 = vld [vmem:[#allocation8 + $0x40] sm:$0xff]  ;;  %v5555_v12 = vld [vmem:[#allocation8 + $0x50] sm:$0xff] }
 0x2a6   :  { %1148 = vmatpush1.msra.mxu0 %v5540_v13  ;;  %1219 = vmatpush1.msra.mxu1 %v5543_v14  ;;  %8608 = vst [vmem:[#allocation84_spill] sm:$0xff] %v5552_v11  ;;  %8609 = vst [vmem:[#allocation85_spill] sm:$0xff] %v5555_v12  ;;  %v5558_v13 = vld [vmem:[#allocation8 + $0x28] sm:$0xff]  ;;  %v5561_v14 = vld [vmem:[#allocation8 + $0x38] sm:$0xff] }
 0x2a7   :  { %1149 = vmatprep.subr.mxu0 %v5546_v15  ;;  %1220 = vmatprep.subr.mxu1 %v5549_v17  ;;  %8610 = vst [vmem:[#allocation86_spill] sm:$0xff] %v5558_v13  ;;  %8611 = vst [vmem:[#allocation87_spill] sm:$0xff] %v5561_v14  ;;  %v5564_v15 = vld [vmem:[#allocation8 + $0x20] sm:$0xff]  ;;  %v5567_v17 = vld [vmem:[#allocation8 + $0x30] sm:$0xff] }
 0x2a8   :  { %1150 = vmatpush1.msra.mxu0 %v5552_v11  ;;  %1221 = vmatpush1.msra.mxu1 %v5555_v12  ;;  %8612 = vst [vmem:[#allocation88_spill] sm:$0xff] %v5564_v15  ;;  %8613 = vst [vmem:[#allocation89_spill] sm:$0xff] %v5567_v17  ;;  %v5570_v11 = vld [vmem:[#allocation8 + $0x8] sm:$0xff]  ;;  %v5573_v12 = vld [vmem:[#allocation8 + $0x18] sm:$0xff] }
 0x2a9   :  { %1151 = vmatprep.subr.mxu0 %v5558_v13  ;;  %1222 = vmatprep.subr.mxu1 %v5561_v14  ;;  %8614 = vst [vmem:[#allocation90_spill] sm:$0xff] %v5570_v11  ;;  %8615 = vst [vmem:[#allocation91_spill] sm:$0xff] %v5573_v12  ;;  %v5576_v13 = vld [vmem:[#allocation8] sm:$0xff]  ;;  %v5579_v14 = vld [vmem:[#allocation8 + $0x10] sm:$0xff] }
 0x2aa   :  { %1152 = vmatpush1.msra.mxu0 %v5564_v15  ;;  %1223 = vmatpush1.msra.mxu1 %v5567_v17  ;;  %8616 = vst [vmem:[#allocation92_spill] sm:$0xff] %v5576_v13  ;;  %8617 = vst [vmem:[#allocation93_spill] sm:$0xff] %v5579_v14  ;;  %v5582_v15 = vld [vmem:[#allocation8 + $0x3e8] sm:$0xff]  ;;  %v5585_v17 = vld [vmem:[#allocation8 + $0x3f8] sm:$0xff] }
 0x2ab   :  { %1153 = vmatprep.subr.mxu0 %v5570_v11  ;;  %1224 = vmatprep.subr.mxu1 %v5573_v12  ;;  %8618 = vst [vmem:[#allocation94_spill] sm:$0xff] %v5582_v15  ;;  %8619 = vst [vmem:[#allocation95_spill] sm:$0xff] %v5585_v17  ;;  %v5588_v11 = vld [vmem:[#allocation8 + $0x3e0] sm:$0xff]  ;;  %v5591_v12 = vld [vmem:[#allocation8 + $0x3f0] sm:$0xff] }
 0x2ac   :  { %1154 = vmatpush1.msra.mxu0 %v5576_v13  ;;  %1225 = vmatpush1.msra.mxu1 %v5579_v14  ;;  %8620 = vst [vmem:[#allocation96_spill] sm:$0xff] %v5588_v11  ;;  %8621 = vst [vmem:[#allocation97_spill] sm:$0xff] %v5591_v12  ;;  %v5594_v13 = vld [vmem:[#allocation8 + $0x3c8] sm:$0xff]  ;;  %v5597_v14 = vld [vmem:[#allocation8 + $0x3d8] sm:$0xff] }
 0x2ad   :  { %1155 = vmatprep.subr.mxu0 %v5582_v15  ;;  %1226 = vmatprep.subr.mxu1 %v5585_v17  ;;  %8622 = vst [vmem:[#allocation98_spill] sm:$0xff] %v5594_v13  ;;  %8623 = vst [vmem:[#allocation99_spill] sm:$0xff] %v5597_v14  ;;  %v5600_v15 = vld [vmem:[#allocation8 + $0x3c0] sm:$0xff]  ;;  %v5603_v17 = vld [vmem:[#allocation8 + $0x3d0] sm:$0xff] }
 0x2ae   :  { %1156 = vmatpush2.msra.mxu0 %v5588_v11  ;;  %1227 = vmatpush2.msra.mxu1 %v5591_v12  ;;  %8624 = vst [vmem:[#allocation100_spill] sm:$0xff] %v5600_v15  ;;  %8625 = vst [vmem:[#allocation101_spill] sm:$0xff] %v5603_v17  ;;  %v5606_v11 = vld [vmem:[#allocation8 + $0x3a8] sm:$0xff]  ;;  %v5609_v12 = vld [vmem:[#allocation8 + $0x3b8] sm:$0xff] }
 0x2af   :  { %1157 = vmatprep.subr.mxu0 %v5594_v13  ;;  %1228 = vmatprep.subr.mxu1 %v5597_v14  ;;  %8626 = vst [vmem:[#allocation102_spill] sm:$0xff] %v5606_v11  ;;  %8627 = vst [vmem:[#allocation103_spill] sm:$0xff] %v5609_v12  ;;  %v5612_v13 = vld [vmem:[#allocation8 + $0x3a0] sm:$0xff]  ;;  %v5615_v14 = vld [vmem:[#allocation8 + $0x3b0] sm:$0xff] }
 0x2b0   :  { %1158 = vmatpush2.msra.mxu0 %v5600_v15  ;;  %1229 = vmatpush2.msra.mxu1 %v5603_v17  ;;  %8628 = vst [vmem:[#allocation104_spill] sm:$0xff] %v5612_v13  ;;  %8629 = vst [vmem:[#allocation105_spill] sm:$0xff] %v5615_v14  ;;  %v5618_v15 = vld [vmem:[#allocation8 + $0x388] sm:$0xff]  ;;  %v5621_v17 = vld [vmem:[#allocation8 + $0x398] sm:$0xff] }
 0x2b1   :  { %1159 = vmatprep.subr.mxu0 %v5606_v11  ;;  %1230 = vmatprep.subr.mxu1 %v5609_v12  ;;  %8630 = vst [vmem:[#allocation106_spill] sm:$0xff] %v5618_v15  ;;  %8631 = vst [vmem:[#allocation107_spill] sm:$0xff] %v5621_v17  ;;  %v5624_v11 = vld [vmem:[#allocation8 + $0x380] sm:$0xff]  ;;  %v5627_v12 = vld [vmem:[#allocation8 + $0x390] sm:$0xff] }
 0x2b2   :  { %1160 = vmatpush2.msra.mxu0 %v5612_v13  ;;  %1231 = vmatpush2.msra.mxu1 %v5615_v14  ;;  %8632 = vst [vmem:[#allocation108_spill] sm:$0xff] %v5624_v11  ;;  %8633 = vst [vmem:[#allocation109_spill] sm:$0xff] %v5627_v12  ;;  %v5630_v13 = vld [vmem:[#allocation8 + $0x368] sm:$0xff]  ;;  %v5633_v14 = vld [vmem:[#allocation8 + $0x378] sm:$0xff] }
 0x2b3   :  { %1161 = vmatprep.subr.mxu0 %v5618_v15  ;;  %1232 = vmatprep.subr.mxu1 %v5621_v17  ;;  %8634 = vst [vmem:[#allocation110_spill] sm:$0xff] %v5630_v13  ;;  %8635 = vst [vmem:[#allocation111_spill] sm:$0xff] %v5633_v14  ;;  %v5636_v15 = vld [vmem:[#allocation8 + $0x360] sm:$0xff]  ;;  %v5639_v17 = vld [vmem:[#allocation8 + $0x370] sm:$0xff] }
 0x2b4   :  { %1162 = vmatpush2.msra.mxu0 %v5624_v11  ;;  %1233 = vmatpush2.msra.mxu1 %v5627_v12  ;;  %8636 = vst [vmem:[#allocation112_spill] sm:$0xff] %v5636_v15  ;;  %8637 = vst [vmem:[#allocation113_spill] sm:$0xff] %v5639_v17  ;;  %v5642_v11 = vld [vmem:[#allocation8 + $0x348] sm:$0xff]  ;;  %v5645_v12 = vld [vmem:[#allocation8 + $0x358] sm:$0xff] }
 0x2b5   :  { %1163 = vmatprep.subr.mxu0 %v5630_v13  ;;  %1234 = vmatprep.subr.mxu1 %v5633_v14  ;;  %8638 = vst [vmem:[#allocation114_spill] sm:$0xff] %v5642_v11  ;;  %8639 = vst [vmem:[#allocation115_spill] sm:$0xff] %v5645_v12  ;;  %v5648_v13 = vld [vmem:[#allocation8 + $0x340] sm:$0xff]  ;;  %v5651_v14 = vld [vmem:[#allocation8 + $0x350] sm:$0xff] }
 0x2b6   :  { %1164 = vmatpush2.msra.mxu0 %v5636_v15  ;;  %1235 = vmatpush2.msra.mxu1 %v5639_v17  ;;  %8640 = vst [vmem:[#allocation116_spill] sm:$0xff] %v5648_v13  ;;  %8641 = vst [vmem:[#allocation117_spill] sm:$0xff] %v5651_v14  ;;  %v5654_v15 = vld [vmem:[#allocation8 + $0x328] sm:$0xff]  ;;  %v5657_v17 = vld [vmem:[#allocation8 + $0x338] sm:$0xff] }
 0x2b7   :  { %1165 = vmatprep.subr.mxu0 %v5642_v11  ;;  %1236 = vmatprep.subr.mxu1 %v5645_v12  ;;  %8642 = vst [vmem:[#allocation118_spill] sm:$0xff] %v5654_v15  ;;  %8643 = vst [vmem:[#allocation119_spill] sm:$0xff] %v5657_v17  ;;  %v5660_v11 = vld [vmem:[#allocation8 + $0x320] sm:$0xff]  ;;  %v5663_v12 = vld [vmem:[#allocation8 + $0x330] sm:$0xff] }
 0x2b8   :  { %1166 = vmatpush2.msra.mxu0 %v5648_v13  ;;  %1237 = vmatpush2.msra.mxu1 %v5651_v14  ;;  %8644 = vst [vmem:[#allocation120_spill] sm:$0xff] %v5660_v11  ;;  %8645 = vst [vmem:[#allocation121_spill] sm:$0xff] %v5663_v12  ;;  %v5666_v13 = vld [vmem:[#allocation8 + $0x308] sm:$0xff]  ;;  %v5669_v14 = vld [vmem:[#allocation8 + $0x318] sm:$0xff] }
 0x2b9   :  { %1167 = vmatprep.subr.mxu0 %v5654_v15  ;;  %1238 = vmatprep.subr.mxu1 %v5657_v17  ;;  %8646 = vst [vmem:[#allocation122_spill] sm:$0xff] %v5666_v13  ;;  %8647 = vst [vmem:[#allocation123_spill] sm:$0xff] %v5669_v14  ;;  %v5672_v15 = vld [vmem:[#allocation8 + $0x300] sm:$0xff]  ;;  %v5675_v17 = vld [vmem:[#allocation8 + $0x310] sm:$0xff] }
 0x2ba   :  { %1168 = vmatpush2.msra.mxu0 %v5660_v11  ;;  %1239 = vmatpush2.msra.mxu1 %v5663_v12  ;;  %8648 = vst [vmem:[#allocation124_spill] sm:$0xff] %v5672_v15  ;;  %8649 = vst [vmem:[#allocation125_spill] sm:$0xff] %v5675_v17  ;;  %v5678_v11 = vld [vmem:[#allocation8 + $0x2e8] sm:$0xff]  ;;  %v5681_v12 = vld [vmem:[#allocation8 + $0x2f8] sm:$0xff] }
 0x2bb   :  { %1169 = vmatprep.subr.mxu0 %v5666_v13  ;;  %1240 = vmatprep.subr.mxu1 %v5669_v14  ;;  %8650 = vst [vmem:[#allocation126_spill] sm:$0xff] %v5678_v11  ;;  %8651 = vst [vmem:[#allocation127_spill] sm:$0xff] %v5681_v12  ;;  %v5684_v13 = vld [vmem:[#allocation8 + $0x2e0] sm:$0xff]  ;;  %v5687_v14 = vld [vmem:[#allocation8 + $0x2f0] sm:$0xff] }
 0x2bc   :  { %1170 = vmatpush2.msra.mxu0 %v5672_v15  ;;  %1241 = vmatpush2.msra.mxu1 %v5675_v17  ;;  %8652 = vst [vmem:[#allocation128_spill] sm:$0xff] %v5684_v13  ;;  %8653 = vst [vmem:[#allocation129_spill] sm:$0xff] %v5687_v14  ;;  %v5690_v15 = vld [vmem:[#allocation8 + $0x2c8] sm:$0xff]  ;;  %v5693_v17 = vld [vmem:[#allocation8 + $0x2d8] sm:$0xff] }
 0x2bd   :  { %1171 = vmatprep.subr.mxu0 %v5678_v11  ;;  %1242 = vmatprep.subr.mxu1 %v5681_v12  ;;  %8654 = vst [vmem:[#allocation130_spill] sm:$0xff] %v5690_v15  ;;  %8655 = vst [vmem:[#allocation131_spill] sm:$0xff] %v5693_v17  ;;  %v5696_v11 = vld [vmem:[#allocation8 + $0x2c0] sm:$0xff]  ;;  %v5699_v12 = vld [vmem:[#allocation8 + $0x2d0] sm:$0xff] }
 0x2be   :  { %1172 = vmatpush2.msra.mxu0 %v5684_v13  ;;  %1243 = vmatpush2.msra.mxu1 %v5687_v14  ;;  %8656 = vst [vmem:[#allocation132_spill] sm:$0xff] %v5696_v11  ;;  %8657 = vst [vmem:[#allocation133_spill] sm:$0xff] %v5699_v12  ;;  %v5702_v13 = vld [vmem:[#allocation8 + $0x2a8] sm:$0xff]  ;;  %v5705_v14 = vld [vmem:[#allocation8 + $0x2b8] sm:$0xff] }
 0x2bf   :  { %1173 = vmatprep.subr.mxu0 %v5690_v15  ;;  %1244 = vmatprep.subr.mxu1 %v5693_v17  ;;  %8658 = vst [vmem:[#allocation134_spill] sm:$0xff] %v5702_v13  ;;  %8659 = vst [vmem:[#allocation135_spill] sm:$0xff] %v5705_v14  ;;  %v5708_v15 = vld [vmem:[#allocation8 + $0x2a0] sm:$0xff]  ;;  %v5711_v17 = vld [vmem:[#allocation8 + $0x2b0] sm:$0xff] }
 0x2c0   :  { %1174 = vmatpush2.msra.mxu0 %v5696_v11  ;;  %1245 = vmatpush2.msra.mxu1 %v5699_v12  ;;  %8660 = vst [vmem:[#allocation136_spill] sm:$0xff] %v5708_v15  ;;  %8661 = vst [vmem:[#allocation137_spill] sm:$0xff] %v5711_v17  ;;  %v5714_v11 = vld [vmem:[#allocation8 + $0x288] sm:$0xff]  ;;  %v5717_v12 = vld [vmem:[#allocation8 + $0x298] sm:$0xff] }
 0x2c1   :  { %1175 = vmatprep.subr.mxu0 %v5702_v13  ;;  %1246 = vmatprep.subr.mxu1 %v5705_v14  ;;  %8662 = vst [vmem:[#allocation138_spill] sm:$0xff] %v5714_v11  ;;  %8663 = vst [vmem:[#allocation139_spill] sm:$0xff] %v5717_v12  ;;  %v5720_v13 = vld [vmem:[#allocation8 + $0x280] sm:$0xff]  ;;  %v5723_v14 = vld [vmem:[#allocation8 + $0x290] sm:$0xff] }
 0x2c2   :  { %1176 = vmatpush2.msra.mxu0 %v5708_v15  ;;  %1247 = vmatpush2.msra.mxu1 %v5711_v17  ;;  %8664 = vst [vmem:[#allocation140_spill] sm:$0xff] %v5720_v13  ;;  %8665 = vst [vmem:[#allocation141_spill] sm:$0xff] %v5723_v14  ;;  %v5726_v15 = vld [vmem:[#allocation8 + $0x268] sm:$0xff]  ;;  %v5729_v17 = vld [vmem:[#allocation8 + $0x278] sm:$0xff] }
 0x2c3   :  { %1177 = vmatprep.subr.mxu0 %v5714_v11  ;;  %1248 = vmatprep.subr.mxu1 %v5717_v12  ;;  %8666 = vst [vmem:[#allocation142_spill] sm:$0xff] %v5726_v15  ;;  %8667 = vst [vmem:[#allocation143_spill] sm:$0xff] %v5729_v17  ;;  %v5732_v11 = vld [vmem:[#allocation8 + $0x260] sm:$0xff]  ;;  %v5735_v12 = vld [vmem:[#allocation8 + $0x270] sm:$0xff] }
 0x2c4   :  { %1178 = vmatpush2.msra.mxu0 %v5720_v13  ;;  %1249 = vmatpush2.msra.mxu1 %v5723_v14  ;;  %8668 = vst [vmem:[#allocation144_spill] sm:$0xff] %v5732_v11  ;;  %8669 = vst [vmem:[#allocation145_spill] sm:$0xff] %v5735_v12  ;;  %v5738_v13 = vld [vmem:[#allocation8 + $0x248] sm:$0xff]  ;;  %v5741_v14 = vld [vmem:[#allocation8 + $0x258] sm:$0xff] }
 0x2c5   :  { %1179 = vmatprep.subr.mxu0 %v5726_v15  ;;  %1250 = vmatprep.subr.mxu1 %v5729_v17  ;;  %8670 = vst [vmem:[#allocation146_spill] sm:$0xff] %v5738_v13  ;;  %8671 = vst [vmem:[#allocation147_spill] sm:$0xff] %v5741_v14  ;;  %v5744_v15 = vld [vmem:[#allocation8 + $0x240] sm:$0xff]  ;;  %v5747_v17 = vld [vmem:[#allocation8 + $0x250] sm:$0xff] }
 0x2c6   :  { %1180 = vmatpush2.msra.mxu0 %v5732_v11  ;;  %1251 = vmatpush2.msra.mxu1 %v5735_v12  ;;  %8672 = vst [vmem:[#allocation148_spill] sm:$0xff] %v5744_v15  ;;  %8673 = vst [vmem:[#allocation149_spill] sm:$0xff] %v5747_v17  ;;  %v5750_v11 = vld [vmem:[#allocation8 + $0x228] sm:$0xff]  ;;  %v5753_v12 = vld [vmem:[#allocation8 + $0x238] sm:$0xff] }
 0x2c7   :  { %1181 = vmatprep.subr.mxu0 %v5738_v13  ;;  %1252 = vmatprep.subr.mxu1 %v5741_v14  ;;  %8674 = vst [vmem:[#allocation150_spill] sm:$0xff] %v5750_v11  ;;  %8675 = vst [vmem:[#allocation151_spill] sm:$0xff] %v5753_v12  ;;  %v5756_v13 = vld [vmem:[#allocation8 + $0x220] sm:$0xff]  ;;  %v5759_v14 = vld [vmem:[#allocation8 + $0x230] sm:$0xff] }
 0x2c8   :  { %1182 = vmatpush2.msra.mxu0 %v5744_v15  ;;  %1253 = vmatpush2.msra.mxu1 %v5747_v17  ;;  %8676 = vst [vmem:[#allocation152_spill] sm:$0xff] %v5756_v13  ;;  %8677 = vst [vmem:[#allocation153_spill] sm:$0xff] %v5759_v14  ;;  %v5762_v15 = vld [vmem:[#allocation8 + $0x208] sm:$0xff]  ;;  %v5765_v17 = vld [vmem:[#allocation8 + $0x218] sm:$0xff] }
 0x2c9   :  { %1183 = vmatprep.subr.mxu0 %v5750_v11  ;;  %1254 = vmatprep.subr.mxu1 %v5753_v12  ;;  %8678 = vst [vmem:[#allocation154_spill] sm:$0xff] %v5762_v15  ;;  %8679 = vst [vmem:[#allocation155_spill] sm:$0xff] %v5765_v17  ;;  %v5768_v11 = vld [vmem:[#allocation8 + $0x200] sm:$0xff]  ;;  %v5771_v12 = vld [vmem:[#allocation8 + $0x210] sm:$0xff] }
 0x2ca   :  { %1184 = vmatpush2.msra.mxu0 %v5756_v13  ;;  %1255 = vmatpush2.msra.mxu1 %v5759_v14  ;;  %8680 = vst [vmem:[#allocation156_spill] sm:$0xff] %v5768_v11  ;;  %8681 = vst [vmem:[#allocation157_spill] sm:$0xff] %v5771_v12 }
 0x2cb   :  { %1185 = vmatprep.subr.mxu0 %v5762_v15  ;;  %1256 = vmatprep.subr.mxu1 %v5765_v17 }
 0x2cc   :  { %1186 = vmatpush2.msra.mxu0 %v5768_v11  ;;  %1257 = vmatpush2.msra.mxu1 %v5771_v12 }
 0x2cd   :  { %1287 = vmatprep.subr.mxu0 %v5189_v16  ;;  %3336 = vmatprep.subr.mxu1 %v8397_v61  ;;  %v5781_v16 = vld [vmem:[%s7678_s1] sm:$0x7] }
 0x2ce   :  { %8682 = vst [vmem:[#allocation158_spill] sm:$0xff] %v5781_v16 }
 0x32b   :  { %v859_v14 = vpop.f32.mrf.mxu0  ;;  %v930_v12 = vpop.f32.mrf.mxu1 }
 0x32c   :  { %v860_v13 = vadd.f32 %v859_v14, %v5198_v19  ;;  %v955_v14 = vmul.f32 %v5781_v16, %v954_v7  ;;  %v931_v6 = vadd.f32 %v930_v12, %v5212_v37 }
 0x32d   :  { %v861_v10 = vpop.f32.mrf.mxu0 }
 0x32e   :  { %v3046_v15 = vmul.f32 -1.442695, %v860_v13  ;;  %v862_v17 = vadd.f32 %v861_v10, %v5203_v24  ;;  %v932_v13 = vpop.f32.mrf.mxu1  ;;  %v5787_v10 = vld [vmem:[%s7679_s2] sm:$0x7] }
 0x32f   :  { %8683 = vst [vmem:[#allocation159_spill] sm:$0xff] %v5787_v10 }
 0x330   :  { %3586 = vpow2.f32 %v3046_v15  ;;  %v3047_v9 = vmul.f32 -1.442695, %v862_v17  ;;  %v956_v15 = vadd.f32 %v5787_v10, %v955_v14 }
 0x332   :  { %3588 = vpow2.f32 %v3047_v9  ;;  %v933_v9 = vadd.f32 %v932_v13, %v5208_v35  ;;  %v1106_v13 = vrot.slane %v956_v15, 1 }
 0x33d   :  { %v3587_v8 = vpop.eup %3586 }
 0x33e   :  { %v938_v11 = vadd.f32 1.0, %v3587_v8 }
 0x33f   :  { %v3589_v8 = vpop.eup %3588 }
 0x340   :  { %3590 = vrcp.f32 %v938_v11  ;;  %v944_v2 = vadd.f32 1.0, %v3589_v8 }
 0x34c   :  { %v1023_v11 = vpop.f32.mrf.mxu0  ;;  %v1094_v17 = vpop.f32.mrf.mxu1 }
 0x34d   :  { %v3591_v24 = vpop.eup %3590  ;;  %v1024_v19 = vadd.f32 %v1023_v11, %v8540_v49 }
 0x34e   :  { %v947_v3 = vmul.f32 %v3591_v24, %v933_v9  ;;  %v3335_v7 = vpop.f32.mrf.mxu1  ;;  %v1025_v46 = vpop.f32.mrf.mxu0  ;;  %v8721_v9 = vld [vmem:[#allocation55_spill] sm:$0xff] }
 0x34f   :  { %v1098_v16 = vadd.f32 %v1024_v19, %v956_v15  ;;  %v1026_v14 = vadd.f32 %v1025_v46, %v8541_v1  ;;  %v1095_v46 = vadd.f32 %v1094_v17, %v4987_v55  ;;  %v8722_v17 = vld [vmem:[#allocation56_spill] sm:$0xff]  ;;  %v8723_v7 = vld [vmem:[#allocation57_spill] sm:$0xff] }
 0x350   :  { %v948_v42 = vadd.f32 %v947_v3, %v931_v6 }
 0x351   :  { %v3049_v63 = vmul.f32 -1.442695, %v1098_v16  ;;  %v1108_v35 = vadd.f32 %v1106_v13, %v1026_v14  ;;  %v8724_v14 = vld [vmem:[#allocation58_spill] sm:$0xff]  ;;  %v8725_v13 = vld [vmem:[#allocation59_spill] sm:$0xff] }
 0x352   :  { %3592 = vtanh.f32 %v948_v42  ;;  %v1116_v42 = vrot.slane %v956_v15, 2  ;;  %v8720_v15 = vld [vmem:[#allocation54_spill] sm:$0xff] }
 0x353   :  { %3594 = vpow2.f32 %v3049_v63  ;;  %v3050_v10 = vmul.f32 -1.442695, %v1108_v35 }
 0x354   :  { %3596 = vrcp.f32 %v944_v2 }
 0x355   :  { %3598 = vpow2.f32 %v3050_v10 }
 0x35f   :  { %v3593_v44 = vpop.eup %3592 }
 0x360   :  { %v3595_v53 = vpop.eup %3594  ;;  %v950_v11 = vsub.f32 %v5219_v4, %v3593_v44 }
 0x361   :  { %v3597_v12 = vpop.eup %3596  ;;  %v1102_v24 = vadd.f32 1.0, %v3595_v53 }
 0x362   :  { %v951_v19 = vmul.f32 %v3597_v12, %v950_v11  ;;  %v3599_v63 = vpop.eup %3598  ;;  %v8726_v11 = vld [vmem:[#allocation60_spill] sm:$0xff]  ;;  %v8727_v12 = vld [vmem:[#allocation61_spill] sm:$0xff] }
 0x363   :  { %3600 = vrcp.f32 %v1102_v24  ;;  %v1112_v16 = vadd.f32 1.0, %v3599_v63  ;;  %v8728_v24 = vld [vmem:[#allocation62_spill] sm:$0xff]  ;;  %v8730_v63 = vld [vmem:[#allocation64_spill] sm:$0xff] }
 0x364   :  { %v5795_v3 = vadd.f32 %v3593_v44, %v951_v19  ;;  %v8729_v19 = vld [vmem:[#allocation63_spill] sm:$0xff] }
 0x366   :  { %1187 = vmatprep.mubr.f32.mxu0 %v5795_v3  ;;  %1258 = vmatprep.mubr.f32.mxu1 %v5795_v3 }
 0x370   :  { %v3601_v35 = vpop.eup %3600 }
 0x371   :  { %v1115_v2 = vmul.f32 %v3601_v35, %v1095_v46  ;;  %v8731_v46 = vld [vmem:[#allocation65_spill] sm:$0xff]  ;;  %v8733_v35 = vld [vmem:[#allocation67_spill] sm:$0xff] }
 0x373   :  { %v1118_v6 = vadd.f32 %v1116_v42, %v1115_v2  ;;  %v8732_v42 = vld [vmem:[#allocation66_spill] sm:$0xff]  ;;  %v8734_v2 = vld [vmem:[#allocation68_spill] sm:$0xff] }
 0x375   :  { %3602 = vtanh.f32 %v1118_v6  ;;  %v8735_v6 = vld [vmem:[#allocation69_spill] sm:$0xff] }
 0x376   :  { %3604 = vrcp.f32 %v1112_v16  ;;  %v8736_v16 = vld [vmem:[#allocation70_spill] sm:$0xff] }
 0x382   :  { %v3603_v4 = vpop.eup %3602 }
 0x383   :  { %v1120_v53 = vsub.f32 %v5225_v18, %v3603_v4  ;;  %v3605_v10 = vpop.eup %3604  ;;  %v8684_v18 = vld [vmem:[#allocation17_spill] sm:$0xff] }
 0x385   :  { %v1121_v44 = vmul.f32 %v3605_v10, %v1120_v53  ;;  %v8738_v53 = vld [vmem:[#allocation72_spill] sm:$0xff]  ;;  %v8739_v10 = vld [vmem:[#allocation73_spill] sm:$0xff] }
 0x387   :  { %v5801_v8 = vadd.f32 %v3603_v4, %v1121_v44  ;;  %v8737_v4 = vld [vmem:[#allocation71_spill] sm:$0xff]  ;;  %v8740_v44 = vld [vmem:[#allocation74_spill] sm:$0xff] }
 0x389   :  { %1188 = vmatmul.mubr.f32.vlgmr.msra.gmra.mxu0 %v5801_v8  ;;  %1259 = vmatmul.mubr.f32.vlgmr.msra.gmra.mxu1 %v5801_v8 }
 0x38a   :  { %1288 = vmatpush1.msra.mxu0 %v5229_v20  ;;  %3337 = vmatpush3.msra.mxu1 %v5232_v21  ;;  %v8685_v20 = vld [vmem:[#allocation22_spill] sm:$0xff] }
 0x38b   :  { %1289 = vmatprep.subr.mxu0 %v5235_v22  ;;  %3338 = vmatprep.subr.mxu1 %v8397_v61  ;;  %v8686_v21 = vld [vmem:[#allocation18_spill] sm:$0xff]  ;;  %v8687_v22 = vld [vmem:[#allocation23_spill] sm:$0xff] }
 0x38c   :  { %1290 = vmatpush1.msra.mxu0 %v5239_v0  ;;  %3339 = vmatpush3.msra.mxu1 %v5242_v23  ;;  %v8688_v0 = vld [vmem:[#allocation19_spill] sm:$0xff]  ;;  %v8689_v23 = vld [vmem:[#allocation24_spill] sm:$0xff] }
 0x38d   :  { %1291 = vmatprep.subr.mxu0 %v5245_v25  ;;  %3340 = vmatprep.subr.mxu1 %v8397_v61  ;;  %v8690_v25 = vld [vmem:[#allocation20_spill] sm:$0xff] }
 0x38e   :  { %1292 = vmatpush1.msra.mxu0 %v5249_v26  ;;  %3341 = vmatpush3.msra.mxu1 %v5252_v27  ;;  %v8691_v26 = vld [vmem:[#allocation25_spill] sm:$0xff]  ;;  %v8692_v27 = vld [vmem:[#allocation26_spill] sm:$0xff] }
 0x38f   :  { %1293 = vmatprep.subr.mxu0 %v5255_v28  ;;  %3342 = vmatprep.subr.mxu1 %v8397_v61  ;;  %v8693_v28 = vld [vmem:[#allocation27_spill] sm:$0xff] }
 0x390   :  { %1294 = vmatpush1.msra.mxu0 %v5259_v29  ;;  %3343 = vmatpush3.msra.mxu1 %v5262_v30  ;;  %v8694_v29 = vld [vmem:[#allocation28_spill] sm:$0xff]  ;;  %v8695_v30 = vld [vmem:[#allocation29_spill] sm:$0xff] }
 0x391   :  { %1295 = vmatprep.subr.mxu0 %v5265_v31  ;;  %3344 = vmatprep.subr.mxu1 %v8397_v61  ;;  %v8696_v31 = vld [vmem:[#allocation30_spill] sm:$0xff] }
 0x392   :  { %1296 = vmatpush1.msra.mxu0 %v5269_v32  ;;  %3345 = vmatpush3.msra.mxu1 %v5272_v33  ;;  %v8697_v32 = vld [vmem:[#allocation31_spill] sm:$0xff]  ;;  %v8698_v33 = vld [vmem:[#allocation32_spill] sm:$0xff] }
 0x393   :  { %1297 = vmatprep.subr.mxu0 %v5275_v34  ;;  %3346 = vmatprep.subr.mxu1 %v8397_v61  ;;  %v8699_v34 = vld [vmem:[#allocation33_spill] sm:$0xff] }
 0x394   :  { %1298 = vmatpush1.msra.mxu0 %v5279_v36  ;;  %3347 = vmatpush3.msra.mxu1 %v5282_v38  ;;  %v8700_v36 = vld [vmem:[#allocation34_spill] sm:$0xff]  ;;  %v8701_v38 = vld [vmem:[#allocation35_spill] sm:$0xff] }
 0x395   :  { %1299 = vmatprep.subr.mxu0 %v5285_v39  ;;  %3348 = vmatprep.subr.mxu1 %v8397_v61  ;;  %v8702_v39 = vld [vmem:[#allocation36_spill] sm:$0xff] }
 0x396   :  { %1300 = vmatpush1.msra.mxu0 %v5289_v40  ;;  %3349 = vmatpush3.msra.mxu1 %v5292_v41  ;;  %v8703_v40 = vld [vmem:[#allocation37_spill] sm:$0xff]  ;;  %v8704_v41 = vld [vmem:[#allocation38_spill] sm:$0xff] }
 0x397   :  { %1301 = vmatprep.subr.mxu0 %v5295_v43  ;;  %3350 = vmatprep.subr.mxu1 %v8397_v61  ;;  %v8705_v43 = vld [vmem:[#allocation39_spill] sm:$0xff] }
 0x398   :  { %1302 = vmatpush1.msra.mxu0 %v5299_v45  ;;  %3351 = vmatpush3.msra.mxu1 %v5302_v47  ;;  %v8706_v45 = vld [vmem:[#allocation40_spill] sm:$0xff]  ;;  %v8707_v47 = vld [vmem:[#allocation41_spill] sm:$0xff] }
 0x399   :  { %1303 = vmatprep.subr.mxu0 %v5305_v50  ;;  %3352 = vmatprep.subr.mxu1 %v8397_v61  ;;  %v8708_v50 = vld [vmem:[#allocation42_spill] sm:$0xff] }
 0x39a   :  { %1304 = vmatpush1.msra.mxu0 %v5309_v52  ;;  %3353 = vmatpush3.msra.mxu1 %v5312_v54  ;;  %v8709_v52 = vld [vmem:[#allocation43_spill] sm:$0xff]  ;;  %v8710_v54 = vld [vmem:[#allocation44_spill] sm:$0xff] }
 0x39b   :  { %1305 = vmatprep.subr.mxu0 %v5315_v58  ;;  %3354 = vmatprep.subr.mxu1 %v8397_v61  ;;  %v8711_v58 = vld [vmem:[#allocation45_spill] sm:$0xff] }
 0x39c   :  { %1306 = vmatpush1.msra.mxu0 %v5319_v59  ;;  %3355 = vmatpush3.msra.mxu1 %v5322_v62  ;;  %v8712_v59 = vld [vmem:[#allocation46_spill] sm:$0xff]  ;;  %v8713_v62 = vld [vmem:[#allocation47_spill] sm:$0xff] }
 0x39d   :  { %1307 = vmatprep.subr.mxu0 %v5325_v51  ;;  %3356 = vmatprep.subr.mxu1 %v8397_v61  ;;  %v8714_v51 = vld [vmem:[#allocation48_spill] sm:$0xff] }
 0x39e   :  { %1308 = vmatpush1.msra.mxu0 %v5329_v56  ;;  %3357 = vmatpush3.msra.mxu1 %v5332_v57  ;;  %v8715_v56 = vld [vmem:[#allocation49_spill] sm:$0xff]  ;;  %v8716_v57 = vld [vmem:[#allocation50_spill] sm:$0xff] }
 0x39f   :  { %1309 = vmatprep.subr.mxu0 %v5335_v48  ;;  %3358 = vmatprep.subr.mxu1 %v8397_v61  ;;  %v8717_v48 = vld [vmem:[#allocation51_spill] sm:$0xff] }
 0x3a0   :  { %1310 = vmatpush1.msra.mxu0 %v5339_v60  ;;  %3359 = vmatpush3.msra.mxu1 %v5342_v5  ;;  %v8718_v60 = vld [vmem:[#allocation52_spill] sm:$0xff]  ;;  %v8719_v5 = vld [vmem:[#allocation53_spill] sm:$0xff] }
 0x3a1   :  { %1311 = vmatprep.subr.mxu0 %v8684_v18  ;;  %3360 = vmatprep.subr.mxu1 %v8397_v61  ;;  %v8741_v18 = vld [vmem:[#allocation75_spill] sm:$0xff] }
 0x3a2   :  { %1312 = vmatpush1.msra.mxu0 %v8685_v20  ;;  %3361 = vmatpush3.msra.mxu1 %v8686_v21  ;;  %v8742_v20 = vld [vmem:[#allocation76_spill] sm:$0xff]  ;;  %v8743_v21 = vld [vmem:[#allocation77_spill] sm:$0xff] }
 0x3a3   :  { %1313 = vmatprep.subr.mxu0 %v8687_v22  ;;  %3362 = vmatprep.subr.mxu1 %v8397_v61  ;;  %v8744_v22 = vld [vmem:[#allocation78_spill] sm:$0xff] }
 0x3a4   :  { %1314 = vmatpush1.msra.mxu0 %v8688_v0  ;;  %3363 = vmatpush3.msra.mxu1 %v8689_v23  ;;  %v8745_v0 = vld [vmem:[#allocation79_spill] sm:$0xff]  ;;  %v8746_v23 = vld [vmem:[#allocation80_spill] sm:$0xff] }
 0x3a5   :  { %1315 = vmatprep.subr.mxu0 %v8690_v25  ;;  %3364 = vmatprep.subr.mxu1 %v8397_v61  ;;  %v8747_v25 = vld [vmem:[#allocation81_spill] sm:$0xff] }
 0x3a6   :  { %1316 = vmatpush1.msra.mxu0 %v8691_v26  ;;  %3365 = vmatpush3.msra.mxu1 %v8692_v27  ;;  %v8748_v26 = vld [vmem:[#allocation82_spill] sm:$0xff]  ;;  %v8749_v27 = vld [vmem:[#allocation83_spill] sm:$0xff] }
 0x3a7   :  { %1317 = vmatprep.subr.mxu0 %v8693_v28  ;;  %3366 = vmatprep.subr.mxu1 %v8397_v61  ;;  %v8750_v28 = vld [vmem:[#allocation84_spill] sm:$0xff] }
 0x3a8   :  { %1318 = vmatpush1.msra.mxu0 %v8694_v29  ;;  %1351 = vmatprep.mubr.f32.mxu0 %v8397_v61  ;;  %v8751_v29 = vld [vmem:[#allocation85_spill] sm:$0xff] }
 0x3a9   :  { %3367 = vmatpush3.msra.mxu1 %v8695_v30  ;;  %3368 = vmatprep.mubr.msk.f32.mxu1 %vm4338_vm0, %v8397_v61  ;;  %v8752_v30 = vld [vmem:[#allocation86_spill] sm:$0xff] }
 0x3aa   :  { %1352 = vmatmul.mubr.f32.vlgmr.msra.gmra.mxu0 %v5801_v8  ;;  %3369 = vmatmul.mubr.f32.vlgmr.msra.gmra.mxu1 %v5801_v8 }
 0x3ab   :  { %1453 = vmatprep.subr.mxu0 %v8696_v31  ;;  %1524 = vmatprep.subr.mxu1 %v8697_v32  ;;  %v8753_v31 = vld [vmem:[#allocation87_spill] sm:$0xff]  ;;  %v8754_v32 = vld [vmem:[#allocation88_spill] sm:$0xff] }
 0x3ac   :  { %1454 = vmatpush1.msra.mxu0 %v8698_v33  ;;  %1525 = vmatpush1.msra.mxu1 %v8699_v34  ;;  %v8755_v33 = vld [vmem:[#allocation89_spill] sm:$0xff]  ;;  %v8756_v34 = vld [vmem:[#allocation90_spill] sm:$0xff] }
 0x3ad   :  { %1455 = vmatprep.subr.mxu0 %v8700_v36  ;;  %1526 = vmatprep.subr.mxu1 %v8701_v38  ;;  %v8757_v36 = vld [vmem:[#allocation91_spill] sm:$0xff]  ;;  %v8758_v38 = vld [vmem:[#allocation92_spill] sm:$0xff] }
 0x3ae   :  { %1456 = vmatpush1.msra.mxu0 %v8702_v39  ;;  %1527 = vmatpush1.msra.mxu1 %v8703_v40  ;;  %v8759_v39 = vld [vmem:[#allocation93_spill] sm:$0xff]  ;;  %v8760_v40 = vld [vmem:[#allocation94_spill] sm:$0xff] }
 0x3af   :  { %1457 = vmatprep.subr.mxu0 %v8704_v41  ;;  %1528 = vmatprep.subr.mxu1 %v8705_v43  ;;  %v8761_v41 = vld [vmem:[#allocation95_spill] sm:$0xff]  ;;  %v8762_v43 = vld [vmem:[#allocation96_spill] sm:$0xff] }
 0x3b0   :  { %1458 = vmatpush1.msra.mxu0 %v8706_v45  ;;  %1529 = vmatpush1.msra.mxu1 %v8707_v47  ;;  %v8763_v45 = vld [vmem:[#allocation97_spill] sm:$0xff]  ;;  %v8764_v47 = vld [vmem:[#allocation98_spill] sm:$0xff] }
 0x3b1   :  { %1459 = vmatprep.subr.mxu0 %v8708_v50  ;;  %1530 = vmatprep.subr.mxu1 %v8709_v52  ;;  %v8765_v50 = vld [vmem:[#allocation99_spill] sm:$0xff]  ;;  %v8766_v52 = vld [vmem:[#allocation100_spill] sm:$0xff] }
 0x3b2   :  { %1460 = vmatpush1.msra.mxu0 %v8710_v54  ;;  %1531 = vmatpush1.msra.mxu1 %v8711_v58  ;;  %v8767_v54 = vld [vmem:[#allocation101_spill] sm:$0xff]  ;;  %v8768_v58 = vld [vmem:[#allocation102_spill] sm:$0xff] }
 0x3b3   :  { %1461 = vmatprep.subr.mxu0 %v8712_v59  ;;  %1532 = vmatprep.subr.mxu1 %v8713_v62  ;;  %v8769_v59 = vld [vmem:[#allocation103_spill] sm:$0xff]  ;;  %v8770_v62 = vld [vmem:[#allocation104_spill] sm:$0xff] }
 0x3b4   :  { %1462 = vmatpush1.msra.mxu0 %v8714_v51  ;;  %1533 = vmatpush1.msra.mxu1 %v8715_v56  ;;  %v8771_v51 = vld [vmem:[#allocation105_spill] sm:$0xff]  ;;  %v8772_v56 = vld [vmem:[#allocation106_spill] sm:$0xff] }
 0x3b5   :  { %1463 = vmatprep.subr.mxu0 %v8716_v57  ;;  %1534 = vmatprep.subr.mxu1 %v8717_v48  ;;  %v8773_v57 = vld [vmem:[#allocation107_spill] sm:$0xff]  ;;  %v8774_v48 = vld [vmem:[#allocation108_spill] sm:$0xff] }
 0x3b6   :  { %1464 = vmatpush1.msra.mxu0 %v8718_v60  ;;  %1535 = vmatpush1.msra.mxu1 %v8719_v5  ;;  %v8775_v60 = vld [vmem:[#allocation109_spill] sm:$0xff]  ;;  %v8776_v5 = vld [vmem:[#allocation110_spill] sm:$0xff] }
 0x3b7   :  { %1465 = vmatprep.subr.mxu0 %v8720_v15  ;;  %1536 = vmatprep.subr.mxu1 %v8721_v9  ;;  %v8777_v15 = vld [vmem:[#allocation111_spill] sm:$0xff]  ;;  %v8778_v9 = vld [vmem:[#allocation112_spill] sm:$0xff] }
 0x3b8   :  { %1466 = vmatpush1.msra.mxu0 %v8722_v17  ;;  %1537 = vmatpush1.msra.mxu1 %v8723_v7  ;;  %v8779_v17 = vld [vmem:[#allocation113_spill] sm:$0xff]  ;;  %v8780_v7 = vld [vmem:[#allocation114_spill] sm:$0xff] }
 0x3b9   :  { %1467 = vmatprep.subr.mxu0 %v8724_v14  ;;  %1538 = vmatprep.subr.mxu1 %v8725_v13  ;;  %v8781_v14 = vld [vmem:[#allocation115_spill] sm:$0xff]  ;;  %v8782_v13 = vld [vmem:[#allocation116_spill] sm:$0xff] }
 0x3ba   :  { %1468 = vmatpush1.msra.mxu0 %v8726_v11  ;;  %1539 = vmatpush1.msra.mxu1 %v8727_v12  ;;  %v8783_v11 = vld [vmem:[#allocation117_spill] sm:$0xff]  ;;  %v8784_v12 = vld [vmem:[#allocation118_spill] sm:$0xff] }
 0x3bb   :  { %1469 = vmatprep.subr.mxu0 %v8728_v24  ;;  %1540 = vmatprep.subr.mxu1 %v8729_v19  ;;  %v8785_v24 = vld [vmem:[#allocation119_spill] sm:$0xff]  ;;  %v8786_v19 = vld [vmem:[#allocation120_spill] sm:$0xff] }
 0x3bc   :  { %1470 = vmatpush1.msra.mxu0 %v8730_v63  ;;  %1541 = vmatpush1.msra.mxu1 %v8731_v46  ;;  %v8787_v63 = vld [vmem:[#allocation121_spill] sm:$0xff]  ;;  %v8788_v46 = vld [vmem:[#allocation122_spill] sm:$0xff] }
 0x3bd   :  { %1471 = vmatprep.subr.mxu0 %v8732_v42  ;;  %1542 = vmatprep.subr.mxu1 %v8733_v35  ;;  %v8789_v42 = vld [vmem:[#allocation123_spill] sm:$0xff]  ;;  %v8790_v35 = vld [vmem:[#allocation124_spill] sm:$0xff] }
 0x3be   :  { %1472 = vmatpush1.msra.mxu0 %v8734_v2  ;;  %1543 = vmatpush1.msra.mxu1 %v8735_v6  ;;  %v8791_v2 = vld [vmem:[#allocation125_spill] sm:$0xff]  ;;  %v8792_v6 = vld [vmem:[#allocation126_spill] sm:$0xff] }
 0x3bf   :  { %1473 = vmatprep.subr.mxu0 %v8736_v16  ;;  %1544 = vmatprep.subr.mxu1 %v8737_v4  ;;  %v8793_v16 = vld [vmem:[#allocation127_spill] sm:$0xff]  ;;  %v8794_v4 = vld [vmem:[#allocation128_spill] sm:$0xff] }
 0x3c0   :  { %1474 = vmatpush1.msra.mxu0 %v8738_v53  ;;  %1545 = vmatpush1.msra.mxu1 %v8739_v10  ;;  %v8795_v53 = vld [vmem:[#allocation129_spill] sm:$0xff]  ;;  %v8796_v10 = vld [vmem:[#allocation130_spill] sm:$0xff] }
 0x3c1   :  { %1475 = vmatprep.subr.mxu0 %v8740_v44  ;;  %1546 = vmatprep.subr.mxu1 %v8741_v18  ;;  %v8797_v44 = vld [vmem:[#allocation131_spill] sm:$0xff]  ;;  %v8798_v18 = vld [vmem:[#allocation132_spill] sm:$0xff] }
 0x3c2   :  { %1476 = vmatpush1.msra.mxu0 %v8742_v20  ;;  %1547 = vmatpush1.msra.mxu1 %v8743_v21  ;;  %v8799_v20 = vld [vmem:[#allocation133_spill] sm:$0xff]  ;;  %v8800_v21 = vld [vmem:[#allocation134_spill] sm:$0xff] }
 0x3c3   :  { %1477 = vmatprep.subr.mxu0 %v8744_v22  ;;  %1548 = vmatprep.subr.mxu1 %v8745_v0  ;;  %v8801_v22 = vld [vmem:[#allocation135_spill] sm:$0xff]  ;;  %v8802_v0 = vld [vmem:[#allocation136_spill] sm:$0xff] }
 0x3c4   :  { %1478 = vmatpush1.msra.mxu0 %v8746_v23  ;;  %1549 = vmatpush1.msra.mxu1 %v8747_v25  ;;  %v8803_v23 = vld [vmem:[#allocation137_spill] sm:$0xff]  ;;  %v8804_v25 = vld [vmem:[#allocation138_spill] sm:$0xff] }
 0x3c5   :  { %1479 = vmatprep.subr.mxu0 %v8748_v26  ;;  %1550 = vmatprep.subr.mxu1 %v8749_v27  ;;  %v8805_v26 = vld [vmem:[#allocation139_spill] sm:$0xff]  ;;  %v8806_v27 = vld [vmem:[#allocation140_spill] sm:$0xff] }
 0x3c6   :  { %1480 = vmatpush1.msra.mxu0 %v8750_v28  ;;  %1551 = vmatpush1.msra.mxu1 %v8751_v29  ;;  %v8807_v28 = vld [vmem:[#allocation141_spill] sm:$0xff]  ;;  %v8808_v29 = vld [vmem:[#allocation142_spill] sm:$0xff] }
 0x3c7   :  { %1481 = vmatprep.subr.mxu0 %v8752_v30  ;;  %1552 = vmatprep.subr.mxu1 %v8753_v31  ;;  %v8809_v30 = vld [vmem:[#allocation143_spill] sm:$0xff]  ;;  %v8810_v31 = vld [vmem:[#allocation144_spill] sm:$0xff] }
 0x3c8   :  { %1482 = vmatpush1.msra.mxu0 %v8754_v32  ;;  %1553 = vmatpush1.msra.mxu1 %v8755_v33  ;;  %v8811_v32 = vld [vmem:[#allocation145_spill] sm:$0xff]  ;;  %v8812_v33 = vld [vmem:[#allocation146_spill] sm:$0xff] }
 0x3c9   :  { %1483 = vmatprep.subr.mxu0 %v8756_v34  ;;  %1554 = vmatprep.subr.mxu1 %v8757_v36  ;;  %v8813_v34 = vld [vmem:[#allocation147_spill] sm:$0xff]  ;;  %v8814_v36 = vld [vmem:[#allocation148_spill] sm:$0xff] }
 0x3ca   :  { %1484 = vmatpush1.msra.mxu0 %v8758_v38  ;;  %1555 = vmatpush1.msra.mxu1 %v8759_v39  ;;  %v8815_v38 = vld [vmem:[#allocation149_spill] sm:$0xff]  ;;  %v8816_v39 = vld [vmem:[#allocation150_spill] sm:$0xff] }
 0x3cb   :  { %1485 = vmatprep.subr.mxu0 %v8760_v40  ;;  %1556 = vmatprep.subr.mxu1 %v8761_v41  ;;  %v8817_v40 = vld [vmem:[#allocation151_spill] sm:$0xff]  ;;  %v8818_v41 = vld [vmem:[#allocation152_spill] sm:$0xff] }
 0x3cc   :  { %1486 = vmatpush2.msra.mxu0 %v8762_v43  ;;  %1557 = vmatpush2.msra.mxu1 %v8763_v45  ;;  %v8819_v43 = vld [vmem:[#allocation153_spill] sm:$0xff]  ;;  %v8820_v45 = vld [vmem:[#allocation154_spill] sm:$0xff] }
 0x3cd   :  { %1487 = vmatprep.subr.mxu0 %v8764_v47  ;;  %1558 = vmatprep.subr.mxu1 %v8765_v50  ;;  %v8821_v47 = vld [vmem:[#allocation155_spill] sm:$0xff]  ;;  %v8822_v50 = vld [vmem:[#allocation156_spill] sm:$0xff] }
 0x3ce   :  { %1488 = vmatpush2.msra.mxu0 %v8766_v52  ;;  %1559 = vmatpush2.msra.mxu1 %v8767_v54  ;;  %v8823_v52 = vld [vmem:[#allocation157_spill] sm:$0xff] }
 0x3cf   :  { %1489 = vmatprep.subr.mxu0 %v8768_v58  ;;  %1560 = vmatprep.subr.mxu1 %v8769_v59  ;;  %v6000_v54 = vld [vmem:[#allocation7 + $0x170] sm:$0xff]  ;;  %v8824_v59 = vld [vmem:[#allocation15_spill] sm:$0xff] }
 0x3d0   :  { %1490 = vmatpush2.msra.mxu0 %v8770_v62  ;;  %1561 = vmatpush2.msra.mxu1 %v8771_v51 }
 0x3d1   :  { %1491 = vmatprep.subr.mxu0 %v8772_v56  ;;  %1562 = vmatprep.subr.mxu1 %v8773_v57  ;;  %v8825_v57 = vld [vmem:[#allocation16_spill] sm:$0xff] }
 0x3d2   :  { %1492 = vmatpush2.msra.mxu0 %v8774_v48  ;;  %1563 = vmatpush2.msra.mxu1 %v8775_v60 }
 0x3d3   :  { %1493 = vmatprep.subr.mxu0 %v8776_v5  ;;  %1564 = vmatprep.subr.mxu1 %v8777_v15 }
 0x3d4   :  { %1494 = vmatpush2.msra.mxu0 %v8778_v9  ;;  %1565 = vmatpush2.msra.mxu1 %v8779_v17  ;;  %v1284_v9 = vstv %s3053_s17 }
 0x3d5   :  { %1495 = vmatprep.subr.mxu0 %v8780_v7  ;;  %1566 = vmatprep.subr.mxu1 %v8781_v14  ;;  %v8826_v7 = vld [vmem:[#allocation158_spill] sm:$0xff] }
 0x3d6   :  { %1496 = vmatpush2.msra.mxu0 %v8782_v13  ;;  %1567 = vmatpush2.msra.mxu1 %v8783_v11  ;;  %v1285_v14 = vmul.f32 %v8826_v7, %v1284_v9  ;;  %v8827_v11 = vld [vmem:[#allocation159_spill] sm:$0xff]  ;;  %v6059_v9 = vld [vmem:[#allocation7 + $0x110] sm:$0xff]  ;;  %v6066_v7 = vld [vmem:[#allocation7 + $0x118] sm:$0xff] }
 0x3d7   :  { %1497 = vmatprep.subr.mxu0 %v8784_v12  ;;  %1568 = vmatprep.subr.mxu1 %v8785_v24 }
 0x3d8   :  { %1498 = vmatpush2.msra.mxu0 %v8786_v19  ;;  %1569 = vmatpush2.msra.mxu1 %v8787_v63  ;;  %v1286_v12 = vadd.f32 %v8827_v11, %v1285_v14  ;;  %v8828_v19 = vld [vmem:[#allocation21_spill] sm:$0xff]  ;;  %v6076_v11 = vld [vmem:[#allocation7 + $0x100] sm:$0xff] }
 0x3d9   :  { %1499 = vmatprep.subr.mxu0 %v8788_v46  ;;  %1570 = vmatprep.subr.mxu1 %v8789_v42  ;;  %v6069_v14 = vld [vmem:[#allocation7 + $0xf8] sm:$0xff] }
 0x3da   :  { %1500 = vmatpush2.msra.mxu0 %v8790_v35  ;;  %1571 = vmatpush2.msra.mxu1 %v8791_v2 }
 0x3db   :  { %1501 = vmatprep.subr.mxu0 %v8792_v6  ;;  %1572 = vmatprep.subr.mxu1 %v8793_v16 }
 0x3dc   :  { %1502 = vmatpush2.msra.mxu0 %v8794_v4  ;;  %1573 = vmatpush2.msra.mxu1 %v8795_v53 }
 0x3dd   :  { %1503 = vmatprep.subr.mxu0 %v8796_v10  ;;  %1574 = vmatprep.subr.mxu1 %v8797_v44 }
 0x3de   :  { %1504 = vmatpush2.msra.mxu0 %v8798_v18  ;;  %1575 = vmatpush2.msra.mxu1 %v8799_v20 }
 0x3df   :  { %1505 = vmatprep.subr.mxu0 %v8800_v21  ;;  %1576 = vmatprep.subr.mxu1 %v8801_v22  ;;  %v1436_v22 = vrot.slane %v1286_v12, 1 }
 0x3e0   :  { %1506 = vmatpush2.msra.mxu0 %v8802_v0  ;;  %1577 = vmatpush2.msra.mxu1 %v8803_v23 }
 0x3e1   :  { %1507 = vmatprep.subr.mxu0 %v8804_v25  ;;  %1578 = vmatprep.subr.mxu1 %v8805_v26 }
 0x3e2   :  { %1508 = vmatpush2.msra.mxu0 %v8806_v27  ;;  %1579 = vmatpush2.msra.mxu1 %v8807_v28 }
 0x3e3   :  { %1509 = vmatprep.subr.mxu0 %v8808_v29  ;;  %1580 = vmatprep.subr.mxu1 %v8809_v30 }
 0x3e4   :  { %1510 = vmatpush2.msra.mxu0 %v8810_v31  ;;  %1581 = vmatpush2.msra.mxu1 %v8811_v32 }
 0x3e5   :  { %1511 = vmatprep.subr.mxu0 %v8812_v33  ;;  %1582 = vmatprep.subr.mxu1 %v8813_v34  ;;  %v1446_v34 = vrot.slane %v1286_v12, 2 }
 0x3e6   :  { %1512 = vmatpush2.msra.mxu0 %v8814_v36  ;;  %1583 = vmatpush2.msra.mxu1 %v8815_v38 }
 0x3e7   :  { %1513 = vmatprep.subr.mxu0 %v8816_v39  ;;  %1584 = vmatprep.subr.mxu1 %v8817_v40 }
 0x3e8   :  { %1514 = vmatpush2.msra.mxu0 %v8818_v41  ;;  %1585 = vmatpush2.msra.mxu1 %v8819_v43 }
 0x3e9   :  { %1515 = vmatprep.subr.mxu0 %v8820_v45  ;;  %1586 = vmatprep.subr.mxu1 %v8821_v47 }
 0x3ea   :  { %1516 = vmatpush2.msra.mxu0 %v8822_v50  ;;  %1587 = vmatpush2.msra.mxu1 %v8823_v52  ;;  %v6023_v50 = vld [vmem:[#allocation7 + $0x168] sm:$0xff]  ;;  %v6026_v52 = vld [vmem:[#allocation7 + $0x178] sm:$0xff] }
 0x3eb   :  { %1617 = vmatprep.subr.mxu0 %v6000_v54  ;;  %3371 = vmatprep.subr.mxu1 %v8397_v61 }
 0x449   :  { %v1189_v58 = vpop.f32.mrf.mxu0  ;;  %v1260_v17 = vpop.f32.mrf.mxu1 }
 0x44a   :  { %v1190_v62 = vadd.f32 %v1189_v58, %v8824_v59  ;;  %v1261_v6 = vadd.f32 %v1260_v17, %v5212_v37  ;;  %v6029_v58 = vld [vmem:[#allocation7 + $0x158] sm:$0xff]  ;;  %v6063_v17 = vld [vmem:[#allocation7 + $0x108] sm:$0xff] }
 0x44b   :  { %v1191_v56 = vpop.f32.mrf.mxu0  ;;  %v1262_v13 = vpop.f32.mrf.mxu1 }
 0x44c   :  { %v3051_v51 = vmul.f32 -1.442695, %v1190_v62  ;;  %v1192_v48 = vadd.f32 %v1191_v56, %v8825_v57  ;;  %v1263_v63 = vadd.f32 %v1262_v13, %v8828_v19  ;;  %v6036_v62 = vld [vmem:[#allocation7 + $0x160] sm:$0xff]  ;;  %v6043_v56 = vld [vmem:[#allocation7 + $0x138] sm:$0xff]  ;;  %v6073_v13 = vld [vmem:[#allocation7 + $0xf0] sm:$0xff] }
 0x44e   :  { %3606 = vpow2.f32 %v3051_v51  ;;  %v3052_v60 = vmul.f32 -1.442695, %v1192_v48  ;;  %v6039_v51 = vld [vmem:[#allocation7 + $0x140] sm:$0xff]  ;;  %v6046_v48 = vld [vmem:[#allocation7 + $0x148] sm:$0xff] }
 0x450   :  { %3608 = vpow2.f32 %v3052_v60  ;;  %v6049_v60 = vld [vmem:[#allocation7 + $0x128] sm:$0xff] }
 0x45b   :  { %v3607_v5 = vpop.eup %3606 }
 0x45c   :  { %v1268_v15 = vadd.f32 1.0, %v3607_v5  ;;  %v6053_v5 = vld [vmem:[#allocation7 + $0x120] sm:$0xff] }
 0x45d   :  { %v3609_v24 = vpop.eup %3608 }
 0x45e   :  { %3610 = vrcp.f32 %v1268_v15  ;;  %v1274_v10 = vadd.f32 1.0, %v3609_v24  ;;  %v6056_v15 = vld [vmem:[#allocation7 + $0x130] sm:$0xff]  ;;  %v6083_v24 = vld [vmem:[#allocation7 + $0xd8] sm:$0xff] }
 0x46a   :  { %v1353_v46 = vpop.f32.mrf.mxu0  ;;  %v1424_v42 = vpop.f32.mrf.mxu1 }
 0x46b   :  { %v3611_v35 = vpop.eup %3610  ;;  %v1354_v2 = vadd.f32 %v1353_v46, %v8540_v49  ;;  %v1425_v33 = vadd.f32 %v1424_v42, %v4987_v55  ;;  %v6089_v46 = vld [vmem:[#allocation7 + $0xc8] sm:$0xff]  ;;  %v6093_v42 = vld [vmem:[#allocation7 + $0xc0] sm:$0xff] }
 0x46c   :  { %v1277_v16 = vmul.f32 %v3611_v35, %v1263_v63  ;;  %v3370_v4 = vpop.f32.mrf.mxu1  ;;  %v1355_v20 = vpop.f32.mrf.mxu0  ;;  %v6086_v63 = vld [vmem:[#allocation7 + $0xe8] sm:$0xff]  ;;  %v6096_v35 = vld [vmem:[#allocation7 + $0xd0] sm:$0xff] }
 0x46d   :  { %v1428_v53 = vadd.f32 %v1354_v2, %v1286_v12  ;;  %v1356_v21 = vadd.f32 %v1355_v20, %v8541_v1  ;;  %v6079_v12 = vld [vmem:[#allocation7 + $0xe0] sm:$0xff]  ;;  %v6099_v2 = vld [vmem:[#allocation7 + $0xb0] sm:$0xff]  ;;  %v6109_v4 = vld [vmem:[#allocation7 + $0x98] sm:$0xff] }
 0x46e   :  { %v1278_v44 = vadd.f32 %v1277_v16, %v1261_v6  ;;  %v6103_v6 = vld [vmem:[#allocation7 + $0xa8] sm:$0xff]  ;;  %v6106_v16 = vld [vmem:[#allocation7 + $0xb8] sm:$0xff] }
 0x46f   :  { %v3054_v18 = vmul.f32 -1.442695, %v1428_v53  ;;  %v1438_v0 = vadd.f32 %v1436_v22, %v1356_v21  ;;  %v6113_v53 = vld [vmem:[#allocation7 + $0x90] sm:$0xff]  ;;  %v6126_v20 = vld [vmem:[#allocation7 + $0x88] sm:$0xff]  ;;  %v6133_v22 = vld [vmem:[#allocation7 + $0x60] sm:$0xff] }
 0x470   :  { %3612 = vtanh.f32 %v1278_v44  ;;  %v6119_v44 = vld [vmem:[#allocation7 + $0x80] sm:$0xff]  ;;  %v6129_v21 = vld [vmem:[#allocation7 + $0x68] sm:$0xff] }
 0x471   :  { %3614 = vpow2.f32 %v3054_v18  ;;  %v3055_v23 = vmul.f32 -1.442695, %v1438_v0  ;;  %v6123_v18 = vld [vmem:[#allocation7 + $0x78] sm:$0xff]  ;;  %v6136_v0 = vld [vmem:[#allocation7 + $0x70] sm:$0xff] }
 0x472   :  { %3616 = vrcp.f32 %v1274_v10  ;;  %v6116_v10 = vld [vmem:[#allocation7 + $0xa0] sm:$0xff] }
 0x473   :  { %3618 = vpow2.f32 %v3055_v23  ;;  %v6139_v23 = vld [vmem:[#allocation7 + $0x50] sm:$0xff] }
 0x474   :  { %8829 = vst [vmem:[#allocation17_spill] sm:$0xff] %v6139_v23 }
 0x47d   :  { %v3613_v25 = vpop.eup %3612 }
 0x47e   :  { %v3615_v26 = vpop.eup %3614  ;;  %v1280_v27 = vsub.f32 %v5795_v3, %v3613_v25 }
 0x47f   :  { %v3617_v28 = vpop.eup %3616  ;;  %v1432_v29 = vadd.f32 1.0, %v3615_v26  ;;  %v6146_v26 = vld [vmem:[#allocation7 + $0x58] sm:$0xff] }
 0x480   :  { %v1281_v30 = vmul.f32 %v3617_v28, %v1280_v27  ;;  %v3619_v32 = vpop.eup %3618  ;;  %8831 = vst [vmem:[#allocation18_spill] sm:$0xff] %v6146_v26  ;;  %v6149_v27 = vld [vmem:[#allocation7 + $0x38] sm:$0xff]  ;;  %v6153_v28 = vld [vmem:[#allocation7 + $0x30] sm:$0xff] }
 0x481   :  { %3620 = vrcp.f32 %v1432_v29  ;;  %v1442_v40 = vadd.f32 1.0, %v3619_v32  ;;  %8832 = vst [vmem:[#allocation23_spill] sm:$0xff] %v6149_v27  ;;  %8833 = vst [vmem:[#allocation19_spill] sm:$0xff] %v6153_v28  ;;  %v6156_v29 = vld [vmem:[#allocation7 + $0x40] sm:$0xff]  ;;  %v6163_v32 = vld [vmem:[#allocation7 + $0x18] sm:$0xff] }
 0x482   :  { %v6013_v31 = vadd.f32 %v3613_v25, %v1281_v30  ;;  %v6143_v25 = vld [vmem:[#allocation7 + $0x48] sm:$0xff]  ;;  %8834 = vst [vmem:[#allocation24_spill] sm:$0xff] %v6156_v29  ;;  %v6159_v30 = vld [vmem:[#allocation7 + $0x20] sm:$0xff]  ;;  %8836 = vst [vmem:[#allocation25_spill] sm:$0xff] %v6163_v32 }
 0x483   :  { %8830 = vst [vmem:[#allocation22_spill] sm:$0xff] %v6143_v25  ;;  %8835 = vst [vmem:[#allocation20_spill] sm:$0xff] %v6159_v30 }
 0x484   :  { %1517 = vmatprep.mubr.f32.mxu0 %v6013_v31  ;;  %1588 = vmatprep.mubr.f32.mxu1 %v6013_v31 }
 0x48e   :  { %v3621_v36 = vpop.eup %3620 }
 0x48f   :  { %v1445_v38 = vmul.f32 %v3621_v36, %v1425_v33  ;;  %v6166_v33 = vld [vmem:[#allocation7 + $0x28] sm:$0xff]  ;;  %v6173_v36 = vld [vmem:[#allocation7] sm:$0xff] }
 0x490   :  { %8837 = vst [vmem:[#allocation26_spill] sm:$0xff] %v6166_v33  ;;  %8839 = vst [vmem:[#allocation28_spill] sm:$0xff] %v6173_v36 }
 0x491   :  { %v1448_v39 = vadd.f32 %v1446_v34, %v1445_v38  ;;  %v6169_v34 = vld [vmem:[#allocation7 + $0x8] sm:$0xff]  ;;  %v6177_v38 = vld [vmem:[#allocation7 + $0x10] sm:$0xff] }
 0x492   :  { %8838 = vst [vmem:[#allocation27_spill] sm:$0xff] %v6169_v34  ;;  %8840 = vst [vmem:[#allocation29_spill] sm:$0xff] %v6177_v38 }
 0x493   :  { %3622 = vtanh.f32 %v1448_v39  ;;  %v6184_v39 = vld [vmem:[#allocation8 + $0x1e8] sm:$0xff] }
 0x494   :  { %3624 = vrcp.f32 %v1442_v40  ;;  %8841 = vst [vmem:[#allocation30_spill] sm:$0xff] %v6184_v39  ;;  %v6187_v40 = vld [vmem:[#allocation8 + $0x1f8] sm:$0xff] }
 0x495   :  { %8842 = vst [vmem:[#allocation31_spill] sm:$0xff] %v6187_v40 }
 0x4a0   :  { %v3623_v3 = vpop.eup %3622 }
 0x4a1   :  { %v1450_v41 = vsub.f32 %v5801_v8, %v3623_v3  ;;  %v3625_v43 = vpop.eup %3624  ;;  %v6033_v8 = vld [vmem:[#allocation7 + $0x150] sm:$0xff] }
 0x4a3   :  { %v1451_v45 = vmul.f32 %v3625_v43, %v1450_v41  ;;  %v6193_v41 = vld [vmem:[#allocation8 + $0x1f0] sm:$0xff]  ;;  %v6196_v43 = vld [vmem:[#allocation8 + $0x1c8] sm:$0xff] }
 0x4a4   :  { %8844 = vst [vmem:[#allocation33_spill] sm:$0xff] %v6193_v41  ;;  %8845 = vst [vmem:[#allocation34_spill] sm:$0xff] %v6196_v43 }
 0x4a5   :  { %v6019_v47 = vadd.f32 %v3623_v3, %v1451_v45  ;;  %v6190_v3 = vld [vmem:[#allocation8 + $0x1e0] sm:$0xff]  ;;  %v6199_v45 = vld [vmem:[#allocation8 + $0x1d8] sm:$0xff] }
 0x4a6   :  { %8843 = vst [vmem:[#allocation32_spill] sm:$0xff] %v6190_v3  ;;  %8846 = vst [vmem:[#allocation35_spill] sm:$0xff] %v6199_v45 }
 0x4a7   :  { %1518 = vmatmul.mubr.f32.vlgmr.msra.gmra.mxu0 %v6019_v47  ;;  %1589 = vmatmul.mubr.f32.vlgmr.msra.gmra.mxu1 %v6019_v47 }
 0x4a8   :  { %1618 = vmatpush1.msra.mxu0 %v6023_v50  ;;  %3372 = vmatpush3.msra.mxu1 %v6026_v52 }
 0x4a9   :  { %1619 = vmatprep.subr.mxu0 %v6029_v58  ;;  %3373 = vmatprep.subr.mxu1 %v8397_v61 }
 0x4aa   :  { %1620 = vmatpush1.msra.mxu0 %v6033_v8  ;;  %3374 = vmatpush3.msra.mxu1 %v6036_v62 }
 0x4ab   :  { %1621 = vmatprep.subr.mxu0 %v6039_v51  ;;  %3375 = vmatprep.subr.mxu1 %v8397_v61 }
 0x4ac   :  { %1622 = vmatpush1.msra.mxu0 %v6043_v56  ;;  %3376 = vmatpush3.msra.mxu1 %v6046_v48 }
 0x4ad   :  { %1623 = vmatprep.subr.mxu0 %v6049_v60  ;;  %3377 = vmatprep.subr.mxu1 %v8397_v61 }
 0x4ae   :  { %1624 = vmatpush1.msra.mxu0 %v6053_v5  ;;  %3378 = vmatpush3.msra.mxu1 %v6056_v15 }
 0x4af   :  { %1625 = vmatprep.subr.mxu0 %v6059_v9  ;;  %3379 = vmatprep.subr.mxu1 %v8397_v61 }
 0x4b0   :  { %1626 = vmatpush1.msra.mxu0 %v6063_v17  ;;  %3380 = vmatpush3.msra.mxu1 %v6066_v7 }
 0x4b1   :  { %1627 = vmatprep.subr.mxu0 %v6069_v14  ;;  %3381 = vmatprep.subr.mxu1 %v8397_v61 }
 0x4b2   :  { %1628 = vmatpush1.msra.mxu0 %v6073_v13  ;;  %3382 = vmatpush3.msra.mxu1 %v6076_v11 }
 0x4b3   :  { %1629 = vmatprep.subr.mxu0 %v6079_v12  ;;  %3383 = vmatprep.subr.mxu1 %v8397_v61 }
 0x4b4   :  { %1630 = vmatpush1.msra.mxu0 %v6083_v24  ;;  %3384 = vmatpush3.msra.mxu1 %v6086_v63 }
 0x4b5   :  { %1631 = vmatprep.subr.mxu0 %v6089_v46  ;;  %3385 = vmatprep.subr.mxu1 %v8397_v61 }
 0x4b6   :  { %1632 = vmatpush1.msra.mxu0 %v6093_v42  ;;  %3386 = vmatpush3.msra.mxu1 %v6096_v35 }
 0x4b7   :  { %1633 = vmatprep.subr.mxu0 %v6099_v2  ;;  %3387 = vmatprep.subr.mxu1 %v8397_v61 }
 0x4b8   :  { %1634 = vmatpush1.msra.mxu0 %v6103_v6  ;;  %3388 = vmatpush3.msra.mxu1 %v6106_v16 }
 0x4b9   :  { %1635 = vmatprep.subr.mxu0 %v6109_v4  ;;  %3389 = vmatprep.subr.mxu1 %v8397_v61 }
 0x4ba   :  { %1636 = vmatpush1.msra.mxu0 %v6113_v53  ;;  %3390 = vmatpush3.msra.mxu1 %v6116_v10 }
 0x4bb   :  { %1637 = vmatprep.subr.mxu0 %v6119_v44  ;;  %3391 = vmatprep.subr.mxu1 %v8397_v61 }
 0x4bc   :  { %1638 = vmatpush1.msra.mxu0 %v6123_v18  ;;  %3392 = vmatpush3.msra.mxu1 %v6126_v20 }
 0x4bd   :  { %1639 = vmatprep.subr.mxu0 %v6129_v21  ;;  %3393 = vmatprep.subr.mxu1 %v8397_v61 }
 0x4be   :  { %1640 = vmatpush1.msra.mxu0 %v6133_v22  ;;  %3394 = vmatpush3.msra.mxu1 %v6136_v0 }
 0x4bf   :  { %1641 = vmatprep.subr.mxu0 %v6139_v23  ;;  %3395 = vmatprep.subr.mxu1 %v8397_v61 }
 0x4c0   :  { %1642 = vmatpush1.msra.mxu0 %v6143_v25  ;;  %3396 = vmatpush3.msra.mxu1 %v6146_v26 }
 0x4c1   :  { %1643 = vmatprep.subr.mxu0 %v6149_v27  ;;  %3397 = vmatprep.subr.mxu1 %v8397_v61 }
 0x4c2   :  { %1644 = vmatpush1.msra.mxu0 %v6153_v28  ;;  %3398 = vmatpush3.msra.mxu1 %v6156_v29 }
 0x4c3   :  { %1645 = vmatprep.subr.mxu0 %v6159_v30  ;;  %3399 = vmatprep.subr.mxu1 %v8397_v61 }
 0x4c4   :  { %1646 = vmatpush1.msra.mxu0 %v6163_v32  ;;  %3400 = vmatpush3.msra.mxu1 %v6166_v33  ;;  %v1614_v33 = vstv %s3058_s0 }
 0x4c5   :  { %1647 = vmatprep.subr.mxu0 %v6169_v34  ;;  %3401 = vmatprep.subr.mxu1 %v8397_v61 }
 0x4c6   :  { %1648 = vmatpush1.msra.mxu0 %v6173_v36  ;;  %1681 = vmatprep.mubr.f32.mxu0 %v8397_v61 }
 0x4c7   :  { %3402 = vmatpush3.msra.mxu1 %v6177_v38  ;;  %3403 = vmatprep.mubr.msk.f32.mxu1 %vm4338_vm0, %v8397_v61 }
 0x4c8   :  { %1682 = vmatmul.mubr.f32.vlgmr.msra.gmra.mxu0 %v6019_v47  ;;  %3404 = vmatmul.mubr.f32.vlgmr.msra.gmra.mxu1 %v6019_v47 }
 0x4c9   :  { %1783 = vmatprep.subr.mxu0 %v6184_v39  ;;  %1854 = vmatprep.subr.mxu1 %v6187_v40  ;;  %v6202_v39 = vld [vmem:[#allocation8 + $0x1c0] sm:$0xff]  ;;  %v6205_v40 = vld [vmem:[#allocation8 + $0x1d0] sm:$0xff] }
 0x4ca   :  { %1784 = vmatpush1.msra.mxu0 %v6190_v3  ;;  %1855 = vmatpush1.msra.mxu1 %v6193_v41  ;;  %8847 = vst [vmem:[#allocation36_spill] sm:$0xff] %v6202_v39  ;;  %8848 = vst [vmem:[#allocation37_spill] sm:$0xff] %v6205_v40  ;;  %v6208_v3 = vld [vmem:[#allocation8 + $0x1a8] sm:$0xff]  ;;  %v6211_v41 = vld [vmem:[#allocation8 + $0x1b8] sm:$0xff] }
 0x4cb   :  { %1785 = vmatprep.subr.mxu0 %v6196_v43  ;;  %1856 = vmatprep.subr.mxu1 %v6199_v45  ;;  %8849 = vst [vmem:[#allocation38_spill] sm:$0xff] %v6208_v3  ;;  %8850 = vst [vmem:[#allocation39_spill] sm:$0xff] %v6211_v41  ;;  %v6214_v43 = vld [vmem:[#allocation8 + $0x1a0] sm:$0xff]  ;;  %v6217_v45 = vld [vmem:[#allocation8 + $0x1b0] sm:$0xff] }
 0x4cc   :  { %1786 = vmatpush1.msra.mxu0 %v6202_v39  ;;  %1857 = vmatpush1.msra.mxu1 %v6205_v40  ;;  %8851 = vst [vmem:[#allocation40_spill] sm:$0xff] %v6214_v43  ;;  %8852 = vst [vmem:[#allocation41_spill] sm:$0xff] %v6217_v45  ;;  %v6220_v39 = vld [vmem:[#allocation8 + $0x188] sm:$0xff]  ;;  %v6223_v40 = vld [vmem:[#allocation8 + $0x198] sm:$0xff] }
 0x4cd   :  { %1787 = vmatprep.subr.mxu0 %v6208_v3  ;;  %1858 = vmatprep.subr.mxu1 %v6211_v41  ;;  %8853 = vst [vmem:[#allocation42_spill] sm:$0xff] %v6220_v39  ;;  %8854 = vst [vmem:[#allocation43_spill] sm:$0xff] %v6223_v40  ;;  %v6226_v3 = vld [vmem:[#allocation8 + $0x180] sm:$0xff]  ;;  %v6229_v41 = vld [vmem:[#allocation8 + $0x190] sm:$0xff] }
 0x4ce   :  { %1788 = vmatpush1.msra.mxu0 %v6214_v43  ;;  %1859 = vmatpush1.msra.mxu1 %v6217_v45  ;;  %8855 = vst [vmem:[#allocation44_spill] sm:$0xff] %v6226_v3  ;;  %8856 = vst [vmem:[#allocation45_spill] sm:$0xff] %v6229_v41  ;;  %v6232_v43 = vld [vmem:[#allocation8 + $0x168] sm:$0xff]  ;;  %v6235_v45 = vld [vmem:[#allocation8 + $0x178] sm:$0xff] }
 0x4cf   :  { %1789 = vmatprep.subr.mxu0 %v6220_v39  ;;  %1860 = vmatprep.subr.mxu1 %v6223_v40  ;;  %8857 = vst [vmem:[#allocation46_spill] sm:$0xff] %v6232_v43  ;;  %8858 = vst [vmem:[#allocation47_spill] sm:$0xff] %v6235_v45  ;;  %v6238_v39 = vld [vmem:[#allocation8 + $0x160] sm:$0xff]  ;;  %v6241_v40 = vld [vmem:[#allocation8 + $0x170] sm:$0xff] }
 0x4d0   :  { %1790 = vmatpush1.msra.mxu0 %v6226_v3  ;;  %1861 = vmatpush1.msra.mxu1 %v6229_v41  ;;  %8859 = vst [vmem:[#allocation48_spill] sm:$0xff] %v6238_v39  ;;  %8860 = vst [vmem:[#allocation49_spill] sm:$0xff] %v6241_v40  ;;  %v6244_v3 = vld [vmem:[#allocation8 + $0x148] sm:$0xff]  ;;  %v6247_v41 = vld [vmem:[#allocation8 + $0x158] sm:$0xff] }
 0x4d1   :  { %1791 = vmatprep.subr.mxu0 %v6232_v43  ;;  %1862 = vmatprep.subr.mxu1 %v6235_v45  ;;  %8861 = vst [vmem:[#allocation50_spill] sm:$0xff] %v6244_v3  ;;  %8862 = vst [vmem:[#allocation51_spill] sm:$0xff] %v6247_v41  ;;  %v6250_v43 = vld [vmem:[#allocation8 + $0x140] sm:$0xff]  ;;  %v6253_v45 = vld [vmem:[#allocation8 + $0x150] sm:$0xff] }
 0x4d2   :  { %1792 = vmatpush1.msra.mxu0 %v6238_v39  ;;  %1863 = vmatpush1.msra.mxu1 %v6241_v40  ;;  %8863 = vst [vmem:[#allocation52_spill] sm:$0xff] %v6250_v43  ;;  %8864 = vst [vmem:[#allocation53_spill] sm:$0xff] %v6253_v45  ;;  %v6256_v39 = vld [vmem:[#allocation8 + $0x128] sm:$0xff]  ;;  %v6259_v40 = vld [vmem:[#allocation8 + $0x138] sm:$0xff] }
 0x4d3   :  { %1793 = vmatprep.subr.mxu0 %v6244_v3  ;;  %1864 = vmatprep.subr.mxu1 %v6247_v41  ;;  %8865 = vst [vmem:[#allocation54_spill] sm:$0xff] %v6256_v39  ;;  %8866 = vst [vmem:[#allocation55_spill] sm:$0xff] %v6259_v40  ;;  %v6262_v3 = vld [vmem:[#allocation8 + $0x120] sm:$0xff]  ;;  %v6265_v41 = vld [vmem:[#allocation8 + $0x130] sm:$0xff] }
 0x4d4   :  { %1794 = vmatpush1.msra.mxu0 %v6250_v43  ;;  %1865 = vmatpush1.msra.mxu1 %v6253_v45  ;;  %8867 = vst [vmem:[#allocation56_spill] sm:$0xff] %v6262_v3  ;;  %8868 = vst [vmem:[#allocation57_spill] sm:$0xff] %v6265_v41  ;;  %v6268_v43 = vld [vmem:[#allocation8 + $0x108] sm:$0xff]  ;;  %v6271_v45 = vld [vmem:[#allocation8 + $0x118] sm:$0xff] }
 0x4d5   :  { %1795 = vmatprep.subr.mxu0 %v6256_v39  ;;  %1866 = vmatprep.subr.mxu1 %v6259_v40  ;;  %8869 = vst [vmem:[#allocation58_spill] sm:$0xff] %v6268_v43  ;;  %8870 = vst [vmem:[#allocation59_spill] sm:$0xff] %v6271_v45  ;;  %v6274_v39 = vld [vmem:[#allocation8 + $0x100] sm:$0xff]  ;;  %v6277_v40 = vld [vmem:[#allocation8 + $0x110] sm:$0xff] }
 0x4d6   :  { %1796 = vmatpush1.msra.mxu0 %v6262_v3  ;;  %1867 = vmatpush1.msra.mxu1 %v6265_v41  ;;  %8871 = vst [vmem:[#allocation60_spill] sm:$0xff] %v6274_v39  ;;  %8872 = vst [vmem:[#allocation61_spill] sm:$0xff] %v6277_v40  ;;  %v6280_v3 = vld [vmem:[#allocation8 + $0xe8] sm:$0xff]  ;;  %v6283_v41 = vld [vmem:[#allocation8 + $0xf8] sm:$0xff] }
 0x4d7   :  { %1797 = vmatprep.subr.mxu0 %v6268_v43  ;;  %1868 = vmatprep.subr.mxu1 %v6271_v45  ;;  %8873 = vst [vmem:[#allocation62_spill] sm:$0xff] %v6280_v3  ;;  %8874 = vst [vmem:[#allocation63_spill] sm:$0xff] %v6283_v41  ;;  %v6286_v43 = vld [vmem:[#allocation8 + $0xe0] sm:$0xff]  ;;  %v6289_v45 = vld [vmem:[#allocation8 + $0xf0] sm:$0xff] }
 0x4d8   :  { %1798 = vmatpush1.msra.mxu0 %v6274_v39  ;;  %1869 = vmatpush1.msra.mxu1 %v6277_v40  ;;  %8875 = vst [vmem:[#allocation64_spill] sm:$0xff] %v6286_v43  ;;  %8876 = vst [vmem:[#allocation65_spill] sm:$0xff] %v6289_v45  ;;  %v6292_v39 = vld [vmem:[#allocation8 + $0xc8] sm:$0xff]  ;;  %v6295_v40 = vld [vmem:[#allocation8 + $0xd8] sm:$0xff] }
 0x4d9   :  { %1799 = vmatprep.subr.mxu0 %v6280_v3  ;;  %1870 = vmatprep.subr.mxu1 %v6283_v41  ;;  %8877 = vst [vmem:[#allocation66_spill] sm:$0xff] %v6292_v39  ;;  %8878 = vst [vmem:[#allocation67_spill] sm:$0xff] %v6295_v40  ;;  %v6298_v3 = vld [vmem:[#allocation8 + $0xc0] sm:$0xff]  ;;  %v6301_v41 = vld [vmem:[#allocation8 + $0xd0] sm:$0xff] }
 0x4da   :  { %1800 = vmatpush1.msra.mxu0 %v6286_v43  ;;  %1871 = vmatpush1.msra.mxu1 %v6289_v45  ;;  %8879 = vst [vmem:[#allocation68_spill] sm:$0xff] %v6298_v3  ;;  %8880 = vst [vmem:[#allocation69_spill] sm:$0xff] %v6301_v41  ;;  %v6304_v43 = vld [vmem:[#allocation8 + $0xa8] sm:$0xff]  ;;  %v6307_v45 = vld [vmem:[#allocation8 + $0xb8] sm:$0xff] }
 0x4db   :  { %1801 = vmatprep.subr.mxu0 %v6292_v39  ;;  %1872 = vmatprep.subr.mxu1 %v6295_v40  ;;  %8881 = vst [vmem:[#allocation70_spill] sm:$0xff] %v6304_v43  ;;  %8882 = vst [vmem:[#allocation71_spill] sm:$0xff] %v6307_v45  ;;  %v6310_v39 = vld [vmem:[#allocation8 + $0xa0] sm:$0xff]  ;;  %v6313_v40 = vld [vmem:[#allocation8 + $0xb0] sm:$0xff] }
 0x4dc   :  { %1802 = vmatpush1.msra.mxu0 %v6298_v3  ;;  %1873 = vmatpush1.msra.mxu1 %v6301_v41  ;;  %8883 = vst [vmem:[#allocation72_spill] sm:$0xff] %v6310_v39  ;;  %8884 = vst [vmem:[#allocation73_spill] sm:$0xff] %v6313_v40  ;;  %v6316_v3 = vld [vmem:[#allocation8 + $0x88] sm:$0xff]  ;;  %v6319_v41 = vld [vmem:[#allocation8 + $0x98] sm:$0xff] }
 0x4dd   :  { %1803 = vmatprep.subr.mxu0 %v6304_v43  ;;  %1874 = vmatprep.subr.mxu1 %v6307_v45  ;;  %8885 = vst [vmem:[#allocation74_spill] sm:$0xff] %v6316_v3  ;;  %8886 = vst [vmem:[#allocation75_spill] sm:$0xff] %v6319_v41  ;;  %v6322_v43 = vld [vmem:[#allocation8 + $0x80] sm:$0xff]  ;;  %v6325_v45 = vld [vmem:[#allocation8 + $0x90] sm:$0xff] }
 0x4de   :  { %1804 = vmatpush1.msra.mxu0 %v6310_v39  ;;  %1875 = vmatpush1.msra.mxu1 %v6313_v40  ;;  %8887 = vst [vmem:[#allocation76_spill] sm:$0xff] %v6322_v43  ;;  %8888 = vst [vmem:[#allocation77_spill] sm:$0xff] %v6325_v45  ;;  %v6328_v39 = vld [vmem:[#allocation8 + $0x68] sm:$0xff]  ;;  %v6331_v40 = vld [vmem:[#allocation8 + $0x78] sm:$0xff] }
 0x4df   :  { %1805 = vmatprep.subr.mxu0 %v6316_v3  ;;  %1876 = vmatprep.subr.mxu1 %v6319_v41  ;;  %8889 = vst [vmem:[#allocation78_spill] sm:$0xff] %v6328_v39  ;;  %8890 = vst [vmem:[#allocation79_spill] sm:$0xff] %v6331_v40  ;;  %v6334_v3 = vld [vmem:[#allocation8 + $0x60] sm:$0xff]  ;;  %v6337_v41 = vld [vmem:[#allocation8 + $0x70] sm:$0xff] }
 0x4e0   :  { %1806 = vmatpush1.msra.mxu0 %v6322_v43  ;;  %1877 = vmatpush1.msra.mxu1 %v6325_v45  ;;  %8891 = vst [vmem:[#allocation80_spill] sm:$0xff] %v6334_v3  ;;  %8892 = vst [vmem:[#allocation81_spill] sm:$0xff] %v6337_v41  ;;  %v6340_v43 = vld [vmem:[#allocation8 + $0x48] sm:$0xff]  ;;  %v6343_v45 = vld [vmem:[#allocation8 + $0x58] sm:$0xff] }
 0x4e1   :  { %1807 = vmatprep.subr.mxu0 %v6328_v39  ;;  %1878 = vmatprep.subr.mxu1 %v6331_v40  ;;  %8893 = vst [vmem:[#allocation82_spill] sm:$0xff] %v6340_v43  ;;  %8894 = vst [vmem:[#allocation83_spill] sm:$0xff] %v6343_v45  ;;  %v6346_v39 = vld [vmem:[#allocation8 + $0x40] sm:$0xff]  ;;  %v6349_v40 = vld [vmem:[#allocation8 + $0x50] sm:$0xff] }
 0x4e2   :  { %1808 = vmatpush1.msra.mxu0 %v6334_v3  ;;  %1879 = vmatpush1.msra.mxu1 %v6337_v41  ;;  %8895 = vst [vmem:[#allocation84_spill] sm:$0xff] %v6346_v39  ;;  %8896 = vst [vmem:[#allocation85_spill] sm:$0xff] %v6349_v40  ;;  %v6352_v3 = vld [vmem:[#allocation8 + $0x28] sm:$0xff]  ;;  %v6355_v41 = vld [vmem:[#allocation8 + $0x38] sm:$0xff] }
 0x4e3   :  { %1809 = vmatprep.subr.mxu0 %v6340_v43  ;;  %1880 = vmatprep.subr.mxu1 %v6343_v45  ;;  %8897 = vst [vmem:[#allocation86_spill] sm:$0xff] %v6352_v3  ;;  %8898 = vst [vmem:[#allocation87_spill] sm:$0xff] %v6355_v41  ;;  %v6358_v43 = vld [vmem:[#allocation8 + $0x20] sm:$0xff]  ;;  %v6361_v45 = vld [vmem:[#allocation8 + $0x30] sm:$0xff] }
 0x4e4   :  { %1810 = vmatpush1.msra.mxu0 %v6346_v39  ;;  %1881 = vmatpush1.msra.mxu1 %v6349_v40  ;;  %8899 = vst [vmem:[#allocation88_spill] sm:$0xff] %v6358_v43  ;;  %8900 = vst [vmem:[#allocation89_spill] sm:$0xff] %v6361_v45  ;;  %v6364_v39 = vld [vmem:[#allocation8 + $0x8] sm:$0xff]  ;;  %v6367_v40 = vld [vmem:[#allocation8 + $0x18] sm:$0xff] }
 0x4e5   :  { %1811 = vmatprep.subr.mxu0 %v6352_v3  ;;  %1882 = vmatprep.subr.mxu1 %v6355_v41  ;;  %8901 = vst [vmem:[#allocation90_spill] sm:$0xff] %v6364_v39  ;;  %8902 = vst [vmem:[#allocation91_spill] sm:$0xff] %v6367_v40  ;;  %v6370_v3 = vld [vmem:[#allocation8] sm:$0xff]  ;;  %v6373_v41 = vld [vmem:[#allocation8 + $0x10] sm:$0xff] }
 0x4e6   :  { %1812 = vmatpush1.msra.mxu0 %v6358_v43  ;;  %1883 = vmatpush1.msra.mxu1 %v6361_v45  ;;  %8903 = vst [vmem:[#allocation92_spill] sm:$0xff] %v6370_v3  ;;  %8904 = vst [vmem:[#allocation93_spill] sm:$0xff] %v6373_v41  ;;  %v6376_v43 = vld [vmem:[#allocation8 + $0x3e8] sm:$0xff]  ;;  %v6379_v45 = vld [vmem:[#allocation8 + $0x3f8] sm:$0xff] }
 0x4e7   :  { %1813 = vmatprep.subr.mxu0 %v6364_v39  ;;  %1884 = vmatprep.subr.mxu1 %v6367_v40  ;;  %8905 = vst [vmem:[#allocation94_spill] sm:$0xff] %v6376_v43  ;;  %8906 = vst [vmem:[#allocation95_spill] sm:$0xff] %v6379_v45  ;;  %v6382_v39 = vld [vmem:[#allocation8 + $0x3e0] sm:$0xff]  ;;  %v6385_v40 = vld [vmem:[#allocation8 + $0x3f0] sm:$0xff] }
 0x4e8   :  { %1814 = vmatpush1.msra.mxu0 %v6370_v3  ;;  %1885 = vmatpush1.msra.mxu1 %v6373_v41  ;;  %8907 = vst [vmem:[#allocation96_spill] sm:$0xff] %v6382_v39  ;;  %8908 = vst [vmem:[#allocation97_spill] sm:$0xff] %v6385_v40  ;;  %v6388_v3 = vld [vmem:[#allocation8 + $0x3c8] sm:$0xff]  ;;  %v6391_v41 = vld [vmem:[#allocation8 + $0x3d8] sm:$0xff] }
 0x4e9   :  { %1815 = vmatprep.subr.mxu0 %v6376_v43  ;;  %1886 = vmatprep.subr.mxu1 %v6379_v45  ;;  %8909 = vst [vmem:[#allocation98_spill] sm:$0xff] %v6388_v3  ;;  %8910 = vst [vmem:[#allocation99_spill] sm:$0xff] %v6391_v41  ;;  %v6394_v43 = vld [vmem:[#allocation8 + $0x3c0] sm:$0xff]  ;;  %v6397_v45 = vld [vmem:[#allocation8 + $0x3d0] sm:$0xff] }
 0x4ea   :  { %1816 = vmatpush2.msra.mxu0 %v6382_v39  ;;  %1887 = vmatpush2.msra.mxu1 %v6385_v40  ;;  %8911 = vst [vmem:[#allocation100_spill] sm:$0xff] %v6394_v43  ;;  %8912 = vst [vmem:[#allocation101_spill] sm:$0xff] %v6397_v45  ;;  %v6400_v39 = vld [vmem:[#allocation8 + $0x3a8] sm:$0xff]  ;;  %v6403_v40 = vld [vmem:[#allocation8 + $0x3b8] sm:$0xff] }
 0x4eb   :  { %1817 = vmatprep.subr.mxu0 %v6388_v3  ;;  %1888 = vmatprep.subr.mxu1 %v6391_v41  ;;  %8913 = vst [vmem:[#allocation102_spill] sm:$0xff] %v6400_v39  ;;  %8914 = vst [vmem:[#allocation103_spill] sm:$0xff] %v6403_v40  ;;  %v6406_v3 = vld [vmem:[#allocation8 + $0x3a0] sm:$0xff]  ;;  %v6409_v41 = vld [vmem:[#allocation8 + $0x3b0] sm:$0xff] }
 0x4ec   :  { %1818 = vmatpush2.msra.mxu0 %v6394_v43  ;;  %1889 = vmatpush2.msra.mxu1 %v6397_v45  ;;  %8915 = vst [vmem:[#allocation104_spill] sm:$0xff] %v6406_v3  ;;  %8916 = vst [vmem:[#allocation105_spill] sm:$0xff] %v6409_v41  ;;  %v6412_v43 = vld [vmem:[#allocation8 + $0x388] sm:$0xff]  ;;  %v6415_v45 = vld [vmem:[#allocation8 + $0x398] sm:$0xff] }
 0x4ed   :  { %1819 = vmatprep.subr.mxu0 %v6400_v39  ;;  %1890 = vmatprep.subr.mxu1 %v6403_v40  ;;  %8917 = vst [vmem:[#allocation106_spill] sm:$0xff] %v6412_v43  ;;  %8918 = vst [vmem:[#allocation107_spill] sm:$0xff] %v6415_v45  ;;  %v6418_v39 = vld [vmem:[#allocation8 + $0x380] sm:$0xff]  ;;  %v6421_v40 = vld [vmem:[#allocation8 + $0x390] sm:$0xff] }
 0x4ee   :  { %1820 = vmatpush2.msra.mxu0 %v6406_v3  ;;  %1891 = vmatpush2.msra.mxu1 %v6409_v41  ;;  %8919 = vst [vmem:[#allocation108_spill] sm:$0xff] %v6418_v39  ;;  %8920 = vst [vmem:[#allocation109_spill] sm:$0xff] %v6421_v40  ;;  %v6424_v3 = vld [vmem:[#allocation8 + $0x368] sm:$0xff]  ;;  %v6427_v41 = vld [vmem:[#allocation8 + $0x378] sm:$0xff] }
 0x4ef   :  { %1821 = vmatprep.subr.mxu0 %v6412_v43  ;;  %1892 = vmatprep.subr.mxu1 %v6415_v45  ;;  %8921 = vst [vmem:[#allocation110_spill] sm:$0xff] %v6424_v3  ;;  %8922 = vst [vmem:[#allocation111_spill] sm:$0xff] %v6427_v41  ;;  %v6430_v43 = vld [vmem:[#allocation8 + $0x360] sm:$0xff]  ;;  %v6433_v45 = vld [vmem:[#allocation8 + $0x370] sm:$0xff] }
 0x4f0   :  { %1822 = vmatpush2.msra.mxu0 %v6418_v39  ;;  %1893 = vmatpush2.msra.mxu1 %v6421_v40  ;;  %8923 = vst [vmem:[#allocation112_spill] sm:$0xff] %v6430_v43  ;;  %8924 = vst [vmem:[#allocation113_spill] sm:$0xff] %v6433_v45  ;;  %v6436_v39 = vld [vmem:[#allocation8 + $0x348] sm:$0xff]  ;;  %v6439_v40 = vld [vmem:[#allocation8 + $0x358] sm:$0xff] }
 0x4f1   :  { %1823 = vmatprep.subr.mxu0 %v6424_v3  ;;  %1894 = vmatprep.subr.mxu1 %v6427_v41  ;;  %8925 = vst [vmem:[#allocation114_spill] sm:$0xff] %v6436_v39  ;;  %8926 = vst [vmem:[#allocation115_spill] sm:$0xff] %v6439_v40  ;;  %v6442_v3 = vld [vmem:[#allocation8 + $0x340] sm:$0xff]  ;;  %v6445_v41 = vld [vmem:[#allocation8 + $0x350] sm:$0xff] }
 0x4f2   :  { %1824 = vmatpush2.msra.mxu0 %v6430_v43  ;;  %1895 = vmatpush2.msra.mxu1 %v6433_v45  ;;  %8927 = vst [vmem:[#allocation116_spill] sm:$0xff] %v6442_v3  ;;  %8928 = vst [vmem:[#allocation117_spill] sm:$0xff] %v6445_v41  ;;  %v6448_v43 = vld [vmem:[#allocation8 + $0x328] sm:$0xff]  ;;  %v6451_v45 = vld [vmem:[#allocation8 + $0x338] sm:$0xff] }
 0x4f3   :  { %1825 = vmatprep.subr.mxu0 %v6436_v39  ;;  %1896 = vmatprep.subr.mxu1 %v6439_v40  ;;  %8929 = vst [vmem:[#allocation118_spill] sm:$0xff] %v6448_v43  ;;  %8930 = vst [vmem:[#allocation119_spill] sm:$0xff] %v6451_v45  ;;  %v6454_v39 = vld [vmem:[#allocation8 + $0x320] sm:$0xff]  ;;  %v6457_v40 = vld [vmem:[#allocation8 + $0x330] sm:$0xff] }
 0x4f4   :  { %1826 = vmatpush2.msra.mxu0 %v6442_v3  ;;  %1897 = vmatpush2.msra.mxu1 %v6445_v41  ;;  %8931 = vst [vmem:[#allocation120_spill] sm:$0xff] %v6454_v39  ;;  %8932 = vst [vmem:[#allocation121_spill] sm:$0xff] %v6457_v40  ;;  %v6460_v3 = vld [vmem:[#allocation8 + $0x308] sm:$0xff]  ;;  %v6463_v41 = vld [vmem:[#allocation8 + $0x318] sm:$0xff] }
 0x4f5   :  { %1827 = vmatprep.subr.mxu0 %v6448_v43  ;;  %1898 = vmatprep.subr.mxu1 %v6451_v45  ;;  %8933 = vst [vmem:[#allocation122_spill] sm:$0xff] %v6460_v3  ;;  %8934 = vst [vmem:[#allocation123_spill] sm:$0xff] %v6463_v41  ;;  %v6466_v43 = vld [vmem:[#allocation8 + $0x300] sm:$0xff]  ;;  %v6469_v45 = vld [vmem:[#allocation8 + $0x310] sm:$0xff] }
 0x4f6   :  { %1828 = vmatpush2.msra.mxu0 %v6454_v39  ;;  %1899 = vmatpush2.msra.mxu1 %v6457_v40  ;;  %8935 = vst [vmem:[#allocation124_spill] sm:$0xff] %v6466_v43  ;;  %8936 = vst [vmem:[#allocation125_spill] sm:$0xff] %v6469_v45  ;;  %v6472_v39 = vld [vmem:[#allocation8 + $0x2e8] sm:$0xff]  ;;  %v6475_v40 = vld [vmem:[#allocation8 + $0x2f8] sm:$0xff] }
 0x4f7   :  { %1829 = vmatprep.subr.mxu0 %v6460_v3  ;;  %1900 = vmatprep.subr.mxu1 %v6463_v41  ;;  %8937 = vst [vmem:[#allocation126_spill] sm:$0xff] %v6472_v39  ;;  %8938 = vst [vmem:[#allocation127_spill] sm:$0xff] %v6475_v40  ;;  %v6478_v3 = vld [vmem:[#allocation8 + $0x2e0] sm:$0xff]  ;;  %v6481_v41 = vld [vmem:[#allocation8 + $0x2f0] sm:$0xff] }
 0x4f8   :  { %1830 = vmatpush2.msra.mxu0 %v6466_v43  ;;  %1901 = vmatpush2.msra.mxu1 %v6469_v45  ;;  %8939 = vst [vmem:[#allocation128_spill] sm:$0xff] %v6478_v3  ;;  %8940 = vst [vmem:[#allocation129_spill] sm:$0xff] %v6481_v41  ;;  %v6484_v43 = vld [vmem:[#allocation8 + $0x2c8] sm:$0xff]  ;;  %v6487_v45 = vld [vmem:[#allocation8 + $0x2d8] sm:$0xff] }
 0x4f9   :  { %1831 = vmatprep.subr.mxu0 %v6472_v39  ;;  %1902 = vmatprep.subr.mxu1 %v6475_v40  ;;  %8941 = vst [vmem:[#allocation130_spill] sm:$0xff] %v6484_v43  ;;  %8942 = vst [vmem:[#allocation131_spill] sm:$0xff] %v6487_v45  ;;  %v6490_v39 = vld [vmem:[#allocation8 + $0x2c0] sm:$0xff]  ;;  %v6493_v40 = vld [vmem:[#allocation8 + $0x2d0] sm:$0xff] }
 0x4fa   :  { %1832 = vmatpush2.msra.mxu0 %v6478_v3  ;;  %1903 = vmatpush2.msra.mxu1 %v6481_v41  ;;  %8943 = vst [vmem:[#allocation132_spill] sm:$0xff] %v6490_v39  ;;  %8944 = vst [vmem:[#allocation133_spill] sm:$0xff] %v6493_v40  ;;  %v6496_v3 = vld [vmem:[#allocation8 + $0x2a8] sm:$0xff]  ;;  %v6499_v41 = vld [vmem:[#allocation8 + $0x2b8] sm:$0xff] }
 0x4fb   :  { %1833 = vmatprep.subr.mxu0 %v6484_v43  ;;  %1904 = vmatprep.subr.mxu1 %v6487_v45  ;;  %8945 = vst [vmem:[#allocation134_spill] sm:$0xff] %v6496_v3  ;;  %8946 = vst [vmem:[#allocation135_spill] sm:$0xff] %v6499_v41  ;;  %v6502_v43 = vld [vmem:[#allocation8 + $0x2a0] sm:$0xff]  ;;  %v6505_v45 = vld [vmem:[#allocation8 + $0x2b0] sm:$0xff] }
 0x4fc   :  { %1834 = vmatpush2.msra.mxu0 %v6490_v39  ;;  %1905 = vmatpush2.msra.mxu1 %v6493_v40  ;;  %8947 = vst [vmem:[#allocation136_spill] sm:$0xff] %v6502_v43  ;;  %8948 = vst [vmem:[#allocation137_spill] sm:$0xff] %v6505_v45  ;;  %v6508_v39 = vld [vmem:[#allocation8 + $0x288] sm:$0xff]  ;;  %v6511_v40 = vld [vmem:[#allocation8 + $0x298] sm:$0xff] }
 0x4fd   :  { %1835 = vmatprep.subr.mxu0 %v6496_v3  ;;  %1906 = vmatprep.subr.mxu1 %v6499_v41  ;;  %8949 = vst [vmem:[#allocation138_spill] sm:$0xff] %v6508_v39  ;;  %8950 = vst [vmem:[#allocation139_spill] sm:$0xff] %v6511_v40  ;;  %v6514_v3 = vld [vmem:[#allocation8 + $0x280] sm:$0xff]  ;;  %v6517_v41 = vld [vmem:[#allocation8 + $0x290] sm:$0xff] }
 0x4fe   :  { %1836 = vmatpush2.msra.mxu0 %v6502_v43  ;;  %1907 = vmatpush2.msra.mxu1 %v6505_v45  ;;  %8951 = vst [vmem:[#allocation140_spill] sm:$0xff] %v6514_v3  ;;  %8952 = vst [vmem:[#allocation141_spill] sm:$0xff] %v6517_v41  ;;  %v6520_v43 = vld [vmem:[#allocation8 + $0x268] sm:$0xff]  ;;  %v6523_v45 = vld [vmem:[#allocation8 + $0x278] sm:$0xff] }
 0x4ff   :  { %1837 = vmatprep.subr.mxu0 %v6508_v39  ;;  %1908 = vmatprep.subr.mxu1 %v6511_v40  ;;  %8953 = vst [vmem:[#allocation142_spill] sm:$0xff] %v6520_v43  ;;  %8954 = vst [vmem:[#allocation143_spill] sm:$0xff] %v6523_v45  ;;  %v6526_v39 = vld [vmem:[#allocation8 + $0x260] sm:$0xff]  ;;  %v6529_v40 = vld [vmem:[#allocation8 + $0x270] sm:$0xff] }
 0x500   :  { %1838 = vmatpush2.msra.mxu0 %v6514_v3  ;;  %1909 = vmatpush2.msra.mxu1 %v6517_v41  ;;  %8955 = vst [vmem:[#allocation144_spill] sm:$0xff] %v6526_v39  ;;  %8956 = vst [vmem:[#allocation145_spill] sm:$0xff] %v6529_v40  ;;  %v6532_v3 = vld [vmem:[#allocation8 + $0x248] sm:$0xff]  ;;  %v6535_v41 = vld [vmem:[#allocation8 + $0x258] sm:$0xff] }
 0x501   :  { %1839 = vmatprep.subr.mxu0 %v6520_v43  ;;  %1910 = vmatprep.subr.mxu1 %v6523_v45  ;;  %8957 = vst [vmem:[#allocation146_spill] sm:$0xff] %v6532_v3  ;;  %8958 = vst [vmem:[#allocation147_spill] sm:$0xff] %v6535_v41  ;;  %v6538_v43 = vld [vmem:[#allocation8 + $0x240] sm:$0xff]  ;;  %v6541_v45 = vld [vmem:[#allocation8 + $0x250] sm:$0xff] }
 0x502   :  { %1840 = vmatpush2.msra.mxu0 %v6526_v39  ;;  %1911 = vmatpush2.msra.mxu1 %v6529_v40  ;;  %8959 = vst [vmem:[#allocation148_spill] sm:$0xff] %v6538_v43  ;;  %8960 = vst [vmem:[#allocation149_spill] sm:$0xff] %v6541_v45  ;;  %v6544_v39 = vld [vmem:[#allocation8 + $0x228] sm:$0xff]  ;;  %v6547_v40 = vld [vmem:[#allocation8 + $0x238] sm:$0xff] }
 0x503   :  { %1841 = vmatprep.subr.mxu0 %v6532_v3  ;;  %1912 = vmatprep.subr.mxu1 %v6535_v41  ;;  %8961 = vst [vmem:[#allocation150_spill] sm:$0xff] %v6544_v39  ;;  %8962 = vst [vmem:[#allocation151_spill] sm:$0xff] %v6547_v40  ;;  %v6550_v3 = vld [vmem:[#allocation8 + $0x220] sm:$0xff]  ;;  %v6553_v41 = vld [vmem:[#allocation8 + $0x230] sm:$0xff] }
 0x504   :  { %1842 = vmatpush2.msra.mxu0 %v6538_v43  ;;  %1913 = vmatpush2.msra.mxu1 %v6541_v45  ;;  %8963 = vst [vmem:[#allocation152_spill] sm:$0xff] %v6550_v3  ;;  %8964 = vst [vmem:[#allocation153_spill] sm:$0xff] %v6553_v41  ;;  %v6556_v43 = vld [vmem:[#allocation8 + $0x208] sm:$0xff]  ;;  %v6559_v45 = vld [vmem:[#allocation8 + $0x218] sm:$0xff] }
 0x505   :  { %1843 = vmatprep.subr.mxu0 %v6544_v39  ;;  %1914 = vmatprep.subr.mxu1 %v6547_v40  ;;  %8965 = vst [vmem:[#allocation154_spill] sm:$0xff] %v6556_v43  ;;  %8966 = vst [vmem:[#allocation155_spill] sm:$0xff] %v6559_v45  ;;  %v6562_v39 = vld [vmem:[#allocation8 + $0x200] sm:$0xff]  ;;  %v6565_v40 = vld [vmem:[#allocation8 + $0x210] sm:$0xff] }
 0x506   :  { %1844 = vmatpush2.msra.mxu0 %v6550_v3  ;;  %1915 = vmatpush2.msra.mxu1 %v6553_v41  ;;  %8967 = vst [vmem:[#allocation156_spill] sm:$0xff] %v6562_v39  ;;  %8968 = vst [vmem:[#allocation157_spill] sm:$0xff] %v6565_v40 }
 0x507   :  { %1845 = vmatprep.subr.mxu0 %v6556_v43  ;;  %1916 = vmatprep.subr.mxu1 %v6559_v45 }
 0x508   :  { %1846 = vmatpush2.msra.mxu0 %v6562_v39  ;;  %1917 = vmatpush2.msra.mxu1 %v6565_v40 }
 0x509   :  { %1947 = vmatprep.subr.mxu0 %v6000_v54  ;;  %3406 = vmatprep.subr.mxu1 %v8397_v61  ;;  %v6575_v54 = vld [vmem:[%s7678_s1] sm:$0x7] }
 0x50a   :  { %8969 = vst [vmem:[#allocation158_spill] sm:$0xff] %v6575_v54 }
 0x567   :  { %v1519_v41 = vpop.f32.mrf.mxu0  ;;  %v1590_v40 = vpop.f32.mrf.mxu1 }
 0x568   :  { %v1520_v3 = vadd.f32 %v1519_v41, %v8824_v59  ;;  %v1615_v41 = vmul.f32 %v6575_v54, %v1614_v33  ;;  %v1591_v32 = vadd.f32 %v1590_v40, %v5212_v37 }
 0x569   :  { %v1521_v38 = vpop.f32.mrf.mxu0 }
 0x56a   :  { %v3056_v43 = vmul.f32 -1.442695, %v1520_v3  ;;  %v1522_v45 = vadd.f32 %v1521_v38, %v8825_v57  ;;  %v1592_v3 = vpop.f32.mrf.mxu1  ;;  %v6581_v38 = vld [vmem:[%s7679_s2] sm:$0x7] }
 0x56b   :  { %8970 = vst [vmem:[#allocation159_spill] sm:$0xff] %v6581_v38 }
 0x56c   :  { %3626 = vpow2.f32 %v3056_v43  ;;  %v3057_v36 = vmul.f32 -1.442695, %v1522_v45  ;;  %v1616_v43 = vadd.f32 %v6581_v38, %v1615_v41 }
 0x56e   :  { %3628 = vpow2.f32 %v3057_v36  ;;  %v1593_v36 = vadd.f32 %v1592_v3, %v8828_v19  ;;  %v1766_v3 = vrot.slane %v1616_v43, 1 }
 0x579   :  { %v3627_v34 = vpop.eup %3626 }
 0x57a   :  { %v1598_v39 = vadd.f32 1.0, %v3627_v34 }
 0x57b   :  { %v3629_v34 = vpop.eup %3628 }
 0x57c   :  { %3630 = vrcp.f32 %v1598_v39  ;;  %v1604_v29 = vadd.f32 1.0, %v3629_v34 }
 0x588   :  { %v1683_v39 = vpop.f32.mrf.mxu0  ;;  %v1754_v45 = vpop.f32.mrf.mxu1 }
 0x589   :  { %v3631_v57 = vpop.eup %3630  ;;  %v1684_v59 = vadd.f32 %v1683_v39, %v8540_v49 }
 0x58a   :  { %v1607_v30 = vmul.f32 %v3631_v57, %v1593_v36  ;;  %v3405_v33 = vpop.f32.mrf.mxu1  ;;  %v1685_v26 = vpop.f32.mrf.mxu0  ;;  %v9008_v36 = vld [vmem:[#allocation55_spill] sm:$0xff] }
 0x58b   :  { %v1758_v54 = vadd.f32 %v1684_v59, %v1616_v43  ;;  %v1686_v41 = vadd.f32 %v1685_v26, %v8541_v1  ;;  %v1755_v26 = vadd.f32 %v1754_v45, %v4987_v55  ;;  %v9009_v45 = vld [vmem:[#allocation56_spill] sm:$0xff]  ;;  %v9010_v33 = vld [vmem:[#allocation57_spill] sm:$0xff] }
 0x58c   :  { %v1608_v28 = vadd.f32 %v1607_v30, %v1591_v32 }
 0x58d   :  { %v3059_v27 = vmul.f32 -1.442695, %v1758_v54  ;;  %v1768_v19 = vadd.f32 %v1766_v3, %v1686_v41  ;;  %v9011_v41 = vld [vmem:[#allocation58_spill] sm:$0xff]  ;;  %v9012_v3 = vld [vmem:[#allocation59_spill] sm:$0xff] }
 0x58e   :  { %3632 = vtanh.f32 %v1608_v28  ;;  %v1776_v28 = vrot.slane %v1616_v43, 2  ;;  %v9007_v43 = vld [vmem:[#allocation54_spill] sm:$0xff] }
 0x58f   :  { %3634 = vpow2.f32 %v3059_v27  ;;  %v3060_v38 = vmul.f32 -1.442695, %v1768_v19 }
 0x590   :  { %3636 = vrcp.f32 %v1604_v29 }
 0x591   :  { %3638 = vpow2.f32 %v3060_v38 }
 0x59b   :  { %v3633_v25 = vpop.eup %3632 }
 0x59c   :  { %v3635_v23 = vpop.eup %3634  ;;  %v1610_v39 = vsub.f32 %v6013_v31, %v3633_v25 }
 0x59d   :  { %v3637_v40 = vpop.eup %3636  ;;  %v1762_v57 = vadd.f32 1.0, %v3635_v23 }
 0x59e   :  { %v1611_v59 = vmul.f32 %v3637_v40, %v1610_v39  ;;  %v3639_v27 = vpop.eup %3638  ;;  %v9013_v39 = vld [vmem:[#allocation60_spill] sm:$0xff]  ;;  %v9014_v40 = vld [vmem:[#allocation61_spill] sm:$0xff] }
 0x59f   :  { %3640 = vrcp.f32 %v1762_v57  ;;  %v1772_v54 = vadd.f32 1.0, %v3639_v27  ;;  %v9015_v57 = vld [vmem:[#allocation62_spill] sm:$0xff]  ;;  %v9017_v27 = vld [vmem:[#allocation64_spill] sm:$0xff] }
 0x5a0   :  { %v6589_v30 = vadd.f32 %v3633_v25, %v1611_v59  ;;  %v9016_v59 = vld [vmem:[#allocation63_spill] sm:$0xff] }
 0x5a2   :  { %1847 = vmatprep.mubr.f32.mxu0 %v6589_v30  ;;  %1918 = vmatprep.mubr.f32.mxu1 %v6589_v30 }
 0x5ac   :  { %v3641_v19 = vpop.eup %3640 }
 0x5ad   :  { %v1775_v29 = vmul.f32 %v3641_v19, %v1755_v26  ;;  %v9018_v26 = vld [vmem:[#allocation65_spill] sm:$0xff]  ;;  %v9020_v19 = vld [vmem:[#allocation67_spill] sm:$0xff] }
 0x5af   :  { %v1778_v32 = vadd.f32 %v1776_v28, %v1775_v29  ;;  %v9019_v28 = vld [vmem:[#allocation66_spill] sm:$0xff]  ;;  %v9021_v29 = vld [vmem:[#allocation68_spill] sm:$0xff] }
 0x5b1   :  { %3642 = vtanh.f32 %v1778_v32  ;;  %v9022_v32 = vld [vmem:[#allocation69_spill] sm:$0xff] }
 0x5b2   :  { %3644 = vrcp.f32 %v1772_v54  ;;  %v9023_v54 = vld [vmem:[#allocation70_spill] sm:$0xff] }
 0x5be   :  { %v3643_v31 = vpop.eup %3642 }
 0x5bf   :  { %v1780_v23 = vsub.f32 %v6019_v47, %v3643_v31  ;;  %v3645_v38 = vpop.eup %3644  ;;  %v8971_v47 = vld [vmem:[#allocation17_spill] sm:$0xff] }
 0x5c1   :  { %v1781_v25 = vmul.f32 %v3645_v38, %v1780_v23  ;;  %v9025_v23 = vld [vmem:[#allocation72_spill] sm:$0xff]  ;;  %v9026_v38 = vld [vmem:[#allocation73_spill] sm:$0xff] }
 0x5c3   :  { %v6595_v34 = vadd.f32 %v3643_v31, %v1781_v25  ;;  %v9024_v31 = vld [vmem:[#allocation71_spill] sm:$0xff]  ;;  %v9027_v25 = vld [vmem:[#allocation74_spill] sm:$0xff] }
 0x5c5   :  { %1848 = vmatmul.mubr.f32.vlgmr.msra.gmra.mxu0 %v6595_v34  ;;  %1919 = vmatmul.mubr.f32.vlgmr.msra.gmra.mxu1 %v6595_v34 }
 0x5c6   :  { %1948 = vmatpush1.msra.mxu0 %v6023_v50  ;;  %3407 = vmatpush3.msra.mxu1 %v6026_v52  ;;  %v8972_v50 = vld [vmem:[#allocation22_spill] sm:$0xff] }
 0x5c7   :  { %1949 = vmatprep.subr.mxu0 %v6029_v58  ;;  %3408 = vmatprep.subr.mxu1 %v8397_v61  ;;  %v8973_v52 = vld [vmem:[#allocation18_spill] sm:$0xff]  ;;  %v8974_v58 = vld [vmem:[#allocation23_spill] sm:$0xff] }
 0x5c8   :  { %1950 = vmatpush1.msra.mxu0 %v6033_v8  ;;  %3409 = vmatpush3.msra.mxu1 %v6036_v62  ;;  %v8975_v8 = vld [vmem:[#allocation19_spill] sm:$0xff]  ;;  %v8976_v62 = vld [vmem:[#allocation24_spill] sm:$0xff] }
 0x5c9   :  { %1951 = vmatprep.subr.mxu0 %v6039_v51  ;;  %3410 = vmatprep.subr.mxu1 %v8397_v61  ;;  %v8977_v51 = vld [vmem:[#allocation20_spill] sm:$0xff] }
 0x5ca   :  { %1952 = vmatpush1.msra.mxu0 %v6043_v56  ;;  %3411 = vmatpush3.msra.mxu1 %v6046_v48  ;;  %v8978_v56 = vld [vmem:[#allocation25_spill] sm:$0xff]  ;;  %v8979_v48 = vld [vmem:[#allocation26_spill] sm:$0xff] }
 0x5cb   :  { %1953 = vmatprep.subr.mxu0 %v6049_v60  ;;  %3412 = vmatprep.subr.mxu1 %v8397_v61  ;;  %v8980_v60 = vld [vmem:[#allocation27_spill] sm:$0xff] }
 0x5cc   :  { %1954 = vmatpush1.msra.mxu0 %v6053_v5  ;;  %3413 = vmatpush3.msra.mxu1 %v6056_v15  ;;  %v8981_v5 = vld [vmem:[#allocation28_spill] sm:$0xff]  ;;  %v8982_v15 = vld [vmem:[#allocation29_spill] sm:$0xff] }
 0x5cd   :  { %1955 = vmatprep.subr.mxu0 %v6059_v9  ;;  %3414 = vmatprep.subr.mxu1 %v8397_v61  ;;  %v8983_v9 = vld [vmem:[#allocation30_spill] sm:$0xff] }
 0x5ce   :  { %1956 = vmatpush1.msra.mxu0 %v6063_v17  ;;  %3415 = vmatpush3.msra.mxu1 %v6066_v7  ;;  %v8984_v17 = vld [vmem:[#allocation31_spill] sm:$0xff]  ;;  %v8985_v7 = vld [vmem:[#allocation32_spill] sm:$0xff] }
 0x5cf   :  { %1957 = vmatprep.subr.mxu0 %v6069_v14  ;;  %3416 = vmatprep.subr.mxu1 %v8397_v61  ;;  %v8986_v14 = vld [vmem:[#allocation33_spill] sm:$0xff] }
 0x5d0   :  { %1958 = vmatpush1.msra.mxu0 %v6073_v13  ;;  %3417 = vmatpush3.msra.mxu1 %v6076_v11  ;;  %v8987_v13 = vld [vmem:[#allocation34_spill] sm:$0xff]  ;;  %v8988_v11 = vld [vmem:[#allocation35_spill] sm:$0xff] }
 0x5d1   :  { %1959 = vmatprep.subr.mxu0 %v6079_v12  ;;  %3418 = vmatprep.subr.mxu1 %v8397_v61  ;;  %v8989_v12 = vld [vmem:[#allocation36_spill] sm:$0xff] }
 0x5d2   :  { %1960 = vmatpush1.msra.mxu0 %v6083_v24  ;;  %3419 = vmatpush3.msra.mxu1 %v6086_v63  ;;  %v8990_v24 = vld [vmem:[#allocation37_spill] sm:$0xff]  ;;  %v8991_v63 = vld [vmem:[#allocation38_spill] sm:$0xff] }
 0x5d3   :  { %1961 = vmatprep.subr.mxu0 %v6089_v46  ;;  %3420 = vmatprep.subr.mxu1 %v8397_v61  ;;  %v8992_v46 = vld [vmem:[#allocation39_spill] sm:$0xff] }
 0x5d4   :  { %1962 = vmatpush1.msra.mxu0 %v6093_v42  ;;  %3421 = vmatpush3.msra.mxu1 %v6096_v35  ;;  %v8993_v42 = vld [vmem:[#allocation40_spill] sm:$0xff]  ;;  %v8994_v35 = vld [vmem:[#allocation41_spill] sm:$0xff] }
 0x5d5   :  { %1963 = vmatprep.subr.mxu0 %v6099_v2  ;;  %3422 = vmatprep.subr.mxu1 %v8397_v61  ;;  %v8995_v2 = vld [vmem:[#allocation42_spill] sm:$0xff] }
 0x5d6   :  { %1964 = vmatpush1.msra.mxu0 %v6103_v6  ;;  %3423 = vmatpush3.msra.mxu1 %v6106_v16  ;;  %v8996_v6 = vld [vmem:[#allocation43_spill] sm:$0xff]  ;;  %v8997_v16 = vld [vmem:[#allocation44_spill] sm:$0xff] }
 0x5d7   :  { %1965 = vmatprep.subr.mxu0 %v6109_v4  ;;  %3424 = vmatprep.subr.mxu1 %v8397_v61  ;;  %v8998_v4 = vld [vmem:[#allocation45_spill] sm:$0xff] }
 0x5d8   :  { %1966 = vmatpush1.msra.mxu0 %v6113_v53  ;;  %3425 = vmatpush3.msra.mxu1 %v6116_v10  ;;  %v8999_v53 = vld [vmem:[#allocation46_spill] sm:$0xff]  ;;  %v9000_v10 = vld [vmem:[#allocation47_spill] sm:$0xff] }
 0x5d9   :  { %1967 = vmatprep.subr.mxu0 %v6119_v44  ;;  %3426 = vmatprep.subr.mxu1 %v8397_v61  ;;  %v9001_v44 = vld [vmem:[#allocation48_spill] sm:$0xff] }
 0x5da   :  { %1968 = vmatpush1.msra.mxu0 %v6123_v18  ;;  %3427 = vmatpush3.msra.mxu1 %v6126_v20  ;;  %v9002_v18 = vld [vmem:[#allocation49_spill] sm:$0xff]  ;;  %v9003_v20 = vld [vmem:[#allocation50_spill] sm:$0xff] }
 0x5db   :  { %1969 = vmatprep.subr.mxu0 %v6129_v21  ;;  %3428 = vmatprep.subr.mxu1 %v8397_v61  ;;  %v9004_v21 = vld [vmem:[#allocation51_spill] sm:$0xff] }
 0x5dc   :  { %1970 = vmatpush1.msra.mxu0 %v6133_v22  ;;  %3429 = vmatpush3.msra.mxu1 %v6136_v0  ;;  %v9005_v22 = vld [vmem:[#allocation52_spill] sm:$0xff]  ;;  %v9006_v0 = vld [vmem:[#allocation53_spill] sm:$0xff] }
 0x5dd   :  { %1971 = vmatprep.subr.mxu0 %v8971_v47  ;;  %3430 = vmatprep.subr.mxu1 %v8397_v61  ;;  %v9028_v47 = vld [vmem:[#allocation75_spill] sm:$0xff] }
 0x5de   :  { %1972 = vmatpush1.msra.mxu0 %v8972_v50  ;;  %3431 = vmatpush3.msra.mxu1 %v8973_v52  ;;  %v9029_v50 = vld [vmem:[#allocation76_spill] sm:$0xff]  ;;  %v9030_v52 = vld [vmem:[#allocation77_spill] sm:$0xff] }
 0x5df   :  { %1973 = vmatprep.subr.mxu0 %v8974_v58  ;;  %3432 = vmatprep.subr.mxu1 %v8397_v61  ;;  %v9031_v58 = vld [vmem:[#allocation78_spill] sm:$0xff] }
 0x5e0   :  { %1974 = vmatpush1.msra.mxu0 %v8975_v8  ;;  %3433 = vmatpush3.msra.mxu1 %v8976_v62  ;;  %v9032_v8 = vld [vmem:[#allocation79_spill] sm:$0xff]  ;;  %v9033_v62 = vld [vmem:[#allocation80_spill] sm:$0xff] }
 0x5e1   :  { %1975 = vmatprep.subr.mxu0 %v8977_v51  ;;  %3434 = vmatprep.subr.mxu1 %v8397_v61  ;;  %v9034_v51 = vld [vmem:[#allocation81_spill] sm:$0xff] }
 0x5e2   :  { %1976 = vmatpush1.msra.mxu0 %v8978_v56  ;;  %3435 = vmatpush3.msra.mxu1 %v8979_v48  ;;  %v9035_v56 = vld [vmem:[#allocation82_spill] sm:$0xff]  ;;  %v9036_v48 = vld [vmem:[#allocation83_spill] sm:$0xff] }
 0x5e3   :  { %1977 = vmatprep.subr.mxu0 %v8980_v60  ;;  %3436 = vmatprep.subr.mxu1 %v8397_v61  ;;  %v9037_v60 = vld [vmem:[#allocation84_spill] sm:$0xff] }
 0x5e4   :  { %1978 = vmatpush1.msra.mxu0 %v8981_v5  ;;  %2011 = vmatprep.mubr.f32.mxu0 %v8397_v61  ;;  %v9038_v5 = vld [vmem:[#allocation85_spill] sm:$0xff] }
 0x5e5   :  { %3437 = vmatpush3.msra.mxu1 %v8982_v15  ;;  %3438 = vmatprep.mubr.msk.f32.mxu1 %vm4338_vm0, %v8397_v61  ;;  %v9039_v15 = vld [vmem:[#allocation86_spill] sm:$0xff] }
 0x5e6   :  { %2012 = vmatmul.mubr.f32.vlgmr.msra.gmra.mxu0 %v6595_v34  ;;  %3439 = vmatmul.mubr.f32.vlgmr.msra.gmra.mxu1 %v6595_v34 }
 0x5e7   :  { %2113 = vmatprep.subr.mxu0 %v8983_v9  ;;  %2184 = vmatprep.subr.mxu1 %v8984_v17  ;;  %v9040_v9 = vld [vmem:[#allocation87_spill] sm:$0xff]  ;;  %v9041_v17 = vld [vmem:[#allocation88_spill] sm:$0xff] }
 0x5e8   :  { %2114 = vmatpush1.msra.mxu0 %v8985_v7  ;;  %2185 = vmatpush1.msra.mxu1 %v8986_v14  ;;  %v9042_v7 = vld [vmem:[#allocation89_spill] sm:$0xff]  ;;  %v9043_v14 = vld [vmem:[#allocation90_spill] sm:$0xff] }
 0x5e9   :  { %2115 = vmatprep.subr.mxu0 %v8987_v13  ;;  %2186 = vmatprep.subr.mxu1 %v8988_v11  ;;  %v9044_v13 = vld [vmem:[#allocation91_spill] sm:$0xff]  ;;  %v9045_v11 = vld [vmem:[#allocation92_spill] sm:$0xff] }
 0x5ea   :  { %2116 = vmatpush1.msra.mxu0 %v8989_v12  ;;  %2187 = vmatpush1.msra.mxu1 %v8990_v24  ;;  %v9046_v12 = vld [vmem:[#allocation93_spill] sm:$0xff]  ;;  %v9047_v24 = vld [vmem:[#allocation94_spill] sm:$0xff] }
 0x5eb   :  { %2117 = vmatprep.subr.mxu0 %v8991_v63  ;;  %2188 = vmatprep.subr.mxu1 %v8992_v46  ;;  %v9048_v63 = vld [vmem:[#allocation95_spill] sm:$0xff]  ;;  %v9049_v46 = vld [vmem:[#allocation96_spill] sm:$0xff] }
 0x5ec   :  { %2118 = vmatpush1.msra.mxu0 %v8993_v42  ;;  %2189 = vmatpush1.msra.mxu1 %v8994_v35  ;;  %v9050_v42 = vld [vmem:[#allocation97_spill] sm:$0xff]  ;;  %v9051_v35 = vld [vmem:[#allocation98_spill] sm:$0xff] }
 0x5ed   :  { %2119 = vmatprep.subr.mxu0 %v8995_v2  ;;  %2190 = vmatprep.subr.mxu1 %v8996_v6  ;;  %v9052_v2 = vld [vmem:[#allocation99_spill] sm:$0xff]  ;;  %v9053_v6 = vld [vmem:[#allocation100_spill] sm:$0xff] }
 0x5ee   :  { %2120 = vmatpush1.msra.mxu0 %v8997_v16  ;;  %2191 = vmatpush1.msra.mxu1 %v8998_v4  ;;  %v9054_v16 = vld [vmem:[#allocation101_spill] sm:$0xff]  ;;  %v9055_v4 = vld [vmem:[#allocation102_spill] sm:$0xff] }
 0x5ef   :  { %2121 = vmatprep.subr.mxu0 %v8999_v53  ;;  %2192 = vmatprep.subr.mxu1 %v9000_v10  ;;  %v9056_v53 = vld [vmem:[#allocation103_spill] sm:$0xff]  ;;  %v9057_v10 = vld [vmem:[#allocation104_spill] sm:$0xff] }
 0x5f0   :  { %2122 = vmatpush1.msra.mxu0 %v9001_v44  ;;  %2193 = vmatpush1.msra.mxu1 %v9002_v18  ;;  %v9058_v44 = vld [vmem:[#allocation105_spill] sm:$0xff]  ;;  %v9059_v18 = vld [vmem:[#allocation106_spill] sm:$0xff] }
 0x5f1   :  { %2123 = vmatprep.subr.mxu0 %v9003_v20  ;;  %2194 = vmatprep.subr.mxu1 %v9004_v21  ;;  %v9060_v20 = vld [vmem:[#allocation107_spill] sm:$0xff]  ;;  %v9061_v21 = vld [vmem:[#allocation108_spill] sm:$0xff] }
 0x5f2   :  { %2124 = vmatpush1.msra.mxu0 %v9005_v22  ;;  %2195 = vmatpush1.msra.mxu1 %v9006_v0  ;;  %v9062_v22 = vld [vmem:[#allocation109_spill] sm:$0xff]  ;;  %v9063_v0 = vld [vmem:[#allocation110_spill] sm:$0xff] }
 0x5f3   :  { %2125 = vmatprep.subr.mxu0 %v9007_v43  ;;  %2196 = vmatprep.subr.mxu1 %v9008_v36  ;;  %v9064_v43 = vld [vmem:[#allocation111_spill] sm:$0xff]  ;;  %v9065_v36 = vld [vmem:[#allocation112_spill] sm:$0xff] }
 0x5f4   :  { %2126 = vmatpush1.msra.mxu0 %v9009_v45  ;;  %2197 = vmatpush1.msra.mxu1 %v9010_v33  ;;  %v9066_v45 = vld [vmem:[#allocation113_spill] sm:$0xff]  ;;  %v9067_v33 = vld [vmem:[#allocation114_spill] sm:$0xff] }
 0x5f5   :  { %2127 = vmatprep.subr.mxu0 %v9011_v41  ;;  %2198 = vmatprep.subr.mxu1 %v9012_v3  ;;  %v9068_v41 = vld [vmem:[#allocation115_spill] sm:$0xff]  ;;  %v9069_v3 = vld [vmem:[#allocation116_spill] sm:$0xff] }
 0x5f6   :  { %2128 = vmatpush1.msra.mxu0 %v9013_v39  ;;  %2199 = vmatpush1.msra.mxu1 %v9014_v40  ;;  %v9070_v39 = vld [vmem:[#allocation117_spill] sm:$0xff]  ;;  %v9071_v40 = vld [vmem:[#allocation118_spill] sm:$0xff] }
 0x5f7   :  { %2129 = vmatprep.subr.mxu0 %v9015_v57  ;;  %2200 = vmatprep.subr.mxu1 %v9016_v59  ;;  %v9072_v57 = vld [vmem:[#allocation119_spill] sm:$0xff]  ;;  %v9073_v59 = vld [vmem:[#allocation120_spill] sm:$0xff] }
 0x5f8   :  { %2130 = vmatpush1.msra.mxu0 %v9017_v27  ;;  %2201 = vmatpush1.msra.mxu1 %v9018_v26  ;;  %v9074_v27 = vld [vmem:[#allocation121_spill] sm:$0xff]  ;;  %v9075_v26 = vld [vmem:[#allocation122_spill] sm:$0xff] }
 0x5f9   :  { %2131 = vmatprep.subr.mxu0 %v9019_v28  ;;  %2202 = vmatprep.subr.mxu1 %v9020_v19  ;;  %v9076_v28 = vld [vmem:[#allocation123_spill] sm:$0xff]  ;;  %v9077_v19 = vld [vmem:[#allocation124_spill] sm:$0xff] }
 0x5fa   :  { %2132 = vmatpush1.msra.mxu0 %v9021_v29  ;;  %2203 = vmatpush1.msra.mxu1 %v9022_v32  ;;  %v9078_v29 = vld [vmem:[#allocation125_spill] sm:$0xff]  ;;  %v9079_v32 = vld [vmem:[#allocation126_spill] sm:$0xff] }
 0x5fb   :  { %2133 = vmatprep.subr.mxu0 %v9023_v54  ;;  %2204 = vmatprep.subr.mxu1 %v9024_v31  ;;  %v9080_v54 = vld [vmem:[#allocation127_spill] sm:$0xff]  ;;  %v9081_v31 = vld [vmem:[#allocation128_spill] sm:$0xff] }
 0x5fc   :  { %2134 = vmatpush1.msra.mxu0 %v9025_v23  ;;  %2205 = vmatpush1.msra.mxu1 %v9026_v38  ;;  %v9082_v23 = vld [vmem:[#allocation129_spill] sm:$0xff]  ;;  %v9083_v38 = vld [vmem:[#allocation130_spill] sm:$0xff] }
 0x5fd   :  { %2135 = vmatprep.subr.mxu0 %v9027_v25  ;;  %2206 = vmatprep.subr.mxu1 %v9028_v47  ;;  %v9084_v25 = vld [vmem:[#allocation131_spill] sm:$0xff]  ;;  %v9085_v47 = vld [vmem:[#allocation132_spill] sm:$0xff] }
 0x5fe   :  { %2136 = vmatpush1.msra.mxu0 %v9029_v50  ;;  %2207 = vmatpush1.msra.mxu1 %v9030_v52  ;;  %v9086_v50 = vld [vmem:[#allocation133_spill] sm:$0xff]  ;;  %v9087_v52 = vld [vmem:[#allocation134_spill] sm:$0xff] }
 0x5ff   :  { %2137 = vmatprep.subr.mxu0 %v9031_v58  ;;  %2208 = vmatprep.subr.mxu1 %v9032_v8  ;;  %v9088_v58 = vld [vmem:[#allocation135_spill] sm:$0xff]  ;;  %v9089_v8 = vld [vmem:[#allocation136_spill] sm:$0xff] }
 0x600   :  { %2138 = vmatpush1.msra.mxu0 %v9033_v62  ;;  %2209 = vmatpush1.msra.mxu1 %v9034_v51  ;;  %v9090_v62 = vld [vmem:[#allocation137_spill] sm:$0xff]  ;;  %v9091_v51 = vld [vmem:[#allocation138_spill] sm:$0xff] }
 0x601   :  { %2139 = vmatprep.subr.mxu0 %v9035_v56  ;;  %2210 = vmatprep.subr.mxu1 %v9036_v48  ;;  %v9092_v56 = vld [vmem:[#allocation139_spill] sm:$0xff]  ;;  %v9093_v48 = vld [vmem:[#allocation140_spill] sm:$0xff] }
 0x602   :  { %2140 = vmatpush1.msra.mxu0 %v9037_v60  ;;  %2211 = vmatpush1.msra.mxu1 %v9038_v5  ;;  %v9094_v60 = vld [vmem:[#allocation141_spill] sm:$0xff]  ;;  %v9095_v5 = vld [vmem:[#allocation142_spill] sm:$0xff] }
 0x603   :  { %2141 = vmatprep.subr.mxu0 %v9039_v15  ;;  %2212 = vmatprep.subr.mxu1 %v9040_v9  ;;  %v9096_v15 = vld [vmem:[#allocation143_spill] sm:$0xff]  ;;  %v9097_v9 = vld [vmem:[#allocation144_spill] sm:$0xff] }
 0x604   :  { %2142 = vmatpush1.msra.mxu0 %v9041_v17  ;;  %2213 = vmatpush1.msra.mxu1 %v9042_v7  ;;  %v9098_v17 = vld [vmem:[#allocation145_spill] sm:$0xff]  ;;  %v9099_v7 = vld [vmem:[#allocation146_spill] sm:$0xff] }
 0x605   :  { %2143 = vmatprep.subr.mxu0 %v9043_v14  ;;  %2214 = vmatprep.subr.mxu1 %v9044_v13  ;;  %v9100_v14 = vld [vmem:[#allocation147_spill] sm:$0xff]  ;;  %v9101_v13 = vld [vmem:[#allocation148_spill] sm:$0xff] }
 0x606   :  { %2144 = vmatpush1.msra.mxu0 %v9045_v11  ;;  %2215 = vmatpush1.msra.mxu1 %v9046_v12  ;;  %v9102_v11 = vld [vmem:[#allocation149_spill] sm:$0xff]  ;;  %v9103_v12 = vld [vmem:[#allocation150_spill] sm:$0xff] }
 0x607   :  { %2145 = vmatprep.subr.mxu0 %v9047_v24  ;;  %2216 = vmatprep.subr.mxu1 %v9048_v63  ;;  %v9104_v24 = vld [vmem:[#allocation151_spill] sm:$0xff]  ;;  %v9105_v63 = vld [vmem:[#allocation152_spill] sm:$0xff] }
 0x608   :  { %2146 = vmatpush2.msra.mxu0 %v9049_v46  ;;  %2217 = vmatpush2.msra.mxu1 %v9050_v42  ;;  %v9106_v46 = vld [vmem:[#allocation153_spill] sm:$0xff]  ;;  %v9107_v42 = vld [vmem:[#allocation154_spill] sm:$0xff] }
 0x609   :  { %2147 = vmatprep.subr.mxu0 %v9051_v35  ;;  %2218 = vmatprep.subr.mxu1 %v9052_v2  ;;  %v9108_v35 = vld [vmem:[#allocation155_spill] sm:$0xff]  ;;  %v9109_v2 = vld [vmem:[#allocation156_spill] sm:$0xff] }
 0x60a   :  { %2148 = vmatpush2.msra.mxu0 %v9053_v6  ;;  %2219 = vmatpush2.msra.mxu1 %v9054_v16  ;;  %v9110_v6 = vld [vmem:[#allocation157_spill] sm:$0xff] }
 0x60b   :  { %2149 = vmatprep.subr.mxu0 %v9055_v4  ;;  %2220 = vmatprep.subr.mxu1 %v9056_v53  ;;  %v6794_v16 = vld [vmem:[#allocation7 + $0x170] sm:$0xff]  ;;  %v9111_v53 = vld [vmem:[#allocation15_spill] sm:$0xff] }
 0x60c   :  { %2150 = vmatpush2.msra.mxu0 %v9057_v10  ;;  %2221 = vmatpush2.msra.mxu1 %v9058_v44 }
 0x60d   :  { %2151 = vmatprep.subr.mxu0 %v9059_v18  ;;  %2222 = vmatprep.subr.mxu1 %v9060_v20  ;;  %v9112_v20 = vld [vmem:[#allocation16_spill] sm:$0xff] }
 0x60e   :  { %2152 = vmatpush2.msra.mxu0 %v9061_v21  ;;  %2223 = vmatpush2.msra.mxu1 %v9062_v22 }
 0x60f   :  { %2153 = vmatprep.subr.mxu0 %v9063_v0  ;;  %2224 = vmatprep.subr.mxu1 %v9064_v43 }
 0x610   :  { %2154 = vmatpush2.msra.mxu0 %v9065_v36  ;;  %2225 = vmatpush2.msra.mxu1 %v9066_v45  ;;  %v1944_v36 = vstv %s3063_s22 }
 0x611   :  { %2155 = vmatprep.subr.mxu0 %v9067_v33  ;;  %2226 = vmatprep.subr.mxu1 %v9068_v41  ;;  %v9113_v33 = vld [vmem:[#allocation158_spill] sm:$0xff] }
 0x612   :  { %2156 = vmatpush2.msra.mxu0 %v9069_v3  ;;  %2227 = vmatpush2.msra.mxu1 %v9070_v39  ;;  %v1945_v41 = vmul.f32 %v9113_v33, %v1944_v36  ;;  %v9114_v39 = vld [vmem:[#allocation159_spill] sm:$0xff]  ;;  %v6853_v36 = vld [vmem:[#allocation7 + $0x110] sm:$0xff]  ;;  %v6860_v33 = vld [vmem:[#allocation7 + $0x118] sm:$0xff] }
 0x613   :  { %2157 = vmatprep.subr.mxu0 %v9071_v40  ;;  %2228 = vmatprep.subr.mxu1 %v9072_v57 }
 0x614   :  { %2158 = vmatpush2.msra.mxu0 %v9073_v59  ;;  %2229 = vmatpush2.msra.mxu1 %v9074_v27  ;;  %v1946_v40 = vadd.f32 %v9114_v39, %v1945_v41  ;;  %v9115_v59 = vld [vmem:[#allocation21_spill] sm:$0xff]  ;;  %v6870_v39 = vld [vmem:[#allocation7 + $0x100] sm:$0xff] }
 0x615   :  { %2159 = vmatprep.subr.mxu0 %v9075_v26  ;;  %2230 = vmatprep.subr.mxu1 %v9076_v28  ;;  %v6863_v41 = vld [vmem:[#allocation7 + $0xf8] sm:$0xff] }
 0x616   :  { %2160 = vmatpush2.msra.mxu0 %v9077_v19  ;;  %2231 = vmatpush2.msra.mxu1 %v9078_v29 }
 0x617   :  { %2161 = vmatprep.subr.mxu0 %v9079_v32  ;;  %2232 = vmatprep.subr.mxu1 %v9080_v54 }
 0x618   :  { %2162 = vmatpush2.msra.mxu0 %v9081_v31  ;;  %2233 = vmatpush2.msra.mxu1 %v9082_v23 }
 0x619   :  { %2163 = vmatprep.subr.mxu0 %v9083_v38  ;;  %2234 = vmatprep.subr.mxu1 %v9084_v25 }
 0x61a   :  { %2164 = vmatpush2.msra.mxu0 %v9085_v47  ;;  %2235 = vmatpush2.msra.mxu1 %v9086_v50 }
 0x61b   :  { %2165 = vmatprep.subr.mxu0 %v9087_v52  ;;  %2236 = vmatprep.subr.mxu1 %v9088_v58  ;;  %v2096_v58 = vrot.slane %v1946_v40, 1 }
 0x61c   :  { %2166 = vmatpush2.msra.mxu0 %v9089_v8  ;;  %2237 = vmatpush2.msra.mxu1 %v9090_v62 }
 0x61d   :  { %2167 = vmatprep.subr.mxu0 %v9091_v51  ;;  %2238 = vmatprep.subr.mxu1 %v9092_v56 }
 0x61e   :  { %2168 = vmatpush2.msra.mxu0 %v9093_v48  ;;  %2239 = vmatpush2.msra.mxu1 %v9094_v60 }
 0x61f   :  { %2169 = vmatprep.subr.mxu0 %v9095_v5  ;;  %2240 = vmatprep.subr.mxu1 %v9096_v15 }
 0x620   :  { %2170 = vmatpush2.msra.mxu0 %v9097_v9  ;;  %2241 = vmatpush2.msra.mxu1 %v9098_v17 }
 0x621   :  { %2171 = vmatprep.subr.mxu0 %v9099_v7  ;;  %2242 = vmatprep.subr.mxu1 %v9100_v14  ;;  %v2106_v14 = vrot.slane %v1946_v40, 2 }
 0x622   :  { %2172 = vmatpush2.msra.mxu0 %v9101_v13  ;;  %2243 = vmatpush2.msra.mxu1 %v9102_v11 }
 0x623   :  { %2173 = vmatprep.subr.mxu0 %v9103_v12  ;;  %2244 = vmatprep.subr.mxu1 %v9104_v24 }
 0x624   :  { %2174 = vmatpush2.msra.mxu0 %v9105_v63  ;;  %2245 = vmatpush2.msra.mxu1 %v9106_v46 }
 0x625   :  { %2175 = vmatprep.subr.mxu0 %v9107_v42  ;;  %2246 = vmatprep.subr.mxu1 %v9108_v35 }
 0x626   :  { %2176 = vmatpush2.msra.mxu0 %v9109_v2  ;;  %2247 = vmatpush2.msra.mxu1 %v9110_v6  ;;  %v6817_v2 = vld [vmem:[#allocation7 + $0x168] sm:$0xff]  ;;  %v6820_v6 = vld [vmem:[#allocation7 + $0x178] sm:$0xff] }
 0x627   :  { %2277 = vmatprep.subr.mxu0 %v6794_v16  ;;  %3441 = vmatprep.subr.mxu1 %v8397_v61 }
 0x685   :  { %v1849_v4 = vpop.f32.mrf.mxu0  ;;  %v1920_v45 = vpop.f32.mrf.mxu1 }
 0x686   :  { %v1850_v10 = vadd.f32 %v1849_v4, %v9111_v53  ;;  %v1921_v32 = vadd.f32 %v1920_v45, %v5212_v37  ;;  %v6823_v4 = vld [vmem:[#allocation7 + $0x158] sm:$0xff]  ;;  %v6857_v45 = vld [vmem:[#allocation7 + $0x108] sm:$0xff] }
 0x687   :  { %v1851_v18 = vpop.f32.mrf.mxu0  ;;  %v1922_v3 = vpop.f32.mrf.mxu1 }
 0x688   :  { %v3061_v44 = vmul.f32 -1.442695, %v1850_v10  ;;  %v1852_v21 = vadd.f32 %v1851_v18, %v9112_v20  ;;  %v1923_v27 = vadd.f32 %v1922_v3, %v9115_v59  ;;  %v6830_v10 = vld [vmem:[#allocation7 + $0x160] sm:$0xff]  ;;  %v6837_v18 = vld [vmem:[#allocation7 + $0x138] sm:$0xff]  ;;  %v6867_v3 = vld [vmem:[#allocation7 + $0xf0] sm:$0xff] }
 0x68a   :  { %3646 = vpow2.f32 %v3061_v44  ;;  %v3062_v22 = vmul.f32 -1.442695, %v1852_v21  ;;  %v6833_v44 = vld [vmem:[#allocation7 + $0x140] sm:$0xff]  ;;  %v6840_v21 = vld [vmem:[#allocation7 + $0x148] sm:$0xff] }
 0x68c   :  { %3648 = vpow2.f32 %v3062_v22  ;;  %v6843_v22 = vld [vmem:[#allocation7 + $0x128] sm:$0xff] }
 0x697   :  { %v3647_v0 = vpop.eup %3646 }
 0x698   :  { %v1928_v43 = vadd.f32 1.0, %v3647_v0  ;;  %v6847_v0 = vld [vmem:[#allocation7 + $0x120] sm:$0xff] }
 0x699   :  { %v3649_v57 = vpop.eup %3648 }
 0x69a   :  { %3650 = vrcp.f32 %v1928_v43  ;;  %v1934_v38 = vadd.f32 1.0, %v3649_v57  ;;  %v6850_v43 = vld [vmem:[#allocation7 + $0x130] sm:$0xff]  ;;  %v6877_v57 = vld [vmem:[#allocation7 + $0xd8] sm:$0xff] }
 0x6a6   :  { %v2013_v26 = vpop.f32.mrf.mxu0  ;;  %v2084_v28 = vpop.f32.mrf.mxu1 }
 0x6a7   :  { %v3651_v19 = vpop.eup %3650  ;;  %v2014_v29 = vadd.f32 %v2013_v26, %v8540_v49  ;;  %v2085_v7 = vadd.f32 %v2084_v28, %v4987_v55  ;;  %v6883_v26 = vld [vmem:[#allocation7 + $0xc8] sm:$0xff]  ;;  %v6887_v28 = vld [vmem:[#allocation7 + $0xc0] sm:$0xff] }
 0x6a8   :  { %v1937_v54 = vmul.f32 %v3651_v19, %v1923_v27  ;;  %v3440_v31 = vpop.f32.mrf.mxu1  ;;  %v2015_v50 = vpop.f32.mrf.mxu0  ;;  %v6880_v27 = vld [vmem:[#allocation7 + $0xe8] sm:$0xff]  ;;  %v6890_v19 = vld [vmem:[#allocation7 + $0xd0] sm:$0xff] }
 0x6a9   :  { %v2088_v23 = vadd.f32 %v2014_v29, %v1946_v40  ;;  %v2016_v52 = vadd.f32 %v2015_v50, %v8541_v1  ;;  %v6873_v40 = vld [vmem:[#allocation7 + $0xe0] sm:$0xff]  ;;  %v6893_v29 = vld [vmem:[#allocation7 + $0xb0] sm:$0xff]  ;;  %v6903_v31 = vld [vmem:[#allocation7 + $0x98] sm:$0xff] }
 0x6aa   :  { %v1938_v25 = vadd.f32 %v1937_v54, %v1921_v32  ;;  %v6897_v32 = vld [vmem:[#allocation7 + $0xa8] sm:$0xff]  ;;  %v6900_v54 = vld [vmem:[#allocation7 + $0xb8] sm:$0xff] }
 0x6ab   :  { %v3064_v47 = vmul.f32 -1.442695, %v2088_v23  ;;  %v2098_v8 = vadd.f32 %v2096_v58, %v2016_v52  ;;  %v6907_v23 = vld [vmem:[#allocation7 + $0x90] sm:$0xff]  ;;  %v6920_v50 = vld [vmem:[#allocation7 + $0x88] sm:$0xff]  ;;  %v6927_v58 = vld [vmem:[#allocation7 + $0x60] sm:$0xff] }
 0x6ac   :  { %3652 = vtanh.f32 %v1938_v25  ;;  %v6913_v25 = vld [vmem:[#allocation7 + $0x80] sm:$0xff]  ;;  %v6923_v52 = vld [vmem:[#allocation7 + $0x68] sm:$0xff] }
 0x6ad   :  { %3654 = vpow2.f32 %v3064_v47  ;;  %v3065_v62 = vmul.f32 -1.442695, %v2098_v8  ;;  %v6917_v47 = vld [vmem:[#allocation7 + $0x78] sm:$0xff]  ;;  %v6930_v8 = vld [vmem:[#allocation7 + $0x70] sm:$0xff] }
 0x6ae   :  { %3656 = vrcp.f32 %v1934_v38  ;;  %v6910_v38 = vld [vmem:[#allocation7 + $0xa0] sm:$0xff] }
 0x6af   :  { %3658 = vpow2.f32 %v3065_v62  ;;  %v6933_v62 = vld [vmem:[#allocation7 + $0x50] sm:$0xff] }
 0x6b0   :  { %9116 = vst [vmem:[#allocation17_spill] sm:$0xff] %v6933_v62 }
 0x6b9   :  { %v3653_v51 = vpop.eup %3652 }
 0x6ba   :  { %v3655_v56 = vpop.eup %3654  ;;  %v1940_v48 = vsub.f32 %v6589_v30, %v3653_v51 }
 0x6bb   :  { %v3657_v60 = vpop.eup %3656  ;;  %v2092_v5 = vadd.f32 1.0, %v3655_v56  ;;  %v6940_v56 = vld [vmem:[#allocation7 + $0x58] sm:$0xff] }
 0x6bc   :  { %v1941_v15 = vmul.f32 %v3657_v60, %v1940_v48  ;;  %v3659_v17 = vpop.eup %3658  ;;  %9118 = vst [vmem:[#allocation18_spill] sm:$0xff] %v6940_v56  ;;  %v6943_v48 = vld [vmem:[#allocation7 + $0x38] sm:$0xff]  ;;  %v6947_v60 = vld [vmem:[#allocation7 + $0x30] sm:$0xff] }
 0x6bd   :  { %3660 = vrcp.f32 %v2092_v5  ;;  %v2102_v24 = vadd.f32 1.0, %v3659_v17  ;;  %9119 = vst [vmem:[#allocation23_spill] sm:$0xff] %v6943_v48  ;;  %9120 = vst [vmem:[#allocation19_spill] sm:$0xff] %v6947_v60  ;;  %v6950_v5 = vld [vmem:[#allocation7 + $0x40] sm:$0xff]  ;;  %v6957_v17 = vld [vmem:[#allocation7 + $0x18] sm:$0xff] }
 0x6be   :  { %v6807_v9 = vadd.f32 %v3653_v51, %v1941_v15  ;;  %v6937_v51 = vld [vmem:[#allocation7 + $0x48] sm:$0xff]  ;;  %9121 = vst [vmem:[#allocation24_spill] sm:$0xff] %v6950_v5  ;;  %v6953_v15 = vld [vmem:[#allocation7 + $0x20] sm:$0xff]  ;;  %9123 = vst [vmem:[#allocation25_spill] sm:$0xff] %v6957_v17 }
 0x6bf   :  { %9117 = vst [vmem:[#allocation22_spill] sm:$0xff] %v6937_v51  ;;  %9122 = vst [vmem:[#allocation20_spill] sm:$0xff] %v6953_v15 }
 0x6c0   :  { %2177 = vmatprep.mubr.f32.mxu0 %v6807_v9  ;;  %2248 = vmatprep.mubr.f32.mxu1 %v6807_v9 }
 0x6ca   :  { %v3661_v13 = vpop.eup %3660 }
 0x6cb   :  { %v2105_v11 = vmul.f32 %v3661_v13, %v2085_v7  ;;  %v6960_v7 = vld [vmem:[#allocation7 + $0x28] sm:$0xff]  ;;  %v6967_v13 = vld [vmem:[#allocation7] sm:$0xff] }
 0x6cc   :  { %9124 = vst [vmem:[#allocation26_spill] sm:$0xff] %v6960_v7  ;;  %9126 = vst [vmem:[#allocation28_spill] sm:$0xff] %v6967_v13 }
 0x6cd   :  { %v2108_v12 = vadd.f32 %v2106_v14, %v2105_v11  ;;  %v6963_v14 = vld [vmem:[#allocation7 + $0x8] sm:$0xff]  ;;  %v6971_v11 = vld [vmem:[#allocation7 + $0x10] sm:$0xff] }
 0x6ce   :  { %9125 = vst [vmem:[#allocation27_spill] sm:$0xff] %v6963_v14  ;;  %9127 = vst [vmem:[#allocation29_spill] sm:$0xff] %v6971_v11 }
 0x6cf   :  { %3662 = vtanh.f32 %v2108_v12  ;;  %v6978_v12 = vld [vmem:[#allocation8 + $0x1e8] sm:$0xff] }
 0x6d0   :  { %3664 = vrcp.f32 %v2102_v24  ;;  %9128 = vst [vmem:[#allocation30_spill] sm:$0xff] %v6978_v12  ;;  %v6981_v24 = vld [vmem:[#allocation8 + $0x1f8] sm:$0xff] }
 0x6d1   :  { %9129 = vst [vmem:[#allocation31_spill] sm:$0xff] %v6981_v24 }
 0x6dc   :  { %v3663_v30 = vpop.eup %3662 }
 0x6dd   :  { %v2110_v63 = vsub.f32 %v6595_v34, %v3663_v30  ;;  %v3665_v46 = vpop.eup %3664  ;;  %v6827_v34 = vld [vmem:[#allocation7 + $0x150] sm:$0xff] }
 0x6df   :  { %v2111_v42 = vmul.f32 %v3665_v46, %v2110_v63  ;;  %v6987_v63 = vld [vmem:[#allocation8 + $0x1f0] sm:$0xff]  ;;  %v6990_v46 = vld [vmem:[#allocation8 + $0x1c8] sm:$0xff] }
 0x6e0   :  { %9131 = vst [vmem:[#allocation33_spill] sm:$0xff] %v6987_v63  ;;  %9132 = vst [vmem:[#allocation34_spill] sm:$0xff] %v6990_v46 }
 0x6e1   :  { %v6813_v35 = vadd.f32 %v3663_v30, %v2111_v42  ;;  %v6984_v30 = vld [vmem:[#allocation8 + $0x1e0] sm:$0xff]  ;;  %v6993_v42 = vld [vmem:[#allocation8 + $0x1d8] sm:$0xff] }
 0x6e2   :  { %9130 = vst [vmem:[#allocation32_spill] sm:$0xff] %v6984_v30  ;;  %9133 = vst [vmem:[#allocation35_spill] sm:$0xff] %v6993_v42 }
 0x6e3   :  { %2178 = vmatmul.mubr.f32.vlgmr.msra.gmra.mxu0 %v6813_v35  ;;  %2249 = vmatmul.mubr.f32.vlgmr.msra.gmra.mxu1 %v6813_v35 }
 0x6e4   :  { %2278 = vmatpush1.msra.mxu0 %v6817_v2  ;;  %3442 = vmatpush3.msra.mxu1 %v6820_v6 }
 0x6e5   :  { %2279 = vmatprep.subr.mxu0 %v6823_v4  ;;  %3443 = vmatprep.subr.mxu1 %v8397_v61 }
 0x6e6   :  { %2280 = vmatpush1.msra.mxu0 %v6827_v34  ;;  %3444 = vmatpush3.msra.mxu1 %v6830_v10 }
 0x6e7   :  { %2281 = vmatprep.subr.mxu0 %v6833_v44  ;;  %3445 = vmatprep.subr.mxu1 %v8397_v61 }
 0x6e8   :  { %2282 = vmatpush1.msra.mxu0 %v6837_v18  ;;  %3446 = vmatpush3.msra.mxu1 %v6840_v21 }
 0x6e9   :  { %2283 = vmatprep.subr.mxu0 %v6843_v22  ;;  %3447 = vmatprep.subr.mxu1 %v8397_v61 }
 0x6ea   :  { %2284 = vmatpush1.msra.mxu0 %v6847_v0  ;;  %3448 = vmatpush3.msra.mxu1 %v6850_v43 }
 0x6eb   :  { %2285 = vmatprep.subr.mxu0 %v6853_v36  ;;  %3449 = vmatprep.subr.mxu1 %v8397_v61 }
 0x6ec   :  { %2286 = vmatpush1.msra.mxu0 %v6857_v45  ;;  %3450 = vmatpush3.msra.mxu1 %v6860_v33 }
 0x6ed   :  { %2287 = vmatprep.subr.mxu0 %v6863_v41  ;;  %3451 = vmatprep.subr.mxu1 %v8397_v61 }
 0x6ee   :  { %2288 = vmatpush1.msra.mxu0 %v6867_v3  ;;  %3452 = vmatpush3.msra.mxu1 %v6870_v39 }
 0x6ef   :  { %2289 = vmatprep.subr.mxu0 %v6873_v40  ;;  %3453 = vmatprep.subr.mxu1 %v8397_v61 }
 0x6f0   :  { %2290 = vmatpush1.msra.mxu0 %v6877_v57  ;;  %3454 = vmatpush3.msra.mxu1 %v6880_v27 }
 0x6f1   :  { %2291 = vmatprep.subr.mxu0 %v6883_v26  ;;  %3455 = vmatprep.subr.mxu1 %v8397_v61 }
 0x6f2   :  { %2292 = vmatpush1.msra.mxu0 %v6887_v28  ;;  %3456 = vmatpush3.msra.mxu1 %v6890_v19 }
 0x6f3   :  { %2293 = vmatprep.subr.mxu0 %v6893_v29  ;;  %3457 = vmatprep.subr.mxu1 %v8397_v61 }
 0x6f4   :  { %2294 = vmatpush1.msra.mxu0 %v6897_v32  ;;  %3458 = vmatpush3.msra.mxu1 %v6900_v54 }
 0x6f5   :  { %2295 = vmatprep.subr.mxu0 %v6903_v31  ;;  %3459 = vmatprep.subr.mxu1 %v8397_v61 }
 0x6f6   :  { %2296 = vmatpush1.msra.mxu0 %v6907_v23  ;;  %3460 = vmatpush3.msra.mxu1 %v6910_v38 }
 0x6f7   :  { %2297 = vmatprep.subr.mxu0 %v6913_v25  ;;  %3461 = vmatprep.subr.mxu1 %v8397_v61 }
 0x6f8   :  { %2298 = vmatpush1.msra.mxu0 %v6917_v47  ;;  %3462 = vmatpush3.msra.mxu1 %v6920_v50 }
 0x6f9   :  { %2299 = vmatprep.subr.mxu0 %v6923_v52  ;;  %3463 = vmatprep.subr.mxu1 %v8397_v61 }
 0x6fa   :  { %2300 = vmatpush1.msra.mxu0 %v6927_v58  ;;  %3464 = vmatpush3.msra.mxu1 %v6930_v8 }
 0x6fb   :  { %2301 = vmatprep.subr.mxu0 %v6933_v62  ;;  %3465 = vmatprep.subr.mxu1 %v8397_v61 }
 0x6fc   :  { %2302 = vmatpush1.msra.mxu0 %v6937_v51  ;;  %3466 = vmatpush3.msra.mxu1 %v6940_v56 }
 0x6fd   :  { %2303 = vmatprep.subr.mxu0 %v6943_v48  ;;  %3467 = vmatprep.subr.mxu1 %v8397_v61 }
 0x6fe   :  { %2304 = vmatpush1.msra.mxu0 %v6947_v60  ;;  %3468 = vmatpush3.msra.mxu1 %v6950_v5 }
 0x6ff   :  { %2305 = vmatprep.subr.mxu0 %v6953_v15  ;;  %3469 = vmatprep.subr.mxu1 %v8397_v61 }
 0x700   :  { %2306 = vmatpush1.msra.mxu0 %v6957_v17  ;;  %3470 = vmatpush3.msra.mxu1 %v6960_v7  ;;  %v2274_v7 = vstv %s3068_s23 }
 0x701   :  { %2307 = vmatprep.subr.mxu0 %v6963_v14  ;;  %3471 = vmatprep.subr.mxu1 %v8397_v61 }
 0x702   :  { %2308 = vmatpush1.msra.mxu0 %v6967_v13  ;;  %2341 = vmatprep.mubr.f32.mxu0 %v8397_v61 }
 0x703   :  { %3472 = vmatpush3.msra.mxu1 %v6971_v11  ;;  %3473 = vmatprep.mubr.msk.f32.mxu1 %vm4338_vm0, %v8397_v61 }
 0x704   :  { %2342 = vmatmul.mubr.f32.vlgmr.msra.gmra.mxu0 %v6813_v35  ;;  %3474 = vmatmul.mubr.f32.vlgmr.msra.gmra.mxu1 %v6813_v35 }
 0x705   :  { %2443 = vmatprep.subr.mxu0 %v6978_v12  ;;  %2514 = vmatprep.subr.mxu1 %v6981_v24  ;;  %v6996_v12 = vld [vmem:[#allocation8 + $0x1c0] sm:$0xff]  ;;  %v6999_v24 = vld [vmem:[#allocation8 + $0x1d0] sm:$0xff] }
 0x706   :  { %2444 = vmatpush1.msra.mxu0 %v6984_v30  ;;  %2515 = vmatpush1.msra.mxu1 %v6987_v63  ;;  %9134 = vst [vmem:[#allocation36_spill] sm:$0xff] %v6996_v12  ;;  %9135 = vst [vmem:[#allocation37_spill] sm:$0xff] %v6999_v24  ;;  %v7002_v30 = vld [vmem:[#allocation8 + $0x1a8] sm:$0xff]  ;;  %v7005_v63 = vld [vmem:[#allocation8 + $0x1b8] sm:$0xff] }
 0x707   :  { %2445 = vmatprep.subr.mxu0 %v6990_v46  ;;  %2516 = vmatprep.subr.mxu1 %v6993_v42  ;;  %9136 = vst [vmem:[#allocation38_spill] sm:$0xff] %v7002_v30  ;;  %9137 = vst [vmem:[#allocation39_spill] sm:$0xff] %v7005_v63  ;;  %v7008_v46 = vld [vmem:[#allocation8 + $0x1a0] sm:$0xff]  ;;  %v7011_v42 = vld [vmem:[#allocation8 + $0x1b0] sm:$0xff] }
 0x708   :  { %2446 = vmatpush1.msra.mxu0 %v6996_v12  ;;  %2517 = vmatpush1.msra.mxu1 %v6999_v24  ;;  %9138 = vst [vmem:[#allocation40_spill] sm:$0xff] %v7008_v46  ;;  %9139 = vst [vmem:[#allocation41_spill] sm:$0xff] %v7011_v42  ;;  %v7014_v12 = vld [vmem:[#allocation8 + $0x188] sm:$0xff]  ;;  %v7017_v24 = vld [vmem:[#allocation8 + $0x198] sm:$0xff] }
 0x709   :  { %2447 = vmatprep.subr.mxu0 %v7002_v30  ;;  %2518 = vmatprep.subr.mxu1 %v7005_v63  ;;  %9140 = vst [vmem:[#allocation42_spill] sm:$0xff] %v7014_v12  ;;  %9141 = vst [vmem:[#allocation43_spill] sm:$0xff] %v7017_v24  ;;  %v7020_v30 = vld [vmem:[#allocation8 + $0x180] sm:$0xff]  ;;  %v7023_v63 = vld [vmem:[#allocation8 + $0x190] sm:$0xff] }
 0x70a   :  { %2448 = vmatpush1.msra.mxu0 %v7008_v46  ;;  %2519 = vmatpush1.msra.mxu1 %v7011_v42  ;;  %9142 = vst [vmem:[#allocation44_spill] sm:$0xff] %v7020_v30  ;;  %9143 = vst [vmem:[#allocation45_spill] sm:$0xff] %v7023_v63  ;;  %v7026_v46 = vld [vmem:[#allocation8 + $0x168] sm:$0xff]  ;;  %v7029_v42 = vld [vmem:[#allocation8 + $0x178] sm:$0xff] }
 0x70b   :  { %2449 = vmatprep.subr.mxu0 %v7014_v12  ;;  %2520 = vmatprep.subr.mxu1 %v7017_v24  ;;  %9144 = vst [vmem:[#allocation46_spill] sm:$0xff] %v7026_v46  ;;  %9145 = vst [vmem:[#allocation47_spill] sm:$0xff] %v7029_v42  ;;  %v7032_v12 = vld [vmem:[#allocation8 + $0x160] sm:$0xff]  ;;  %v7035_v24 = vld [vmem:[#allocation8 + $0x170] sm:$0xff] }
 0x70c   :  { %2450 = vmatpush1.msra.mxu0 %v7020_v30  ;;  %2521 = vmatpush1.msra.mxu1 %v7023_v63  ;;  %9146 = vst [vmem:[#allocation48_spill] sm:$0xff] %v7032_v12  ;;  %9147 = vst [vmem:[#allocation49_spill] sm:$0xff] %v7035_v24  ;;  %v7038_v30 = vld [vmem:[#allocation8 + $0x148] sm:$0xff]  ;;  %v7041_v63 = vld [vmem:[#allocation8 + $0x158] sm:$0xff] }
 0x70d   :  { %2451 = vmatprep.subr.mxu0 %v7026_v46  ;;  %2522 = vmatprep.subr.mxu1 %v7029_v42  ;;  %9148 = vst [vmem:[#allocation50_spill] sm:$0xff] %v7038_v30  ;;  %9149 = vst [vmem:[#allocation51_spill] sm:$0xff] %v7041_v63  ;;  %v7044_v46 = vld [vmem:[#allocation8 + $0x140] sm:$0xff]  ;;  %v7047_v42 = vld [vmem:[#allocation8 + $0x150] sm:$0xff] }
 0x70e   :  { %2452 = vmatpush1.msra.mxu0 %v7032_v12  ;;  %2523 = vmatpush1.msra.mxu1 %v7035_v24  ;;  %9150 = vst [vmem:[#allocation52_spill] sm:$0xff] %v7044_v46  ;;  %9151 = vst [vmem:[#allocation53_spill] sm:$0xff] %v7047_v42  ;;  %v7050_v12 = vld [vmem:[#allocation8 + $0x128] sm:$0xff]  ;;  %v7053_v24 = vld [vmem:[#allocation8 + $0x138] sm:$0xff] }
 0x70f   :  { %2453 = vmatprep.subr.mxu0 %v7038_v30  ;;  %2524 = vmatprep.subr.mxu1 %v7041_v63  ;;  %9152 = vst [vmem:[#allocation54_spill] sm:$0xff] %v7050_v12  ;;  %9153 = vst [vmem:[#allocation55_spill] sm:$0xff] %v7053_v24  ;;  %v7056_v30 = vld [vmem:[#allocation8 + $0x120] sm:$0xff]  ;;  %v7059_v63 = vld [vmem:[#allocation8 + $0x130] sm:$0xff] }
 0x710   :  { %2454 = vmatpush1.msra.mxu0 %v7044_v46  ;;  %2525 = vmatpush1.msra.mxu1 %v7047_v42  ;;  %9154 = vst [vmem:[#allocation56_spill] sm:$0xff] %v7056_v30  ;;  %9155 = vst [vmem:[#allocation57_spill] sm:$0xff] %v7059_v63  ;;  %v7062_v46 = vld [vmem:[#allocation8 + $0x108] sm:$0xff]  ;;  %v7065_v42 = vld [vmem:[#allocation8 + $0x118] sm:$0xff] }
 0x711   :  { %2455 = vmatprep.subr.mxu0 %v7050_v12  ;;  %2526 = vmatprep.subr.mxu1 %v7053_v24  ;;  %9156 = vst [vmem:[#allocation58_spill] sm:$0xff] %v7062_v46  ;;  %9157 = vst [vmem:[#allocation59_spill] sm:$0xff] %v7065_v42  ;;  %v7068_v12 = vld [vmem:[#allocation8 + $0x100] sm:$0xff]  ;;  %v7071_v24 = vld [vmem:[#allocation8 + $0x110] sm:$0xff] }
 0x712   :  { %2456 = vmatpush1.msra.mxu0 %v7056_v30  ;;  %2527 = vmatpush1.msra.mxu1 %v7059_v63  ;;  %9158 = vst [vmem:[#allocation60_spill] sm:$0xff] %v7068_v12  ;;  %9159 = vst [vmem:[#allocation61_spill] sm:$0xff] %v7071_v24  ;;  %v7074_v30 = vld [vmem:[#allocation8 + $0xe8] sm:$0xff]  ;;  %v7077_v63 = vld [vmem:[#allocation8 + $0xf8] sm:$0xff] }
 0x713   :  { %2457 = vmatprep.subr.mxu0 %v7062_v46  ;;  %2528 = vmatprep.subr.mxu1 %v7065_v42  ;;  %9160 = vst [vmem:[#allocation62_spill] sm:$0xff] %v7074_v30  ;;  %9161 = vst [vmem:[#allocation63_spill] sm:$0xff] %v7077_v63  ;;  %v7080_v46 = vld [vmem:[#allocation8 + $0xe0] sm:$0xff]  ;;  %v7083_v42 = vld [vmem:[#allocation8 + $0xf0] sm:$0xff] }
 0x714   :  { %2458 = vmatpush1.msra.mxu0 %v7068_v12  ;;  %2529 = vmatpush1.msra.mxu1 %v7071_v24  ;;  %9162 = vst [vmem:[#allocation64_spill] sm:$0xff] %v7080_v46  ;;  %9163 = vst [vmem:[#allocation65_spill] sm:$0xff] %v7083_v42  ;;  %v7086_v12 = vld [vmem:[#allocation8 + $0xc8] sm:$0xff]  ;;  %v7089_v24 = vld [vmem:[#allocation8 + $0xd8] sm:$0xff] }
 0x715   :  { %2459 = vmatprep.subr.mxu0 %v7074_v30  ;;  %2530 = vmatprep.subr.mxu1 %v7077_v63  ;;  %9164 = vst [vmem:[#allocation66_spill] sm:$0xff] %v7086_v12  ;;  %9165 = vst [vmem:[#allocation67_spill] sm:$0xff] %v7089_v24  ;;  %v7092_v30 = vld [vmem:[#allocation8 + $0xc0] sm:$0xff]  ;;  %v7095_v63 = vld [vmem:[#allocation8 + $0xd0] sm:$0xff] }
 0x716   :  { %2460 = vmatpush1.msra.mxu0 %v7080_v46  ;;  %2531 = vmatpush1.msra.mxu1 %v7083_v42  ;;  %9166 = vst [vmem:[#allocation68_spill] sm:$0xff] %v7092_v30  ;;  %9167 = vst [vmem:[#allocation69_spill] sm:$0xff] %v7095_v63  ;;  %v7098_v46 = vld [vmem:[#allocation8 + $0xa8] sm:$0xff]  ;;  %v7101_v42 = vld [vmem:[#allocation8 + $0xb8] sm:$0xff] }
 0x717   :  { %2461 = vmatprep.subr.mxu0 %v7086_v12  ;;  %2532 = vmatprep.subr.mxu1 %v7089_v24  ;;  %9168 = vst [vmem:[#allocation70_spill] sm:$0xff] %v7098_v46  ;;  %9169 = vst [vmem:[#allocation71_spill] sm:$0xff] %v7101_v42  ;;  %v7104_v12 = vld [vmem:[#allocation8 + $0xa0] sm:$0xff]  ;;  %v7107_v24 = vld [vmem:[#allocation8 + $0xb0] sm:$0xff] }
 0x718   :  { %2462 = vmatpush1.msra.mxu0 %v7092_v30  ;;  %2533 = vmatpush1.msra.mxu1 %v7095_v63  ;;  %9170 = vst [vmem:[#allocation72_spill] sm:$0xff] %v7104_v12  ;;  %9171 = vst [vmem:[#allocation73_spill] sm:$0xff] %v7107_v24  ;;  %v7110_v30 = vld [vmem:[#allocation8 + $0x88] sm:$0xff]  ;;  %v7113_v63 = vld [vmem:[#allocation8 + $0x98] sm:$0xff] }
 0x719   :  { %2463 = vmatprep.subr.mxu0 %v7098_v46  ;;  %2534 = vmatprep.subr.mxu1 %v7101_v42  ;;  %9172 = vst [vmem:[#allocation74_spill] sm:$0xff] %v7110_v30  ;;  %9173 = vst [vmem:[#allocation75_spill] sm:$0xff] %v7113_v63  ;;  %v7116_v46 = vld [vmem:[#allocation8 + $0x80] sm:$0xff]  ;;  %v7119_v42 = vld [vmem:[#allocation8 + $0x90] sm:$0xff] }
 0x71a   :  { %2464 = vmatpush1.msra.mxu0 %v7104_v12  ;;  %2535 = vmatpush1.msra.mxu1 %v7107_v24  ;;  %9174 = vst [vmem:[#allocation76_spill] sm:$0xff] %v7116_v46  ;;  %9175 = vst [vmem:[#allocation77_spill] sm:$0xff] %v7119_v42  ;;  %v7122_v12 = vld [vmem:[#allocation8 + $0x68] sm:$0xff]  ;;  %v7125_v24 = vld [vmem:[#allocation8 + $0x78] sm:$0xff] }
 0x71b   :  { %2465 = vmatprep.subr.mxu0 %v7110_v30  ;;  %2536 = vmatprep.subr.mxu1 %v7113_v63  ;;  %9176 = vst [vmem:[#allocation78_spill] sm:$0xff] %v7122_v12  ;;  %9177 = vst [vmem:[#allocation79_spill] sm:$0xff] %v7125_v24  ;;  %v7128_v30 = vld [vmem:[#allocation8 + $0x60] sm:$0xff]  ;;  %v7131_v63 = vld [vmem:[#allocation8 + $0x70] sm:$0xff] }
 0x71c   :  { %2466 = vmatpush1.msra.mxu0 %v7116_v46  ;;  %2537 = vmatpush1.msra.mxu1 %v7119_v42  ;;  %9178 = vst [vmem:[#allocation80_spill] sm:$0xff] %v7128_v30  ;;  %9179 = vst [vmem:[#allocation81_spill] sm:$0xff] %v7131_v63  ;;  %v7134_v46 = vld [vmem:[#allocation8 + $0x48] sm:$0xff]  ;;  %v7137_v42 = vld [vmem:[#allocation8 + $0x58] sm:$0xff] }
 0x71d   :  { %2467 = vmatprep.subr.mxu0 %v7122_v12  ;;  %2538 = vmatprep.subr.mxu1 %v7125_v24  ;;  %9180 = vst [vmem:[#allocation82_spill] sm:$0xff] %v7134_v46  ;;  %9181 = vst [vmem:[#allocation83_spill] sm:$0xff] %v7137_v42  ;;  %v7140_v12 = vld [vmem:[#allocation8 + $0x40] sm:$0xff]  ;;  %v7143_v24 = vld [vmem:[#allocation8 + $0x50] sm:$0xff] }
 0x71e   :  { %2468 = vmatpush1.msra.mxu0 %v7128_v30  ;;  %2539 = vmatpush1.msra.mxu1 %v7131_v63  ;;  %9182 = vst [vmem:[#allocation84_spill] sm:$0xff] %v7140_v12  ;;  %9183 = vst [vmem:[#allocation85_spill] sm:$0xff] %v7143_v24  ;;  %v7146_v30 = vld [vmem:[#allocation8 + $0x28] sm:$0xff]  ;;  %v7149_v63 = vld [vmem:[#allocation8 + $0x38] sm:$0xff] }
 0x71f   :  { %2469 = vmatprep.subr.mxu0 %v7134_v46  ;;  %2540 = vmatprep.subr.mxu1 %v7137_v42  ;;  %9184 = vst [vmem:[#allocation86_spill] sm:$0xff] %v7146_v30  ;;  %9185 = vst [vmem:[#allocation87_spill] sm:$0xff] %v7149_v63  ;;  %v7152_v46 = vld [vmem:[#allocation8 + $0x20] sm:$0xff]  ;;  %v7155_v42 = vld [vmem:[#allocation8 + $0x30] sm:$0xff] }
 0x720   :  { %2470 = vmatpush1.msra.mxu0 %v7140_v12  ;;  %2541 = vmatpush1.msra.mxu1 %v7143_v24  ;;  %9186 = vst [vmem:[#allocation88_spill] sm:$0xff] %v7152_v46  ;;  %9187 = vst [vmem:[#allocation89_spill] sm:$0xff] %v7155_v42  ;;  %v7158_v12 = vld [vmem:[#allocation8 + $0x8] sm:$0xff]  ;;  %v7161_v24 = vld [vmem:[#allocation8 + $0x18] sm:$0xff] }
 0x721   :  { %2471 = vmatprep.subr.mxu0 %v7146_v30  ;;  %2542 = vmatprep.subr.mxu1 %v7149_v63  ;;  %9188 = vst [vmem:[#allocation90_spill] sm:$0xff] %v7158_v12  ;;  %9189 = vst [vmem:[#allocation91_spill] sm:$0xff] %v7161_v24  ;;  %v7164_v30 = vld [vmem:[#allocation8] sm:$0xff]  ;;  %v7167_v63 = vld [vmem:[#allocation8 + $0x10] sm:$0xff] }
 0x722   :  { %2472 = vmatpush1.msra.mxu0 %v7152_v46  ;;  %2543 = vmatpush1.msra.mxu1 %v7155_v42  ;;  %9190 = vst [vmem:[#allocation92_spill] sm:$0xff] %v7164_v30  ;;  %9191 = vst [vmem:[#allocation93_spill] sm:$0xff] %v7167_v63  ;;  %v7170_v46 = vld [vmem:[#allocation8 + $0x3e8] sm:$0xff]  ;;  %v7173_v42 = vld [vmem:[#allocation8 + $0x3f8] sm:$0xff] }
 0x723   :  { %2473 = vmatprep.subr.mxu0 %v7158_v12  ;;  %2544 = vmatprep.subr.mxu1 %v7161_v24  ;;  %9192 = vst [vmem:[#allocation94_spill] sm:$0xff] %v7170_v46  ;;  %9193 = vst [vmem:[#allocation95_spill] sm:$0xff] %v7173_v42  ;;  %v7176_v12 = vld [vmem:[#allocation8 + $0x3e0] sm:$0xff]  ;;  %v7179_v24 = vld [vmem:[#allocation8 + $0x3f0] sm:$0xff] }
 0x724   :  { %2474 = vmatpush1.msra.mxu0 %v7164_v30  ;;  %2545 = vmatpush1.msra.mxu1 %v7167_v63  ;;  %9194 = vst [vmem:[#allocation96_spill] sm:$0xff] %v7176_v12  ;;  %9195 = vst [vmem:[#allocation97_spill] sm:$0xff] %v7179_v24  ;;  %v7182_v30 = vld [vmem:[#allocation8 + $0x3c8] sm:$0xff]  ;;  %v7185_v63 = vld [vmem:[#allocation8 + $0x3d8] sm:$0xff] }
 0x725   :  { %2475 = vmatprep.subr.mxu0 %v7170_v46  ;;  %2546 = vmatprep.subr.mxu1 %v7173_v42  ;;  %9196 = vst [vmem:[#allocation98_spill] sm:$0xff] %v7182_v30  ;;  %9197 = vst [vmem:[#allocation99_spill] sm:$0xff] %v7185_v63  ;;  %v7188_v46 = vld [vmem:[#allocation8 + $0x3c0] sm:$0xff]  ;;  %v7191_v42 = vld [vmem:[#allocation8 + $0x3d0] sm:$0xff] }
 0x726   :  { %2476 = vmatpush2.msra.mxu0 %v7176_v12  ;;  %2547 = vmatpush2.msra.mxu1 %v7179_v24  ;;  %9198 = vst [vmem:[#allocation100_spill] sm:$0xff] %v7188_v46  ;;  %9199 = vst [vmem:[#allocation101_spill] sm:$0xff] %v7191_v42  ;;  %v7194_v12 = vld [vmem:[#allocation8 + $0x3a8] sm:$0xff]  ;;  %v7197_v24 = vld [vmem:[#allocation8 + $0x3b8] sm:$0xff] }
 0x727   :  { %2477 = vmatprep.subr.mxu0 %v7182_v30  ;;  %2548 = vmatprep.subr.mxu1 %v7185_v63  ;;  %9200 = vst [vmem:[#allocation102_spill] sm:$0xff] %v7194_v12  ;;  %9201 = vst [vmem:[#allocation103_spill] sm:$0xff] %v7197_v24  ;;  %v7200_v30 = vld [vmem:[#allocation8 + $0x3a0] sm:$0xff]  ;;  %v7203_v63 = vld [vmem:[#allocation8 + $0x3b0] sm:$0xff] }
 0x728   :  { %2478 = vmatpush2.msra.mxu0 %v7188_v46  ;;  %2549 = vmatpush2.msra.mxu1 %v7191_v42  ;;  %9202 = vst [vmem:[#allocation104_spill] sm:$0xff] %v7200_v30  ;;  %9203 = vst [vmem:[#allocation105_spill] sm:$0xff] %v7203_v63  ;;  %v7206_v46 = vld [vmem:[#allocation8 + $0x388] sm:$0xff]  ;;  %v7209_v42 = vld [vmem:[#allocation8 + $0x398] sm:$0xff] }
 0x729   :  { %2479 = vmatprep.subr.mxu0 %v7194_v12  ;;  %2550 = vmatprep.subr.mxu1 %v7197_v24  ;;  %9204 = vst [vmem:[#allocation106_spill] sm:$0xff] %v7206_v46  ;;  %9205 = vst [vmem:[#allocation107_spill] sm:$0xff] %v7209_v42  ;;  %v7212_v12 = vld [vmem:[#allocation8 + $0x380] sm:$0xff]  ;;  %v7215_v24 = vld [vmem:[#allocation8 + $0x390] sm:$0xff] }
 0x72a   :  { %2480 = vmatpush2.msra.mxu0 %v7200_v30  ;;  %2551 = vmatpush2.msra.mxu1 %v7203_v63  ;;  %9206 = vst [vmem:[#allocation108_spill] sm:$0xff] %v7212_v12  ;;  %9207 = vst [vmem:[#allocation109_spill] sm:$0xff] %v7215_v24  ;;  %v7218_v30 = vld [vmem:[#allocation8 + $0x368] sm:$0xff]  ;;  %v7221_v63 = vld [vmem:[#allocation8 + $0x378] sm:$0xff] }
 0x72b   :  { %2481 = vmatprep.subr.mxu0 %v7206_v46  ;;  %2552 = vmatprep.subr.mxu1 %v7209_v42  ;;  %9208 = vst [vmem:[#allocation110_spill] sm:$0xff] %v7218_v30  ;;  %9209 = vst [vmem:[#allocation111_spill] sm:$0xff] %v7221_v63  ;;  %v7224_v46 = vld [vmem:[#allocation8 + $0x360] sm:$0xff]  ;;  %v7227_v42 = vld [vmem:[#allocation8 + $0x370] sm:$0xff] }
 0x72c   :  { %2482 = vmatpush2.msra.mxu0 %v7212_v12  ;;  %2553 = vmatpush2.msra.mxu1 %v7215_v24  ;;  %9210 = vst [vmem:[#allocation112_spill] sm:$0xff] %v7224_v46  ;;  %9211 = vst [vmem:[#allocation113_spill] sm:$0xff] %v7227_v42  ;;  %v7230_v12 = vld [vmem:[#allocation8 + $0x348] sm:$0xff]  ;;  %v7233_v24 = vld [vmem:[#allocation8 + $0x358] sm:$0xff] }
 0x72d   :  { %2483 = vmatprep.subr.mxu0 %v7218_v30  ;;  %2554 = vmatprep.subr.mxu1 %v7221_v63  ;;  %9212 = vst [vmem:[#allocation114_spill] sm:$0xff] %v7230_v12  ;;  %9213 = vst [vmem:[#allocation115_spill] sm:$0xff] %v7233_v24  ;;  %v7236_v30 = vld [vmem:[#allocation8 + $0x340] sm:$0xff]  ;;  %v7239_v63 = vld [vmem:[#allocation8 + $0x350] sm:$0xff] }
 0x72e   :  { %2484 = vmatpush2.msra.mxu0 %v7224_v46  ;;  %2555 = vmatpush2.msra.mxu1 %v7227_v42  ;;  %9214 = vst [vmem:[#allocation116_spill] sm:$0xff] %v7236_v30  ;;  %9215 = vst [vmem:[#allocation117_spill] sm:$0xff] %v7239_v63  ;;  %v7242_v46 = vld [vmem:[#allocation8 + $0x328] sm:$0xff]  ;;  %v7245_v42 = vld [vmem:[#allocation8 + $0x338] sm:$0xff] }
 0x72f   :  { %2485 = vmatprep.subr.mxu0 %v7230_v12  ;;  %2556 = vmatprep.subr.mxu1 %v7233_v24  ;;  %9216 = vst [vmem:[#allocation118_spill] sm:$0xff] %v7242_v46  ;;  %9217 = vst [vmem:[#allocation119_spill] sm:$0xff] %v7245_v42  ;;  %v7248_v12 = vld [vmem:[#allocation8 + $0x320] sm:$0xff]  ;;  %v7251_v24 = vld [vmem:[#allocation8 + $0x330] sm:$0xff] }
 0x730   :  { %2486 = vmatpush2.msra.mxu0 %v7236_v30  ;;  %2557 = vmatpush2.msra.mxu1 %v7239_v63  ;;  %9218 = vst [vmem:[#allocation120_spill] sm:$0xff] %v7248_v12  ;;  %9219 = vst [vmem:[#allocation121_spill] sm:$0xff] %v7251_v24  ;;  %v7254_v30 = vld [vmem:[#allocation8 + $0x308] sm:$0xff]  ;;  %v7257_v63 = vld [vmem:[#allocation8 + $0x318] sm:$0xff] }
 0x731   :  { %2487 = vmatprep.subr.mxu0 %v7242_v46  ;;  %2558 = vmatprep.subr.mxu1 %v7245_v42  ;;  %9220 = vst [vmem:[#allocation122_spill] sm:$0xff] %v7254_v30  ;;  %9221 = vst [vmem:[#allocation123_spill] sm:$0xff] %v7257_v63  ;;  %v7260_v46 = vld [vmem:[#allocation8 + $0x300] sm:$0xff]  ;;  %v7263_v42 = vld [vmem:[#allocation8 + $0x310] sm:$0xff] }
 0x732   :  { %2488 = vmatpush2.msra.mxu0 %v7248_v12  ;;  %2559 = vmatpush2.msra.mxu1 %v7251_v24  ;;  %9222 = vst [vmem:[#allocation124_spill] sm:$0xff] %v7260_v46  ;;  %9223 = vst [vmem:[#allocation125_spill] sm:$0xff] %v7263_v42  ;;  %v7266_v12 = vld [vmem:[#allocation8 + $0x2e8] sm:$0xff]  ;;  %v7269_v24 = vld [vmem:[#allocation8 + $0x2f8] sm:$0xff] }
 0x733   :  { %2489 = vmatprep.subr.mxu0 %v7254_v30  ;;  %2560 = vmatprep.subr.mxu1 %v7257_v63  ;;  %9224 = vst [vmem:[#allocation126_spill] sm:$0xff] %v7266_v12  ;;  %9225 = vst [vmem:[#allocation127_spill] sm:$0xff] %v7269_v24  ;;  %v7272_v30 = vld [vmem:[#allocation8 + $0x2e0] sm:$0xff]  ;;  %v7275_v63 = vld [vmem:[#allocation8 + $0x2f0] sm:$0xff] }
 0x734   :  { %2490 = vmatpush2.msra.mxu0 %v7260_v46  ;;  %2561 = vmatpush2.msra.mxu1 %v7263_v42  ;;  %9226 = vst [vmem:[#allocation128_spill] sm:$0xff] %v7272_v30  ;;  %9227 = vst [vmem:[#allocation129_spill] sm:$0xff] %v7275_v63  ;;  %v7278_v46 = vld [vmem:[#allocation8 + $0x2c8] sm:$0xff]  ;;  %v7281_v42 = vld [vmem:[#allocation8 + $0x2d8] sm:$0xff] }
 0x735   :  { %2491 = vmatprep.subr.mxu0 %v7266_v12  ;;  %2562 = vmatprep.subr.mxu1 %v7269_v24  ;;  %9228 = vst [vmem:[#allocation130_spill] sm:$0xff] %v7278_v46  ;;  %9229 = vst [vmem:[#allocation131_spill] sm:$0xff] %v7281_v42  ;;  %v7284_v12 = vld [vmem:[#allocation8 + $0x2c0] sm:$0xff]  ;;  %v7287_v24 = vld [vmem:[#allocation8 + $0x2d0] sm:$0xff] }
 0x736   :  { %2492 = vmatpush2.msra.mxu0 %v7272_v30  ;;  %2563 = vmatpush2.msra.mxu1 %v7275_v63  ;;  %9230 = vst [vmem:[#allocation132_spill] sm:$0xff] %v7284_v12  ;;  %9231 = vst [vmem:[#allocation133_spill] sm:$0xff] %v7287_v24  ;;  %v7290_v30 = vld [vmem:[#allocation8 + $0x2a8] sm:$0xff]  ;;  %v7293_v63 = vld [vmem:[#allocation8 + $0x2b8] sm:$0xff] }
 0x737   :  { %2493 = vmatprep.subr.mxu0 %v7278_v46  ;;  %2564 = vmatprep.subr.mxu1 %v7281_v42  ;;  %9232 = vst [vmem:[#allocation134_spill] sm:$0xff] %v7290_v30  ;;  %9233 = vst [vmem:[#allocation135_spill] sm:$0xff] %v7293_v63  ;;  %v7296_v46 = vld [vmem:[#allocation8 + $0x2a0] sm:$0xff]  ;;  %v7299_v42 = vld [vmem:[#allocation8 + $0x2b0] sm:$0xff] }
 0x738   :  { %2494 = vmatpush2.msra.mxu0 %v7284_v12  ;;  %2565 = vmatpush2.msra.mxu1 %v7287_v24  ;;  %9234 = vst [vmem:[#allocation136_spill] sm:$0xff] %v7296_v46  ;;  %9235 = vst [vmem:[#allocation137_spill] sm:$0xff] %v7299_v42  ;;  %v7302_v12 = vld [vmem:[#allocation8 + $0x288] sm:$0xff]  ;;  %v7305_v24 = vld [vmem:[#allocation8 + $0x298] sm:$0xff] }
 0x739   :  { %2495 = vmatprep.subr.mxu0 %v7290_v30  ;;  %2566 = vmatprep.subr.mxu1 %v7293_v63  ;;  %9236 = vst [vmem:[#allocation138_spill] sm:$0xff] %v7302_v12  ;;  %9237 = vst [vmem:[#allocation139_spill] sm:$0xff] %v7305_v24  ;;  %v7308_v30 = vld [vmem:[#allocation8 + $0x280] sm:$0xff]  ;;  %v7311_v63 = vld [vmem:[#allocation8 + $0x290] sm:$0xff] }
 0x73a   :  { %2496 = vmatpush2.msra.mxu0 %v7296_v46  ;;  %2567 = vmatpush2.msra.mxu1 %v7299_v42  ;;  %9238 = vst [vmem:[#allocation140_spill] sm:$0xff] %v7308_v30  ;;  %9239 = vst [vmem:[#allocation141_spill] sm:$0xff] %v7311_v63  ;;  %v7314_v46 = vld [vmem:[#allocation8 + $0x268] sm:$0xff]  ;;  %v7317_v42 = vld [vmem:[#allocation8 + $0x278] sm:$0xff] }
 0x73b   :  { %2497 = vmatprep.subr.mxu0 %v7302_v12  ;;  %2568 = vmatprep.subr.mxu1 %v7305_v24  ;;  %9240 = vst [vmem:[#allocation142_spill] sm:$0xff] %v7314_v46  ;;  %9241 = vst [vmem:[#allocation143_spill] sm:$0xff] %v7317_v42  ;;  %v7320_v12 = vld [vmem:[#allocation8 + $0x260] sm:$0xff]  ;;  %v7323_v24 = vld [vmem:[#allocation8 + $0x270] sm:$0xff] }
 0x73c   :  { %2498 = vmatpush2.msra.mxu0 %v7308_v30  ;;  %2569 = vmatpush2.msra.mxu1 %v7311_v63  ;;  %9242 = vst [vmem:[#allocation144_spill] sm:$0xff] %v7320_v12  ;;  %9243 = vst [vmem:[#allocation145_spill] sm:$0xff] %v7323_v24  ;;  %v7326_v30 = vld [vmem:[#allocation8 + $0x248] sm:$0xff]  ;;  %v7329_v63 = vld [vmem:[#allocation8 + $0x258] sm:$0xff] }
 0x73d   :  { %2499 = vmatprep.subr.mxu0 %v7314_v46  ;;  %2570 = vmatprep.subr.mxu1 %v7317_v42  ;;  %9244 = vst [vmem:[#allocation146_spill] sm:$0xff] %v7326_v30  ;;  %9245 = vst [vmem:[#allocation147_spill] sm:$0xff] %v7329_v63  ;;  %v7332_v46 = vld [vmem:[#allocation8 + $0x240] sm:$0xff]  ;;  %v7335_v42 = vld [vmem:[#allocation8 + $0x250] sm:$0xff] }
 0x73e   :  { %2500 = vmatpush2.msra.mxu0 %v7320_v12  ;;  %2571 = vmatpush2.msra.mxu1 %v7323_v24  ;;  %9246 = vst [vmem:[#allocation148_spill] sm:$0xff] %v7332_v46  ;;  %9247 = vst [vmem:[#allocation149_spill] sm:$0xff] %v7335_v42  ;;  %v7338_v12 = vld [vmem:[#allocation8 + $0x228] sm:$0xff]  ;;  %v7341_v24 = vld [vmem:[#allocation8 + $0x238] sm:$0xff] }
 0x73f   :  { %2501 = vmatprep.subr.mxu0 %v7326_v30  ;;  %2572 = vmatprep.subr.mxu1 %v7329_v63  ;;  %9248 = vst [vmem:[#allocation150_spill] sm:$0xff] %v7338_v12  ;;  %9249 = vst [vmem:[#allocation151_spill] sm:$0xff] %v7341_v24  ;;  %v7344_v30 = vld [vmem:[#allocation8 + $0x220] sm:$0xff]  ;;  %v7347_v63 = vld [vmem:[#allocation8 + $0x230] sm:$0xff] }
 0x740   :  { %2502 = vmatpush2.msra.mxu0 %v7332_v46  ;;  %2573 = vmatpush2.msra.mxu1 %v7335_v42  ;;  %9250 = vst [vmem:[#allocation152_spill] sm:$0xff] %v7344_v30  ;;  %9251 = vst [vmem:[#allocation153_spill] sm:$0xff] %v7347_v63  ;;  %v7350_v46 = vld [vmem:[#allocation8 + $0x208] sm:$0xff]  ;;  %v7353_v42 = vld [vmem:[#allocation8 + $0x218] sm:$0xff] }
 0x741   :  { %2503 = vmatprep.subr.mxu0 %v7338_v12  ;;  %2574 = vmatprep.subr.mxu1 %v7341_v24  ;;  %9252 = vst [vmem:[#allocation154_spill] sm:$0xff] %v7350_v46  ;;  %9253 = vst [vmem:[#allocation155_spill] sm:$0xff] %v7353_v42  ;;  %v7356_v12 = vld [vmem:[#allocation8 + $0x200] sm:$0xff]  ;;  %v7359_v24 = vld [vmem:[#allocation8 + $0x210] sm:$0xff] }
 0x742   :  { %2504 = vmatpush2.msra.mxu0 %v7344_v30  ;;  %2575 = vmatpush2.msra.mxu1 %v7347_v63  ;;  %9254 = vst [vmem:[#allocation156_spill] sm:$0xff] %v7356_v12  ;;  %9255 = vst [vmem:[#allocation157_spill] sm:$0xff] %v7359_v24 }
 0x743   :  { %2505 = vmatprep.subr.mxu0 %v7350_v46  ;;  %2576 = vmatprep.subr.mxu1 %v7353_v42 }
 0x744   :  { %2506 = vmatpush2.msra.mxu0 %v7356_v12  ;;  %2577 = vmatpush2.msra.mxu1 %v7359_v24 }
 0x745   :  { %2607 = vmatprep.subr.mxu0 %v6794_v16  ;;  %3476 = vmatprep.subr.mxu1 %v8397_v61  ;;  %v7369_v16 = vld [vmem:[%s7678_s1] sm:$0x7]  ;;  %s3073_s1 = sld [smem:[#allocation3 + $0x7]] }
 0x746   :  { %9256 = vst [vmem:[#allocation158_spill] sm:$0xff] %v7369_v16 }
 0x7a3   :  { %v2179_v63 = vpop.f32.mrf.mxu0  ;;  %v2250_v24 = vpop.f32.mrf.mxu1 }
 0x7a4   :  { %v2180_v30 = vadd.f32 %v2179_v63, %v9111_v53  ;;  %v2275_v63 = vmul.f32 %v7369_v16, %v2274_v7  ;;  %v2251_v17 = vadd.f32 %v2250_v24, %v5212_v37 }
 0x7a5   :  { %v2181_v11 = vpop.f32.mrf.mxu0 }
 0x7a6   :  { %v3066_v46 = vmul.f32 -1.442695, %v2180_v30  ;;  %v2182_v42 = vadd.f32 %v2181_v11, %v9112_v20  ;;  %v2252_v30 = vpop.f32.mrf.mxu1  ;;  %v7375_v11 = vld [vmem:[%s7679_s2] sm:$0x7] }
 0x7a7   :  { %9257 = vst [vmem:[#allocation159_spill] sm:$0xff] %v7375_v11 }
 0x7a8   :  { %3666 = vpow2.f32 %v3066_v46  ;;  %v3067_v13 = vmul.f32 -1.442695, %v2182_v42  ;;  %v2276_v46 = vadd.f32 %v7375_v11, %v2275_v63 }
 0x7aa   :  { %3668 = vpow2.f32 %v3067_v13  ;;  %v2253_v13 = vadd.f32 %v2252_v30, %v9115_v59  ;;  %v2426_v30 = vrot.slane %v2276_v46, 1 }
 0x7b5   :  { %v3667_v14 = vpop.eup %3666 }
 0x7b6   :  { %v2258_v12 = vadd.f32 1.0, %v3667_v14 }
 0x7b7   :  { %v3669_v14 = vpop.eup %3668 }
 0x7b8   :  { %3670 = vrcp.f32 %v2258_v12  ;;  %v2264_v5 = vadd.f32 1.0, %v3669_v14 }
 0x7c4   :  { %v2343_v12 = vpop.f32.mrf.mxu0  ;;  %v2414_v42 = vpop.f32.mrf.mxu1 }
 0x7c5   :  { %v3671_v20 = vpop.eup %3670  ;;  %v2344_v53 = vadd.f32 %v2343_v12, %v8540_v49 }
 0x7c6   :  { %v2267_v15 = vmul.f32 %v3671_v20, %v2253_v13  ;;  %v3475_v7 = vpop.f32.mrf.mxu1  ;;  %v2345_v56 = vpop.f32.mrf.mxu0  ;;  %v9295_v13 = vld [vmem:[#allocation55_spill] sm:$0xff] }
 0x7c7   :  { %v2418_v16 = vadd.f32 %v2344_v53, %v2276_v46  ;;  %v2346_v63 = vadd.f32 %v2345_v56, %v8541_v1  ;;  %v2415_v56 = vadd.f32 %v2414_v42, %v4987_v55  ;;  %v9296_v42 = vld [vmem:[#allocation56_spill] sm:$0xff]  ;;  %v9297_v7 = vld [vmem:[#allocation57_spill] sm:$0xff] }
 0x7c8   :  { %v2268_v60 = vadd.f32 %v2267_v15, %v2251_v17 }
 0x7c9   :  { %v3069_v48 = vmul.f32 -1.442695, %v2418_v16  ;;  %v2428_v59 = vadd.f32 %v2426_v30, %v2346_v63  ;;  %v9298_v63 = vld [vmem:[#allocation58_spill] sm:$0xff]  ;;  %v9299_v30 = vld [vmem:[#allocation59_spill] sm:$0xff] }
 0x7ca   :  { %3672 = vtanh.f32 %v2268_v60  ;;  %v2436_v60 = vrot.slane %v2276_v46, 2  ;;  %v9294_v46 = vld [vmem:[#allocation54_spill] sm:$0xff] }
 0x7cb   :  { %3674 = vpow2.f32 %v3069_v48  ;;  %v3070_v11 = vmul.f32 -1.442695, %v2428_v59 }
 0x7cc   :  { %3676 = vrcp.f32 %v2264_v5 }
 0x7cd   :  { %3678 = vpow2.f32 %v3070_v11 }
 0x7d7   :  { %v3673_v51 = vpop.eup %3672 }
 0x7d8   :  { %v3675_v62 = vpop.eup %3674  ;;  %v2270_v12 = vsub.f32 %v6807_v9, %v3673_v51 }
 0x7d9   :  { %v3677_v24 = vpop.eup %3676  ;;  %v2422_v20 = vadd.f32 1.0, %v3675_v62 }
 0x7da   :  { %v2271_v53 = vmul.f32 %v3677_v24, %v2270_v12  ;;  %v3679_v48 = vpop.eup %3678  ;;  %v9300_v12 = vld [vmem:[#allocation60_spill] sm:$0xff]  ;;  %v9301_v24 = vld [vmem:[#allocation61_spill] sm:$0xff] }
 0x7db   :  { %3680 = vrcp.f32 %v2422_v20  ;;  %v2432_v16 = vadd.f32 1.0, %v3679_v48  ;;  %v9302_v20 = vld [vmem:[#allocation62_spill] sm:$0xff]  ;;  %v9304_v48 = vld [vmem:[#allocation64_spill] sm:$0xff] }
 0x7dc   :  { %v7383_v15 = vadd.f32 %v3673_v51, %v2271_v53  ;;  %v9303_v53 = vld [vmem:[#allocation63_spill] sm:$0xff] }
 0x7de   :  { %2507 = vmatprep.mubr.f32.mxu0 %v7383_v15  ;;  %2578 = vmatprep.mubr.f32.mxu1 %v7383_v15 }
 0x7e8   :  { %v3681_v59 = vpop.eup %3680 }
 0x7e9   :  { %v2435_v5 = vmul.f32 %v3681_v59, %v2415_v56  ;;  %v9305_v56 = vld [vmem:[#allocation65_spill] sm:$0xff]  ;;  %v9307_v59 = vld [vmem:[#allocation67_spill] sm:$0xff] }
 0x7eb   :  { %v2438_v17 = vadd.f32 %v2436_v60, %v2435_v5  ;;  %v9306_v60 = vld [vmem:[#allocation66_spill] sm:$0xff]  ;;  %v9308_v5 = vld [vmem:[#allocation68_spill] sm:$0xff] }
 0x7ed   :  { %3682 = vtanh.f32 %v2438_v17  ;;  %v9309_v17 = vld [vmem:[#allocation69_spill] sm:$0xff] }
 0x7ee   :  { %3684 = vrcp.f32 %v2432_v16  ;;  %v9310_v16 = vld [vmem:[#allocation70_spill] sm:$0xff] }
 0x7fa   :  { %v3683_v9 = vpop.eup %3682 }
 0x7fb   :  { %v2440_v62 = vsub.f32 %v6813_v35, %v3683_v9  ;;  %v3685_v11 = vpop.eup %3684  ;;  %v9258_v35 = vld [vmem:[#allocation17_spill] sm:$0xff] }
 0x7fd   :  { %v2441_v51 = vmul.f32 %v3685_v11, %v2440_v62  ;;  %v9312_v62 = vld [vmem:[#allocation72_spill] sm:$0xff]  ;;  %v9313_v11 = vld [vmem:[#allocation73_spill] sm:$0xff] }
 0x7ff   :  { %v7389_v14 = vadd.f32 %v3683_v9, %v2441_v51  ;;  %v9311_v9 = vld [vmem:[#allocation71_spill] sm:$0xff]  ;;  %v9314_v51 = vld [vmem:[#allocation74_spill] sm:$0xff] }
 0x801   :  { %2508 = vmatmul.mubr.f32.vlgmr.msra.gmra.mxu0 %v7389_v14  ;;  %2579 = vmatmul.mubr.f32.vlgmr.msra.gmra.mxu1 %v7389_v14 }
 0x802   :  { %2608 = vmatpush1.msra.mxu0 %v6817_v2  ;;  %3477 = vmatpush3.msra.mxu1 %v6820_v6  ;;  %v9259_v2 = vld [vmem:[#allocation22_spill] sm:$0xff] }
 0x803   :  { %2609 = vmatprep.subr.mxu0 %v6823_v4  ;;  %3478 = vmatprep.subr.mxu1 %v8397_v61  ;;  %v9260_v6 = vld [vmem:[#allocation18_spill] sm:$0xff]  ;;  %v9261_v4 = vld [vmem:[#allocation23_spill] sm:$0xff] }
 0x804   :  { %2610 = vmatpush1.msra.mxu0 %v6827_v34  ;;  %3479 = vmatpush3.msra.mxu1 %v6830_v10  ;;  %v9262_v34 = vld [vmem:[#allocation19_spill] sm:$0xff]  ;;  %v9263_v10 = vld [vmem:[#allocation24_spill] sm:$0xff] }
 0x805   :  { %2611 = vmatprep.subr.mxu0 %v6833_v44  ;;  %3480 = vmatprep.subr.mxu1 %v8397_v61  ;;  %v9264_v44 = vld [vmem:[#allocation20_spill] sm:$0xff] }
 0x806   :  { %2612 = vmatpush1.msra.mxu0 %v6837_v18  ;;  %3481 = vmatpush3.msra.mxu1 %v6840_v21  ;;  %v9265_v18 = vld [vmem:[#allocation25_spill] sm:$0xff]  ;;  %v9266_v21 = vld [vmem:[#allocation26_spill] sm:$0xff] }
 0x807   :  { %2613 = vmatprep.subr.mxu0 %v6843_v22  ;;  %3482 = vmatprep.subr.mxu1 %v8397_v61  ;;  %v9267_v22 = vld [vmem:[#allocation27_spill] sm:$0xff] }
 0x808   :  { %2614 = vmatpush1.msra.mxu0 %v6847_v0  ;;  %3483 = vmatpush3.msra.mxu1 %v6850_v43  ;;  %v9268_v0 = vld [vmem:[#allocation28_spill] sm:$0xff]  ;;  %v9269_v43 = vld [vmem:[#allocation29_spill] sm:$0xff] }
 0x809   :  { %2615 = vmatprep.subr.mxu0 %v6853_v36  ;;  %3484 = vmatprep.subr.mxu1 %v8397_v61  ;;  %v9270_v36 = vld [vmem:[#allocation30_spill] sm:$0xff] }
 0x80a   :  { %2616 = vmatpush1.msra.mxu0 %v6857_v45  ;;  %3485 = vmatpush3.msra.mxu1 %v6860_v33  ;;  %v9271_v45 = vld [vmem:[#allocation31_spill] sm:$0xff]  ;;  %v9272_v33 = vld [vmem:[#allocation32_spill] sm:$0xff] }
 0x80b   :  { %2617 = vmatprep.subr.mxu0 %v6863_v41  ;;  %3486 = vmatprep.subr.mxu1 %v8397_v61  ;;  %v9273_v41 = vld [vmem:[#allocation33_spill] sm:$0xff] }
 0x80c   :  { %2618 = vmatpush1.msra.mxu0 %v6867_v3  ;;  %3487 = vmatpush3.msra.mxu1 %v6870_v39  ;;  %v9274_v3 = vld [vmem:[#allocation34_spill] sm:$0xff]  ;;  %v9275_v39 = vld [vmem:[#allocation35_spill] sm:$0xff] }
 0x80d   :  { %2619 = vmatprep.subr.mxu0 %v6873_v40  ;;  %3488 = vmatprep.subr.mxu1 %v8397_v61  ;;  %v9276_v40 = vld [vmem:[#allocation36_spill] sm:$0xff] }
 0x80e   :  { %2620 = vmatpush1.msra.mxu0 %v6877_v57  ;;  %3489 = vmatpush3.msra.mxu1 %v6880_v27  ;;  %v9277_v57 = vld [vmem:[#allocation37_spill] sm:$0xff]  ;;  %v9278_v27 = vld [vmem:[#allocation38_spill] sm:$0xff] }
 0x80f   :  { %2621 = vmatprep.subr.mxu0 %v6883_v26  ;;  %3490 = vmatprep.subr.mxu1 %v8397_v61  ;;  %v9279_v26 = vld [vmem:[#allocation39_spill] sm:$0xff] }
 0x810   :  { %2622 = vmatpush1.msra.mxu0 %v6887_v28  ;;  %3491 = vmatpush3.msra.mxu1 %v6890_v19  ;;  %v9280_v28 = vld [vmem:[#allocation40_spill] sm:$0xff]  ;;  %v9281_v19 = vld [vmem:[#allocation41_spill] sm:$0xff] }
 0x811   :  { %2623 = vmatprep.subr.mxu0 %v6893_v29  ;;  %3492 = vmatprep.subr.mxu1 %v8397_v61  ;;  %v9282_v29 = vld [vmem:[#allocation42_spill] sm:$0xff] }
 0x812   :  { %2624 = vmatpush1.msra.mxu0 %v6897_v32  ;;  %3493 = vmatpush3.msra.mxu1 %v6900_v54  ;;  %v9283_v32 = vld [vmem:[#allocation43_spill] sm:$0xff]  ;;  %v9284_v54 = vld [vmem:[#allocation44_spill] sm:$0xff] }
 0x813   :  { %2625 = vmatprep.subr.mxu0 %v6903_v31  ;;  %3494 = vmatprep.subr.mxu1 %v8397_v61  ;;  %v9285_v31 = vld [vmem:[#allocation45_spill] sm:$0xff] }
 0x814   :  { %2626 = vmatpush1.msra.mxu0 %v6907_v23  ;;  %3495 = vmatpush3.msra.mxu1 %v6910_v38  ;;  %v9286_v23 = vld [vmem:[#allocation46_spill] sm:$0xff]  ;;  %v9287_v38 = vld [vmem:[#allocation47_spill] sm:$0xff] }
 0x815   :  { %2627 = vmatprep.subr.mxu0 %v6913_v25  ;;  %3496 = vmatprep.subr.mxu1 %v8397_v61  ;;  %v9288_v25 = vld [vmem:[#allocation48_spill] sm:$0xff] }
 0x816   :  { %2628 = vmatpush1.msra.mxu0 %v6917_v47  ;;  %3497 = vmatpush3.msra.mxu1 %v6920_v50  ;;  %v9289_v47 = vld [vmem:[#allocation49_spill] sm:$0xff]  ;;  %v9290_v50 = vld [vmem:[#allocation50_spill] sm:$0xff] }
 0x817   :  { %2629 = vmatprep.subr.mxu0 %v6923_v52  ;;  %3498 = vmatprep.subr.mxu1 %v8397_v61  ;;  %v9291_v52 = vld [vmem:[#allocation51_spill] sm:$0xff] }
 0x818   :  { %2630 = vmatpush1.msra.mxu0 %v6927_v58  ;;  %3499 = vmatpush3.msra.mxu1 %v6930_v8  ;;  %v9292_v58 = vld [vmem:[#allocation52_spill] sm:$0xff]  ;;  %v9293_v8 = vld [vmem:[#allocation53_spill] sm:$0xff] }
 0x819   :  { %2631 = vmatprep.subr.mxu0 %v9258_v35  ;;  %3500 = vmatprep.subr.mxu1 %v8397_v61  ;;  %v9315_v35 = vld [vmem:[#allocation75_spill] sm:$0xff] }
 0x81a   :  { %2632 = vmatpush1.msra.mxu0 %v9259_v2  ;;  %3501 = vmatpush3.msra.mxu1 %v9260_v6  ;;  %v9316_v2 = vld [vmem:[#allocation76_spill] sm:$0xff]  ;;  %v9317_v6 = vld [vmem:[#allocation77_spill] sm:$0xff] }
 0x81b   :  { %2633 = vmatprep.subr.mxu0 %v9261_v4  ;;  %3502 = vmatprep.subr.mxu1 %v8397_v61  ;;  %v9318_v4 = vld [vmem:[#allocation78_spill] sm:$0xff] }
 0x81c   :  { %2634 = vmatpush1.msra.mxu0 %v9262_v34  ;;  %3503 = vmatpush3.msra.mxu1 %v9263_v10  ;;  %v9319_v34 = vld [vmem:[#allocation79_spill] sm:$0xff]  ;;  %v9320_v10 = vld [vmem:[#allocation80_spill] sm:$0xff] }
 0x81d   :  { %2635 = vmatprep.subr.mxu0 %v9264_v44  ;;  %3504 = vmatprep.subr.mxu1 %v8397_v61  ;;  %v9321_v44 = vld [vmem:[#allocation81_spill] sm:$0xff] }
 0x81e   :  { %2636 = vmatpush1.msra.mxu0 %v9265_v18  ;;  %3505 = vmatpush3.msra.mxu1 %v9266_v21  ;;  %v9322_v18 = vld [vmem:[#allocation82_spill] sm:$0xff]  ;;  %v9323_v21 = vld [vmem:[#allocation83_spill] sm:$0xff] }
 0x81f   :  { %2637 = vmatprep.subr.mxu0 %v9267_v22  ;;  %3506 = vmatprep.subr.mxu1 %v8397_v61  ;;  %v9324_v22 = vld [vmem:[#allocation84_spill] sm:$0xff] }
 0x820   :  { %2638 = vmatpush1.msra.mxu0 %v9268_v0  ;;  %2671 = vmatprep.mubr.f32.mxu0 %v8397_v61  ;;  %v9325_v0 = vld [vmem:[#allocation85_spill] sm:$0xff] }
 0x821   :  { %3507 = vmatpush3.msra.mxu1 %v9269_v43  ;;  %3508 = vmatprep.mubr.msk.f32.mxu1 %vm4338_vm0, %v8397_v61  ;;  %v9326_v43 = vld [vmem:[#allocation86_spill] sm:$0xff] }
 0x822   :  { %2672 = vmatmul.mubr.f32.vlgmr.msra.gmra.mxu0 %v7389_v14  ;;  %3509 = vmatmul.mubr.f32.vlgmr.msra.gmra.mxu1 %v7389_v14 }
 0x823   :  { %2773 = vmatprep.subr.mxu0 %v9270_v36  ;;  %2844 = vmatprep.subr.mxu1 %v9271_v45  ;;  %v9327_v36 = vld [vmem:[#allocation87_spill] sm:$0xff]  ;;  %v9328_v45 = vld [vmem:[#allocation88_spill] sm:$0xff] }
 0x824   :  { %2774 = vmatpush1.msra.mxu0 %v9272_v33  ;;  %2845 = vmatpush1.msra.mxu1 %v9273_v41  ;;  %v9329_v33 = vld [vmem:[#allocation89_spill] sm:$0xff]  ;;  %v9330_v41 = vld [vmem:[#allocation90_spill] sm:$0xff] }
 0x825   :  { %2775 = vmatprep.subr.mxu0 %v9274_v3  ;;  %2846 = vmatprep.subr.mxu1 %v9275_v39  ;;  %v9331_v3 = vld [vmem:[#allocation91_spill] sm:$0xff]  ;;  %v9332_v39 = vld [vmem:[#allocation92_spill] sm:$0xff] }
 0x826   :  { %2776 = vmatpush1.msra.mxu0 %v9276_v40  ;;  %2847 = vmatpush1.msra.mxu1 %v9277_v57  ;;  %v9333_v40 = vld [vmem:[#allocation93_spill] sm:$0xff]  ;;  %v9334_v57 = vld [vmem:[#allocation94_spill] sm:$0xff] }
 0x827   :  { %2777 = vmatprep.subr.mxu0 %v9278_v27  ;;  %2848 = vmatprep.subr.mxu1 %v9279_v26  ;;  %v9335_v27 = vld [vmem:[#allocation95_spill] sm:$0xff]  ;;  %v9336_v26 = vld [vmem:[#allocation96_spill] sm:$0xff] }
 0x828   :  { %2778 = vmatpush1.msra.mxu0 %v9280_v28  ;;  %2849 = vmatpush1.msra.mxu1 %v9281_v19  ;;  %v9337_v28 = vld [vmem:[#allocation97_spill] sm:$0xff]  ;;  %v9338_v19 = vld [vmem:[#allocation98_spill] sm:$0xff] }
 0x829   :  { %2779 = vmatprep.subr.mxu0 %v9282_v29  ;;  %2850 = vmatprep.subr.mxu1 %v9283_v32  ;;  %v9339_v29 = vld [vmem:[#allocation99_spill] sm:$0xff]  ;;  %v9340_v32 = vld [vmem:[#allocation100_spill] sm:$0xff] }
 0x82a   :  { %2780 = vmatpush1.msra.mxu0 %v9284_v54  ;;  %2851 = vmatpush1.msra.mxu1 %v9285_v31  ;;  %v9341_v54 = vld [vmem:[#allocation101_spill] sm:$0xff]  ;;  %v9342_v31 = vld [vmem:[#allocation102_spill] sm:$0xff] }
 0x82b   :  { %2781 = vmatprep.subr.mxu0 %v9286_v23  ;;  %2852 = vmatprep.subr.mxu1 %v9287_v38  ;;  %v9343_v23 = vld [vmem:[#allocation103_spill] sm:$0xff]  ;;  %v9344_v38 = vld [vmem:[#allocation104_spill] sm:$0xff] }
 0x82c   :  { %2782 = vmatpush1.msra.mxu0 %v9288_v25  ;;  %2853 = vmatpush1.msra.mxu1 %v9289_v47  ;;  %v9345_v25 = vld [vmem:[#allocation105_spill] sm:$0xff]  ;;  %v9346_v47 = vld [vmem:[#allocation106_spill] sm:$0xff] }
 0x82d   :  { %2783 = vmatprep.subr.mxu0 %v9290_v50  ;;  %2854 = vmatprep.subr.mxu1 %v9291_v52  ;;  %v9347_v50 = vld [vmem:[#allocation107_spill] sm:$0xff]  ;;  %v9348_v52 = vld [vmem:[#allocation108_spill] sm:$0xff] }
 0x82e   :  { %2784 = vmatpush1.msra.mxu0 %v9292_v58  ;;  %2855 = vmatpush1.msra.mxu1 %v9293_v8  ;;  %v9349_v58 = vld [vmem:[#allocation109_spill] sm:$0xff]  ;;  %v9350_v8 = vld [vmem:[#allocation110_spill] sm:$0xff] }
 0x82f   :  { %2785 = vmatprep.subr.mxu0 %v9294_v46  ;;  %2856 = vmatprep.subr.mxu1 %v9295_v13  ;;  %v9351_v46 = vld [vmem:[#allocation111_spill] sm:$0xff]  ;;  %v9352_v13 = vld [vmem:[#allocation112_spill] sm:$0xff] }
 0x830   :  { %2786 = vmatpush1.msra.mxu0 %v9296_v42  ;;  %2857 = vmatpush1.msra.mxu1 %v9297_v7  ;;  %v9353_v42 = vld [vmem:[#allocation113_spill] sm:$0xff]  ;;  %v9354_v7 = vld [vmem:[#allocation114_spill] sm:$0xff] }
 0x831   :  { %2787 = vmatprep.subr.mxu0 %v9298_v63  ;;  %2858 = vmatprep.subr.mxu1 %v9299_v30  ;;  %v9355_v63 = vld [vmem:[#allocation115_spill] sm:$0xff]  ;;  %v9356_v30 = vld [vmem:[#allocation116_spill] sm:$0xff] }
 0x832   :  { %2788 = vmatpush1.msra.mxu0 %v9300_v12  ;;  %2859 = vmatpush1.msra.mxu1 %v9301_v24  ;;  %v9357_v12 = vld [vmem:[#allocation117_spill] sm:$0xff]  ;;  %v9358_v24 = vld [vmem:[#allocation118_spill] sm:$0xff] }
 0x833   :  { %2789 = vmatprep.subr.mxu0 %v9302_v20  ;;  %2860 = vmatprep.subr.mxu1 %v9303_v53  ;;  %v9359_v20 = vld [vmem:[#allocation119_spill] sm:$0xff]  ;;  %v9360_v53 = vld [vmem:[#allocation120_spill] sm:$0xff] }
 0x834   :  { %2790 = vmatpush1.msra.mxu0 %v9304_v48  ;;  %2861 = vmatpush1.msra.mxu1 %v9305_v56  ;;  %v9361_v48 = vld [vmem:[#allocation121_spill] sm:$0xff]  ;;  %v9362_v56 = vld [vmem:[#allocation122_spill] sm:$0xff] }
 0x835   :  { %2791 = vmatprep.subr.mxu0 %v9306_v60  ;;  %2862 = vmatprep.subr.mxu1 %v9307_v59  ;;  %v9363_v60 = vld [vmem:[#allocation123_spill] sm:$0xff]  ;;  %v9364_v59 = vld [vmem:[#allocation124_spill] sm:$0xff] }
 0x836   :  { %2792 = vmatpush1.msra.mxu0 %v9308_v5  ;;  %2863 = vmatpush1.msra.mxu1 %v9309_v17  ;;  %v9365_v5 = vld [vmem:[#allocation125_spill] sm:$0xff]  ;;  %v9366_v17 = vld [vmem:[#allocation126_spill] sm:$0xff] }
 0x837   :  { %2793 = vmatprep.subr.mxu0 %v9310_v16  ;;  %2864 = vmatprep.subr.mxu1 %v9311_v9  ;;  %v9367_v16 = vld [vmem:[#allocation127_spill] sm:$0xff]  ;;  %v9368_v9 = vld [vmem:[#allocation128_spill] sm:$0xff] }
 0x838   :  { %2794 = vmatpush1.msra.mxu0 %v9312_v62  ;;  %2865 = vmatpush1.msra.mxu1 %v9313_v11  ;;  %v9369_v62 = vld [vmem:[#allocation129_spill] sm:$0xff]  ;;  %v9370_v11 = vld [vmem:[#allocation130_spill] sm:$0xff] }
 0x839   :  { %2795 = vmatprep.subr.mxu0 %v9314_v51  ;;  %2866 = vmatprep.subr.mxu1 %v9315_v35  ;;  %v9371_v51 = vld [vmem:[#allocation131_spill] sm:$0xff]  ;;  %v9372_v35 = vld [vmem:[#allocation132_spill] sm:$0xff] }
 0x83a   :  { %2796 = vmatpush1.msra.mxu0 %v9316_v2  ;;  %2867 = vmatpush1.msra.mxu1 %v9317_v6  ;;  %v9373_v2 = vld [vmem:[#allocation133_spill] sm:$0xff]  ;;  %v9374_v6 = vld [vmem:[#allocation134_spill] sm:$0xff] }
 0x83b   :  { %2797 = vmatprep.subr.mxu0 %v9318_v4  ;;  %2868 = vmatprep.subr.mxu1 %v9319_v34  ;;  %v9375_v4 = vld [vmem:[#allocation135_spill] sm:$0xff]  ;;  %v9376_v34 = vld [vmem:[#allocation136_spill] sm:$0xff] }
 0x83c   :  { %2798 = vmatpush1.msra.mxu0 %v9320_v10  ;;  %2869 = vmatpush1.msra.mxu1 %v9321_v44  ;;  %v9377_v10 = vld [vmem:[#allocation137_spill] sm:$0xff]  ;;  %v9378_v44 = vld [vmem:[#allocation138_spill] sm:$0xff] }
 0x83d   :  { %2799 = vmatprep.subr.mxu0 %v9322_v18  ;;  %2870 = vmatprep.subr.mxu1 %v9323_v21  ;;  %v9379_v18 = vld [vmem:[#allocation139_spill] sm:$0xff]  ;;  %v9380_v21 = vld [vmem:[#allocation140_spill] sm:$0xff] }
 0x83e   :  { %2800 = vmatpush1.msra.mxu0 %v9324_v22  ;;  %2871 = vmatpush1.msra.mxu1 %v9325_v0  ;;  %v9381_v22 = vld [vmem:[#allocation141_spill] sm:$0xff]  ;;  %v9382_v0 = vld [vmem:[#allocation142_spill] sm:$0xff] }
 0x83f   :  { %2801 = vmatprep.subr.mxu0 %v9326_v43  ;;  %2872 = vmatprep.subr.mxu1 %v9327_v36  ;;  %v9383_v43 = vld [vmem:[#allocation143_spill] sm:$0xff]  ;;  %v9384_v36 = vld [vmem:[#allocation144_spill] sm:$0xff] }
 0x840   :  { %2802 = vmatpush1.msra.mxu0 %v9328_v45  ;;  %2873 = vmatpush1.msra.mxu1 %v9329_v33  ;;  %v9385_v45 = vld [vmem:[#allocation145_spill] sm:$0xff]  ;;  %v9386_v33 = vld [vmem:[#allocation146_spill] sm:$0xff] }
 0x841   :  { %2803 = vmatprep.subr.mxu0 %v9330_v41  ;;  %2874 = vmatprep.subr.mxu1 %v9331_v3  ;;  %v9387_v41 = vld [vmem:[#allocation147_spill] sm:$0xff]  ;;  %v9388_v3 = vld [vmem:[#allocation148_spill] sm:$0xff] }
 0x842   :  { %2804 = vmatpush1.msra.mxu0 %v9332_v39  ;;  %2875 = vmatpush1.msra.mxu1 %v9333_v40  ;;  %v9389_v39 = vld [vmem:[#allocation149_spill] sm:$0xff]  ;;  %v9390_v40 = vld [vmem:[#allocation150_spill] sm:$0xff] }
 0x843   :  { %2805 = vmatprep.subr.mxu0 %v9334_v57  ;;  %2876 = vmatprep.subr.mxu1 %v9335_v27  ;;  %v9391_v57 = vld [vmem:[#allocation151_spill] sm:$0xff]  ;;  %v9392_v27 = vld [vmem:[#allocation152_spill] sm:$0xff] }
 0x844   :  { %2806 = vmatpush2.msra.mxu0 %v9336_v26  ;;  %2877 = vmatpush2.msra.mxu1 %v9337_v28  ;;  %v9393_v26 = vld [vmem:[#allocation153_spill] sm:$0xff]  ;;  %v9394_v28 = vld [vmem:[#allocation154_spill] sm:$0xff] }
 0x845   :  { %2807 = vmatprep.subr.mxu0 %v9338_v19  ;;  %2878 = vmatprep.subr.mxu1 %v9339_v29  ;;  %v9395_v19 = vld [vmem:[#allocation155_spill] sm:$0xff]  ;;  %v9396_v29 = vld [vmem:[#allocation156_spill] sm:$0xff] }
 0x846   :  { %2808 = vmatpush2.msra.mxu0 %v9340_v32  ;;  %2879 = vmatpush2.msra.mxu1 %v9341_v54  ;;  %v9397_v32 = vld [vmem:[#allocation157_spill] sm:$0xff] }
 0x847   :  { %2809 = vmatprep.subr.mxu0 %v9342_v31  ;;  %2880 = vmatprep.subr.mxu1 %v9343_v23  ;;  %v9398_v31 = vld [vmem:[#allocation15_spill] sm:$0xff] }
 0x848   :  { %2810 = vmatpush2.msra.mxu0 %v9344_v38  ;;  %2881 = vmatpush2.msra.mxu1 %v9345_v25 }
 0x849   :  { %2811 = vmatprep.subr.mxu0 %v9346_v47  ;;  %2882 = vmatprep.subr.mxu1 %v9347_v50  ;;  %v9399_v47 = vld [vmem:[#allocation16_spill] sm:$0xff] }
 0x84a   :  { %2812 = vmatpush2.msra.mxu0 %v9348_v52  ;;  %2883 = vmatpush2.msra.mxu1 %v9349_v58 }
 0x84b   :  { %2813 = vmatprep.subr.mxu0 %v9350_v8  ;;  %2884 = vmatprep.subr.mxu1 %v9351_v46  ;;  %v2604_v46 = vstv %s3073_s1 }
 0x84c   :  { %2814 = vmatpush2.msra.mxu0 %v9352_v13  ;;  %2885 = vmatpush2.msra.mxu1 %v9353_v42  ;;  %v9400_v42 = vld [vmem:[#allocation158_spill] sm:$0xff] }
 0x84d   :  { %2815 = vmatprep.subr.mxu0 %v9354_v7  ;;  %2886 = vmatprep.subr.mxu1 %v9355_v63  ;;  %v2605_v7 = vmul.f32 %v9400_v42, %v2604_v46  ;;  %v2933_v46 = vld [vmem:[%s7684_s7] sm:$0xff] }
 0x84e   :  { %2816 = vmatpush2.msra.mxu0 %v9356_v30  ;;  %2887 = vmatpush2.msra.mxu1 %v9357_v12  ;;  %v9401_v30 = vld [vmem:[#allocation159_spill] sm:$0xff] }
 0x84f   :  { %2817 = vmatprep.subr.mxu0 %v9358_v24  ;;  %2888 = vmatprep.subr.mxu1 %v9359_v20  ;;  %v2606_v12 = vadd.f32 %v9401_v30, %v2605_v7  ;;  %v9402_v20 = vld [vmem:[#allocation21_spill] sm:$0xff] }
 0x850   :  { %2818 = vmatpush2.msra.mxu0 %v9360_v53  ;;  %2889 = vmatpush2.msra.mxu1 %v9361_v48 }
 0x851   :  { %2819 = vmatprep.subr.mxu0 %v9362_v56  ;;  %2890 = vmatprep.subr.mxu1 %v9363_v60 }
 0x852   :  { %2820 = vmatpush2.msra.mxu0 %v9364_v59  ;;  %2891 = vmatpush2.msra.mxu1 %v9365_v5 }
 0x853   :  { %2821 = vmatprep.subr.mxu0 %v9366_v17  ;;  %2892 = vmatprep.subr.mxu1 %v9367_v16 }
 0x854   :  { %2822 = vmatpush2.msra.mxu0 %v9368_v9  ;;  %2893 = vmatpush2.msra.mxu1 %v9369_v62 }
 0x855   :  { %2823 = vmatprep.subr.mxu0 %v9370_v11  ;;  %2894 = vmatprep.subr.mxu1 %v9371_v51 }
 0x856   :  { %2824 = vmatpush2.msra.mxu0 %v9372_v35  ;;  %2895 = vmatpush2.msra.mxu1 %v9373_v2 }
 0x857   :  { %2825 = vmatprep.subr.mxu0 %v9374_v6  ;;  %2896 = vmatprep.subr.mxu1 %v9375_v4  ;;  %v2756_v6 = vrot.slane %v2606_v12, 1 }
 0x858   :  { %2826 = vmatpush2.msra.mxu0 %v9376_v34  ;;  %2897 = vmatpush2.msra.mxu1 %v9377_v10 }
 0x859   :  { %2827 = vmatprep.subr.mxu0 %v9378_v44  ;;  %2898 = vmatprep.subr.mxu1 %v9379_v18 }
 0x85a   :  { %2828 = vmatpush2.msra.mxu0 %v9380_v21  ;;  %2899 = vmatpush2.msra.mxu1 %v9381_v22 }
 0x85b   :  { %2829 = vmatprep.subr.mxu0 %v9382_v0  ;;  %2900 = vmatprep.subr.mxu1 %v9383_v43 }
 0x85c   :  { %2830 = vmatpush2.msra.mxu0 %v9384_v36  ;;  %2901 = vmatpush2.msra.mxu1 %v9385_v45  ;;  %v2766_v36 = vrot.slane %v2606_v12, 2 }
 0x85d   :  { %2831 = vmatprep.subr.mxu0 %v9386_v33  ;;  %2902 = vmatprep.subr.mxu1 %v9387_v41 }
 0x85e   :  { %2832 = vmatpush2.msra.mxu0 %v9388_v3  ;;  %2903 = vmatpush2.msra.mxu1 %v9389_v39 }
 0x85f   :  { %2833 = vmatprep.subr.mxu0 %v9390_v40  ;;  %2904 = vmatprep.subr.mxu1 %v9391_v57 }
 0x860   :  { %2834 = vmatpush2.msra.mxu0 %v9392_v27  ;;  %2905 = vmatpush2.msra.mxu1 %v9393_v26  ;;  %v2947_v26 = vld [vmem:[%s7684_s7 + $0x70] sm:$0xff] }
 0x861   :  { %2835 = vmatprep.subr.mxu0 %v9394_v28  ;;  %2906 = vmatprep.subr.mxu1 %v9395_v19  ;;  %v2945_v28 = vld [vmem:[%s7684_s7 + $0x60] sm:$0xff]  ;;  %v2944_v19 = vld [vmem:[%s7684_s7 + $0x58] sm:$0xff] }
 0x862   :  { %2836 = vmatpush2.msra.mxu0 %v9396_v29  ;;  %2907 = vmatpush2.msra.mxu1 %v9397_v32  ;;  %v2943_v29 = vld [vmem:[%s7684_s7 + $0x50] sm:$0xff]  ;;  %v2942_v32 = vld [vmem:[%s7684_s7 + $0x48] sm:$0xff] }
 0x863   :  { %3511 = vmatprep.subr.mxu0 %v8397_v61 }
 0x8c1   :  { %v2509_v54 = vpop.f32.mrf.mxu0  ;;  %v2580_v13 = vpop.f32.mrf.mxu1 }
 0x8c2   :  { %v2510_v23 = vadd.f32 %v2509_v54, %v9398_v31  ;;  %v2581_v5 = vadd.f32 %v2580_v13, %v5212_v37  ;;  %v2941_v54 = vld [vmem:[%s7684_s7 + $0x40] sm:$0xff] }
 0x8c3   :  { %v2511_v25 = vpop.f32.mrf.mxu0  ;;  %v2582_v63 = vpop.f32.mrf.mxu1 }
 0x8c4   :  { %v3071_v38 = vmul.f32 -1.442695, %v2510_v23  ;;  %v2512_v50 = vadd.f32 %v2511_v25, %v9399_v47  ;;  %v2583_v53 = vadd.f32 %v2582_v63, %v9402_v20  ;;  %v2940_v23 = vld [vmem:[%s7684_s7 + $0x38] sm:$0xff]  ;;  %v2938_v25 = vld [vmem:[%s7684_s7 + $0x28] sm:$0xff] }
 0x8c6   :  { %3686 = vpow2.f32 %v3071_v38  ;;  %v3072_v52 = vmul.f32 -1.442695, %v2512_v50  ;;  %v2939_v38 = vld [vmem:[%s7684_s7 + $0x30] sm:$0xff]  ;;  %v2937_v50 = vld [vmem:[%s7684_s7 + $0x20] sm:$0xff] }
 0x8c8   :  { %3688 = vpow2.f32 %v3072_v52  ;;  %v2936_v52 = vld [vmem:[%s7684_s7 + $0x18] sm:$0xff] }
 0x8d3   :  { %v3687_v58 = vpop.eup %3686 }
 0x8d4   :  { %v2588_v8 = vadd.f32 1.0, %v3687_v58  ;;  %v2935_v58 = vld [vmem:[%s7684_s7 + $0x10] sm:$0xff] }
 0x8d5   :  { %v3689_v24 = vpop.eup %3688 }
 0x8d6   :  { %3690 = vrcp.f32 %v2588_v8  ;;  %v2594_v62 = vadd.f32 1.0, %v3689_v24  ;;  %v2934_v8 = vld [vmem:[%s7684_s7 + $0x8] sm:$0xff] }
 0x8e2   :  { %v2673_v48 = vpop.f32.mrf.mxu0  ;;  %v2744_v56 = vpop.f32.mrf.mxu1 }
 0x8e3   :  { %v3691_v60 = vpop.eup %3690  ;;  %v2674_v59 = vadd.f32 %v2673_v48, %v8540_v49 }
 0x8e4   :  { %v2597_v17 = vmul.f32 %v3691_v60, %v2583_v53  ;;  %v3510_v16 = vpop.f32.mrf.mxu1  ;;  %v2675_v35 = vpop.f32.mrf.mxu0 }
 0x8e5   :  { %v2748_v9 = vadd.f32 %v2674_v59, %v2606_v12  ;;  %v2676_v2 = vadd.f32 %v2675_v35, %v8541_v1  ;;  %v2745_v1 = vadd.f32 %v2744_v56, %v4987_v55  ;;  %v2948_v55 = vld [vmem:[%s7684_s7 + $0x78] sm:$0xff]  ;;  %v2949_v35 = vld [vmem:[#allocation2] sm:$0x1] }
 0x8e6   :  { %v2598_v11 = vadd.f32 %v2597_v17, %v2581_v5 }
 0x8e7   :  { %v3074_v51 = vmul.f32 -1.442695, %v2748_v9  ;;  %v2758_v4 = vadd.f32 %v2756_v6, %v2676_v2 }
 0x8e8   :  { %3692 = vtanh.f32 %v2598_v11 }
 0x8e9   :  { %3694 = vpow2.f32 %v3074_v51  ;;  %v3075_v34 = vmul.f32 -1.442695, %v2758_v4 }
 0x8ea   :  { %3696 = vrcp.f32 %v2594_v62 }
 0x8eb   :  { %3698 = vpow2.f32 %v3075_v34 }
 0x8f5   :  { %v3693_v10 = vpop.eup %3692 }
 0x8f6   :  { %v3695_v44 = vpop.eup %3694  ;;  %v2600_v49 = vsub.f32 %v7383_v15, %v3693_v10 }
 0x8f7   :  { %v3697_v18 = vpop.eup %3696  ;;  %v2752_v21 = vadd.f32 1.0, %v3695_v44 }
 0x8f8   :  { %v2601_v22 = vmul.f32 %v3697_v18, %v2600_v49  ;;  %v3699_v43 = vpop.eup %3698 }
 0x8f9   :  { %3700 = vrcp.f32 %v2752_v21  ;;  %v2762_v3 = vadd.f32 1.0, %v3699_v43 }
 0x8fa   :  { %v7598_v0 = vadd.f32 %v3693_v10, %v2601_v22 }
 0x8fc   :  { %2837 = vmatprep.mubr.f32.mxu0 %v7598_v0  ;;  %2908 = vmatprep.mubr.f32.mxu1 %v7598_v0 }
 0x906   :  { %v3701_v45 = vpop.eup %3700 }
 0x907   :  { %v2765_v33 = vmul.f32 %v3701_v45, %v2745_v1 }
 0x909   :  { %v2768_v41 = vadd.f32 %v2766_v36, %v2765_v33 }
 0x90b   :  { %3702 = vtanh.f32 %v2768_v41 }
 0x90c   :  { %3704 = vrcp.f32 %v2762_v3 }
 0x918   :  { %v3703_v15 = vpop.eup %3702 }
 0x919   :  { %v2770_v39 = vsub.f32 %v7389_v14, %v3703_v15  ;;  %v3705_v40 = vpop.eup %3704  ;;  %v2946_v14 = vld [vmem:[%s7684_s7 + $0x68] sm:$0xff]  ;;  %s4339_s7 = smov [#allocation10]  }
 0x91a   :  { %s3028_s28 = sshll.u32 %s4339_s7, 4  ;;  %s3029_s28 = int_to_ptr.vmem [resolvable:$true] %s3028_s28 }
 0x91b   :  { %v2771_v57 = vmul.f32 %v3705_v40, %v2770_v39  ;;  %s4302_s29 = scalar_lea.vmem %s3029_s28, 16  ;;  %s4306_s30 = scalar_lea.vmem %s3029_s28, 32 }
 0x91c   :  { %p4303_p1 = scmp.ne.s32.totalorder %s3029_s28, %s4302_s29  ;;  %p4307_p2 = scmp.lt.s32.totalorder %s3029_s28, %s3029_s28 }
 0x91d   :  { %v2772_v27 = vadd.f32 %v3703_v15, %v2771_v57  ;;  %p4308_p3 = scmp.lt.s32.totalorder %s4306_s30, %s4302_s29 }
 0x91f   :  { %2838 = vmatmul.mubr.f32.vlgmr.msra.gmra.mxu0 %v2772_v27  ;;  %2909 = vmatmul.mubr.f32.vlgmr.msra.gmra.mxu1 %v2772_v27  ;;  %p4309_p4 = por %p4308_p3, %p4307_p2 }
 0x920   :  { %3543 = vmatprep.mubr.msk.f32.mxu0 %vm4338_vm0, %v8397_v61  ;;  %3512 = vmatpush3.msra.mxu0 %v2948_v55 }
 0x921   :  { %3513 = vmatprep.subr.mxu0 %v8397_v61  ;;  %p4310_p5 = pnand %p4309_p4, %p4303_p1 }
 0x922   :  { %3514 = vmatpush3.msra.mxu0 %v2947_v26 }
 0x923   :  { %3515 = vmatprep.subr.mxu0 %v8397_v61 }
 0x924   :  { %3516 = vmatpush3.msra.mxu0 %v2946_v14 }
 0x925   :  { %3517 = vmatprep.subr.mxu0 %v8397_v61 }
 0x926   :  { %3518 = vmatpush3.msra.mxu0 %v2945_v28 }
 0x927   :  { %3519 = vmatprep.subr.mxu0 %v8397_v61 }
 0x928   :  { %3520 = vmatpush3.msra.mxu0 %v2944_v19 }
 0x929   :  { %3521 = vmatprep.subr.mxu0 %v8397_v61 }
 0x92a   :  { %3522 = vmatpush3.msra.mxu0 %v2943_v29 }
 0x92b   :  { %3523 = vmatprep.subr.mxu0 %v8397_v61 }
 0x92c   :  { %3524 = vmatpush3.msra.mxu0 %v2942_v32 }
 0x92d   :  { %3525 = vmatprep.subr.mxu0 %v8397_v61 }
 0x92e   :  { %3526 = vmatpush3.msra.mxu0 %v2941_v54 }
 0x92f   :  { %3527 = vmatprep.subr.mxu0 %v8397_v61 }
 0x930   :  { %3528 = vmatpush3.msra.mxu0 %v2940_v23 }
 0x931   :  { %3529 = vmatprep.subr.mxu0 %v8397_v61 }
 0x932   :  { %3530 = vmatpush3.msra.mxu0 %v2939_v38 }
 0x933   :  { %3531 = vmatprep.subr.mxu0 %v8397_v61 }
 0x934   :  { %3532 = vmatpush3.msra.mxu0 %v2938_v25 }
 0x935   :  { %3533 = vmatprep.subr.mxu0 %v8397_v61 }
 0x936   :  { %3534 = vmatpush3.msra.mxu0 %v2937_v50 }
 0x937   :  { %3535 = vmatprep.subr.mxu0 %v8397_v61 }
 0x938   :  { %3536 = vmatpush3.msra.mxu0 %v2936_v52 }
 0x939   :  { %3537 = vmatprep.subr.mxu0 %v8397_v61 }
 0x93a   :  { %3538 = vmatpush3.msra.mxu0 %v2935_v58 }
 0x93b   :  { %3539 = vmatprep.subr.mxu0 %v8397_v61 }
 0x93c   :  { %3540 = vmatpush3.msra.mxu0 %v2934_v8 }
 0x93d   :  { %3541 = vmatprep.subr.mxu0 %v8397_v61 }
 0x93e   :  { %3542 = vmatpush3.msra.mxu0 %v2933_v46 }
 0x9df   :  { %v2839_v13 = vpop.f32.mrf.mxu0  ;;  %v2910_v48 = vpop.f32.mrf.mxu1 }
 0x9e0   :  { %v2840_v42 = vadd.f32 %v2839_v13, %v9398_v31  ;;  %v2911_v5 = vadd.f32 %v2910_v48, %v5212_v37 }
 0x9e1   :  { %v2841_v63 = vpop.f32.mrf.mxu0  ;;  %v2912_v56 = vpop.f32.mrf.mxu1 }
 0x9e2   :  { %v3076_v7 = vmul.f32 -1.442695, %v2840_v42  ;;  %v2842_v30 = vadd.f32 %v2841_v63, %v9399_v47  ;;  %v2913_v59 = vadd.f32 %v2912_v56, %v9402_v20 }
 0x9e4   :  { %3706 = vpow2.f32 %v3076_v7  ;;  %v3077_v12 = vmul.f32 -1.442695, %v2842_v30 }
 0x9e6   :  { %3708 = vpow2.f32 %v3077_v12 }
 0x9f1   :  { %v3707_v24 = vpop.eup %3706 }
 0x9f2   :  { %v2918_v53 = vadd.f32 1.0, %v3707_v24 }
 0x9f3   :  { %v3709_v60 = vpop.eup %3708 }
 0x9f4   :  { %3710 = vrcp.f32 %v2918_v53  ;;  %v2924_v31 = vadd.f32 1.0, %v3709_v60 }
 0xa01   :  { %v3711_v61 = vpop.eup %3710 }
 0xa02   :  { %v2927_v17 = vmul.f32 %v3711_v61, %v2913_v59 }
 0xa04   :  { %v2928_v16 = vadd.f32 %v2927_v17, %v2911_v5 }
 0xa06   :  { %3712 = vtanh.f32 %v2928_v16 }
 0xa07   :  { %3714 = vrcp.f32 %v2924_v31 }
 0xa13   :  { %v3713_v9 = vpop.eup %3712 }
 0xa14   :  { %v2930_v47 = vsub.f32 %v7598_v0, %v3713_v9  ;;  %v3715_v62 = vpop.eup %3714 }
 0xa16   :  { %v2931_v11 = vmul.f32 %v3715_v62, %v2930_v47 }
 0xa18   :  { %v2932_v51 = vadd.f32 %v3713_v9, %v2931_v11 }
 0xa1a   :  { %3544 = vmatmul.mubr.f32.vlgmr.msra.gmra.mxu0 %v2932_v51 }
 0xada   :  { %v3016_v2 = vpop.f32.mrf.mxu0 }
 0xadb   :  { %v3017_v20 = vadd.f32 %v3016_v2, %v2949_v35 }
 0xadc   :  { %v3545_v37 = vpop.f32.mrf.mxu0 }
 0xadd   :  { %3021 = vst.msk [vmem:[#allocation10] sm:$0x1] %vm3020_vm1, %v3017_v20 }
 0xade   :  { %4313 = shalt.err (!%p4310_p5)
}
 0xadf   :  { %3031 = dma.vmem_to_hbm [thread:$0]  %s3029_s28, 16, %s7686_s9, [#allocation5]  }
 0xae0   :  { %4328 = dma.done.wait [#allocation5], 16  }
 0xae1   :  { %4329 = vsyncadd [#allocation5], 4294967280 }
 0xae2   :  { %3035 = vsyncpa [#allocation4], 1 }
 0xae3   :  { %3036 = vsyncpa [#allocation9], 1 }
 0xae4   :  { %3037 = vsyncpa [#allocation5], 1 }
 0xae5   :  { %3038 = vsyncpa [#allocation6], 1 }

</bundles_post_ra>
